<compile_context>
chip_gen: v7x
topology: tpu7x:2x2x1
jax: 0.10.0
libtpu: 0.0.40
codegen_flags: <defaults>
</compile_context>

<pallas_src>
import math

import jax
import jax.numpy as jnp
import numpy as np
from jax.experimental import pallas as pl
from jax.experimental.pallas import tpu as pltpu

C1 = 0.01 ** 2
C2 = 0.03 ** 2

_SMALL_IMAGE_DIM = 128     # below this, an MXU tile is mostly padding
_MXU_PLANE_CAP = 8         # per-plane H-pass loop is unrolled -> keep modest
_TAP_PLANE_CAP = 256


def _gaussian_1d(window_size: int, sigma: float = 1.5) -> np.ndarray:
    # Deterministic re-implementation of gaussian(window_size, 1.5).
    g = np.array(
        [math.exp(-((x - window_size // 2) ** 2) / (2.0 * sigma ** 2))
         for x in range(window_size)],
        dtype=np.float64,
    )
    return (g / g.sum()).astype(np.float32)


def _band_matrix(n: int, g: np.ndarray) -> np.ndarray:
    """Banded (Toeplitz) matrix B with (x @ B)[j] = sum_k x[j+k-pad] * g[k]
    (zero padding).  B is symmetric because g is."""
    ws = len(g)
    pad = ws // 2
    m = np.zeros((n, n), dtype=np.float32)
    for j in range(n):
        for k in range(ws):
            v = j + k - pad
            if 0 <= v < n:
                m[v, j] = g[k]
    return m


def _ssim_tail(mu1, mu2, e11, e22, e12):
    """Elementwise SSIM map from the five convolution results."""
    mu1_sq = mu1 * mu1
    mu2_sq = mu2 * mu2
    mu1_mu2 = mu1 * mu2
    sigma1_sq = e11 - mu1_sq
    sigma2_sq = e22 - mu2_sq
    sigma12 = e12 - mu1_mu2

    num = (2.0 * mu1_mu2 + C1) * (2.0 * sigma12 + C2)
    den = (mu1_sq + mu2_sq + C1) * (sigma1_sq + sigma2_sq + C2)
    inv = pl.reciprocal(den, approx=True)   # EUP slot
    inv = inv * (2.0 - den * inv)           # one Newton step -> ~f32 accuracy
    return num * inv


# --------------------------------------------------------------------------
# Large-plane path: separable Gaussian conv as two fused MXU matmul passes.
# --------------------------------------------------------------------------
def _make_mxu_kernel(P: int, H: int, W: int):
    def kernel(x1_ref, x2_ref, ah_ref, bw_ref, out_ref):
        a = x1_ref[...]                     # (P, H, W) f32
        b = x2_ref[...]
        ah = ah_ref[...]                    # (H, H) banded Gaussian (H pass)
        bw = bw_ref[...]                    # (W, W) banded Gaussian (W pass)

        # W-direction pass: ONE matmul over all 5 components of all P planes.
        comps = (a, b, a * a, b * b, a * b)
        s = jnp.concatenate([c.reshape(P * H, W) for c in comps], axis=0)
        t = jnp.dot(s, bw, preferred_element_type=jnp.float32)   # (5*P*H, W)

        # H-direction pass: Ah stays resident; plain 2-D matmuls per
        # (component, plane) slab — no broadcast copy of Ah.
        def hpass(c):
            rows = [
                jnp.dot(ah, t[(c * P + p) * H:(c * P + p + 1) * H, :],
                        preferred_element_type=jnp.float32)
                for p in range(P)
            ]
            return jnp.concatenate(rows, axis=0).reshape(P, H, W)

        mu1, mu2 = hpass(0), hpass(1)
        e11, e22, e12 = hpass(2), hpass(3), hpass(4)

        ssim_map = _ssim_tail(mu1, mu2, e11, e22, e12)            # (P, H, W)
        psum = jnp.sum(jnp.sum(ssim_map, axis=-1), axis=-1)       # (P,)
        out_ref[...] = psum.reshape(1, 1, P)

    return kernel


# --------------------------------------------------------------------------
# Small-plane path: 11-tap separable shift-and-accumulate on the VPU/XLU.
# --------------------------------------------------------------------------
def _make_tap_kernel(P: int, H: int, W: int, taps):
    ws = len(taps)
    pad = ws // 2

    def kernel(x1_ref, x2_ref, out_ref, padw_ref, padh_ref):
        a = x1_ref[...]                     # (P, H, W)
        b = x2_ref[...]
        s = jnp.concatenate([a, b, a * a, b * b, a * b], axis=0)  # (5P, H, W)

        # W-direction: zero-padded lane-shift taps.
        padw_ref[...] = jnp.zeros_like(padw_ref)
        padw_ref[:, :, pad:pad + W] = s
        t = taps[0] * padw_ref[:, :, 0:W]
        for k in range(1, ws):
            t = t + taps[k] * padw_ref[:, :, k:k + W]

        # H-direction: zero-padded sublane-shift taps.
        padh_ref[...] = jnp.zeros_like(padh_ref)
        padh_ref[:, pad:pad + H, :] = t
        z = taps[0] * padh_ref[:, 0:H, :]
        for k in range(1, ws):
            z = z + taps[k] * padh_ref[:, k:k + H, :]

        mu1, mu2 = z[0:P], z[P:2 * P]
        e11, e22, e12 = z[2 * P:3 * P], z[3 * P:4 * P], z[4 * P:5 * P]

        ssim_map = _ssim_tail(mu1, mu2, e11, e22, e12)            # (P, H, W)
        psum = jnp.sum(jnp.sum(ssim_map, axis=-1), axis=-1)       # (P,)
        out_ref[...] = psum.reshape(1, 1, P)

    return kernel


# --------------------------------------------------------------------------
# Wrapper: VMEM-aware plane blocking + path dispatch.
# --------------------------------------------------------------------------
def _vmem_budget_bytes() -> int:
    phys = 64 << 20                          # conservative default (v7x/core)
    try:
        cap = getattr(pltpu.get_tpu_info(), "vmem_capacity_bytes", None)
        if cap:
            phys = int(cap)
    except Exception:
        pass
    return int(max(32 << 20, min(0.70 * phys, 100 << 20)))


def _largest_divisor_le(n: int, cap: int) -> int:
    cap = max(1, min(cap, n))
    for d in range(cap, 0, -1):
        if n % d == 0:
            return d
    return 1


def _pick_plane_block(nc, h, w, budget, per_pixel_bytes, fixed_bytes, hard_cap):
    avail = budget - fixed_bytes - (2 << 20)          # 2 MiB slack
    p_fit = max(1, avail // (per_pixel_bytes * h * w))
    cap = hard_cap
    if nc >= 2:
        cap = min(cap, nc // 2)   # >= 2 grid steps so both v7x TCs get work
    cap = min(cap, p_fit)
    return _largest_divisor_le(nc, int(cap))


def ssim_pallas(img1, img2, *, window_size: int = 11, size_average: bool = True):
    """SSIM.forward(img1, img2) — img1/img2 are NCHW."""
    N, C, H, W = img1.shape
    NC = N * C

    x1 = img1.reshape(NC, H, W).astype(jnp.float32)
    x2 = img2.reshape(NC, H, W).astype(jnp.float32)

    g1d = _gaussian_1d(window_size)
    budget = _vmem_budget_bytes()

    use_taps = (max(H, W) < _SMALL_IMAGE_DIM) or (H % 8 != 0)

    if use_taps:
        pad = window_size // 2
        P = _pick_plane_block(NC, H, W, budget, per_pixel_bytes=200,
                              fixed_bytes=0, hard_cap=_TAP_PLANE_CAP)
        G = NC // P
        kernel = _make_tap_kernel(P, H, W, [float(v) for v in g1d])
        cost = pl.CostEstimate(
            flops=NC * H * W * (5 * 4 * window_size + 32),
            transcendentals=NC * H * W,
            bytes_accessed=4 * (2 * NC * H * W + NC))
        plane_sums = pl.pallas_call(
            kernel,
            out_shape=jax.ShapeDtypeStruct((G, 1, P), jnp.float32),
            grid=(G,),
            in_specs=[
                pl.BlockSpec((P, H, W), lambda i: (i, 0, 0)),
                pl.BlockSpec((P, H, W), lambda i: (i, 0, 0)),
            ],
            out_specs=pl.BlockSpec((1, 1, P), lambda i: (i, 0, 0)),
            scratch_shapes=[
                pltpu.VMEM((5 * P, H, W + 2 * pad), jnp.float32),
                pltpu.VMEM((5 * P, H + 2 * pad, W), jnp.float32),
            ],
            compiler_params=pltpu.CompilerParams(
                dimension_semantics=("parallel",),
                vmem_limit_bytes=budget),
            cost_estimate=cost,
        )(x1, x2)
    else:
        ah = jnp.asarray(_band_matrix(H, g1d))        # (H, H)
        bw = jnp.asarray(_band_matrix(W, g1d))        # (W, W)
        fixed = 8 * (H * H + W * W)                   # Ah/Bw, double-buffered
        P = _pick_plane_block(NC, H, W, budget, per_pixel_bytes=112,
                              fixed_bytes=fixed, hard_cap=_MXU_PLANE_CAP)
        G = NC // P
        kernel = _make_mxu_kernel(P, H, W)
        cost = pl.CostEstimate(
            flops=NC * (2 * 5 * H * W * (H + W) + 32 * H * W),
            transcendentals=NC * H * W,
            bytes_accessed=4 * (2 * NC * H * W + H * H + W * W + NC))
        plane_sums = pl.pallas_call(
            kernel,
            out_shape=jax.ShapeDtypeStruct((G, 1, P), jnp.float32),
            grid=(G,),
            in_specs=[
                pl.BlockSpec((P, H, W), lambda i: (i, 0, 0)),
                pl.BlockSpec((P, H, W), lambda i: (i, 0, 0)),
                pl.BlockSpec((H, H), lambda i: (0, 0)),
                pl.BlockSpec((W, W), lambda i: (0, 0)),
            ],
            out_specs=pl.BlockSpec((1, 1, P), lambda i: (i, 0, 0)),
            compiler_params=pltpu.CompilerParams(
                dimension_semantics=("parallel",),
                vmem_limit_bytes=budget),
            cost_estimate=cost,
        )(x1, x2, ah, bw)

    plane_sums = plane_sums.reshape(NC)
    if size_average:
        return jnp.sum(plane_sums) / float(NC * H * W)
    return jnp.sum(plane_sums.reshape(N, C), axis=1) / float(C * H * W)


# --------------------------------------------------------------------------
# Pure-JAX reference (mirrors the PyTorch _ssim) for validation.
# --------------------------------------------------------------------------
def _ssim_reference(img1, img2, *, window_size: int = 11, size_average: bool = True):
    N, C, H, W = img1.shape
    pad = window_size // 2
    g = jnp.asarray(_gaussian_1d(window_size))
    w2d = jnp.outer(g, g)

    def conv(x):
        xp = jnp.pad(x, ((0, 0), (0, 0), (pad, pad), (pad, pad)))
        out = jnp.zeros_like(x)
        for di in range(window_size):
            for dj in range(window_size):
                out = out + w2d[di, dj] * xp[:, :, di:di + H, dj:dj + W]
        return out

    mu1 = conv(img1)
    mu2 = conv(img2)
    mu1_sq, mu2_sq, mu1_mu2 = mu1 * mu1, mu2 * mu2, mu1 * mu2
    sigma1_sq = conv(img1 * img1) - mu1_sq
    sigma2_sq = conv(img2 * img2) - mu2_sq
    sigma12 = conv(img1 * img2) - mu1_mu2
    ssim_map = ((2 * mu1_mu2 + C1) * (2 * sigma12 + C2)) / (
        (mu1_sq + mu2_sq + C1) * (sigma1_sq + sigma2_sq + C2))
    if size_average:
        return ssim_map.mean()
    return ssim_map.mean(axis=(1, 2, 3))


if __name__ == "__main__":
    key = jax.random.PRNGKey(0)
    k1, k2, k3, k4 = jax.random.split(key, 4)

    # Small NCHW images (exercises the VPU tap path, the module's test shape).
    img1 = jax.random.uniform(k1, (2, 4, 16, 16), dtype=jnp.float32)
    img2 = jax.random.uniform(k2, (2, 4, 16, 16), dtype=jnp.float32)

    out = jax.block_until_ready(ssim_pallas(img1, img2, window_size=11))
    ref = _ssim_reference(img1, img2, window_size=11)
    assert jnp.allclose(out, ref, rtol=5e-4, atol=5e-5), (out, ref)

    out_b = jax.block_until_ready(
        ssim_pallas(img1, img2, window_size=11, size_average=False))
    ref_b = _ssim_reference(img1, img2, window_size=11, size_average=False)
    assert jnp.allclose(out_b, ref_b, rtol=5e-4, atol=5e-5), (out_b, ref_b)

    # Larger planes (exercises the fused-MXU band-matmul path).
    big1 = jax.random.uniform(k3, (1, 2, 128, 128), dtype=jnp.float32)
    big2 = jax.random.uniform(k4, (1, 2, 128, 128), dtype=jnp.float32)
    out2 = jax.block_until_ready(ssim_pallas(big1, big2, window_size=11))
    ref2 = _ssim_reference(big1, big2, window_size=11)
    assert jnp.allclose(out2, ref2, rtol=5e-4, atol=5e-5), (out2, ref2)

    print("KERNEL_OK")
</pallas_src>

<mosaic_0001>
module attributes {stable_mosaic.version = 11 : i64} {
  func.func @kernel(%arg0: i32, %arg1: memref<4x16x16xf32, #tpu.memory_space<vmem>>, %arg2: memref<4x16x16xf32, #tpu.memory_space<vmem>>, %arg3: memref<1x1x4xf32, #tpu.memory_space<vmem>>, %arg4: memref<20x16x26xf32, #tpu.memory_space<vmem>>, %arg5: memref<20x26x16xf32, #tpu.memory_space<vmem>>) attributes {dimension_semantics = [#tpu.dimension_semantics<parallel>], iteration_bounds = array<i64: 2>, scalar_prefetch = 0 : i64, scratch_operands = 2 : i64, tpu.core_type = #tpu.core_type<tc>, window_params = [{transform_indices = @transform_0, window_bounds = array<i64: 4, 16, 16>}, {transform_indices = @transform_1, window_bounds = array<i64: 4, 16, 16>}, {transform_indices = @transform_2, window_bounds = array<i64: 1, 1, 4>}]} {
    %c0 = arith.constant 0 : index
    %c0_0 = arith.constant 0 : index
    %c0_1 = arith.constant 0 : index
    %0 = vector.load %arg1[%c0, %c0_0, %c0_1] : memref<4x16x16xf32, #tpu.memory_space<vmem>>, vector<4x16x16xf32>
    %c0_2 = arith.constant 0 : index
    %c0_3 = arith.constant 0 : index
    %c0_4 = arith.constant 0 : index
    %1 = vector.load %arg2[%c0_2, %c0_3, %c0_4] : memref<4x16x16xf32, #tpu.memory_space<vmem>>, vector<4x16x16xf32>
    %2 = arith.mulf %0, %0 : vector<4x16x16xf32>
    %3 = arith.mulf %1, %1 : vector<4x16x16xf32>
    %4 = arith.mulf %0, %1 : vector<4x16x16xf32>
    %5 = tpu.concatenate %0, %1, %2, %3, %4 in 0 : vector<4x16x16xf32>, vector<4x16x16xf32>, vector<4x16x16xf32>, vector<4x16x16xf32>, vector<4x16x16xf32> -> vector<20x16x16xf32>
    %cst = arith.constant 0.000000e+00 : f32
    %6 = vector.broadcast %cst : f32 to vector<20x16x26xf32>
    %c0_5 = arith.constant 0 : index
    %c0_6 = arith.constant 0 : index
    %c0_7 = arith.constant 0 : index
    %7 = vector.load %arg4[%c0_5, %c0_6, %c0_7] : memref<20x16x26xf32, #tpu.memory_space<vmem>>, vector<20x16x26xf32>
    tpu.vector_store %arg4[%c0_5, %c0_6, %c0_7], %6 {strides = array<i32>} : memref<20x16x26xf32, #tpu.memory_space<vmem>>, vector<20x16x26xf32>,
    %c0_8 = arith.constant 0 : index
    %c0_9 = arith.constant 0 : index
    %c5 = arith.constant 5 : index
    %8 = vector.load %arg4[%c0_8, %c0_9, %c5] : memref<20x16x26xf32, #tpu.memory_space<vmem>>, vector<20x16x16xf32>
    tpu.vector_store %arg4[%c0_8, %c0_9, %c5], %5 {strides = array<i32>} : memref<20x16x26xf32, #tpu.memory_space<vmem>>, vector<20x16x16xf32>,
    %c0_10 = arith.constant 0 : index
    %c0_11 = arith.constant 0 : index
    %c0_12 = arith.constant 0 : index
    %9 = vector.load %arg4[%c0_10, %c0_11, %c0_12] : memref<20x16x26xf32, #tpu.memory_space<vmem>>, vector<20x16x16xf32>
    %cst_13 = arith.constant 0.00102838012 : f32
    %10 = vector.broadcast %cst_13 : f32 to vector<20x16x16xf32>
    %11 = arith.mulf %10, %9 : vector<20x16x16xf32>
    %c0_14 = arith.constant 0 : index
    %c0_15 = arith.constant 0 : index
    %c1 = arith.constant 1 : index
    %12 = vector.load %arg4[%c0_14, %c0_15, %c1] : memref<20x16x26xf32, #tpu.memory_space<vmem>>, vector<20x16x16xf32>
    %cst_16 = arith.constant 0.00759875821 : f32
    %13 = vector.broadcast %cst_16 : f32 to vector<20x16x16xf32>
    %14 = arith.mulf %13, %12 : vector<20x16x16xf32>
    %15 = arith.addf %11, %14 : vector<20x16x16xf32>
    %c0_17 = arith.constant 0 : index
    %c0_18 = arith.constant 0 : index
    %c2 = arith.constant 2 : index
    %16 = vector.load %arg4[%c0_17, %c0_18, %c2] : memref<20x16x26xf32, #tpu.memory_space<vmem>>, vector<20x16x16xf32>
    %cst_19 = arith.constant 0.0360007733 : f32
    %17 = vector.broadcast %cst_19 : f32 to vector<20x16x16xf32>
    %18 = arith.mulf %17, %16 : vector<20x16x16xf32>
    %19 = arith.addf %15, %18 : vector<20x16x16xf32>
    %c0_20 = arith.constant 0 : index
    %c0_21 = arith.constant 0 : index
    %c3 = arith.constant 3 : index
    %20 = vector.load %arg4[%c0_20, %c0_21, %c3] : memref<20x16x26xf32, #tpu.memory_space<vmem>>, vector<20x16x16xf32>
    %cst_22 = arith.constant 0.109360687 : f32
    %21 = vector.broadcast %cst_22 : f32 to vector<20x16x16xf32>
    %22 = arith.mulf %21, %20 : vector<20x16x16xf32>
    %23 = arith.addf %19, %22 : vector<20x16x16xf32>
    %c0_23 = arith.constant 0 : index
    %c0_24 = arith.constant 0 : index
    %c4 = arith.constant 4 : index
    %24 = vector.load %arg4[%c0_23, %c0_24, %c4] : memref<20x16x26xf32, #tpu.memory_space<vmem>>, vector<20x16x16xf32>
    %cst_25 = arith.constant 0.213005543 : f32
    %25 = vector.broadcast %cst_25 : f32 to vector<20x16x16xf32>
    %26 = arith.mulf %25, %24 : vector<20x16x16xf32>
    %27 = arith.addf %23, %26 : vector<20x16x16xf32>
    %c0_26 = arith.constant 0 : index
    %c0_27 = arith.constant 0 : index
    %c5_28 = arith.constant 5 : index
    %28 = vector.load %arg4[%c0_26, %c0_27, %c5_28] : memref<20x16x26xf32, #tpu.memory_space<vmem>>, vector<20x16x16xf32>
    %cst_29 = arith.constant 0.266011715 : f32
    %29 = vector.broadcast %cst_29 : f32 to vector<20x16x16xf32>
    %30 = arith.mulf %29, %28 : vector<20x16x16xf32>
    %31 = arith.addf %27, %30 : vector<20x16x16xf32>
    %c0_30 = arith.constant 0 : index
    %c0_31 = arith.constant 0 : index
    %c6 = arith.constant 6 : index
    %32 = vector.load %arg4[%c0_30, %c0_31, %c6] : memref<20x16x26xf32, #tpu.memory_space<vmem>>, vector<20x16x16xf32>
    %cst_32 = arith.constant 0.213005543 : f32
    %33 = vector.broadcast %cst_32 : f32 to vector<20x16x16xf32>
    %34 = arith.mulf %33, %32 : vector<20x16x16xf32>
    %35 = arith.addf %31, %34 : vector<20x16x16xf32>
    %c0_33 = arith.constant 0 : index
    %c0_34 = arith.constant 0 : index
    %c7 = arith.constant 7 : index
    %36 = vector.load %arg4[%c0_33, %c0_34, %c7] : memref<20x16x26xf32, #tpu.memory_space<vmem>>, vector<20x16x16xf32>
    %cst_35 = arith.constant 0.109360687 : f32
    %37 = vector.broadcast %cst_35 : f32 to vector<20x16x16xf32>
    %38 = arith.mulf %37, %36 : vector<20x16x16xf32>
    %39 = arith.addf %35, %38 : vector<20x16x16xf32>
    %c0_36 = arith.constant 0 : index
    %c0_37 = arith.constant 0 : index
    %c8 = arith.constant 8 : index
    %40 = vector.load %arg4[%c0_36, %c0_37, %c8] : memref<20x16x26xf32, #tpu.memory_space<vmem>>, vector<20x16x16xf32>
    %cst_38 = arith.constant 0.0360007733 : f32
    %41 = vector.broadcast %cst_38 : f32 to vector<20x16x16xf32>
    %42 = arith.mulf %41, %40 : vector<20x16x16xf32>
    %43 = arith.addf %39, %42 : vector<20x16x16xf32>
    %c0_39 = arith.constant 0 : index
    %c0_40 = arith.constant 0 : index
    %c9 = arith.constant 9 : index
    %44 = vector.load %arg4[%c0_39, %c0_40, %c9] : memref<20x16x26xf32, #tpu.memory_space<vmem>>, vector<20x16x16xf32>
    %cst_41 = arith.constant 0.00759875821 : f32
    %45 = vector.broadcast %cst_41 : f32 to vector<20x16x16xf32>
    %46 = arith.mulf %45, %44 : vector<20x16x16xf32>
    %47 = arith.addf %43, %46 : vector<20x16x16xf32>
    %c0_42 = arith.constant 0 : index
    %c0_43 = arith.constant 0 : index
    %c10 = arith.constant 10 : index
    %48 = vector.load %arg4[%c0_42, %c0_43, %c10] : memref<20x16x26xf32, #tpu.memory_space<vmem>>, vector<20x16x16xf32>
    %cst_44 = arith.constant 0.00102838012 : f32
    %49 = vector.broadcast %cst_44 : f32 to vector<20x16x16xf32>
    %50 = arith.mulf %49, %48 : vector<20x16x16xf32>
    %51 = arith.addf %47, %50 : vector<20x16x16xf32>
    %cst_45 = arith.constant 0.000000e+00 : f32
    %52 = vector.broadcast %cst_45 : f32 to vector<20x26x16xf32>
    %c0_46 = arith.constant 0 : index
    %c0_47 = arith.constant 0 : index
    %c0_48 = arith.constant 0 : index
    %53 = vector.load %arg5[%c0_46, %c0_47, %c0_48] : memref<20x26x16xf32, #tpu.memory_space<vmem>>, vector<20x26x16xf32>
    tpu.vector_store %arg5[%c0_46, %c0_47, %c0_48], %52 {strides = array<i32>} : memref<20x26x16xf32, #tpu.memory_space<vmem>>, vector<20x26x16xf32>,
    %c0_49 = arith.constant 0 : index
    %c5_50 = arith.constant 5 : index
    %c0_51 = arith.constant 0 : index
    %54 = vector.load %arg5[%c0_49, %c5_50, %c0_51] : memref<20x26x16xf32, #tpu.memory_space<vmem>>, vector<20x16x16xf32>
    tpu.vector_store %arg5[%c0_49, %c5_50, %c0_51], %51 {strides = array<i32>} : memref<20x26x16xf32, #tpu.memory_space<vmem>>, vector<20x16x16xf32>,
    %c0_52 = arith.constant 0 : index
    %c0_53 = arith.constant 0 : index
    %c0_54 = arith.constant 0 : index
    %55 = vector.load %arg5[%c0_52, %c0_53, %c0_54] : memref<20x26x16xf32, #tpu.memory_space<vmem>>, vector<20x16x16xf32>
    %cst_55 = arith.constant 0.00102838012 : f32
    %56 = vector.broadcast %cst_55 : f32 to vector<20x16x16xf32>
    %57 = arith.mulf %56, %55 : vector<20x16x16xf32>
    %c0_56 = arith.constant 0 : index
    %c1_57 = arith.constant 1 : index
    %c0_58 = arith.constant 0 : index
    %58 = vector.load %arg5[%c0_56, %c1_57, %c0_58] : memref<20x26x16xf32, #tpu.memory_space<vmem>>, vector<20x16x16xf32>
    %cst_59 = arith.constant 0.00759875821 : f32
    %59 = vector.broadcast %cst_59 : f32 to vector<20x16x16xf32>
    %60 = arith.mulf %59, %58 : vector<20x16x16xf32>
    %61 = arith.addf %57, %60 : vector<20x16x16xf32>
    %c0_60 = arith.constant 0 : index
    %c2_61 = arith.constant 2 : index
    %c0_62 = arith.constant 0 : index
    %62 = vector.load %arg5[%c0_60, %c2_61, %c0_62] : memref<20x26x16xf32, #tpu.memory_space<vmem>>, vector<20x16x16xf32>
    %cst_63 = arith.constant 0.0360007733 : f32
    %63 = vector.broadcast %cst_63 : f32 to vector<20x16x16xf32>
    %64 = arith.mulf %63, %62 : vector<20x16x16xf32>
    %65 = arith.addf %61, %64 : vector<20x16x16xf32>
    %c0_64 = arith.constant 0 : index
    %c3_65 = arith.constant 3 : index
    %c0_66 = arith.constant 0 : index
    %66 = vector.load %arg5[%c0_64, %c3_65, %c0_66] : memref<20x26x16xf32, #tpu.memory_space<vmem>>, vector<20x16x16xf32>
    %cst_67 = arith.constant 0.109360687 : f32
    %67 = vector.broadcast %cst_67 : f32 to vector<20x16x16xf32>
    %68 = arith.mulf %67, %66 : vector<20x16x16xf32>
    %69 = arith.addf %65, %68 : vector<20x16x16xf32>
    %c0_68 = arith.constant 0 : index
    %c4_69 = arith.constant 4 : index
    %c0_70 = arith.constant 0 : index
    %70 = vector.load %arg5[%c0_68, %c4_69, %c0_70] : memref<20x26x16xf32, #tpu.memory_space<vmem>>, vector<20x16x16xf32>
    %cst_71 = arith.constant 0.213005543 : f32
    %71 = vector.broadcast %cst_71 : f32 to vector<20x16x16xf32>
    %72 = arith.mulf %71, %70 : vector<20x16x16xf32>
    %73 = arith.addf %69, %72 : vector<20x16x16xf32>
    %c0_72 = arith.constant 0 : index
    %c5_73 = arith.constant 5 : index
    %c0_74 = arith.constant 0 : index
    %74 = vector.load %arg5[%c0_72, %c5_73, %c0_74] : memref<20x26x16xf32, #tpu.memory_space<vmem>>, vector<20x16x16xf32>
    %cst_75 = arith.constant 0.266011715 : f32
    %75 = vector.broadcast %cst_75 : f32 to vector<20x16x16xf32>
    %76 = arith.mulf %75, %74 : vector<20x16x16xf32>
    %77 = arith.addf %73, %76 : vector<20x16x16xf32>
    %c0_76 = arith.constant 0 : index
    %c6_77 = arith.constant 6 : index
    %c0_78 = arith.constant 0 : index
    %78 = vector.load %arg5[%c0_76, %c6_77, %c0_78] : memref<20x26x16xf32, #tpu.memory_space<vmem>>, vector<20x16x16xf32>
    %cst_79 = arith.constant 0.213005543 : f32
    %79 = vector.broadcast %cst_79 : f32 to vector<20x16x16xf32>
    %80 = arith.mulf %79, %78 : vector<20x16x16xf32>
    %81 = arith.addf %77, %80 : vector<20x16x16xf32>
    %c0_80 = arith.constant 0 : index
    %c7_81 = arith.constant 7 : index
    %c0_82 = arith.constant 0 : index
    %82 = vector.load %arg5[%c0_80, %c7_81, %c0_82] : memref<20x26x16xf32, #tpu.memory_space<vmem>>, vector<20x16x16xf32>
    %cst_83 = arith.constant 0.109360687 : f32
    %83 = vector.broadcast %cst_83 : f32 to vector<20x16x16xf32>
    %84 = arith.mulf %83, %82 : vector<20x16x16xf32>
    %85 = arith.addf %81, %84 : vector<20x16x16xf32>
    %c0_84 = arith.constant 0 : index
    %c8_85 = arith.constant 8 : index
    %c0_86 = arith.constant 0 : index
    %86 = vector.load %arg5[%c0_84, %c8_85, %c0_86] : memref<20x26x16xf32, #tpu.memory_space<vmem>>, vector<20x16x16xf32>
    %cst_87 = arith.constant 0.0360007733 : f32
    %87 = vector.broadcast %cst_87 : f32 to vector<20x16x16xf32>
    %88 = arith.mulf %87, %86 : vector<20x16x16xf32>
    %89 = arith.addf %85, %88 : vector<20x16x16xf32>
    %c0_88 = arith.constant 0 : index
    %c9_89 = arith.constant 9 : index
    %c0_90 = arith.constant 0 : index
    %90 = vector.load %arg5[%c0_88, %c9_89, %c0_90] : memref<20x26x16xf32, #tpu.memory_space<vmem>>, vector<20x16x16xf32>
    %cst_91 = arith.constant 0.00759875821 : f32
    %91 = vector.broadcast %cst_91 : f32 to vector<20x16x16xf32>
    %92 = arith.mulf %91, %90 : vector<20x16x16xf32>
    %93 = arith.addf %89, %92 : vector<20x16x16xf32>
    %c0_92 = arith.constant 0 : index
    %c10_93 = arith.constant 10 : index
    %c0_94 = arith.constant 0 : index
    %94 = vector.load %arg5[%c0_92, %c10_93, %c0_94] : memref<20x26x16xf32, #tpu.memory_space<vmem>>, vector<20x16x16xf32>
    %cst_95 = arith.constant 0.00102838012 : f32
    %95 = vector.broadcast %cst_95 : f32 to vector<20x16x16xf32>
    %96 = arith.mulf %95, %94 : vector<20x16x16xf32>
    %97 = arith.addf %93, %96 : vector<20x16x16xf32>
    %98 = vector.extract_strided_slice %97 {offsets = [0, 0, 0], sizes = [4, 16, 16], strides = [1, 1, 1]} : vector<20x16x16xf32> to vector<4x16x16xf32>
    %99 = vector.extract_strided_slice %97 {offsets = [4, 0, 0], sizes = [4, 16, 16], strides = [1, 1, 1]} : vector<20x16x16xf32> to vector<4x16x16xf32>
    %100 = vector.extract_strided_slice %97 {offsets = [8, 0, 0], sizes = [4, 16, 16], strides = [1, 1, 1]} : vector<20x16x16xf32> to vector<4x16x16xf32>
    %101 = vector.extract_strided_slice %97 {offsets = [12, 0, 0], sizes = [4, 16, 16], strides = [1, 1, 1]} : vector<20x16x16xf32> to vector<4x16x16xf32>
    %102 = vector.extract_strided_slice %97 {offsets = [16, 0, 0], sizes = [4, 16, 16], strides = [1, 1, 1]} : vector<20x16x16xf32> to vector<4x16x16xf32>
    %103 = arith.mulf %98, %98 : vector<4x16x16xf32>
    %104 = arith.mulf %99, %99 : vector<4x16x16xf32>
    %105 = arith.mulf %98, %99 : vector<4x16x16xf32>
    %106 = arith.subf %100, %103 : vector<4x16x16xf32>
    %107 = arith.subf %101, %104 : vector<4x16x16xf32>
    %108 = arith.subf %102, %105 : vector<4x16x16xf32>
    %cst_96 = arith.constant 2.000000e+00 : f32
    %109 = vector.broadcast %cst_96 : f32 to vector<4x16x16xf32>
    %110 = arith.mulf %109, %105 : vector<4x16x16xf32>
    %cst_97 = arith.constant 9.99999974E-5 : f32
    %111 = vector.broadcast %cst_97 : f32 to vector<4x16x16xf32>
    %112 = arith.addf %110, %111 : vector<4x16x16xf32>
    %cst_98 = arith.constant 2.000000e+00 : f32
    %113 = vector.broadcast %cst_98 : f32 to vector<4x16x16xf32>
    %114 = arith.mulf %113, %108 : vector<4x16x16xf32>
    %cst_99 = arith.constant 8.99999984E-4 : f32
    %115 = vector.broadcast %cst_99 : f32 to vector<4x16x16xf32>
    %116 = arith.addf %114, %115 : vector<4x16x16xf32>
    %117 = arith.mulf %112, %116 : vector<4x16x16xf32>
    %118 = arith.addf %103, %104 : vector<4x16x16xf32>
    %cst_100 = arith.constant 9.99999974E-5 : f32
    %119 = vector.broadcast %cst_100 : f32 to vector<4x16x16xf32>
    %120 = arith.addf %118, %119 : vector<4x16x16xf32>
    %121 = arith.addf %106, %107 : vector<4x16x16xf32>
    %cst_101 = arith.constant 8.99999984E-4 : f32
    %122 = vector.broadcast %cst_101 : f32 to vector<4x16x16xf32>
    %123 = arith.addf %121, %122 : vector<4x16x16xf32>
    %124 = arith.mulf %120, %123 : vector<4x16x16xf32>
    %125 = tpu.reciprocal %124 {approx = true} : vector<4x16x16xf32> -> vector<4x16x16xf32>
    %126 = arith.mulf %124, %125 : vector<4x16x16xf32>
    %cst_102 = arith.constant 2.000000e+00 : f32
    %127 = vector.broadcast %cst_102 : f32 to vector<4x16x16xf32>
    %128 = arith.subf %127, %126 : vector<4x16x16xf32>
    %129 = arith.mulf %125, %128 : vector<4x16x16xf32>
    %130 = arith.mulf %117, %129 : vector<4x16x16xf32>
    %cst_103 = arith.constant dense<0.000000e+00> : vector<4x16xf32>
    %131 = vector.multi_reduction <add>, %130, %cst_103 [2] : vector<4x16x16xf32> to vector<4x16xf32>
    %cst_104 = arith.constant dense<0.000000e+00> : vector<4xf32>
    %132 = vector.multi_reduction <add>, %131, %cst_104 [1] : vector<4x16xf32> to vector<4xf32>
    %133 = vector.shape_cast %132 : vector<4xf32> to vector<1x1x4xf32>
    %c0_105 = arith.constant 0 : index
    %c0_106 = arith.constant 0 : index
    %c0_107 = arith.constant 0 : index
    %134 = vector.load %arg3[%c0_105, %c0_106, %c0_107] : memref<1x1x4xf32, #tpu.memory_space<vmem>>, vector<1x1x4xf32>
    tpu.vector_store %arg3[%c0_105, %c0_106, %c0_107], %133 {strides = array<i32>} : memref<1x1x4xf32, #tpu.memory_space<vmem>>, vector<1x1x4xf32>,
    return
  }
  func.func @transform_0(%arg0: i32) -> (i32, i32, i32) {
    %c0_i32 = arith.constant 0 : i32
    %c0_i32_0 = arith.constant 0 : i32
    %c0_i32_1 = arith.constant 0 : i32
    return %arg0, %c0_i32, %c0_i32_0 : i32, i32, i32
  }
  func.func @transform_1(%arg0: i32) -> (i32, i32, i32) {
    %c0_i32 = arith.constant 0 : i32
    %c0_i32_0 = arith.constant 0 : i32
    %c0_i32_1 = arith.constant 0 : i32
    return %arg0, %c0_i32, %c0_i32_0 : i32, i32, i32
  }
  func.func @transform_2(%arg0: i32) -> (i32, i32, i32) {
    %c0_i32 = arith.constant 0 : i32
    %c0_i32_0 = arith.constant 0 : i32
    %c0_i32_1 = arith.constant 0 : i32
    return %arg0, %c0_i32, %c0_i32_0 : i32, i32, i32
  }
}

</mosaic_0001>

<bundles_post_ra>
// kernel: tpu_custom_call.1
= control target key start
LH: loop header
LB: loop body
LE: loop exit
PB: predicated region body
PF: predicated region fallthrough
CT: control target
= control target key end

     0   :  { %7 = vsyncpa [#allocation5], 0  ;;  %s8610_s0 = inlined_call_operand.hbm [shape: f32[8,16,16], index: 0, kind: input, shape index: {}]   ;;  %s8611_s1 = inlined_call_operand.hbm [shape: f32[8,16,16], index: 1, kind: input, shape index: {}]   ;;  %s8612_s2 = inlined_call_operand.hbm [shape: f32[2,1,4], index: 2, kind: output, shape index: {}]  }
   0x1   :  { %9 = vsyncpa [#allocation5 + $0x1], 0 }
   0x2   :  { %10 = vsyncpa [#allocation8], 0 }
   0x3   :  { %12 = vsyncpa [#allocation8 + $0x1], 0 }
   0x4   :  { %13 = vsyncpa [#allocation6], 0 }
   0x5   :  { %15 = vsyncpa [#allocation6 + $0x1], 0  ;;  %s4596_s9 = smov 0   ;;  %s4598_s10 = smov 0  }
   0x6   :  { %s4600_s11 = smov 0   ;;  %s4602_s12 = smov 0  }
   0x7 LB: > { %s4617_s13 = sadd.s32 4294967295, %s4562_s12   ;;  %s4290_s14 = sadd.s32 4294967294, %s4562_s12   ;;  %s4562_s12 = sphi %s4602_s12, %s9805_s12   ;;  %s4558_s11 = sphi %s4600_s11, %s9804_s11   ;;  %s4554_s10 = sphi %s4598_s10, %s9803_s10   ;;  %s4550_s9 = sphi %s4596_s9, %s9802_s9  }
   0x8   : > { %s4621_s15 = sadd.s32 1, %s4562_s12   ;;  %s28_s16 = sadd.s32 1, %s4558_s11 }
   0x9   : > { %s25_s17 = ssub.s32 %s4562_s12, %s4621_s15  ;;  %p35_p0 = scmp.ne.s32.totalorder %s4558_s11, %s4554_s10 }
   0xa   : > { %p26_p1 = scmp.eq.s32.totalorder %s25_s17, 0  ;;  %p36_p2 = scmp.eq.s32.totalorder %s4562_s12, 0 }
   0xb   : > { %p41_p3 = scmp.ne.s32.totalorder %s4554_s10, %s4550_s9  ;;  %p42_p4 = scmp.eq.s32.totalorder %s4617_s13, 0 }
   0xc   : > { %s4633_s18 = scalar_select %p26_p1, %s4558_s11, %s28_s16  }
   0xd   : > { %p4635_p5 = por %p36_p2, %p35_p0  ;;  %p4639_p6 = por %p42_p4, %p41_p3 }
   0xe   : > { %p91_p7 = scmp.eq.s32.totalorder %s4617_s13, 1  ;;  %p97_p8 = scmp.eq.s32.totalorder %s4290_s14, 1 }
   0xf   : > { %s8778_s20 = scalar_select %p4639_p6, 1, 0 }
  0x10   : > { %p4328_p10 = scmp.lt.s32.totalorder %s4562_s12, 2  ;;  %p4646_p11 = por %p91_p7, %p35_p0 }
  0x11   : > { %p4650_p12 = por %p97_p8, %p41_p3  ;;  %s4655_s23 = sand.u32 1, %s4558_s11  }
  0x12   : > { %s8779_s21 = scalar_select %p4646_p11, 1, 0 }
  0x13   : > { %s8780_s22 = scalar_select %p4650_p12, 1, 0 }
  0x14   : > { %s4308_s24 = sshll.u32 %s4562_s12, 10  ;;  %s4293_s25 = sshll.u32 %s4655_s23, 6 }
  0x15   : > { %s4664_s28 = scalar_lea.hbm %s8610_s0, %s4308_s24  ;;  %s121_s29 = scalar_lea.vmem [#allocation4], %s4293_s25 }
  0x16   : > { %s129_s30 = sshll.u32 %s121_s29, 4  ;;  %p4670_p13 = pnand %p4328_p10, %p4635_p5  ;;  %s4674_s30 = int_to_ptr.vmem [resolvable:$true] %s129_s30 }
  0x17   : > { %s118_s4 = scalar_lea.sflag [#allocation5], %s4655_s23  ;;  %s4432_s5 = scalar_lea.hbm %s4664_s28, 1024 }
  0x18   : > { %p4433_p0 = scmp.ne.s32.totalorder %s4664_s28, %s4432_s5  ;;  %p4434_p1 = pneg %p4670_p13 }
  0x19   : > { %s4437_s8 = scalar_lea.hbm %s8610_s0, 2048  ;;  %p4438_p4 = scmp.lt.u32.totalorder %s4664_s28, %s8610_s0 }
  0x1a   : > { %p4435_p2 = pnand %p4434_p1, %p4433_p0  ;;  %p4439_p5 = scmp.lt.u32.totalorder %s4437_s8, %s4432_s5 }
  0x1b   : > { %p4441_p8 = scmp.lt.u32.totalorder %s4432_s5, %s4664_s28 }
  0x1c   : > { %p4436_p3 = pneg %p4435_p2  ;;  %p4440_p7 = por %p4439_p5, %p4438_p4 }
  0x1e   : > { %p4442_p10 = por %p4441_p8, %p4440_p7 }
  0x20   : > { %p4443_p9 = pnand %p4442_p10, %p4436_p3 }
  0x22   : > { %4446 = shalt.err (!%p4443_p9)
}
  0x23   : > { %s4447_s17 = scalar_lea.vmem %s4674_s30, 1024  ;;  %s4564_s19 = smov [#allocation4]  }
  0x24   : > { %p4448_p0 = scmp.ne.s32.totalorder %s4674_s30, %s4447_s17  ;;  %s4452_s26 = sshll.u32 %s4564_s19, 4  ;;  %s4453_s26 = int_to_ptr.vmem [resolvable:$false] %s4452_s26 }
  0x25   : > { %s4454_s27 = scalar_lea.vmem %s4453_s26, 2048  ;;  %p4455_p11 = scmp.lt.s32.totalorder %s4674_s30, %s4453_s26 }
  0x26   : > { %p4450_p2 = pnand %p4448_p0, %p4434_p1  ;;  %p4456_p4 = scmp.lt.s32.totalorder %s4454_s27, %s4447_s17 }
  0x28   : > { %p4451_p12 = pneg %p4450_p2  ;;  %p4457_p5 = por %p4456_p4, %p4455_p11 }
  0x2a   : > { %p4458_p7 = pnand %p4457_p5, %p4451_p12 }
  0x2c   : > { %4461 = shalt.err (!%p4458_p7)
}
  0x2d   : > { %s4565_s29 = smov 128   ;;  %s4566_s5 = smov 8  }
  0x2e   : > { %4320 = dma.hbm_to_vmem [thread:$0]  (!%p4670_p13), %s4664_s28, 1024, %s4674_s30, %s118_s4, %s4565_s29, %s4565_s29, %s4566_s5  }
  0x2f   : > { %p4301_p9 = scmp.ge.s32.totalorder %s4562_s12, 1  ;;  %p159_p11 = scmp.lt.s32.totalorder %s4562_s12, 3 }
  0x30   : > { %s4718_s14 = scalar_lea.hbm %s8611_s1, %s4308_s24  ;;  %s143_s16 = scalar_lea.vmem [#allocation7], %s4293_s25 }
  0x31   : > { %p4709_p12 = pnand %p4301_p9, %p159_p11  ;;  %s151_s17 = sshll.u32 %s143_s16, 4  ;;  %s4722_s17 = int_to_ptr.vmem [resolvable:$true] %s151_s17 }
  0x32   : > { %s140_s28 = scalar_lea.sflag [#allocation8], %s4655_s23  ;;  %s4462_s30 = scalar_lea.hbm %s4718_s14, 1024 }
  0x33   : > { %p4463_p3 = scmp.ne.s32.totalorder %s4718_s14, %s4462_s30  ;;  %s4467_s24 = scalar_lea.hbm %s8611_s1, 2048 }
  0x34   : > { %p4468_p0 = scmp.lt.u32.totalorder %s4718_s14, %s8611_s1  ;;  %p4469_p2 = scmp.lt.u32.totalorder %s4467_s24, %s4462_s30 }
  0x35   : > { %p4465_p8 = pnand %p4463_p3, %p4434_p1  ;;  %p4471_p5 = scmp.lt.u32.totalorder %s4462_s30, %s4718_s14 }
  0x36   : > { %p4470_p4 = por %p4469_p2, %p4468_p0 }
  0x37   : > { %p4466_p10 = pneg %p4465_p8 }
  0x38   : > { %p4472_p7 = por %p4471_p5, %p4470_p4 }
  0x3a   : > { %p4473_p9 = pnand %p4472_p7, %p4466_p10 }
  0x3c   : > { %4476 = shalt.err (!%p4473_p9)
}
  0x3d   : > { %s4477_s25 = scalar_lea.vmem %s4722_s17, 1024  ;;  %s4567_s7 = smov [#allocation7]  }
  0x3e   : > { %p4478_p11 = scmp.ne.s32.totalorder %s4722_s17, %s4477_s25  ;;  %s4482_s8 = sshll.u32 %s4567_s7, 4  ;;  %s4483_s8 = int_to_ptr.vmem [resolvable:$false] %s4482_s8 }
  0x3f   : > { %s4484_s16 = scalar_lea.vmem %s4483_s8, 2048  ;;  %p4485_p6 = scmp.lt.s32.totalorder %s4722_s17, %s4483_s8 }
  0x40   : > { %p4480_p3 = pnand %p4478_p11, %p4434_p1  ;;  %p4486_p0 = scmp.lt.s32.totalorder %s4484_s16, %s4477_s25 }
  0x42   : > { %p4481_p8 = pneg %p4480_p3  ;;  %p4487_p2 = por %p4486_p0, %p4485_p6 }
  0x44   : > { %p4488_p4 = pnand %p4487_p2, %p4481_p8 }
  0x46   : > { %4491 = shalt.err (!%p4488_p4)
}
  0x47   : > { %4323 = dma.hbm_to_vmem [thread:$0]  (!%p4670_p13), %s4718_s14, 1024, %s4722_s17, %s140_s28, %s4565_s29, %s4565_s29, %s4566_s5  }
  0x48   : > { %163 = sbr.rel (%p4709_p12) target bundleno = 1690 (0x69a), region = 28 }
  0x4f   : > { %s4756_s30 = sand.u32 1, %s4554_s10   ;;  %p8783_p6 = scmp.ne.s32.totalorder %s8778_s20, 0 }
  0x50   : > { %s4302_s4 = sshll.u32 %s4756_s30, 6  ;;  %s166_s19 = scalar_lea.sflag [#allocation5], %s4756_s30 }
  0x51   : > { %s4760_s3 = scalar_lea.vmem [#allocation4], %s4302_s4 }
  0x52   : > { %4537 = dma.done.wait (%p8783_p6), %s166_s19, 1024  }
  0x53   : > { %4539 = vsyncadd (%p8783_p6), %s166_s19, 4294966272  ;;  %s175_s23 = scalar_lea.sflag [#allocation8], %s4756_s30  ;;  %s4767_s29 = scalar_lea.vmem [#allocation7], %s4302_s4 }
  0x54   : > { %4541 = dma.done.wait (%p8783_p6), %s175_s23, 1024  }
  0x55   : > { %4543 = vsyncadd (%p8783_p6), %s175_s23, 4294966272  ;;  %vm245_vm0 = vcmask 211968   ;;  %v8615_v0 = vmov 0.0   ;;  %v4854_v1 = vld [vmem:[%s4760_s3] sm:$0xff]  ;;  %v4857_v2 = vld [vmem:[%s4760_s3 + $0x10] sm:$0xff]  ;;  %s4569_s20 = smov 5  }
  0x56   : > { %246 = vst.msk [vmem:[#allocation2] sm:$0xff] %vm245_vm0, %v8615_v0  ;;  %247 = vst.msk [vmem:[#allocation2 + $0x8] sm:$0xff] %vm245_vm0, %v8615_v0  ;;  %326 = vrot.lane.b32.xlu0 %v4854_v1, %s4569_s20  ;;  %330 = vrot.lane.b32.xlu1 %v4857_v2, %s4569_s20  ;;  %v206_v3 = vld [vmem:[%s4760_s3 + $0x8] sm:$0xff]  ;;  %v4865_v4 = vld [vmem:[%s4760_s3 + $0x18] sm:$0xff]  ;;  %v221_v17 = vmul.f32 %v4854_v1, %v4854_v1  ;;  %v223_v19 = vmul.f32 %v4857_v2, %v4857_v2  ;;  %vm446_vm1 = vcmask 171048   ;;  %s4570_s5 = smov 127  }
  0x57   : > { %248 = vst.msk [vmem:[#allocation2 + $0x10] sm:$0xff] %vm245_vm0, %v8615_v0  ;;  %249 = vst.msk [vmem:[#allocation2 + $0x18] sm:$0xff] %vm245_vm0, %v8615_v0  ;;  %v4871_v5 = vld [vmem:[%s4760_s3 + $0x20] sm:$0xff]  ;;  %v4874_v6 = vld [vmem:[%s4760_s3 + $0x28] sm:$0xff]  ;;  %v222_v18 = vmul.f32 %v206_v3, %v206_v3  ;;  %v224_v20 = vmul.f32 %v4865_v4, %v4865_v4  ;;  %s4571_s6 = smov 126   ;;  %s4572_s14 = smov 125  }
  0x58   : > { %250 = vst.msk [vmem:[#allocation2 + $0x20] sm:$0xff] %vm245_vm0, %v8615_v0  ;;  %251 = vst.msk [vmem:[#allocation2 + $0x28] sm:$0xff] %vm245_vm0, %v8615_v0  ;;  %v4881_v7 = vld [vmem:[%s4760_s3 + $0x30] sm:$0xff]  ;;  %v4884_v8 = vld [vmem:[%s4760_s3 + $0x38] sm:$0xff]  ;;  %v225_v21 = vmul.f32 %v4871_v5, %v4871_v5  ;;  %v226_v22 = vmul.f32 %v4874_v6, %v4874_v6  ;;  %s4573_s17 = smov 124   ;;  %s4574_s28 = smov 123  }
  0x59   : > { %252 = vst.msk [vmem:[#allocation2 + $0x30] sm:$0xff] %vm245_vm0, %v8615_v0  ;;  %253 = vst.msk [vmem:[#allocation2 + $0x38] sm:$0xff] %vm245_vm0, %v8615_v0  ;;  %v213_v9 = vld [vmem:[%s4767_s29] sm:$0xff]  ;;  %v214_v10 = vld [vmem:[%s4767_s29 + $0x8] sm:$0xff]  ;;  %v227_v23 = vmul.f32 %v4881_v7, %v4881_v7  ;;  %v228_v24 = vmul.f32 %v4884_v8, %v4884_v8  ;;  %s4575_s24 = smov 122   ;;  %s4576_s26 = smov 121  }
  0x5a   : > { %254 = vst.msk [vmem:[#allocation2 + $0x40] sm:$0xff] %vm245_vm0, %v8615_v0  ;;  %255 = vst.msk [vmem:[#allocation2 + $0x48] sm:$0xff] %vm245_vm0, %v8615_v0  ;;  %328 = vrot.lane.b32.xlu0 %v206_v3, %s4569_s20  ;;  %332 = vrot.lane.b32.xlu1 %v4865_v4, %s4569_s20  ;;  %v215_v11 = vld [vmem:[%s4767_s29 + $0x10] sm:$0xff]  ;;  %v216_v12 = vld [vmem:[%s4767_s29 + $0x18] sm:$0xff]  ;;  %v229_v25 = vmul.f32 %v213_v9, %v213_v9  ;;  %v230_v26 = vmul.f32 %v214_v10, %v214_v10  ;;  %s4577_s27 = smov 120   ;;  %s4578_s25 = smov 119  }
  0x5b   : > { %256 = vst.msk [vmem:[#allocation2 + $0x50] sm:$0xff] %vm245_vm0, %v8615_v0  ;;  %257 = vst.msk [vmem:[#allocation2 + $0x58] sm:$0xff] %vm245_vm0, %v8615_v0  ;;  %v217_v13 = vld [vmem:[%s4767_s29 + $0x20] sm:$0xff]  ;;  %v218_v14 = vld [vmem:[%s4767_s29 + $0x28] sm:$0xff]  ;;  %v231_v27 = vmul.f32 %v215_v11, %v215_v11  ;;  %v232_v28 = vmul.f32 %v216_v12, %v216_v12  ;;  %v237_v33 = vmul.f32 %v213_v9, %v4854_v1  ;;  %vm2607_vm2 = vcmask 130048   ;;  %s4579_s7 = smov 118  }
  0x5c   : > { %258 = vst.msk [vmem:[#allocation2 + $0x60] sm:$0xff] %vm245_vm0, %v8615_v0  ;;  %259 = vst.msk [vmem:[#allocation2 + $0x68] sm:$0xff] %vm245_vm0, %v8615_v0  ;;  %v219_v15 = vld [vmem:[%s4767_s29 + $0x30] sm:$0xff]  ;;  %v220_v16 = vld [vmem:[%s4767_s29 + $0x38] sm:$0xff]  ;;  %v233_v29 = vmul.f32 %v217_v13, %v217_v13  ;;  %v234_v30 = vmul.f32 %v218_v14, %v218_v14  ;;  %v238_v34 = vmul.f32 %v214_v10, %v206_v3  ;;  %vm2611_vm3 = vcmask 123904   ;;  %s4304_s8 = sshll.u32 %s4617_s13, 4 }
  0x5d   : > { %260 = vst.msk [vmem:[#allocation2 + $0x70] sm:$0xff] %vm245_vm0, %v8615_v0  ;;  %261 = vst.msk [vmem:[#allocation2 + $0x78] sm:$0xff] %vm245_vm0, %v8615_v0  ;;  %v235_v31 = vmul.f32 %v219_v15, %v219_v15  ;;  %v236_v32 = vmul.f32 %v220_v16, %v220_v16  ;;  %v239_v35 = vmul.f32 %v215_v11, %v4857_v2  ;;  %vm4140_vm4 = vcmask 130112   ;;  %s202_s16 = scalar_lea.vmem [#allocation9], %s4756_s30  ;;  %s8566_s23 = scalar_lea.hbm %s8612_s2, %s4304_s8 }
  0x5e   : > { %262 = vst.msk [vmem:[#allocation2 + $0x80] sm:$0xff] %vm245_vm0, %v8615_v0  ;;  %263 = vst.msk [vmem:[#allocation2 + $0x88] sm:$0xff] %vm245_vm0, %v8615_v0  ;;  %334 = vrot.lane.b32.xlu0 %v4871_v5, %s4569_s20  ;;  %336 = vrot.lane.b32.xlu1 %v4874_v6, %s4569_s20  ;;  %v240_v36 = vmul.f32 %v216_v12, %v4865_v4  ;;  %v241_v37 = vmul.f32 %v217_v13, %v4871_v5  ;;  %vm4169_vm5 = vcmask 1041409   ;;  %vm4171_vm6 = vcmask 1042434   ;;  %s4201_s4 = sshll.u32 %s202_s16, 4  ;;  %s4189_s29 = scalar_lea.sflag [#allocation6], %s4756_s30  ;;  %s8568_s4 = int_to_ptr.vmem [resolvable:$true] %s4201_s4 }
  0x5f   : > { %264 = vst.msk [vmem:[#allocation2 + $0x90] sm:$0xff] %vm245_vm0, %v8615_v0  ;;  %265 = vst.msk [vmem:[#allocation2 + $0x98] sm:$0xff] %vm245_vm0, %v8615_v0  ;;  %v242_v38 = vmul.f32 %v218_v14, %v4874_v6  ;;  %v243_v39 = vmul.f32 %v219_v15, %v4881_v7  ;;  %v244_v40 = vmul.f32 %v220_v16, %v4884_v8  ;;  %vm4173_vm7 = vcmask 1043459   ;;  %p9799_p1 = scmp.ne.s32.totalorder %s8779_s21, 0  ;;  %s4580_s13 = smov [#allocation9]  }
  0x60   : > { %266 = vst.msk [vmem:[#allocation2 + $0xa0] sm:$0xff] %vm245_vm0, %v8615_v0  ;;  %267 = vst.msk [vmem:[#allocation2 + $0xa8] sm:$0xff] %vm245_vm0, %v8615_v0  ;;  %vm4176_vm8 = vcmask 125952   ;;  %vm4186_vm9 = vcmask 24576  }
  0x61   : > { %268 = vst.msk [vmem:[#allocation2 + $0xb0] sm:$0xff] %vm245_vm0, %v8615_v0  ;;  %269 = vst.msk [vmem:[#allocation2 + $0xb8] sm:$0xff] %vm245_vm0, %v8615_v0 }
  0x62   : > { %270 = vst.msk [vmem:[#allocation2 + $0xc0] sm:$0xff] %vm245_vm0, %v8615_v0  ;;  %271 = vst.msk [vmem:[#allocation2 + $0xc8] sm:$0xff] %vm245_vm0, %v8615_v0  ;;  %338 = vrot.lane.b32.xlu0 %v4881_v7, %s4569_s20  ;;  %340 = vrot.lane.b32.xlu1 %v4884_v8, %s4569_s20 }
  0x63   : > { %272 = vst.msk [vmem:[#allocation2 + $0xd0] sm:$0xff] %vm245_vm0, %v8615_v0  ;;  %273 = vst.msk [vmem:[#allocation2 + $0xd8] sm:$0xff] %vm245_vm0, %v8615_v0 }
  0x64   : > { %274 = vst.msk [vmem:[#allocation2 + $0xe0] sm:$0xff] %vm245_vm0, %v8615_v0  ;;  %275 = vst.msk [vmem:[#allocation2 + $0xe8] sm:$0xff] %vm245_vm0, %v8615_v0 }
  0x65   : > { %276 = vst.msk [vmem:[#allocation2 + $0xf0] sm:$0xff] %vm245_vm0, %v8615_v0  ;;  %277 = vst.msk [vmem:[#allocation2 + $0xf8] sm:$0xff] %vm245_vm0, %v8615_v0 }
  0x66   : > { %278 = vst.msk [vmem:[#allocation2 + $0x100] sm:$0xff] %vm245_vm0, %v8615_v0  ;;  %279 = vst.msk [vmem:[#allocation2 + $0x108] sm:$0xff] %vm245_vm0, %v8615_v0  ;;  %342 = vrot.lane.b32.xlu0 %v213_v9, %s4569_s20  ;;  %344 = vrot.lane.b32.xlu1 %v214_v10, %s4569_s20 }
  0x67   : > { %280 = vst.msk [vmem:[#allocation2 + $0x110] sm:$0xff] %vm245_vm0, %v8615_v0  ;;  %281 = vst.msk [vmem:[#allocation2 + $0x118] sm:$0xff] %vm245_vm0, %v8615_v0 }
  0x68   : > { %282 = vst.msk [vmem:[#allocation2 + $0x120] sm:$0xff] %vm245_vm0, %v8615_v0  ;;  %283 = vst.msk [vmem:[#allocation2 + $0x128] sm:$0xff] %vm245_vm0, %v8615_v0 }
  0x69   : > { %284 = vst.msk [vmem:[#allocation2 + $0x130] sm:$0xff] %vm245_vm0, %v8615_v0  ;;  %285 = vst.msk [vmem:[#allocation2 + $0x138] sm:$0xff] %vm245_vm0, %v8615_v0 }
  0x6a   : > { %346 = vrot.lane.b32.xlu0 %v215_v11, %s4569_s20  ;;  %348 = vrot.lane.b32.xlu1 %v216_v12, %s4569_s20 }
  0x6e   : > { %350 = vrot.lane.b32.xlu0 %v217_v13, %s4569_s20  ;;  %352 = vrot.lane.b32.xlu1 %v218_v14, %s4569_s20 }
  0x72   : > { %354 = vrot.lane.b32.xlu0 %v219_v15, %s4569_s20  ;;  %356 = vrot.lane.b32.xlu1 %v220_v16, %s4569_s20 }
  0x76   : > { %358 = vrot.lane.b32.xlu0 %v221_v17, %s4569_s20  ;;  %360 = vrot.lane.b32.xlu1 %v222_v18, %s4569_s20 }
  0x7a   : > { %362 = vrot.lane.b32.xlu0 %v223_v19, %s4569_s20  ;;  %364 = vrot.lane.b32.xlu1 %v224_v20, %s4569_s20 }
  0x7e   : > { %366 = vrot.lane.b32.xlu0 %v225_v21, %s4569_s20  ;;  %368 = vrot.lane.b32.xlu1 %v226_v22, %s4569_s20 }
  0x82   : > { %370 = vrot.lane.b32.xlu0 %v227_v23, %s4569_s20  ;;  %372 = vrot.lane.b32.xlu1 %v228_v24, %s4569_s20 }
  0x86   : > { %374 = vrot.lane.b32.xlu0 %v229_v25, %s4569_s20  ;;  %376 = vrot.lane.b32.xlu1 %v230_v26, %s4569_s20 }
  0x8a   : > { %378 = vrot.lane.b32.xlu0 %v231_v27, %s4569_s20  ;;  %380 = vrot.lane.b32.xlu1 %v232_v28, %s4569_s20 }
  0x8e   : > { %382 = vrot.lane.b32.xlu0 %v233_v29, %s4569_s20  ;;  %384 = vrot.lane.b32.xlu1 %v234_v30, %s4569_s20 }
  0x92   : > { %386 = vrot.lane.b32.xlu0 %v235_v31, %s4569_s20  ;;  %388 = vrot.lane.b32.xlu1 %v236_v32, %s4569_s20 }
  0x96   : > { %390 = vrot.lane.b32.xlu0 %v237_v33, %s4569_s20  ;;  %392 = vrot.lane.b32.xlu1 %v238_v34, %s4569_s20 }
  0x9a   : > { %394 = vrot.lane.b32.xlu0 %v239_v35, %s4569_s20  ;;  %396 = vrot.lane.b32.xlu1 %v240_v36, %s4569_s20 }
  0x9e   : > { %398 = vrot.lane.b32.xlu0 %v241_v37, %s4569_s20  ;;  %400 = vrot.lane.b32.xlu1 %v242_v38, %s4569_s20 }
  0xa2   : > { %402 = vrot.lane.b32.xlu0 %v243_v39, %s4569_s20  ;;  %404 = vrot.lane.b32.xlu1 %v244_v40, %s4569_s20  ;;  %s4492_s20 = scalar_lea.vmem %s8568_s4, 16 }
  0xa3   : > { %p4493_p13 = scmp.ne.s32.totalorder %s8568_s4, %s4492_s20 }
  0xa5   : > { %p4494_p12 = pnand %p4493_p13, %p9799_p1 }
  0xa7   : > { %p4495_p10 = pneg %p4494_p12 }
  0xc8   : > { %v327_v41 = vpop.permute.xlu0 %326  ;;  %v331_v42 = vpop.permute.xlu1 %330 }
  0xc9   : > { %447 = vst.msk [vmem:[#allocation2] sm:$0xff] %vm446_vm1, %v327_v41  ;;  %449 = vst.msk [vmem:[#allocation2 + $0x10] sm:$0xff] %vm446_vm1, %v331_v42 }
  0xcc   : > { %v329_v43 = vpop.permute.xlu0 %328  ;;  %v333_v44 = vpop.permute.xlu1 %332 }
  0xcd   : > { %448 = vst.msk [vmem:[#allocation2 + $0x8] sm:$0xff] %vm446_vm1, %v329_v43  ;;  %450 = vst.msk [vmem:[#allocation2 + $0x18] sm:$0xff] %vm446_vm1, %v333_v44 }
  0xd0   : > { %v335_v45 = vpop.permute.xlu0 %334  ;;  %v4955_v46 = vld [vmem:[#allocation2] sm:$0xff]  ;;  %v337_v47 = vpop.permute.xlu1 %336  ;;  %v4957_v48 = vld [vmem:[#allocation2 + $0x10] sm:$0xff] }
  0xd1   : > { %451 = vst.msk [vmem:[#allocation2 + $0x20] sm:$0xff] %vm446_vm1, %v335_v45  ;;  %v4961_v49 = vmul.f32 0.007598758, %v4955_v46  ;;  %452 = vst.msk [vmem:[#allocation2 + $0x28] sm:$0xff] %vm446_vm1, %v337_v47  ;;  %v4967_v50 = vmul.f32 0.007598758, %v4957_v48 }
  0xd3   : > { %8784 = vst [vmem:[#allocation13_spill] sm:$0xff] %v4961_v49  ;;  %647 = vrot.lane.b32.xlu0 %v4961_v49, %s4570_s5  ;;  %8785 = vst [vmem:[#allocation14_spill] sm:$0xff] %v4967_v50 }
  0xd4   : > { %v339_v51 = vpop.permute.xlu0 %338  ;;  %v4969_v52 = vld [vmem:[#allocation2 + $0x8] sm:$0xff]  ;;  %v341_v53 = vpop.permute.xlu1 %340  ;;  %v4971_v54 = vld [vmem:[#allocation2 + $0x18] sm:$0xff] }
  0xd5   : > { %453 = vst.msk [vmem:[#allocation2 + $0x30] sm:$0xff] %vm446_vm1, %v339_v51  ;;  %v4975_v55 = vmul.f32 0.007598758, %v4969_v52  ;;  %454 = vst.msk [vmem:[#allocation2 + $0x38] sm:$0xff] %vm446_vm1, %v341_v53  ;;  %v4983_v56 = vmul.f32 0.007598758, %v4971_v54 }
  0xd7   : > { %8786 = vst [vmem:[#allocation15_spill] sm:$0xff] %v4975_v55  ;;  %649 = vrot.lane.b32.xlu1 %v4975_v55, %s4570_s5  ;;  %651 = vrot.lane.b32.xlu0 %v4967_v50, %s4570_s5  ;;  %8787 = vst [vmem:[#allocation16_spill] sm:$0xff] %v4983_v56 }
  0xd8   : > { %v343_v57 = vpop.permute.xlu0 %342  ;;  %v4985_v58 = vld [vmem:[#allocation2 + $0x20] sm:$0xff]  ;;  %v345_v59 = vpop.permute.xlu1 %344  ;;  %v4987_v60 = vld [vmem:[#allocation2 + $0x28] sm:$0xff] }
  0xd9   : > { %455 = vst.msk [vmem:[#allocation2 + $0x40] sm:$0xff] %vm446_vm1, %v343_v57  ;;  %v4991_v61 = vmul.f32 0.007598758, %v4985_v58  ;;  %456 = vst.msk [vmem:[#allocation2 + $0x48] sm:$0xff] %vm446_vm1, %v345_v59  ;;  %v4999_v62 = vmul.f32 0.007598758, %v4987_v60 }
  0xdb   : > { %8788 = vst [vmem:[#allocation17_spill] sm:$0xff] %v4991_v61  ;;  %653 = vrot.lane.b32.xlu1 %v4983_v56, %s4570_s5  ;;  %655 = vrot.lane.b32.xlu0 %v4991_v61, %s4570_s5  ;;  %8789 = vst [vmem:[#allocation18_spill] sm:$0xff] %v4999_v62 }
  0xdc   : > { %v347_v63 = vpop.permute.xlu0 %346  ;;  %v5001_v1 = vld [vmem:[#allocation2 + $0x30] sm:$0xff]  ;;  %v349_v2 = vpop.permute.xlu1 %348  ;;  %v5003_v3 = vld [vmem:[#allocation2 + $0x38] sm:$0xff] }
  0xdd   : > { %457 = vst.msk [vmem:[#allocation2 + $0x50] sm:$0xff] %vm446_vm1, %v347_v63  ;;  %v5007_v4 = vmul.f32 0.007598758, %v5001_v1  ;;  %458 = vst.msk [vmem:[#allocation2 + $0x58] sm:$0xff] %vm446_vm1, %v349_v2  ;;  %v5015_v5 = vmul.f32 0.007598758, %v5003_v3 }
  0xdf   : > { %8790 = vst [vmem:[#allocation19_spill] sm:$0xff] %v5007_v4  ;;  %657 = vrot.lane.b32.xlu1 %v4999_v62, %s4570_s5  ;;  %659 = vrot.lane.b32.xlu0 %v5007_v4, %s4570_s5  ;;  %8791 = vst [vmem:[#allocation20_spill] sm:$0xff] %v5015_v5 }
  0xe0   : > { %v351_v6 = vpop.permute.xlu0 %350  ;;  %v5017_v7 = vld [vmem:[#allocation2 + $0x40] sm:$0xff]  ;;  %v353_v8 = vpop.permute.xlu1 %352  ;;  %v5019_v9 = vld [vmem:[#allocation2 + $0x48] sm:$0xff] }
  0xe1   : > { %459 = vst.msk [vmem:[#allocation2 + $0x60] sm:$0xff] %vm446_vm1, %v351_v6  ;;  %v5023_v10 = vmul.f32 0.007598758, %v5017_v7  ;;  %460 = vst.msk [vmem:[#allocation2 + $0x68] sm:$0xff] %vm446_vm1, %v353_v8  ;;  %v5031_v11 = vmul.f32 0.007598758, %v5019_v9 }
  0xe3   : > { %8792 = vst [vmem:[#allocation21_spill] sm:$0xff] %v5023_v10  ;;  %661 = vrot.lane.b32.xlu1 %v5015_v5, %s4570_s5  ;;  %663 = vrot.lane.b32.xlu0 %v5023_v10, %s4570_s5  ;;  %8793 = vst [vmem:[#allocation22_spill] sm:$0xff] %v5031_v11 }
  0xe4   : > { %v355_v12 = vpop.permute.xlu0 %354  ;;  %v5033_v13 = vld [vmem:[#allocation2 + $0x50] sm:$0xff]  ;;  %v357_v14 = vpop.permute.xlu1 %356  ;;  %v5035_v15 = vld [vmem:[#allocation2 + $0x58] sm:$0xff] }
  0xe5   : > { %461 = vst.msk [vmem:[#allocation2 + $0x70] sm:$0xff] %vm446_vm1, %v355_v12  ;;  %v5039_v16 = vmul.f32 0.007598758, %v5033_v13  ;;  %462 = vst.msk [vmem:[#allocation2 + $0x78] sm:$0xff] %vm446_vm1, %v357_v14  ;;  %v5047_v17 = vmul.f32 0.007598758, %v5035_v15 }
  0xe6   : > { %v5320_v5 = vmul.f32 0.036000773, %v5033_v13  ;;  %v5327_v4 = vmul.f32 0.036000773, %v5035_v15 }
  0xe7   : > { %8794 = vst [vmem:[#allocation23_spill] sm:$0xff] %v5039_v16  ;;  %665 = vrot.lane.b32.xlu1 %v5031_v11, %s4570_s5  ;;  %667 = vrot.lane.b32.xlu0 %v5039_v16, %s4570_s5  ;;  %8795 = vst [vmem:[#allocation24_spill] sm:$0xff] %v5047_v17 }
  0xe8   : > { %v359_v18 = vpop.permute.xlu0 %358  ;;  %v5049_v19 = vld [vmem:[#allocation2 + $0x60] sm:$0xff]  ;;  %v361_v20 = vpop.permute.xlu1 %360  ;;  %v5051_v21 = vld [vmem:[#allocation2 + $0x68] sm:$0xff]  ;;  %8834 = vst [vmem:[#allocation63_spill] sm:$0xff] %v5320_v5  ;;  %8835 = vst [vmem:[#allocation64_spill] sm:$0xff] %v5327_v4 }
  0xe9   : > { %463 = vst.msk [vmem:[#allocation2 + $0x80] sm:$0xff] %vm446_vm1, %v359_v18  ;;  %v5055_v22 = vmul.f32 0.007598758, %v5049_v19  ;;  %464 = vst.msk [vmem:[#allocation2 + $0x88] sm:$0xff] %vm446_vm1, %v361_v20  ;;  %v5063_v23 = vmul.f32 0.007598758, %v5051_v21 }
  0xeb   : > { %8796 = vst [vmem:[#allocation25_spill] sm:$0xff] %v5055_v22  ;;  %669 = vrot.lane.b32.xlu1 %v5047_v17, %s4570_s5  ;;  %671 = vrot.lane.b32.xlu0 %v5055_v22, %s4570_s5  ;;  %8797 = vst [vmem:[#allocation26_spill] sm:$0xff] %v5063_v23  ;;  %v5337_v22 = vmul.f32 0.036000773, %v5051_v21 }
  0xec   : > { %v363_v24 = vpop.permute.xlu0 %362  ;;  %v5065_v25 = vld [vmem:[#allocation2 + $0x70] sm:$0xff]  ;;  %v365_v26 = vpop.permute.xlu1 %364  ;;  %v5067_v27 = vld [vmem:[#allocation2 + $0x78] sm:$0xff] }
  0xed   : > { %465 = vst.msk [vmem:[#allocation2 + $0x90] sm:$0xff] %vm446_vm1, %v363_v24  ;;  %v5071_v28 = vmul.f32 0.007598758, %v5065_v25  ;;  %466 = vst.msk [vmem:[#allocation2 + $0x98] sm:$0xff] %vm446_vm1, %v365_v26  ;;  %v5079_v29 = vmul.f32 0.007598758, %v5067_v27 }
  0xee   : > { %8837 = vst [vmem:[#allocation66_spill] sm:$0xff] %v5337_v22  ;;  %v5340_v62 = vmul.f32 0.036000773, %v5065_v25  ;;  %v5347_v61 = vmul.f32 0.036000773, %v5067_v27 }
  0xef   : > { %8798 = vst [vmem:[#allocation27_spill] sm:$0xff] %v5071_v28  ;;  %673 = vrot.lane.b32.xlu1 %v5063_v23, %s4570_s5  ;;  %675 = vrot.lane.b32.xlu0 %v5071_v28, %s4570_s5  ;;  %8799 = vst [vmem:[#allocation28_spill] sm:$0xff] %v5079_v29  ;;  %v5317_v28 = vmul.f32 0.036000773, %v5019_v9  ;;  %v5330_v23 = vmul.f32 0.036000773, %v5049_v19 }
  0xf0   : > { %v367_v30 = vpop.permute.xlu0 %366  ;;  %v5081_v31 = vld [vmem:[#allocation2 + $0x80] sm:$0xff]  ;;  %v369_v32 = vpop.permute.xlu1 %368  ;;  %v5083_v33 = vld [vmem:[#allocation2 + $0x88] sm:$0xff]  ;;  %8838 = vst [vmem:[#allocation67_spill] sm:$0xff] %v5340_v62  ;;  %8839 = vst [vmem:[#allocation68_spill] sm:$0xff] %v5347_v61 }
  0xf1   : > { %467 = vst.msk [vmem:[#allocation2 + $0xa0] sm:$0xff] %vm446_vm1, %v367_v30  ;;  %v5087_v34 = vmul.f32 0.007598758, %v5081_v31  ;;  %468 = vst.msk [vmem:[#allocation2 + $0xa8] sm:$0xff] %vm446_vm1, %v369_v32  ;;  %v5095_v35 = vmul.f32 0.007598758, %v5083_v33 }
  0xf2   : > { %8833 = vst [vmem:[#allocation62_spill] sm:$0xff] %v5317_v28  ;;  %8836 = vst [vmem:[#allocation65_spill] sm:$0xff] %v5330_v23  ;;  %v5350_v17 = vmul.f32 0.036000773, %v5081_v31  ;;  %v5359_v11 = vmul.f32 0.036000773, %v5083_v33 }
  0xf3   : > { %8800 = vst [vmem:[#allocation29_spill] sm:$0xff] %v5087_v34  ;;  %677 = vrot.lane.b32.xlu1 %v5079_v29, %s4570_s5  ;;  %679 = vrot.lane.b32.xlu0 %v5087_v34, %s4570_s5  ;;  %8801 = vst [vmem:[#allocation30_spill] sm:$0xff] %v5095_v35  ;;  %v5307_v34 = vmul.f32 0.036000773, %v5003_v3  ;;  %v5310_v29 = vmul.f32 0.036000773, %v5017_v7 }
  0xf4   : > { %v371_v36 = vpop.permute.xlu0 %370  ;;  %v5097_v37 = vld [vmem:[#allocation2 + $0x90] sm:$0xff]  ;;  %v373_v38 = vpop.permute.xlu1 %372  ;;  %v5099_v39 = vld [vmem:[#allocation2 + $0x98] sm:$0xff]  ;;  %8840 = vst [vmem:[#allocation69_spill] sm:$0xff] %v5350_v17  ;;  %8842 = vst [vmem:[#allocation71_spill] sm:$0xff] %v5359_v11 }
  0xf5   : > { %469 = vst.msk [vmem:[#allocation2 + $0xb0] sm:$0xff] %vm446_vm1, %v371_v36  ;;  %v5103_v40 = vmul.f32 0.007598758, %v5097_v37  ;;  %470 = vst.msk [vmem:[#allocation2 + $0xb8] sm:$0xff] %vm446_vm1, %v373_v38  ;;  %v5111_v41 = vmul.f32 0.007598758, %v5099_v39 }
  0xf6   : > { %8831 = vst [vmem:[#allocation60_spill] sm:$0xff] %v5307_v34  ;;  %8832 = vst [vmem:[#allocation61_spill] sm:$0xff] %v5310_v29  ;;  %v5362_v10 = vmul.f32 0.036000773, %v5097_v37  ;;  %v5373_v55 = vmul.f32 0.036000773, %v5099_v39 }
  0xf7   : > { %8802 = vst [vmem:[#allocation31_spill] sm:$0xff] %v5103_v40  ;;  %681 = vrot.lane.b32.xlu1 %v5095_v35, %s4570_s5  ;;  %683 = vrot.lane.b32.xlu0 %v5103_v40, %s4570_s5  ;;  %8803 = vst [vmem:[#allocation32_spill] sm:$0xff] %v5111_v41  ;;  %v5297_v40 = vmul.f32 0.036000773, %v4987_v60  ;;  %v5300_v35 = vmul.f32 0.036000773, %v5001_v1 }
  0xf8   : > { %v375_v42 = vpop.permute.xlu0 %374  ;;  %v5113_v43 = vld [vmem:[#allocation2 + $0xa0] sm:$0xff]  ;;  %v377_v44 = vpop.permute.xlu1 %376  ;;  %v5115_v45 = vld [vmem:[#allocation2 + $0xa8] sm:$0xff]  ;;  %8843 = vst [vmem:[#allocation72_spill] sm:$0xff] %v5362_v10  ;;  %8846 = vst [vmem:[#allocation75_spill] sm:$0xff] %v5373_v55 }
  0xf9   : > { %471 = vst.msk [vmem:[#allocation2 + $0xc0] sm:$0xff] %vm446_vm1, %v375_v42  ;;  %v5119_v47 = vmul.f32 0.007598758, %v5113_v43  ;;  %472 = vst.msk [vmem:[#allocation2 + $0xc8] sm:$0xff] %vm446_vm1, %v377_v44  ;;  %v5127_v51 = vmul.f32 0.007598758, %v5115_v45 }
  0xfa   : > { %8829 = vst [vmem:[#allocation58_spill] sm:$0xff] %v5297_v40  ;;  %8830 = vst [vmem:[#allocation59_spill] sm:$0xff] %v5300_v35 }
  0xfb   : > { %8804 = vst [vmem:[#allocation33_spill] sm:$0xff] %v5119_v47  ;;  %685 = vrot.lane.b32.xlu1 %v5111_v41, %s4570_s5  ;;  %687 = vrot.lane.b32.xlu0 %v5119_v47, %s4570_s5  ;;  %8805 = vst [vmem:[#allocation34_spill] sm:$0xff] %v5127_v51  ;;  %v5277_v41 = vmul.f32 0.036000773, %v4969_v52 }
  0xfc   : > { %v379_v53 = vpop.permute.xlu0 %378  ;;  %v5129_v57 = vld [vmem:[#allocation2 + $0xb0] sm:$0xff]  ;;  %v381_v59 = vpop.permute.xlu1 %380  ;;  %v5131_v63 = vld [vmem:[#allocation2 + $0xb8] sm:$0xff] }
  0xfd   : > { %473 = vst.msk [vmem:[#allocation2 + $0xd0] sm:$0xff] %vm446_vm1, %v379_v53  ;;  %v5135_v2 = vmul.f32 0.007598758, %v5129_v57  ;;  %474 = vst.msk [vmem:[#allocation2 + $0xd8] sm:$0xff] %vm446_vm1, %v381_v59  ;;  %v5143_v6 = vmul.f32 0.007598758, %v5131_v63 }
  0xfe   : > { %8825 = vst [vmem:[#allocation54_spill] sm:$0xff] %v5277_v41 }
  0xff   : > { %8806 = vst [vmem:[#allocation35_spill] sm:$0xff] %v5135_v2  ;;  %689 = vrot.lane.b32.xlu1 %v5127_v51, %s4570_s5  ;;  %691 = vrot.lane.b32.xlu0 %v5135_v2, %s4570_s5  ;;  %8807 = vst [vmem:[#allocation36_spill] sm:$0xff] %v5143_v6 }
 0x100   : > { %v383_v8 = vpop.permute.xlu0 %382  ;;  %v5145_v12 = vld [vmem:[#allocation2 + $0xc0] sm:$0xff]  ;;  %v385_v14 = vpop.permute.xlu1 %384  ;;  %v5147_v18 = vld [vmem:[#allocation2 + $0xc8] sm:$0xff] }
 0x101   : > { %475 = vst.msk [vmem:[#allocation2 + $0xe0] sm:$0xff] %vm446_vm1, %v383_v8  ;;  %v5151_v20 = vmul.f32 0.007598758, %v5145_v12  ;;  %476 = vst.msk [vmem:[#allocation2 + $0xe8] sm:$0xff] %vm446_vm1, %v385_v14  ;;  %v5159_v24 = vmul.f32 0.007598758, %v5147_v18 }
 0x103   : > { %8808 = vst [vmem:[#allocation37_spill] sm:$0xff] %v5151_v20  ;;  %693 = vrot.lane.b32.xlu1 %v5143_v6, %s4570_s5  ;;  %695 = vrot.lane.b32.xlu0 %v5151_v20, %s4570_s5  ;;  %8809 = vst [vmem:[#allocation38_spill] sm:$0xff] %v5159_v24 }
 0x104   : > { %v387_v26 = vpop.permute.xlu0 %386  ;;  %v5161_v30 = vld [vmem:[#allocation2 + $0xd0] sm:$0xff]  ;;  %v389_v32 = vpop.permute.xlu1 %388  ;;  %v5163_v36 = vld [vmem:[#allocation2 + $0xd8] sm:$0xff] }
 0x105   : > { %477 = vst.msk [vmem:[#allocation2 + $0xf0] sm:$0xff] %vm446_vm1, %v387_v26  ;;  %v5167_v38 = vmul.f32 0.007598758, %v5161_v30  ;;  %478 = vst.msk [vmem:[#allocation2 + $0xf8] sm:$0xff] %vm446_vm1, %v389_v32  ;;  %v5175_v42 = vmul.f32 0.007598758, %v5163_v36 }
 0x107   : > { %8810 = vst [vmem:[#allocation39_spill] sm:$0xff] %v5167_v38  ;;  %697 = vrot.lane.b32.xlu1 %v5159_v24, %s4570_s5  ;;  %699 = vrot.lane.b32.xlu0 %v5167_v38, %s4570_s5  ;;  %8811 = vst [vmem:[#allocation40_spill] sm:$0xff] %v5175_v42 }
 0x108   : > { %v391_v44 = vpop.permute.xlu0 %390  ;;  %v5177_v53 = vld [vmem:[#allocation2 + $0xe0] sm:$0xff]  ;;  %v393_v59 = vpop.permute.xlu1 %392  ;;  %v5179_v8 = vld [vmem:[#allocation2 + $0xe8] sm:$0xff] }
 0x109   : > { %479 = vst.msk [vmem:[#allocation2 + $0x100] sm:$0xff] %vm446_vm1, %v391_v44  ;;  %v5183_v14 = vmul.f32 0.007598758, %v5177_v53  ;;  %480 = vst.msk [vmem:[#allocation2 + $0x108] sm:$0xff] %vm446_vm1, %v393_v59  ;;  %v5191_v26 = vmul.f32 0.007598758, %v5179_v8 }
 0x10b   : > { %8812 = vst [vmem:[#allocation41_spill] sm:$0xff] %v5183_v14  ;;  %701 = vrot.lane.b32.xlu1 %v5175_v42, %s4570_s5  ;;  %703 = vrot.lane.b32.xlu0 %v5183_v14, %s4570_s5  ;;  %8813 = vst [vmem:[#allocation42_spill] sm:$0xff] %v5191_v26 }
 0x10c   : > { %v395_v32 = vpop.permute.xlu0 %394  ;;  %v5193_v0 = vld [vmem:[#allocation2 + $0xf0] sm:$0xff]  ;;  %v397_v6 = vpop.permute.xlu1 %396  ;;  %v5195_v2 = vld [vmem:[#allocation2 + $0xf8] sm:$0xff] }
 0x10d   : > { %481 = vst.msk [vmem:[#allocation2 + $0x110] sm:$0xff] %vm446_vm1, %v395_v32  ;;  %v5199_v44 = vmul.f32 0.007598758, %v5193_v0  ;;  %482 = vst.msk [vmem:[#allocation2 + $0x118] sm:$0xff] %vm446_vm1, %v397_v6  ;;  %v5207_v59 = vmul.f32 0.007598758, %v5195_v2 }
 0x10f   : > { %8814 = vst [vmem:[#allocation43_spill] sm:$0xff] %v5199_v44  ;;  %705 = vrot.lane.b32.xlu1 %v5191_v26, %s4570_s5  ;;  %707 = vrot.lane.b32.xlu0 %v5199_v44, %s4570_s5  ;;  %8815 = vst [vmem:[#allocation44_spill] sm:$0xff] %v5207_v59 }
 0x110   : > { %v399_v14 = vpop.permute.xlu0 %398  ;;  %v5209_v51 = vld [vmem:[#allocation2 + $0x100] sm:$0xff]  ;;  %v401_v47 = vpop.permute.xlu1 %400  ;;  %v5211_v42 = vld [vmem:[#allocation2 + $0x108] sm:$0xff] }
 0x111   : > { %483 = vst.msk [vmem:[#allocation2 + $0x120] sm:$0xff] %vm446_vm1, %v399_v14  ;;  %v5215_v32 = vmul.f32 0.007598758, %v5209_v51  ;;  %484 = vst.msk [vmem:[#allocation2 + $0x128] sm:$0xff] %vm446_vm1, %v401_v47  ;;  %v5223_v6 = vmul.f32 0.007598758, %v5211_v42 }
 0x113   : > { %8816 = vst [vmem:[#allocation45_spill] sm:$0xff] %v5215_v32  ;;  %709 = vrot.lane.b32.xlu1 %v5207_v59, %s4570_s5  ;;  %711 = vrot.lane.b32.xlu0 %v5215_v32, %s4570_s5  ;;  %8817 = vst [vmem:[#allocation46_spill] sm:$0xff] %v5223_v6 }
 0x114   : > { %v403_v44 = vpop.permute.xlu0 %402  ;;  %v5225_v26 = vld [vmem:[#allocation2 + $0x110] sm:$0xff]  ;;  %v405_v38 = vpop.permute.xlu1 %404  ;;  %v5227_v24 = vld [vmem:[#allocation2 + $0x118] sm:$0xff] }
 0x115   : > { %485 = vst.msk [vmem:[#allocation2 + $0x130] sm:$0xff] %vm446_vm1, %v403_v44  ;;  %v5231_v14 = vmul.f32 0.007598758, %v5225_v26  ;;  %486 = vst.msk [vmem:[#allocation2 + $0x138] sm:$0xff] %vm446_vm1, %v405_v38  ;;  %v5239_v47 = vmul.f32 0.007598758, %v5227_v24 }
 0x117   : > { %8818 = vst [vmem:[#allocation47_spill] sm:$0xff] %v5231_v14  ;;  %713 = vrot.lane.b32.xlu1 %v5223_v6, %s4570_s5  ;;  %715 = vrot.lane.b32.xlu0 %v5231_v14, %s4570_s5  ;;  %8819 = vst [vmem:[#allocation48_spill] sm:$0xff] %v5239_v47 }
 0x118   : > { %v5241_v32 = vld [vmem:[#allocation2 + $0x120] sm:$0xff]  ;;  %v5243_v59 = vld [vmem:[#allocation2 + $0x128] sm:$0xff] }
 0x119   : > { %v5246_v44 = vmul.f32 0.007598758, %v5241_v32  ;;  %v5253_v38 = vmul.f32 0.007598758, %v5243_v59 }
 0x11b   : > { %8820 = vst [vmem:[#allocation49_spill] sm:$0xff] %v5246_v44  ;;  %717 = vrot.lane.b32.xlu1 %v5239_v47, %s4570_s5  ;;  %719 = vrot.lane.b32.xlu0 %v5246_v44, %s4570_s5  ;;  %8821 = vst [vmem:[#allocation50_spill] sm:$0xff] %v5253_v38  ;;  %v5270_v44 = vmul.f32 0.036000773, %v4955_v46 }
 0x11c   : > { %v5255_v14 = vld [vmem:[#allocation2 + $0x130] sm:$0xff]  ;;  %v5257_v6 = vld [vmem:[#allocation2 + $0x138] sm:$0xff] }
 0x11d   : > { %v5260_v20 = vmul.f32 0.007598758, %v5255_v14  ;;  %v5267_v47 = vmul.f32 0.007598758, %v5257_v6  ;;  %8824 = vst [vmem:[#allocation53_spill] sm:$0xff] %v5270_v44 }
 0x11f   : > { %8822 = vst [vmem:[#allocation51_spill] sm:$0xff] %v5260_v20  ;;  %721 = vrot.lane.b32.xlu1 %v5253_v38, %s4570_s5  ;;  %723 = vrot.lane.b32.xlu0 %v5260_v20, %s4570_s5  ;;  %8823 = vst [vmem:[#allocation52_spill] sm:$0xff] %v5267_v47  ;;  %v5280_v38 = vmul.f32 0.036000773, %v4957_v48  ;;  %v5287_v20 = vmul.f32 0.036000773, %v4971_v54 }
 0x121   : > { %8826 = vst [vmem:[#allocation55_spill] sm:$0xff] %v5280_v38  ;;  %8827 = vst [vmem:[#allocation56_spill] sm:$0xff] %v5287_v20 }
 0x123   : > { %725 = vrot.lane.b32.xlu1 %v5267_v47, %s4570_s5  ;;  %887 = vrot.lane.b32.xlu0 %v5270_v44, %s4571_s6  ;;  %v5290_v47 = vmul.f32 0.036000773, %v4985_v58  ;;  %s4496_s5 = sshll.u32 %s4580_s13, 4  ;;  %s4497_s5 = int_to_ptr.vmem [resolvable:$false] %s4496_s5 }
 0x124   : > { %p4499_p5 = scmp.lt.s32.totalorder %s8568_s4, %s4497_s5 }
 0x125   : > { %8828 = vst [vmem:[#allocation57_spill] sm:$0xff] %v5290_v47 }
 0x127   : > { %889 = vrot.lane.b32.xlu1 %v5277_v41, %s4571_s6  ;;  %891 = vrot.lane.b32.xlu0 %v5280_v38, %s4571_s6 }
 0x12b   : > { %893 = vrot.lane.b32.xlu1 %v5287_v20, %s4571_s6  ;;  %895 = vrot.lane.b32.xlu0 %v5290_v47, %s4571_s6 }
 0x12f   : > { %897 = vrot.lane.b32.xlu1 %v5297_v40, %s4571_s6  ;;  %899 = vrot.lane.b32.xlu0 %v5300_v35, %s4571_s6 }
 0x133   : > { %901 = vrot.lane.b32.xlu1 %v5307_v34, %s4571_s6  ;;  %903 = vrot.lane.b32.xlu0 %v5310_v29, %s4571_s6 }
 0x137   : > { %905 = vrot.lane.b32.xlu1 %v5317_v28, %s4571_s6  ;;  %907 = vrot.lane.b32.xlu0 %v5320_v5, %s4571_s6 }
 0x13b   : > { %909 = vrot.lane.b32.xlu1 %v5327_v4, %s4571_s6  ;;  %911 = vrot.lane.b32.xlu0 %v5330_v23, %s4571_s6 }
 0x13f   : > { %913 = vrot.lane.b32.xlu1 %v5337_v22, %s4571_s6  ;;  %915 = vrot.lane.b32.xlu0 %v5340_v62, %s4571_s6 }
 0x143   : > { %917 = vrot.lane.b32.xlu1 %v5347_v61, %s4571_s6  ;;  %919 = vrot.lane.b32.xlu0 %v5350_v17, %s4571_s6 }
 0x145   : > { %v5356_v16 = vpop.permute.xlu0 %647 }
 0x146   : > { %8841 = vst [vmem:[#allocation70_spill] sm:$0xff] %v5356_v16  ;;  %v5376_v16 = vmul.f32 0.036000773, %v5113_v43 }
 0x147   : > { %921 = vrot.lane.b32.xlu1 %v5359_v11, %s4571_s6  ;;  %923 = vrot.lane.b32.xlu0 %v5362_v10, %s4571_s6 }
 0x148   : > { %8847 = vst [vmem:[#allocation76_spill] sm:$0xff] %v5376_v16 }
 0x149   : > { %v5368_v56 = vpop.permute.xlu1 %649  ;;  %v5370_v50 = vpop.permute.xlu0 %651 }
 0x14a   : > { %8844 = vst [vmem:[#allocation73_spill] sm:$0xff] %v5368_v56  ;;  %8845 = vst [vmem:[#allocation74_spill] sm:$0xff] %v5370_v50  ;;  %v5387_v56 = vmul.f32 0.036000773, %v5115_v45  ;;  %v5390_v50 = vmul.f32 0.036000773, %v5129_v57 }
 0x14b   : > { %925 = vrot.lane.b32.xlu1 %v5373_v55, %s4571_s6  ;;  %927 = vrot.lane.b32.xlu0 %v5376_v16, %s4571_s6 }
 0x14c   : > { %8850 = vst [vmem:[#allocation79_spill] sm:$0xff] %v5387_v56  ;;  %8851 = vst [vmem:[#allocation80_spill] sm:$0xff] %v5390_v50 }
 0x14d   : > { %v5382_v49 = vpop.permute.xlu1 %653  ;;  %v5384_v11 = vpop.permute.xlu0 %655 }
 0x14e   : > { %8848 = vst [vmem:[#allocation77_spill] sm:$0xff] %v5382_v49  ;;  %8849 = vst [vmem:[#allocation78_spill] sm:$0xff] %v5384_v11  ;;  %v5401_v49 = vmul.f32 0.036000773, %v5131_v63  ;;  %v5404_v11 = vmul.f32 0.036000773, %v5145_v12 }
 0x14f   : > { %929 = vrot.lane.b32.xlu1 %v5387_v56, %s4571_s6  ;;  %931 = vrot.lane.b32.xlu0 %v5390_v50, %s4571_s6 }
 0x150   : > { %8854 = vst [vmem:[#allocation83_spill] sm:$0xff] %v5401_v49  ;;  %8855 = vst [vmem:[#allocation84_spill] sm:$0xff] %v5404_v11 }
 0x151   : > { %v5396_v55 = vpop.permute.xlu1 %657  ;;  %v5398_v10 = vpop.permute.xlu0 %659 }
 0x152   : > { %8852 = vst [vmem:[#allocation81_spill] sm:$0xff] %v5396_v55  ;;  %8853 = vst [vmem:[#allocation82_spill] sm:$0xff] %v5398_v10  ;;  %v5415_v55 = vmul.f32 0.036000773, %v5147_v18  ;;  %v5418_v10 = vmul.f32 0.036000773, %v5161_v30 }
 0x153   : > { %933 = vrot.lane.b32.xlu1 %v5401_v49, %s4571_s6  ;;  %935 = vrot.lane.b32.xlu0 %v5404_v11, %s4571_s6 }
 0x154   : > { %8858 = vst [vmem:[#allocation87_spill] sm:$0xff] %v5415_v55  ;;  %8859 = vst [vmem:[#allocation88_spill] sm:$0xff] %v5418_v10 }
 0x155   : > { %v5410_v56 = vpop.permute.xlu1 %661  ;;  %v5412_v16 = vpop.permute.xlu0 %663 }
 0x156   : > { %8856 = vst [vmem:[#allocation85_spill] sm:$0xff] %v5410_v56  ;;  %8857 = vst [vmem:[#allocation86_spill] sm:$0xff] %v5412_v16  ;;  %v5429_v56 = vmul.f32 0.036000773, %v5163_v36  ;;  %v5432_v16 = vmul.f32 0.036000773, %v5177_v53 }
 0x157   : > { %937 = vrot.lane.b32.xlu1 %v5415_v55, %s4571_s6  ;;  %939 = vrot.lane.b32.xlu0 %v5418_v10, %s4571_s6 }
 0x158   : > { %8862 = vst [vmem:[#allocation91_spill] sm:$0xff] %v5429_v56  ;;  %8863 = vst [vmem:[#allocation92_spill] sm:$0xff] %v5432_v16 }
 0x159   : > { %v5424_v49 = vpop.permute.xlu1 %665  ;;  %v5426_v50 = vpop.permute.xlu0 %667 }
 0x15a   : > { %8860 = vst [vmem:[#allocation89_spill] sm:$0xff] %v5424_v49  ;;  %8861 = vst [vmem:[#allocation90_spill] sm:$0xff] %v5426_v50  ;;  %v5443_v49 = vmul.f32 0.036000773, %v5179_v8  ;;  %v5446_v50 = vmul.f32 0.036000773, %v5193_v0 }
 0x15b   : > { %941 = vrot.lane.b32.xlu1 %v5429_v56, %s4571_s6  ;;  %943 = vrot.lane.b32.xlu0 %v5432_v16, %s4571_s6 }
 0x15c   : > { %8866 = vst [vmem:[#allocation95_spill] sm:$0xff] %v5443_v49  ;;  %8867 = vst [vmem:[#allocation96_spill] sm:$0xff] %v5446_v50 }
 0x15d   : > { %v5438_v55 = vpop.permute.xlu1 %669  ;;  %v5440_v11 = vpop.permute.xlu0 %671 }
 0x15e   : > { %8864 = vst [vmem:[#allocation93_spill] sm:$0xff] %v5438_v55  ;;  %8865 = vst [vmem:[#allocation94_spill] sm:$0xff] %v5440_v11  ;;  %v5457_v55 = vmul.f32 0.036000773, %v5195_v2  ;;  %v5460_v11 = vmul.f32 0.036000773, %v5209_v51 }
 0x15f   : > { %945 = vrot.lane.b32.xlu1 %v5443_v49, %s4571_s6  ;;  %947 = vrot.lane.b32.xlu0 %v5446_v50, %s4571_s6 }
 0x160   : > { %8870 = vst [vmem:[#allocation99_spill] sm:$0xff] %v5457_v55  ;;  %8871 = vst [vmem:[#allocation100_spill] sm:$0xff] %v5460_v11 }
 0x161   : > { %v5452_v56 = vpop.permute.xlu1 %673  ;;  %v5454_v10 = vpop.permute.xlu0 %675 }
 0x162   : > { %8868 = vst [vmem:[#allocation97_spill] sm:$0xff] %v5452_v56  ;;  %8869 = vst [vmem:[#allocation98_spill] sm:$0xff] %v5454_v10  ;;  %v5471_v56 = vmul.f32 0.036000773, %v5211_v42  ;;  %v5474_v10 = vmul.f32 0.036000773, %v5225_v26 }
 0x163   : > { %949 = vrot.lane.b32.xlu1 %v5457_v55, %s4571_s6  ;;  %951 = vrot.lane.b32.xlu0 %v5460_v11, %s4571_s6  ;;  %v5485_v11 = vmul.f32 0.036000773, %v5227_v24 }
 0x164   : > { %8874 = vst [vmem:[#allocation103_spill] sm:$0xff] %v5471_v56  ;;  %8875 = vst [vmem:[#allocation104_spill] sm:$0xff] %v5474_v10 }
 0x165   : > { %v5466_v49 = vpop.permute.xlu1 %677  ;;  %v5468_v16 = vpop.permute.xlu0 %679  ;;  %8878 = vst [vmem:[#allocation107_spill] sm:$0xff] %v5485_v11 }
 0x166   : > { %8872 = vst [vmem:[#allocation101_spill] sm:$0xff] %v5466_v49  ;;  %8873 = vst [vmem:[#allocation102_spill] sm:$0xff] %v5468_v16  ;;  %v5488_v16 = vmul.f32 0.036000773, %v5241_v32 }
 0x167   : > { %953 = vrot.lane.b32.xlu1 %v5471_v56, %s4571_s6  ;;  %955 = vrot.lane.b32.xlu0 %v5474_v10, %s4571_s6  ;;  %v5499_v10 = vmul.f32 0.036000773, %v5243_v59 }
 0x168   : > { %8879 = vst [vmem:[#allocation108_spill] sm:$0xff] %v5488_v16 }
 0x169   : > { %v5480_v55 = vpop.permute.xlu1 %681  ;;  %v5482_v50 = vpop.permute.xlu0 %683  ;;  %8882 = vst [vmem:[#allocation111_spill] sm:$0xff] %v5499_v10 }
 0x16a   : > { %8876 = vst [vmem:[#allocation105_spill] sm:$0xff] %v5480_v55  ;;  %8877 = vst [vmem:[#allocation106_spill] sm:$0xff] %v5482_v50  ;;  %v5502_v50 = vmul.f32 0.036000773, %v5255_v14 }
 0x16b   : > { %957 = vrot.lane.b32.xlu1 %v5485_v11, %s4571_s6  ;;  %959 = vrot.lane.b32.xlu0 %v5488_v16, %s4571_s6  ;;  %v5513_v16 = vmul.f32 0.036000773, %v5257_v6 }
 0x16c   : > { %8883 = vst [vmem:[#allocation112_spill] sm:$0xff] %v5502_v50 }
 0x16d   : > { %v5494_v56 = vpop.permute.xlu1 %685  ;;  %v5496_v49 = vpop.permute.xlu0 %687  ;;  %8886 = vst [vmem:[#allocation115_spill] sm:$0xff] %v5513_v16 }
 0x16e   : > { %8880 = vst [vmem:[#allocation109_spill] sm:$0xff] %v5494_v56  ;;  %8881 = vst [vmem:[#allocation110_spill] sm:$0xff] %v5496_v49  ;;  %v5516_v49 = vmul.f32 0.10936069, %v4955_v46 }
 0x16f   : > { %961 = vrot.lane.b32.xlu1 %v5499_v10, %s4571_s6  ;;  %963 = vrot.lane.b32.xlu0 %v5502_v50, %s4571_s6 }
 0x170   : > { %8887 = vst [vmem:[#allocation116_spill] sm:$0xff] %v5516_v49 }
 0x171   : > { %v5508_v11 = vpop.permute.xlu1 %689  ;;  %v5510_v55 = vpop.permute.xlu0 %691 }
 0x172   : > { %8884 = vst [vmem:[#allocation113_spill] sm:$0xff] %v5508_v11  ;;  %8885 = vst [vmem:[#allocation114_spill] sm:$0xff] %v5510_v55  ;;  %v5527_v11 = vmul.f32 0.10936069, %v4969_v52  ;;  %v5530_v55 = vmul.f32 0.10936069, %v4957_v48 }
 0x173   : > { %965 = vrot.lane.b32.xlu1 %v5513_v16, %s4571_s6  ;;  %1127 = vrot.lane.b32.xlu0 %v5516_v49, %s4572_s14  ;;  %s4498_s6 = scalar_lea.vmem %s4497_s5, 32 }
 0x174   : > { %8890 = vst [vmem:[#allocation119_spill] sm:$0xff] %v5527_v11  ;;  %8891 = vst [vmem:[#allocation120_spill] sm:$0xff] %v5530_v55  ;;  %p4500_p7 = scmp.lt.s32.totalorder %s4498_s6, %s4492_s20 }
 0x175   : > { %v5522_v10 = vpop.permute.xlu1 %693  ;;  %v5524_v50 = vpop.permute.xlu0 %695 }
 0x176   : > { %8888 = vst [vmem:[#allocation117_spill] sm:$0xff] %v5522_v10  ;;  %8889 = vst [vmem:[#allocation118_spill] sm:$0xff] %v5524_v50  ;;  %v5541_v10 = vmul.f32 0.10936069, %v4971_v54  ;;  %v5544_v50 = vmul.f32 0.10936069, %v4985_v58  ;;  %p4501_p9 = por %p4500_p7, %p4499_p5 }
 0x177   : > { %1129 = vrot.lane.b32.xlu1 %v5527_v11, %s4572_s14  ;;  %1131 = vrot.lane.b32.xlu0 %v5530_v55, %s4572_s14 }
 0x178   : > { %8894 = vst [vmem:[#allocation123_spill] sm:$0xff] %v5541_v10  ;;  %8895 = vst [vmem:[#allocation124_spill] sm:$0xff] %v5544_v50  ;;  %p4502_p11 = pnand %p4501_p9, %p4495_p10 }
 0x179   : > { %v5536_v16 = vpop.permute.xlu1 %697  ;;  %v5538_v56 = vpop.permute.xlu0 %699 }
 0x17a   : > { %8892 = vst [vmem:[#allocation121_spill] sm:$0xff] %v5536_v16  ;;  %8893 = vst [vmem:[#allocation122_spill] sm:$0xff] %v5538_v56  ;;  %v5555_v16 = vmul.f32 0.10936069, %v4987_v60  ;;  %v5558_v56 = vmul.f32 0.10936069, %v5001_v1 }
 0x17b   : > { %1133 = vrot.lane.b32.xlu1 %v5541_v10, %s4572_s14  ;;  %1135 = vrot.lane.b32.xlu0 %v5544_v50, %s4572_s14 }
 0x17c   : > { %8898 = vst [vmem:[#allocation127_spill] sm:$0xff] %v5555_v16  ;;  %8899 = vst [vmem:[#allocation128_spill] sm:$0xff] %v5558_v56 }
 0x17d   : > { %v5550_v17 = vpop.permute.xlu1 %701  ;;  %v5552_v61 = vpop.permute.xlu0 %703 }
 0x17e   : > { %8896 = vst [vmem:[#allocation125_spill] sm:$0xff] %v5550_v17  ;;  %8897 = vst [vmem:[#allocation126_spill] sm:$0xff] %v5552_v61  ;;  %v5569_v17 = vmul.f32 0.10936069, %v5003_v3  ;;  %v5572_v61 = vmul.f32 0.10936069, %v5017_v7 }
 0x17f   : > { %1137 = vrot.lane.b32.xlu1 %v5555_v16, %s4572_s14  ;;  %1139 = vrot.lane.b32.xlu0 %v5558_v56, %s4572_s14 }
 0x180   : > { %8902 = vst [vmem:[#allocation131_spill] sm:$0xff] %v5569_v17  ;;  %8903 = vst [vmem:[#allocation132_spill] sm:$0xff] %v5572_v61 }
 0x181   : > { %v5564_v62 = vpop.permute.xlu1 %705  ;;  %v5566_v34 = vpop.permute.xlu0 %707 }
 0x182   : > { %8900 = vst [vmem:[#allocation129_spill] sm:$0xff] %v5564_v62  ;;  %8901 = vst [vmem:[#allocation130_spill] sm:$0xff] %v5566_v34  ;;  %v5583_v62 = vmul.f32 0.10936069, %v5019_v9  ;;  %v5586_v34 = vmul.f32 0.10936069, %v5033_v13 }
 0x183   : > { %1141 = vrot.lane.b32.xlu1 %v5569_v17, %s4572_s14  ;;  %1143 = vrot.lane.b32.xlu0 %v5572_v61, %s4572_s14 }
 0x184   : > { %8906 = vst [vmem:[#allocation135_spill] sm:$0xff] %v5583_v62  ;;  %8907 = vst [vmem:[#allocation136_spill] sm:$0xff] %v5586_v34 }
 0x185   : > { %v5578_v35 = vpop.permute.xlu1 %709  ;;  %v5580_v22 = vpop.permute.xlu0 %711 }
 0x186   : > { %8904 = vst [vmem:[#allocation133_spill] sm:$0xff] %v5578_v35  ;;  %8905 = vst [vmem:[#allocation134_spill] sm:$0xff] %v5580_v22  ;;  %v5597_v35 = vmul.f32 0.10936069, %v5035_v15  ;;  %v5600_v22 = vmul.f32 0.10936069, %v5049_v19 }
 0x187   : > { %1145 = vrot.lane.b32.xlu1 %v5583_v62, %s4572_s14  ;;  %1147 = vrot.lane.b32.xlu0 %v5586_v34, %s4572_s14 }
 0x188   : > { %8910 = vst [vmem:[#allocation139_spill] sm:$0xff] %v5597_v35  ;;  %8911 = vst [vmem:[#allocation140_spill] sm:$0xff] %v5600_v22 }
 0x189   : > { %v5592_v23 = vpop.permute.xlu1 %713  ;;  %v5594_v40 = vpop.permute.xlu0 %715 }
 0x18a   : > { %8908 = vst [vmem:[#allocation137_spill] sm:$0xff] %v5592_v23  ;;  %8909 = vst [vmem:[#allocation138_spill] sm:$0xff] %v5594_v40  ;;  %v5611_v23 = vmul.f32 0.10936069, %v5051_v21  ;;  %v5614_v40 = vmul.f32 0.10936069, %v5065_v25 }
 0x18b   : > { %1149 = vrot.lane.b32.xlu1 %v5597_v35, %s4572_s14  ;;  %1151 = vrot.lane.b32.xlu0 %v5600_v22, %s4572_s14 }
 0x18c   : > { %8914 = vst [vmem:[#allocation143_spill] sm:$0xff] %v5611_v23  ;;  %8915 = vst [vmem:[#allocation144_spill] sm:$0xff] %v5614_v40 }
 0x18d   : > { %v5606_v47 = vpop.permute.xlu1 %717  ;;  %v5608_v4 = vpop.permute.xlu0 %719 }
 0x18e   : > { %8912 = vst [vmem:[#allocation141_spill] sm:$0xff] %v5606_v47  ;;  %8913 = vst [vmem:[#allocation142_spill] sm:$0xff] %v5608_v4  ;;  %v5625_v47 = vmul.f32 0.10936069, %v5067_v27  ;;  %v5628_v4 = vmul.f32 0.10936069, %v5081_v31 }
 0x18f   : > { %1153 = vrot.lane.b32.xlu1 %v5611_v23, %s4572_s14  ;;  %1155 = vrot.lane.b32.xlu0 %v5614_v40, %s4572_s14 }
 0x190   : > { %8918 = vst [vmem:[#allocation147_spill] sm:$0xff] %v5625_v47  ;;  %8919 = vst [vmem:[#allocation148_spill] sm:$0xff] %v5628_v4 }
 0x191   : > { %v5620_v5 = vpop.permute.xlu1 %721  ;;  %v5622_v28 = vpop.permute.xlu0 %723 }
 0x192   : > { %8916 = vst [vmem:[#allocation145_spill] sm:$0xff] %v5620_v5  ;;  %8917 = vst [vmem:[#allocation146_spill] sm:$0xff] %v5622_v28  ;;  %v5639_v5 = vmul.f32 0.10936069, %v5083_v33  ;;  %v5642_v28 = vmul.f32 0.10936069, %v5097_v37 }
 0x193   : > { %1157 = vrot.lane.b32.xlu1 %v5625_v47, %s4572_s14  ;;  %1159 = vrot.lane.b32.xlu0 %v5628_v4, %s4572_s14 }
 0x194   : > { %8922 = vst [vmem:[#allocation151_spill] sm:$0xff] %v5639_v5  ;;  %8923 = vst [vmem:[#allocation152_spill] sm:$0xff] %v5642_v28 }
 0x195   : > { %v5634_v29 = vpop.permute.xlu1 %725  ;;  %v5636_v20 = vpop.permute.xlu0 %887 }
 0x196   : > { %8920 = vst [vmem:[#allocation149_spill] sm:$0xff] %v5634_v29  ;;  %8921 = vst [vmem:[#allocation150_spill] sm:$0xff] %v5636_v20  ;;  %v5653_v29 = vmul.f32 0.10936069, %v5099_v39  ;;  %v5656_v20 = vmul.f32 0.10936069, %v5113_v43 }
 0x197   : > { %1161 = vrot.lane.b32.xlu1 %v5639_v5, %s4572_s14  ;;  %1163 = vrot.lane.b32.xlu0 %v5642_v28, %s4572_s14 }
 0x198   : > { %8926 = vst [vmem:[#allocation155_spill] sm:$0xff] %v5653_v29  ;;  %8927 = vst [vmem:[#allocation156_spill] sm:$0xff] %v5656_v20 }
 0x199   : > { %v5648_v38 = vpop.permute.xlu1 %889  ;;  %v5650_v41 = vpop.permute.xlu0 %891 }
 0x19a   : > { %8924 = vst [vmem:[#allocation153_spill] sm:$0xff] %v5648_v38  ;;  %8925 = vst [vmem:[#allocation154_spill] sm:$0xff] %v5650_v41  ;;  %v5667_v38 = vmul.f32 0.10936069, %v5115_v45  ;;  %v5670_v41 = vmul.f32 0.10936069, %v5129_v57 }
 0x19b   : > { %1165 = vrot.lane.b32.xlu1 %v5653_v29, %s4572_s14  ;;  %1167 = vrot.lane.b32.xlu0 %v5656_v20, %s4572_s14 }
 0x19c   : > { %8930 = vst [vmem:[#allocation159_spill] sm:$0xff] %v5667_v38  ;;  %8931 = vst [vmem:[#allocation160_spill] sm:$0xff] %v5670_v41 }
 0x19d   : > { %v5662_v44 = vpop.permute.xlu1 %893  ;;  %v5664_v5 = vpop.permute.xlu0 %895 }
 0x19e   : > { %8928 = vst [vmem:[#allocation157_spill] sm:$0xff] %v5662_v44  ;;  %8929 = vst [vmem:[#allocation158_spill] sm:$0xff] %v5664_v5  ;;  %v5681_v44 = vmul.f32 0.10936069, %v5131_v63  ;;  %v5684_v5 = vmul.f32 0.10936069, %v5145_v12 }
 0x19f   : > { %1169 = vrot.lane.b32.xlu1 %v5667_v38, %s4572_s14  ;;  %1171 = vrot.lane.b32.xlu0 %v5670_v41, %s4572_s14 }
 0x1a0   : > { %8934 = vst [vmem:[#allocation163_spill] sm:$0xff] %v5681_v44  ;;  %8935 = vst [vmem:[#allocation164_spill] sm:$0xff] %v5684_v5 }
 0x1a1   : > { %v5676_v29 = vpop.permute.xlu1 %897  ;;  %v5678_v28 = vpop.permute.xlu0 %899 }
 0x1a2   : > { %8932 = vst [vmem:[#allocation161_spill] sm:$0xff] %v5676_v29  ;;  %8933 = vst [vmem:[#allocation162_spill] sm:$0xff] %v5678_v28  ;;  %v5695_v29 = vmul.f32 0.10936069, %v5147_v18  ;;  %v5698_v28 = vmul.f32 0.10936069, %v5161_v30 }
 0x1a3   : > { %1173 = vrot.lane.b32.xlu1 %v5681_v44, %s4572_s14  ;;  %1175 = vrot.lane.b32.xlu0 %v5684_v5, %s4572_s14 }
 0x1a4   : > { %8938 = vst [vmem:[#allocation167_spill] sm:$0xff] %v5695_v29  ;;  %8939 = vst [vmem:[#allocation168_spill] sm:$0xff] %v5698_v28 }
 0x1a5   : > { %v5690_v38 = vpop.permute.xlu1 %901  ;;  %v5692_v20 = vpop.permute.xlu0 %903 }
 0x1a6   : > { %8936 = vst [vmem:[#allocation165_spill] sm:$0xff] %v5690_v38  ;;  %8937 = vst [vmem:[#allocation166_spill] sm:$0xff] %v5692_v20  ;;  %v5709_v38 = vmul.f32 0.10936069, %v5163_v36  ;;  %v5712_v20 = vmul.f32 0.10936069, %v5177_v53 }
 0x1a7   : > { %1177 = vrot.lane.b32.xlu1 %v5695_v29, %s4572_s14  ;;  %1179 = vrot.lane.b32.xlu0 %v5698_v28, %s4572_s14 }
 0x1a8   : > { %8942 = vst [vmem:[#allocation171_spill] sm:$0xff] %v5709_v38  ;;  %8943 = vst [vmem:[#allocation172_spill] sm:$0xff] %v5712_v20 }
 0x1a9   : > { %v5704_v44 = vpop.permute.xlu1 %905  ;;  %v5706_v41 = vpop.permute.xlu0 %907 }
 0x1aa   : > { %8940 = vst [vmem:[#allocation169_spill] sm:$0xff] %v5704_v44  ;;  %8941 = vst [vmem:[#allocation170_spill] sm:$0xff] %v5706_v41  ;;  %v5723_v44 = vmul.f32 0.10936069, %v5179_v8  ;;  %v5726_v41 = vmul.f32 0.10936069, %v5193_v0 }
 0x1ab   : > { %1181 = vrot.lane.b32.xlu1 %v5709_v38, %s4572_s14  ;;  %1183 = vrot.lane.b32.xlu0 %v5712_v20, %s4572_s14 }
 0x1ac   : > { %8946 = vst [vmem:[#allocation175_spill] sm:$0xff] %v5723_v44  ;;  %8947 = vst [vmem:[#allocation176_spill] sm:$0xff] %v5726_v41 }
 0x1ad   : > { %v5718_v29 = vpop.permute.xlu1 %909  ;;  %v5720_v5 = vpop.permute.xlu0 %911 }
 0x1ae   : > { %8944 = vst [vmem:[#allocation173_spill] sm:$0xff] %v5718_v29  ;;  %8945 = vst [vmem:[#allocation174_spill] sm:$0xff] %v5720_v5  ;;  %v5737_v29 = vmul.f32 0.10936069, %v5195_v2  ;;  %v5740_v5 = vmul.f32 0.10936069, %v5209_v51 }
 0x1af   : > { %1185 = vrot.lane.b32.xlu1 %v5723_v44, %s4572_s14  ;;  %1187 = vrot.lane.b32.xlu0 %v5726_v41, %s4572_s14 }
 0x1b0   : > { %8950 = vst [vmem:[#allocation179_spill] sm:$0xff] %v5737_v29  ;;  %8951 = vst [vmem:[#allocation180_spill] sm:$0xff] %v5740_v5 }
 0x1b1   : > { %v5732_v38 = vpop.permute.xlu1 %913  ;;  %v5734_v28 = vpop.permute.xlu0 %915 }
 0x1b2   : > { %8948 = vst [vmem:[#allocation177_spill] sm:$0xff] %v5732_v38  ;;  %8949 = vst [vmem:[#allocation178_spill] sm:$0xff] %v5734_v28  ;;  %v5751_v38 = vmul.f32 0.10936069, %v5211_v42  ;;  %v5754_v28 = vmul.f32 0.10936069, %v5225_v26 }
 0x1b3   : > { %1189 = vrot.lane.b32.xlu1 %v5737_v29, %s4572_s14  ;;  %1191 = vrot.lane.b32.xlu0 %v5740_v5, %s4572_s14 }
 0x1b4   : > { %8954 = vst [vmem:[#allocation183_spill] sm:$0xff] %v5751_v38  ;;  %8955 = vst [vmem:[#allocation184_spill] sm:$0xff] %v5754_v28 }
 0x1b5   : > { %v5746_v44 = vpop.permute.xlu1 %917  ;;  %v5748_v20 = vpop.permute.xlu0 %919 }
 0x1b6   : > { %8952 = vst [vmem:[#allocation181_spill] sm:$0xff] %v5746_v44  ;;  %8953 = vst [vmem:[#allocation182_spill] sm:$0xff] %v5748_v20  ;;  %v5765_v44 = vmul.f32 0.10936069, %v5227_v24  ;;  %v5768_v20 = vmul.f32 0.10936069, %v5241_v32 }
 0x1b7   : > { %1193 = vrot.lane.b32.xlu1 %v5751_v38, %s4572_s14  ;;  %1195 = vrot.lane.b32.xlu0 %v5754_v28, %s4572_s14 }
 0x1b8   : > { %8958 = vst [vmem:[#allocation187_spill] sm:$0xff] %v5765_v44  ;;  %8959 = vst [vmem:[#allocation188_spill] sm:$0xff] %v5768_v20 }
 0x1b9   : > { %v5760_v29 = vpop.permute.xlu1 %921  ;;  %v5762_v41 = vpop.permute.xlu0 %923 }
 0x1ba   : > { %8956 = vst [vmem:[#allocation185_spill] sm:$0xff] %v5760_v29  ;;  %8957 = vst [vmem:[#allocation186_spill] sm:$0xff] %v5762_v41  ;;  %v5779_v29 = vmul.f32 0.10936069, %v5243_v59  ;;  %v5782_v41 = vmul.f32 0.10936069, %v5255_v14 }
 0x1bb   : > { %1197 = vrot.lane.b32.xlu1 %v5765_v44, %s4572_s14  ;;  %1199 = vrot.lane.b32.xlu0 %v5768_v20, %s4572_s14 }
 0x1bc   : > { %8962 = vst [vmem:[#allocation191_spill] sm:$0xff] %v5779_v29  ;;  %8963 = vst [vmem:[#allocation192_spill] sm:$0xff] %v5782_v41 }
 0x1bd   : > { %v5774_v38 = vpop.permute.xlu1 %925  ;;  %v5776_v5 = vpop.permute.xlu0 %927 }
 0x1be   : > { %8960 = vst [vmem:[#allocation189_spill] sm:$0xff] %v5774_v38  ;;  %8961 = vst [vmem:[#allocation190_spill] sm:$0xff] %v5776_v5  ;;  %v5793_v38 = vmul.f32 0.10936069, %v5257_v6  ;;  %v5796_v5 = vmul.f32 0.21300554, %v4955_v46 }
 0x1bf   : > { %1201 = vrot.lane.b32.xlu1 %v5779_v29, %s4572_s14  ;;  %1203 = vrot.lane.b32.xlu0 %v5782_v41, %s4572_s14 }
 0x1c0   : > { %8966 = vst [vmem:[#allocation195_spill] sm:$0xff] %v5793_v38 }
 0x1c1   : > { %v5788_v44 = vpop.permute.xlu1 %929  ;;  %v5790_v28 = vpop.permute.xlu0 %931 }
 0x1c2   : > { %8964 = vst [vmem:[#allocation193_spill] sm:$0xff] %v5788_v44  ;;  %8965 = vst [vmem:[#allocation194_spill] sm:$0xff] %v5790_v28  ;;  %v5807_v44 = vmul.f32 0.21300554, %v4969_v52  ;;  %v5810_v28 = vmul.f32 0.21300554, %v4957_v48 }
 0x1c3   : > { %1205 = vrot.lane.b32.xlu1 %v5793_v38, %s4572_s14  ;;  %1367 = vrot.lane.b32.xlu0 %v5796_v5, %s4573_s17 }
 0x1c5   : > { %v5802_v29 = vpop.permute.xlu1 %933  ;;  %v5804_v41 = vpop.permute.xlu0 %935 }
 0x1c6   : > { %8967 = vst [vmem:[#allocation196_spill] sm:$0xff] %v5802_v29  ;;  %8968 = vst [vmem:[#allocation197_spill] sm:$0xff] %v5804_v41  ;;  %v5821_v29 = vmul.f32 0.21300554, %v4971_v54  ;;  %v5824_v41 = vmul.f32 0.21300554, %v4985_v58 }
 0x1c7   : > { %1369 = vrot.lane.b32.xlu1 %v5807_v44, %s4573_s17  ;;  %1371 = vrot.lane.b32.xlu0 %v5810_v28, %s4573_s17 }
 0x1c9   : > { %v5816_v46 = vpop.permute.xlu1 %937  ;;  %v5818_v38 = vpop.permute.xlu0 %939 }
 0x1ca   : > { %8969 = vst [vmem:[#allocation198_spill] sm:$0xff] %v5816_v46  ;;  %8970 = vst [vmem:[#allocation199_spill] sm:$0xff] %v5818_v38  ;;  %v5835_v46 = vmul.f32 0.21300554, %v4987_v60  ;;  %v5838_v38 = vmul.f32 0.21300554, %v5001_v1 }
 0x1cb   : > { %1373 = vrot.lane.b32.xlu1 %v5821_v29, %s4573_s17  ;;  %1375 = vrot.lane.b32.xlu0 %v5824_v41, %s4573_s17 }
 0x1cd   : > { %v5830_v48 = vpop.permute.xlu1 %941  ;;  %v5832_v52 = vpop.permute.xlu0 %943 }
 0x1ce   : > { %8971 = vst [vmem:[#allocation200_spill] sm:$0xff] %v5830_v48  ;;  %8972 = vst [vmem:[#allocation201_spill] sm:$0xff] %v5832_v52  ;;  %v5849_v48 = vmul.f32 0.21300554, %v5003_v3  ;;  %v5852_v52 = vmul.f32 0.21300554, %v5017_v7 }
 0x1cf   : > { %1377 = vrot.lane.b32.xlu1 %v5835_v46, %s4573_s17  ;;  %1379 = vrot.lane.b32.xlu0 %v5838_v38, %s4573_s17 }
 0x1d1   : > { %v5844_v54 = vpop.permute.xlu1 %945  ;;  %v5846_v58 = vpop.permute.xlu0 %947 }
 0x1d2   : > { %8973 = vst [vmem:[#allocation202_spill] sm:$0xff] %v5844_v54  ;;  %8974 = vst [vmem:[#allocation203_spill] sm:$0xff] %v5846_v58  ;;  %v5863_v54 = vmul.f32 0.21300554, %v5019_v9  ;;  %v5866_v58 = vmul.f32 0.21300554, %v5033_v13 }
 0x1d3   : > { %1381 = vrot.lane.b32.xlu1 %v5849_v48, %s4573_s17  ;;  %1383 = vrot.lane.b32.xlu0 %v5852_v52, %s4573_s17 }
 0x1d5   : > { %v5858_v60 = vpop.permute.xlu1 %949  ;;  %v5860_v1 = vpop.permute.xlu0 %951 }
 0x1d6   : > { %8975 = vst [vmem:[#allocation204_spill] sm:$0xff] %v5858_v60  ;;  %8976 = vst [vmem:[#allocation205_spill] sm:$0xff] %v5860_v1  ;;  %v5877_v60 = vmul.f32 0.21300554, %v5035_v15  ;;  %v5880_v1 = vmul.f32 0.21300554, %v5049_v19 }
 0x1d7   : > { %1385 = vrot.lane.b32.xlu1 %v5863_v54, %s4573_s17  ;;  %1387 = vrot.lane.b32.xlu0 %v5866_v58, %s4573_s17 }
 0x1d9   : > { %v5872_v3 = vpop.permute.xlu1 %953  ;;  %v5874_v7 = vpop.permute.xlu0 %955 }
 0x1da   : > { %8977 = vst [vmem:[#allocation206_spill] sm:$0xff] %v5872_v3  ;;  %8978 = vst [vmem:[#allocation207_spill] sm:$0xff] %v5874_v7  ;;  %v5891_v3 = vmul.f32 0.21300554, %v5051_v21  ;;  %v5894_v7 = vmul.f32 0.21300554, %v5065_v25 }
 0x1db   : > { %1389 = vrot.lane.b32.xlu1 %v5877_v60, %s4573_s17  ;;  %1391 = vrot.lane.b32.xlu0 %v5880_v1, %s4573_s17 }
 0x1dd   : > { %v5886_v9 = vpop.permute.xlu1 %957  ;;  %v5888_v13 = vpop.permute.xlu0 %959 }
 0x1de   : > { %8979 = vst [vmem:[#allocation208_spill] sm:$0xff] %v5886_v9  ;;  %8980 = vst [vmem:[#allocation209_spill] sm:$0xff] %v5888_v13  ;;  %v5905_v9 = vmul.f32 0.21300554, %v5067_v27  ;;  %v5908_v13 = vmul.f32 0.21300554, %v5081_v31 }
 0x1df   : > { %1393 = vrot.lane.b32.xlu1 %v5891_v3, %s4573_s17  ;;  %1395 = vrot.lane.b32.xlu0 %v5894_v7, %s4573_s17 }
 0x1e1   : > { %v5900_v15 = vpop.permute.xlu1 %961  ;;  %v5902_v19 = vpop.permute.xlu0 %963 }
 0x1e2   : > { %8981 = vst [vmem:[#allocation210_spill] sm:$0xff] %v5900_v15  ;;  %8982 = vst [vmem:[#allocation211_spill] sm:$0xff] %v5902_v19  ;;  %v5919_v15 = vmul.f32 0.21300554, %v5083_v33  ;;  %v5922_v19 = vmul.f32 0.21300554, %v5097_v37 }
 0x1e3   : > { %1397 = vrot.lane.b32.xlu1 %v5905_v9, %s4573_s17  ;;  %1399 = vrot.lane.b32.xlu0 %v5908_v13, %s4573_s17 }
 0x1e5   : > { %v5914_v21 = vpop.permute.xlu1 %965  ;;  %v5916_v20 = vpop.permute.xlu0 %1127 }
 0x1e6   : > { %8983 = vst [vmem:[#allocation212_spill] sm:$0xff] %v5914_v21  ;;  %8984 = vst [vmem:[#allocation213_spill] sm:$0xff] %v5916_v20  ;;  %v5933_v21 = vmul.f32 0.21300554, %v5099_v39  ;;  %v5936_v20 = vmul.f32 0.21300554, %v5113_v43 }
 0x1e7   : > { %1401 = vrot.lane.b32.xlu1 %v5919_v15, %s4573_s17  ;;  %1403 = vrot.lane.b32.xlu0 %v5922_v19, %s4573_s17 }
 0x1e9   : > { %v5928_v27 = vpop.permute.xlu1 %1129  ;;  %v5930_v4 = vpop.permute.xlu0 %1131 }
 0x1ea   : > { %8985 = vst [vmem:[#allocation214_spill] sm:$0xff] %v5928_v27  ;;  %8986 = vst [vmem:[#allocation215_spill] sm:$0xff] %v5930_v4  ;;  %v5947_v27 = vmul.f32 0.21300554, %v5115_v45  ;;  %v5950_v4 = vmul.f32 0.21300554, %v5129_v57 }
 0x1eb   : > { %1405 = vrot.lane.b32.xlu1 %v5933_v21, %s4573_s17  ;;  %1407 = vrot.lane.b32.xlu0 %v5936_v20, %s4573_s17 }
 0x1ed   : > { %v5942_v47 = vpop.permute.xlu1 %1133  ;;  %v5944_v40 = vpop.permute.xlu0 %1135 }
 0x1ee   : > { %8987 = vst [vmem:[#allocation216_spill] sm:$0xff] %v5942_v47  ;;  %8988 = vst [vmem:[#allocation217_spill] sm:$0xff] %v5944_v40  ;;  %v5961_v47 = vmul.f32 0.21300554, %v5131_v63  ;;  %v5964_v40 = vmul.f32 0.21300554, %v5145_v12 }
 0x1ef   : > { %1409 = vrot.lane.b32.xlu1 %v5947_v27, %s4573_s17  ;;  %1411 = vrot.lane.b32.xlu0 %v5950_v4, %s4573_s17 }
 0x1f1   : > { %v5956_v23 = vpop.permute.xlu1 %1137  ;;  %v5958_v22 = vpop.permute.xlu0 %1139 }
 0x1f2   : > { %8989 = vst [vmem:[#allocation218_spill] sm:$0xff] %v5956_v23  ;;  %8990 = vst [vmem:[#allocation219_spill] sm:$0xff] %v5958_v22  ;;  %v5975_v23 = vmul.f32 0.21300554, %v5147_v18  ;;  %v5978_v22 = vmul.f32 0.21300554, %v5161_v30 }
 0x1f3   : > { %1413 = vrot.lane.b32.xlu1 %v5961_v47, %s4573_s17  ;;  %1415 = vrot.lane.b32.xlu0 %v5964_v40, %s4573_s17 }
 0x1f5   : > { %v5970_v35 = vpop.permute.xlu1 %1141  ;;  %v5972_v34 = vpop.permute.xlu0 %1143 }
 0x1f6   : > { %8991 = vst [vmem:[#allocation220_spill] sm:$0xff] %v5970_v35  ;;  %8992 = vst [vmem:[#allocation221_spill] sm:$0xff] %v5972_v34  ;;  %v5989_v35 = vmul.f32 0.21300554, %v5163_v36  ;;  %v5992_v34 = vmul.f32 0.21300554, %v5177_v53 }
 0x1f7   : > { %1417 = vrot.lane.b32.xlu1 %v5975_v23, %s4573_s17  ;;  %1419 = vrot.lane.b32.xlu0 %v5978_v22, %s4573_s17 }
 0x1f9   : > { %v5984_v62 = vpop.permute.xlu1 %1145  ;;  %v5986_v61 = vpop.permute.xlu0 %1147 }
 0x1fa   : > { %8993 = vst [vmem:[#allocation222_spill] sm:$0xff] %v5984_v62  ;;  %8994 = vst [vmem:[#allocation223_spill] sm:$0xff] %v5986_v61  ;;  %v6003_v62 = vmul.f32 0.21300554, %v5179_v8  ;;  %v6006_v61 = vmul.f32 0.21300554, %v5193_v0 }
 0x1fb   : > { %1421 = vrot.lane.b32.xlu1 %v5989_v35, %s4573_s17  ;;  %1423 = vrot.lane.b32.xlu0 %v5992_v34, %s4573_s17 }
 0x1fc   : > { %8997 = vst [vmem:[#allocation226_spill] sm:$0xff] %v6006_v61 }
 0x1fd   : > { %v5998_v17 = vpop.permute.xlu1 %1149  ;;  %v6000_v56 = vpop.permute.xlu0 %1151 }
 0x1fe   : > { %8995 = vst [vmem:[#allocation224_spill] sm:$0xff] %v5998_v17  ;;  %8996 = vst [vmem:[#allocation225_spill] sm:$0xff] %v6000_v56  ;;  %v6017_v17 = vmul.f32 0.21300554, %v5195_v2  ;;  %v6020_v56 = vmul.f32 0.21300554, %v5209_v51 }
 0x1ff   : > { %1425 = vrot.lane.b32.xlu1 %v6003_v62, %s4573_s17  ;;  %1427 = vrot.lane.b32.xlu0 %v6006_v61, %s4573_s17 }
 0x200   : > { %9000 = vst [vmem:[#allocation229_spill] sm:$0xff] %v6017_v17  ;;  %9001 = vst [vmem:[#allocation230_spill] sm:$0xff] %v6020_v56 }
 0x201   : > { %v6012_v16 = vpop.permute.xlu1 %1153  ;;  %v6014_v50 = vpop.permute.xlu0 %1155 }
 0x202   : > { %8998 = vst [vmem:[#allocation227_spill] sm:$0xff] %v6012_v16  ;;  %8999 = vst [vmem:[#allocation228_spill] sm:$0xff] %v6014_v50  ;;  %v6031_v16 = vmul.f32 0.21300554, %v5211_v42  ;;  %v6034_v50 = vmul.f32 0.21300554, %v5225_v26 }
 0x203   : > { %1429 = vrot.lane.b32.xlu1 %v6017_v17, %s4573_s17  ;;  %1431 = vrot.lane.b32.xlu0 %v6020_v56, %s4573_s17  ;;  %v6088_v17 = vld [vmem:[#allocation2 + $0x10] sm:$0xff] }
 0x204   : > { %9004 = vst [vmem:[#allocation233_spill] sm:$0xff] %v6031_v16  ;;  %9005 = vst [vmem:[#allocation234_spill] sm:$0xff] %v6034_v50  ;;  %v1529_v61 = vmul.f32 0.26601171, %v6088_v17 }
 0x205   : > { %v6026_v10 = vpop.permute.xlu1 %1157  ;;  %v6028_v55 = vpop.permute.xlu0 %1159  ;;  %9021 = vst [vmem:[#allocation250_spill] sm:$0xff] %v6088_v17 }
 0x206   : > { %9002 = vst [vmem:[#allocation231_spill] sm:$0xff] %v6026_v10  ;;  %9003 = vst [vmem:[#allocation232_spill] sm:$0xff] %v6028_v55  ;;  %v6045_v10 = vmul.f32 0.21300554, %v5227_v24  ;;  %v6048_v55 = vmul.f32 0.21300554, %v5241_v32 }
 0x207   : > { %1433 = vrot.lane.b32.xlu1 %v6031_v16, %s4573_s17  ;;  %1435 = vrot.lane.b32.xlu0 %v6034_v50, %s4573_s17 }
 0x208   : > { %9008 = vst [vmem:[#allocation237_spill] sm:$0xff] %v6045_v10  ;;  %9009 = vst [vmem:[#allocation238_spill] sm:$0xff] %v6048_v55 }
 0x209   : > { %v6040_v11 = vpop.permute.xlu1 %1161  ;;  %v6042_v49 = vpop.permute.xlu0 %1163 }
 0x20a   : > { %9006 = vst [vmem:[#allocation235_spill] sm:$0xff] %v6040_v11  ;;  %9007 = vst [vmem:[#allocation236_spill] sm:$0xff] %v6042_v49  ;;  %v6059_v11 = vmul.f32 0.21300554, %v5243_v59  ;;  %v6062_v49 = vmul.f32 0.21300554, %v5255_v14 }
 0x20b   : > { %1437 = vrot.lane.b32.xlu1 %v6045_v10, %s4573_s17  ;;  %1439 = vrot.lane.b32.xlu0 %v6048_v55, %s4573_s17 }
 0x20c   : > { %9012 = vst [vmem:[#allocation241_spill] sm:$0xff] %v6059_v11  ;;  %9013 = vst [vmem:[#allocation242_spill] sm:$0xff] %v6062_v49 }
 0x20d   : > { %v6054_v16 = vpop.permute.xlu1 %1165  ;;  %v6056_v56 = vpop.permute.xlu0 %1167 }
 0x20e   : > { %9010 = vst [vmem:[#allocation239_spill] sm:$0xff] %v6054_v16  ;;  %9011 = vst [vmem:[#allocation240_spill] sm:$0xff] %v6056_v56  ;;  %v6073_v16 = vmul.f32 0.21300554, %v5257_v6  ;;  %v6075_v56 = vld [vmem:[#allocation2] sm:$0xff] }
 0x20f   : > { %1441 = vrot.lane.b32.xlu1 %v6059_v11, %s4573_s17  ;;  %1443 = vrot.lane.b32.xlu0 %v6062_v49, %s4573_s17  ;;  %9017 = vst [vmem:[#allocation246_spill] sm:$0xff] %v6075_v56  ;;  %v1527_v55 = vmul.f32 0.26601171, %v6075_v56 }
 0x210   : > { %9016 = vst [vmem:[#allocation245_spill] sm:$0xff] %v6073_v16 }
 0x211   : > { %v6068_v10 = vpop.permute.xlu1 %1169  ;;  %v6070_v50 = vpop.permute.xlu0 %1171 }
 0x212   : > { %9014 = vst [vmem:[#allocation243_spill] sm:$0xff] %v6068_v10  ;;  %9015 = vst [vmem:[#allocation244_spill] sm:$0xff] %v6070_v50  ;;  %v6085_v10 = vld [vmem:[#allocation2 + $0x8] sm:$0xff] }
 0x213   : > { %1445 = vrot.lane.b32.xlu1 %v6073_v16, %s4573_s17  ;;  %1607 = vrot.lane.b32.xlu0 %v1527_v55, %s4574_s28  ;;  %9020 = vst [vmem:[#allocation249_spill] sm:$0xff] %v6085_v10  ;;  %v1528_v50 = vmul.f32 0.26601171, %v6085_v10  ;;  %v6097_v55 = vld [vmem:[#allocation2 + $0x18] sm:$0xff] }
 0x214   : > { %9024 = vst [vmem:[#allocation253_spill] sm:$0xff] %v6097_v55 }
 0x215   : > { %v6081_v11 = vpop.permute.xlu1 %1173  ;;  %v6083_v49 = vpop.permute.xlu0 %1175 }
 0x216   : > { %9018 = vst [vmem:[#allocation247_spill] sm:$0xff] %v6081_v11  ;;  %9019 = vst [vmem:[#allocation248_spill] sm:$0xff] %v6083_v49  ;;  %v1530_v49 = vmul.f32 0.26601171, %v6097_v55  ;;  %v6100_v11 = vld [vmem:[#allocation2 + $0x20] sm:$0xff] }
 0x217   : > { %1609 = vrot.lane.b32.xlu1 %v1528_v50, %s4574_s28  ;;  %1611 = vrot.lane.b32.xlu0 %v1529_v61, %s4574_s28  ;;  %9025 = vst [vmem:[#allocation254_spill] sm:$0xff] %v6100_v11  ;;  %v1531_v10 = vmul.f32 0.26601171, %v6100_v11  ;;  %v6109_v61 = vld [vmem:[#allocation2 + $0x28] sm:$0xff] }
 0x218   : > { %9028 = vst [vmem:[#allocation257_spill] sm:$0xff] %v6109_v61 }
 0x219   : > { %v6093_v56 = vpop.permute.xlu1 %1177  ;;  %v6095_v16 = vpop.permute.xlu0 %1179 }
 0x21a   : > { %9022 = vst [vmem:[#allocation251_spill] sm:$0xff] %v6093_v56  ;;  %9023 = vst [vmem:[#allocation252_spill] sm:$0xff] %v6095_v16  ;;  %v1532_v16 = vmul.f32 0.26601171, %v6109_v61  ;;  %v6112_v56 = vld [vmem:[#allocation2 + $0x30] sm:$0xff] }
 0x21b   : > { %1613 = vrot.lane.b32.xlu1 %v1530_v49, %s4574_s28  ;;  %1615 = vrot.lane.b32.xlu0 %v1531_v10, %s4574_s28  ;;  %9029 = vst [vmem:[#allocation258_spill] sm:$0xff] %v6112_v56  ;;  %v1533_v55 = vmul.f32 0.26601171, %v6112_v56  ;;  %v6121_v10 = vld [vmem:[#allocation2 + $0x38] sm:$0xff] }
 0x21c   : > { %9032 = vst [vmem:[#allocation261_spill] sm:$0xff] %v6121_v10 }
 0x21d   : > { %v6105_v17 = vpop.permute.xlu1 %1181  ;;  %v6107_v50 = vpop.permute.xlu0 %1183 }
 0x21e   : > { %9026 = vst [vmem:[#allocation255_spill] sm:$0xff] %v6105_v17  ;;  %9027 = vst [vmem:[#allocation256_spill] sm:$0xff] %v6107_v50  ;;  %v1534_v50 = vmul.f32 0.26601171, %v6121_v10  ;;  %v6124_v17 = vld [vmem:[#allocation2 + $0x40] sm:$0xff] }
 0x21f   : > { %1617 = vrot.lane.b32.xlu1 %v1532_v16, %s4574_s28  ;;  %1619 = vrot.lane.b32.xlu0 %v1533_v55, %s4574_s28  ;;  %9033 = vst [vmem:[#allocation262_spill] sm:$0xff] %v6124_v17  ;;  %v1535_v61 = vmul.f32 0.26601171, %v6124_v17  ;;  %v6133_v55 = vld [vmem:[#allocation2 + $0x48] sm:$0xff] }
 0x220   : > { %9036 = vst [vmem:[#allocation265_spill] sm:$0xff] %v6133_v55 }
 0x221   : > { %v6117_v11 = vpop.permute.xlu1 %1185  ;;  %v6119_v49 = vpop.permute.xlu0 %1187 }
 0x222   : > { %9030 = vst [vmem:[#allocation259_spill] sm:$0xff] %v6117_v11  ;;  %9031 = vst [vmem:[#allocation260_spill] sm:$0xff] %v6119_v49  ;;  %v1536_v49 = vmul.f32 0.26601171, %v6133_v55  ;;  %v6136_v11 = vld [vmem:[#allocation2 + $0x50] sm:$0xff] }
 0x223   : > { %1621 = vrot.lane.b32.xlu1 %v1534_v50, %s4574_s28  ;;  %1623 = vrot.lane.b32.xlu0 %v1535_v61, %s4574_s28  ;;  %9037 = vst [vmem:[#allocation266_spill] sm:$0xff] %v6136_v11  ;;  %v1537_v10 = vmul.f32 0.26601171, %v6136_v11  ;;  %v6145_v61 = vld [vmem:[#allocation2 + $0x58] sm:$0xff] }
 0x224   : > { %9040 = vst [vmem:[#allocation269_spill] sm:$0xff] %v6145_v61 }
 0x225   : > { %v6129_v56 = vpop.permute.xlu1 %1189  ;;  %v6131_v16 = vpop.permute.xlu0 %1191 }
 0x226   : > { %9034 = vst [vmem:[#allocation263_spill] sm:$0xff] %v6129_v56  ;;  %9035 = vst [vmem:[#allocation264_spill] sm:$0xff] %v6131_v16  ;;  %v1538_v16 = vmul.f32 0.26601171, %v6145_v61  ;;  %v6148_v56 = vld [vmem:[#allocation2 + $0x60] sm:$0xff] }
 0x227   : > { %1625 = vrot.lane.b32.xlu1 %v1536_v49, %s4574_s28  ;;  %1627 = vrot.lane.b32.xlu0 %v1537_v10, %s4574_s28  ;;  %9041 = vst [vmem:[#allocation270_spill] sm:$0xff] %v6148_v56  ;;  %v1539_v55 = vmul.f32 0.26601171, %v6148_v56  ;;  %v6157_v10 = vld [vmem:[#allocation2 + $0x68] sm:$0xff] }
 0x229   : > { %v6141_v17 = vpop.permute.xlu1 %1193  ;;  %v6143_v50 = vpop.permute.xlu0 %1195 }
 0x22a   : > { %9038 = vst [vmem:[#allocation267_spill] sm:$0xff] %v6141_v17  ;;  %9039 = vst [vmem:[#allocation268_spill] sm:$0xff] %v6143_v50  ;;  %v1540_v50 = vmul.f32 0.26601171, %v6157_v10  ;;  %v1541_v17 = vmul.f32 0.26601171, %v5065_v25 }
 0x22b   : > { %1629 = vrot.lane.b32.xlu1 %v1538_v16, %s4574_s28  ;;  %1631 = vrot.lane.b32.xlu0 %v1539_v55, %s4574_s28  ;;  %v6167_v16 = vld [vmem:[#allocation2 + $0x78] sm:$0xff] }
 0x22c   : > { %v1542_v55 = vmul.f32 0.26601171, %v6167_v16 }
 0x22d   : > { %v6153_v11 = vpop.permute.xlu1 %1197  ;;  %v6155_v49 = vpop.permute.xlu0 %1199 }
 0x22e   : > { %9042 = vst [vmem:[#allocation271_spill] sm:$0xff] %v6153_v11  ;;  %9043 = vst [vmem:[#allocation272_spill] sm:$0xff] %v6155_v49  ;;  %v1543_v49 = vmul.f32 0.26601171, %v5081_v31  ;;  %v1546_v31 = vmul.f32 0.26601171, %v5099_v39 }
 0x22f   : > { %1633 = vrot.lane.b32.xlu1 %v1540_v50, %s4574_s28  ;;  %1635 = vrot.lane.b32.xlu0 %v1541_v17, %s4574_s28  ;;  %v1544_v17 = vmul.f32 0.26601171, %v5083_v33  ;;  %v1545_v50 = vmul.f32 0.26601171, %v5097_v37  ;;  %v1548_v37 = vmul.f32 0.26601171, %v5115_v45 }
 0x231   : > { %v6163_v61 = vpop.permute.xlu1 %1201  ;;  %v6165_v56 = vpop.permute.xlu0 %1203 }
 0x232   : > { %9044 = vst [vmem:[#allocation273_spill] sm:$0xff] %v6163_v61  ;;  %9045 = vst [vmem:[#allocation274_spill] sm:$0xff] %v6165_v56 }
 0x233   : > { %1637 = vrot.lane.b32.xlu1 %v1542_v55, %s4574_s28  ;;  %1639 = vrot.lane.b32.xlu0 %v1543_v49, %s4574_s28  ;;  %v1547_v49 = vmul.f32 0.26601171, %v5113_v43  ;;  %v1550_v43 = vmul.f32 0.26601171, %v5131_v63 }
 0x235   : > { %v6173_v11 = vpop.permute.xlu1 %1205  ;;  %v6175_v25 = vpop.permute.xlu0 %1367 }
 0x236   : > { %9046 = vst [vmem:[#allocation275_spill] sm:$0xff] %v6173_v11  ;;  %9047 = vst [vmem:[#allocation276_spill] sm:$0xff] %v6175_v25 }
 0x237   : > { %1641 = vrot.lane.b32.xlu1 %v1544_v17, %s4574_s28  ;;  %1643 = vrot.lane.b32.xlu0 %v1545_v50, %s4574_s28  ;;  %v1549_v17 = vmul.f32 0.26601171, %v5129_v57  ;;  %v1552_v57 = vmul.f32 0.26601171, %v5147_v18 }
 0x239   : > { %v6181_v56 = vpop.permute.xlu1 %1369  ;;  %v6183_v61 = vpop.permute.xlu0 %1371 }
 0x23a   : > { %9048 = vst [vmem:[#allocation277_spill] sm:$0xff] %v6181_v56  ;;  %9049 = vst [vmem:[#allocation278_spill] sm:$0xff] %v6183_v61 }
 0x23b   : > { %1645 = vrot.lane.b32.xlu1 %v1546_v31, %s4574_s28  ;;  %1647 = vrot.lane.b32.xlu0 %v1547_v49, %s4574_s28  ;;  %v1551_v31 = vmul.f32 0.26601171, %v5145_v12  ;;  %v1554_v12 = vmul.f32 0.26601171, %v5163_v36 }
 0x23d   : > { %v6189_v55 = vpop.permute.xlu1 %1373  ;;  %v6191_v33 = vpop.permute.xlu0 %1375 }
 0x23e   : > { %9050 = vst [vmem:[#allocation279_spill] sm:$0xff] %v6189_v55  ;;  %9051 = vst [vmem:[#allocation280_spill] sm:$0xff] %v6191_v33 }
 0x23f   : > { %1649 = vrot.lane.b32.xlu1 %v1548_v37, %s4574_s28  ;;  %1651 = vrot.lane.b32.xlu0 %v1549_v17, %s4574_s28  ;;  %v1553_v37 = vmul.f32 0.26601171, %v5161_v30  ;;  %v1556_v30 = vmul.f32 0.26601171, %v5179_v8 }
 0x241   : > { %v6197_v50 = vpop.permute.xlu1 %1377  ;;  %v6199_v39 = vpop.permute.xlu0 %1379 }
 0x242   : > { %9052 = vst [vmem:[#allocation281_spill] sm:$0xff] %v6197_v50  ;;  %9053 = vst [vmem:[#allocation282_spill] sm:$0xff] %v6199_v39 }
 0x243   : > { %1653 = vrot.lane.b32.xlu1 %v1550_v43, %s4574_s28  ;;  %1655 = vrot.lane.b32.xlu0 %v1551_v31, %s4574_s28  ;;  %v1555_v43 = vmul.f32 0.26601171, %v5177_v53  ;;  %v1558_v53 = vmul.f32 0.26601171, %v5195_v2 }
 0x245   : > { %v6205_v49 = vpop.permute.xlu1 %1381  ;;  %v6207_v45 = vpop.permute.xlu0 %1383 }
 0x246   : > { %9054 = vst [vmem:[#allocation283_spill] sm:$0xff] %v6205_v49  ;;  %9055 = vst [vmem:[#allocation284_spill] sm:$0xff] %v6207_v45 }
 0x247   : > { %1657 = vrot.lane.b32.xlu1 %v1552_v57, %s4574_s28  ;;  %1659 = vrot.lane.b32.xlu0 %v1553_v37, %s4574_s28  ;;  %v1557_v57 = vmul.f32 0.26601171, %v5193_v0  ;;  %v1560_v0 = vmul.f32 0.26601171, %v5211_v42 }
 0x249   : > { %v6213_v17 = vpop.permute.xlu1 %1385  ;;  %v6215_v63 = vpop.permute.xlu0 %1387 }
 0x24a   : > { %9056 = vst [vmem:[#allocation285_spill] sm:$0xff] %v6213_v17  ;;  %9057 = vst [vmem:[#allocation286_spill] sm:$0xff] %v6215_v63  ;;  %v4430_v63 = vld [vmem:[#allocation2 + $0x130] sm:$0xff] }
 0x24b   : > { %1661 = vrot.lane.b32.xlu1 %v1554_v12, %s4574_s28  ;;  %1663 = vrot.lane.b32.xlu0 %v1555_v43, %s4574_s28  ;;  %v1559_v12 = vmul.f32 0.26601171, %v5209_v51  ;;  %v1562_v51 = vmul.f32 0.26601171, %v5227_v24 }
 0x24d   : > { %v6221_v31 = vpop.permute.xlu1 %1389  ;;  %v6223_v18 = vpop.permute.xlu0 %1391 }
 0x24e   : > { %9058 = vst [vmem:[#allocation287_spill] sm:$0xff] %v6221_v31  ;;  %9059 = vst [vmem:[#allocation288_spill] sm:$0xff] %v6223_v18  ;;  %v9370_v18 = vld [vmem:[#allocation82_spill] sm:$0xff] }
 0x24f   : > { %1665 = vrot.lane.b32.xlu1 %v1556_v30, %s4574_s28  ;;  %1667 = vrot.lane.b32.xlu0 %v1557_v57, %s4574_s28  ;;  %v1561_v30 = vmul.f32 0.26601171, %v5225_v26  ;;  %v1564_v26 = vmul.f32 0.26601171, %v5243_v59 }
 0x251   : > { %v6229_v37 = vpop.permute.xlu1 %1393  ;;  %v6231_v36 = vpop.permute.xlu0 %1395 }
 0x252   : > { %9060 = vst [vmem:[#allocation289_spill] sm:$0xff] %v6229_v37  ;;  %9061 = vst [vmem:[#allocation290_spill] sm:$0xff] %v6231_v36  ;;  %v9369_v37 = vld [vmem:[#allocation81_spill] sm:$0xff] }
 0x253   : > { %1669 = vrot.lane.b32.xlu1 %v1558_v53, %s4574_s28  ;;  %1671 = vrot.lane.b32.xlu0 %v1559_v12, %s4574_s28  ;;  %v1563_v53 = vmul.f32 0.26601171, %v5241_v32  ;;  %v1566_v32 = vmul.f32 0.26601171, %v5257_v6 }
 0x255   : > { %v6237_v43 = vpop.permute.xlu1 %1397  ;;  %v6239_v8 = vpop.permute.xlu0 %1399 }
 0x256   : > { %9062 = vst [vmem:[#allocation291_spill] sm:$0xff] %v6237_v43  ;;  %9063 = vst [vmem:[#allocation292_spill] sm:$0xff] %v6239_v8  ;;  %v9366_v43 = vld [vmem:[#allocation74_spill] sm:$0xff] }
 0x257   : > { %1673 = vrot.lane.b32.xlu1 %v1560_v0, %s4574_s28  ;;  %1675 = vrot.lane.b32.xlu0 %v1561_v30, %s4574_s28  ;;  %v1565_v0 = vmul.f32 0.26601171, %v5255_v14 }
 0x259   : > { %v6245_v57 = vpop.permute.xlu1 %1401  ;;  %v6247_v2 = vpop.permute.xlu0 %1403 }
 0x25a   : > { %9064 = vst [vmem:[#allocation293_spill] sm:$0xff] %v6245_v57  ;;  %9065 = vst [vmem:[#allocation294_spill] sm:$0xff] %v6247_v2  ;;  %v4429_v2 = vld [vmem:[#allocation2 + $0x128] sm:$0xff] }
 0x25b   : > { %1677 = vrot.lane.b32.xlu1 %v1562_v51, %s4574_s28  ;;  %1679 = vrot.lane.b32.xlu0 %v1563_v53, %s4574_s28  ;;  %v7136_v57 = vmul.f32 0.0010283801, %v4429_v2 }
 0x25d   : > { %v6253_v12 = vpop.permute.xlu1 %1405  ;;  %v6255_v42 = vpop.permute.xlu0 %1407  ;;  %9362 = vst [vmem:[#allocation340_spill] sm:$0xff] %v7136_v57 }
 0x25e   : > { %9066 = vst [vmem:[#allocation295_spill] sm:$0xff] %v6253_v12  ;;  %9067 = vst [vmem:[#allocation296_spill] sm:$0xff] %v6255_v42  ;;  %v4428_v42 = vld [vmem:[#allocation2 + $0x120] sm:$0xff] }
 0x25f   : > { %1681 = vrot.lane.b32.xlu1 %v1564_v26, %s4574_s28  ;;  %1683 = vrot.lane.b32.xlu0 %v1565_v0, %s4574_s28  ;;  %v9103_v0 = vld [vmem:[#allocation229_spill] sm:$0xff]  ;;  %v7134_v12 = vmul.f32 0.0010283801, %v4428_v42 }
 0x261   : > { %v6261_v30 = vpop.permute.xlu1 %1409  ;;  %v6263_v24 = vpop.permute.xlu0 %1411  ;;  %9361 = vst [vmem:[#allocation339_spill] sm:$0xff] %v7134_v12 }
 0x262   : > { %9068 = vst [vmem:[#allocation297_spill] sm:$0xff] %v6261_v30  ;;  %9069 = vst [vmem:[#allocation298_spill] sm:$0xff] %v6263_v24 }
 0x263   : > { %1685 = vrot.lane.b32.xlu1 %v1566_v32, %s4574_s28  ;;  %1767 = vrot.lane.b32.xlu0 %v5796_v5, %s4575_s24 }
 0x265   : > { %v6269_v51 = vpop.permute.xlu1 %1413  ;;  %v6271_v59 = vpop.permute.xlu0 %1415 }
 0x266   : > { %9070 = vst [vmem:[#allocation299_spill] sm:$0xff] %v6269_v51  ;;  %9071 = vst [vmem:[#allocation300_spill] sm:$0xff] %v6271_v59 }
 0x267   : > { %1769 = vrot.lane.b32.xlu1 %v5807_v44, %s4575_s24  ;;  %1771 = vrot.lane.b32.xlu0 %v5810_v28, %s4575_s24 }
 0x269   : > { %v6277_v14 = vpop.permute.xlu1 %1417  ;;  %v6279_v53 = vpop.permute.xlu0 %1419 }
 0x26a   : > { %9072 = vst [vmem:[#allocation301_spill] sm:$0xff] %v6277_v14  ;;  %9073 = vst [vmem:[#allocation302_spill] sm:$0xff] %v6279_v53 }
 0x26b   : > { %1773 = vrot.lane.b32.xlu1 %v5821_v29, %s4575_s24  ;;  %1775 = vrot.lane.b32.xlu0 %v5824_v41, %s4575_s24 }
 0x26d   : > { %v6285_v5 = vpop.permute.xlu1 %1421  ;;  %v6287_v6 = vpop.permute.xlu0 %1423 }
 0x26e   : > { %9074 = vst [vmem:[#allocation303_spill] sm:$0xff] %v6285_v5  ;;  %9075 = vst [vmem:[#allocation304_spill] sm:$0xff] %v6287_v6 }
 0x26f   : > { %1777 = vrot.lane.b32.xlu1 %v5835_v46, %s4575_s24  ;;  %1779 = vrot.lane.b32.xlu0 %v5838_v38, %s4575_s24 }
 0x271   : > { %v6293_v28 = vpop.permute.xlu1 %1425  ;;  %v6295_v44 = vpop.permute.xlu0 %1427 }
 0x272   : > { %9076 = vst [vmem:[#allocation305_spill] sm:$0xff] %v6293_v28  ;;  %9077 = vst [vmem:[#allocation306_spill] sm:$0xff] %v6295_v44  ;;  %v4417_v44 = vld [vmem:[#allocation2 + $0xc8] sm:$0xff] }
 0x273   : > { %1781 = vrot.lane.b32.xlu1 %v5849_v48, %s4575_s24  ;;  %1783 = vrot.lane.b32.xlu0 %v5852_v52, %s4575_s24 }
 0x275   : > { %v6301_v29 = vpop.permute.xlu1 %1429  ;;  %v6303_v41 = vpop.permute.xlu0 %1431 }
 0x276   : > { %9078 = vst [vmem:[#allocation307_spill] sm:$0xff] %v6301_v29  ;;  %9079 = vst [vmem:[#allocation308_spill] sm:$0xff] %v6303_v41 }
 0x277   : > { %1785 = vrot.lane.b32.xlu1 %v5863_v54, %s4575_s24  ;;  %1787 = vrot.lane.b32.xlu0 %v5866_v58, %s4575_s24 }
 0x279   : > { %v6309_v38 = vpop.permute.xlu1 %1433  ;;  %v6311_v46 = vpop.permute.xlu0 %1435 }
 0x27a   : > { %9080 = vst [vmem:[#allocation309_spill] sm:$0xff] %v6309_v38  ;;  %9081 = vst [vmem:[#allocation310_spill] sm:$0xff] %v6311_v46 }
 0x27b   : > { %1789 = vrot.lane.b32.xlu1 %v5877_v60, %s4575_s24  ;;  %1791 = vrot.lane.b32.xlu0 %v5880_v1, %s4575_s24 }
 0x27d   : > { %v6317_v48 = vpop.permute.xlu1 %1437  ;;  %v6319_v52 = vpop.permute.xlu0 %1439 }
 0x27e   : > { %9082 = vst [vmem:[#allocation311_spill] sm:$0xff] %v6317_v48  ;;  %9083 = vst [vmem:[#allocation312_spill] sm:$0xff] %v6319_v52 }
 0x27f   : > { %1793 = vrot.lane.b32.xlu1 %v5891_v3, %s4575_s24  ;;  %1795 = vrot.lane.b32.xlu0 %v5894_v7, %s4575_s24 }
 0x281   : > { %v6325_v54 = vpop.permute.xlu1 %1441  ;;  %v6327_v58 = vpop.permute.xlu0 %1443 }
 0x282   : > { %9084 = vst [vmem:[#allocation313_spill] sm:$0xff] %v6325_v54  ;;  %9085 = vst [vmem:[#allocation314_spill] sm:$0xff] %v6327_v58 }
 0x283   : > { %1797 = vrot.lane.b32.xlu1 %v5905_v9, %s4575_s24  ;;  %1799 = vrot.lane.b32.xlu0 %v5908_v13, %s4575_s24 }
 0x285   : > { %v6333_v60 = vpop.permute.xlu1 %1445  ;;  %v6335_v1 = vpop.permute.xlu0 %1607 }
 0x286   : > { %9086 = vst [vmem:[#allocation315_spill] sm:$0xff] %v6333_v60  ;;  %9087 = vst [vmem:[#allocation316_spill] sm:$0xff] %v6335_v1  ;;  %v7078_v1 = vmul.f32 0.0010283801, %v6167_v16  ;;  %v4408_v60 = vld [vmem:[#allocation2 + $0x80] sm:$0xff] }
 0x287   : > { %1801 = vrot.lane.b32.xlu1 %v5919_v15, %s4575_s24  ;;  %1803 = vrot.lane.b32.xlu0 %v5922_v19, %s4575_s24  ;;  %v7080_v58 = vmul.f32 0.0010283801, %v4408_v60  ;;  %v4412_v16 = vld [vmem:[#allocation2 + $0xa0] sm:$0xff]  ;;  %v4413_v60 = vld [vmem:[#allocation2 + $0xa8] sm:$0xff] }
 0x288   : > { %v7094_v46 = vmul.f32 0.0010283801, %v4413_v60  ;;  %v4419_v60 = vld [vmem:[#allocation2 + $0xd8] sm:$0xff] }
 0x289   : > { %v6341_v3 = vpop.permute.xlu1 %1609  ;;  %v6343_v7 = vpop.permute.xlu0 %1611  ;;  %v7110_v5 = vmul.f32 0.0010283801, %v4419_v60 }
 0x28a   : > { %9088 = vst [vmem:[#allocation317_spill] sm:$0xff] %v6341_v3  ;;  %9089 = vst [vmem:[#allocation318_spill] sm:$0xff] %v6343_v7 }
 0x28b   : > { %1805 = vrot.lane.b32.xlu1 %v5933_v21, %s4575_s24  ;;  %1807 = vrot.lane.b32.xlu0 %v5936_v20, %s4575_s24 }
 0x28d   : > { %v6349_v9 = vpop.permute.xlu1 %1613  ;;  %v6351_v13 = vpop.permute.xlu0 %1615 }
 0x28e   : > { %9090 = vst [vmem:[#allocation319_spill] sm:$0xff] %v6349_v9  ;;  %9091 = vst [vmem:[#allocation320_spill] sm:$0xff] %v6351_v13  ;;  %v9329_v13 = vld [vmem:[#allocation42_spill] sm:$0xff] }
 0x28f   : > { %1809 = vrot.lane.b32.xlu1 %v5947_v27, %s4575_s24  ;;  %1811 = vrot.lane.b32.xlu0 %v5950_v4, %s4575_s24  ;;  %v9330_v9 = vld [vmem:[#allocation254_spill] sm:$0xff] }
 0x291   : > { %v6357_v15 = vpop.permute.xlu1 %1617  ;;  %v6359_v19 = vpop.permute.xlu0 %1619 }
 0x292   : > { %9092 = vst [vmem:[#allocation321_spill] sm:$0xff] %v6357_v15  ;;  %9093 = vst [vmem:[#allocation322_spill] sm:$0xff] %v6359_v19 }
 0x293   : > { %1813 = vrot.lane.b32.xlu1 %v5961_v47, %s4575_s24  ;;  %1815 = vrot.lane.b32.xlu0 %v5964_v40, %s4575_s24 }
 0x295   : > { %v6365_v20 = vpop.permute.xlu1 %1621  ;;  %v6367_v21 = vpop.permute.xlu0 %1623 }
 0x296   : > { %9094 = vst [vmem:[#allocation323_spill] sm:$0xff] %v6365_v20  ;;  %9095 = vst [vmem:[#allocation324_spill] sm:$0xff] %v6367_v21  ;;  %v9319_v20 = vld [vmem:[#allocation269_spill] sm:$0xff] }
 0x297   : > { %1817 = vrot.lane.b32.xlu1 %v5975_v23, %s4575_s24  ;;  %1819 = vrot.lane.b32.xlu0 %v5978_v22, %s4575_s24  ;;  %v9100_v23 = vld [vmem:[#allocation226_spill] sm:$0xff]  ;;  %v6963_v19 = vmul.f32 0.0010283801, %v9319_v20 }
 0x298   : > { %v9325_v20 = vld [vmem:[#allocation34_spill] sm:$0xff] }
 0x299   : > { %v6373_v4 = vpop.permute.xlu1 %1625  ;;  %v6375_v27 = vpop.permute.xlu0 %1627 }
 0x29a   : > { %9096 = vst [vmem:[#allocation325_spill] sm:$0xff] %v6373_v4  ;;  %9097 = vst [vmem:[#allocation326_spill] sm:$0xff] %v6375_v27 }
 0x29b   : > { %1821 = vrot.lane.b32.xlu1 %v5989_v35, %s4575_s24  ;;  %1823 = vrot.lane.b32.xlu0 %v5992_v34, %s4575_s24  ;;  %v9104_v35 = vld [vmem:[#allocation230_spill] sm:$0xff] }
 0x29d   : > { %v6381_v40 = vpop.permute.xlu1 %1629  ;;  %v6383_v47 = vpop.permute.xlu0 %1631 }
 0x29e   : > { %9098 = vst [vmem:[#allocation327_spill] sm:$0xff] %v6381_v40  ;;  %9099 = vst [vmem:[#allocation328_spill] sm:$0xff] %v6383_v47  ;;  %v9107_v47 = vld [vmem:[#allocation233_spill] sm:$0xff] }
 0x29f   : > { %1825 = vrot.lane.b32.xlu1 %v6003_v62, %s4575_s24  ;;  %1827 = vrot.lane.b32.xlu0 %v9100_v23, %s4575_s24  ;;  %v9108_v62 = vld [vmem:[#allocation234_spill] sm:$0xff] }
 0x2a1   : > { %v6389_v22 = vpop.permute.xlu1 %1633  ;;  %v6391_v26 = vpop.permute.xlu0 %1635 }
 0x2a2   : > { %9101 = vst [vmem:[#allocation226_spill] sm:$0xff] %v6389_v22  ;;  %9102 = vst [vmem:[#allocation329_spill] sm:$0xff] %v6391_v26  ;;  %v9111_v26 = vld [vmem:[#allocation237_spill] sm:$0xff] }
 0x2a3   : > { %1829 = vrot.lane.b32.xlu1 %v9103_v0, %s4575_s24  ;;  %1831 = vrot.lane.b32.xlu0 %v9104_v35, %s4575_s24  ;;  %v9112_v0 = vld [vmem:[#allocation238_spill] sm:$0xff] }
 0x2a5   : > { %v6397_v34 = vpop.permute.xlu1 %1637  ;;  %v6399_v32 = vpop.permute.xlu0 %1639 }
 0x2a6   : > { %9105 = vst [vmem:[#allocation229_spill] sm:$0xff] %v6397_v34  ;;  %9106 = vst [vmem:[#allocation230_spill] sm:$0xff] %v6399_v32  ;;  %v9115_v32 = vld [vmem:[#allocation241_spill] sm:$0xff] }
 0x2a7   : > { %1833 = vrot.lane.b32.xlu1 %v9107_v47, %s4575_s24  ;;  %1835 = vrot.lane.b32.xlu0 %v9108_v62, %s4575_s24  ;;  %v9116_v47 = vld [vmem:[#allocation242_spill] sm:$0xff] }
 0x2a9   : > { %v6405_v23 = vpop.permute.xlu1 %1641  ;;  %v6407_v22 = vpop.permute.xlu0 %1643 }
 0x2aa   : > { %9109 = vst [vmem:[#allocation233_spill] sm:$0xff] %v6405_v23  ;;  %9110 = vst [vmem:[#allocation234_spill] sm:$0xff] %v6407_v22  ;;  %v9119_v22 = vld [vmem:[#allocation245_spill] sm:$0xff] }
 0x2ab   : > { %1837 = vrot.lane.b32.xlu1 %v9111_v26, %s4575_s24  ;;  %1839 = vrot.lane.b32.xlu0 %v9112_v0, %s4575_s24  ;;  %v9120_v26 = vld [vmem:[#allocation116_spill] sm:$0xff] }
 0x2ad   : > { %v6413_v35 = vpop.permute.xlu1 %1645  ;;  %v6415_v34 = vpop.permute.xlu0 %1647 }
 0x2ae   : > { %9113 = vst [vmem:[#allocation237_spill] sm:$0xff] %v6413_v35  ;;  %9114 = vst [vmem:[#allocation238_spill] sm:$0xff] %v6415_v34  ;;  %v9128_v35 = vld [vmem:[#allocation124_spill] sm:$0xff] }
 0x2af   : > { %1841 = vrot.lane.b32.xlu1 %v9115_v32, %s4575_s24  ;;  %1843 = vrot.lane.b32.xlu0 %v9116_v47, %s4575_s24  ;;  %v9123_v32 = vld [vmem:[#allocation119_spill] sm:$0xff]  ;;  %v9124_v47 = vld [vmem:[#allocation120_spill] sm:$0xff] }
 0x2b1   : > { %v6421_v62 = vpop.permute.xlu1 %1649  ;;  %v6423_v23 = vpop.permute.xlu0 %1651 }
 0x2b2   : > { %9117 = vst [vmem:[#allocation241_spill] sm:$0xff] %v6421_v62  ;;  %9118 = vst [vmem:[#allocation242_spill] sm:$0xff] %v6423_v23 }
 0x2b3   : > { %1845 = vrot.lane.b32.xlu1 %v9119_v22, %s4575_s24  ;;  %1927 = vrot.lane.b32.xlu0 %v9120_v26, %s4576_s26  ;;  %v9127_v22 = vld [vmem:[#allocation123_spill] sm:$0xff] }
 0x2b5   : > { %v6429_v0 = vpop.permute.xlu1 %1653  ;;  %v6431_v34 = vpop.permute.xlu0 %1655 }
 0x2b6   : > { %9121 = vst [vmem:[#allocation245_spill] sm:$0xff] %v6429_v0  ;;  %9122 = vst [vmem:[#allocation116_spill] sm:$0xff] %v6431_v34  ;;  %v9131_v34 = vld [vmem:[#allocation127_spill] sm:$0xff] }
 0x2b7   : > { %1929 = vrot.lane.b32.xlu1 %v9123_v32, %s4576_s26  ;;  %1931 = vrot.lane.b32.xlu0 %v9124_v47, %s4576_s26  ;;  %v9132_v32 = vld [vmem:[#allocation128_spill] sm:$0xff] }
 0x2b9   : > { %v6437_v62 = vpop.permute.xlu1 %1657  ;;  %v6439_v23 = vpop.permute.xlu0 %1659 }
 0x2ba   : > { %9125 = vst [vmem:[#allocation119_spill] sm:$0xff] %v6437_v62  ;;  %9126 = vst [vmem:[#allocation120_spill] sm:$0xff] %v6439_v23  ;;  %v9135_v23 = vld [vmem:[#allocation131_spill] sm:$0xff] }
 0x2bb   : > { %1933 = vrot.lane.b32.xlu1 %v9127_v22, %s4576_s26  ;;  %1935 = vrot.lane.b32.xlu0 %v9128_v35, %s4576_s26  ;;  %v9136_v22 = vld [vmem:[#allocation132_spill] sm:$0xff] }
 0x2bd   : > { %v6445_v26 = vpop.permute.xlu1 %1661  ;;  %v6447_v0 = vpop.permute.xlu0 %1663 }
 0x2be   : > { %9129 = vst [vmem:[#allocation123_spill] sm:$0xff] %v6445_v26  ;;  %9130 = vst [vmem:[#allocation124_spill] sm:$0xff] %v6447_v0  ;;  %v9139_v0 = vld [vmem:[#allocation135_spill] sm:$0xff] }
 0x2bf   : > { %1937 = vrot.lane.b32.xlu1 %v9131_v34, %s4576_s26  ;;  %1939 = vrot.lane.b32.xlu0 %v9132_v32, %s4576_s26  ;;  %v9140_v34 = vld [vmem:[#allocation136_spill] sm:$0xff] }
 0x2c1   : > { %v6453_v47 = vpop.permute.xlu1 %1665  ;;  %v6455_v62 = vpop.permute.xlu0 %1667 }
 0x2c2   : > { %9133 = vst [vmem:[#allocation127_spill] sm:$0xff] %v6453_v47  ;;  %9134 = vst [vmem:[#allocation128_spill] sm:$0xff] %v6455_v62  ;;  %v9143_v62 = vld [vmem:[#allocation139_spill] sm:$0xff] }
 0x2c3   : > { %1941 = vrot.lane.b32.xlu1 %v9135_v23, %s4576_s26  ;;  %1943 = vrot.lane.b32.xlu0 %v9136_v22, %s4576_s26  ;;  %v9144_v23 = vld [vmem:[#allocation140_spill] sm:$0xff] }
 0x2c5   : > { %v6461_v35 = vpop.permute.xlu1 %1669  ;;  %v6463_v26 = vpop.permute.xlu0 %1671 }
 0x2c6   : > { %9137 = vst [vmem:[#allocation131_spill] sm:$0xff] %v6461_v35  ;;  %9138 = vst [vmem:[#allocation132_spill] sm:$0xff] %v6463_v26  ;;  %v9147_v26 = vld [vmem:[#allocation143_spill] sm:$0xff] }
 0x2c7   : > { %1945 = vrot.lane.b32.xlu1 %v9139_v0, %s4576_s26  ;;  %1947 = vrot.lane.b32.xlu0 %v9140_v34, %s4576_s26  ;;  %v9148_v0 = vld [vmem:[#allocation144_spill] sm:$0xff] }
 0x2c9   : > { %v6469_v32 = vpop.permute.xlu1 %1673  ;;  %v6471_v47 = vpop.permute.xlu0 %1675 }
 0x2ca   : > { %9141 = vst [vmem:[#allocation135_spill] sm:$0xff] %v6469_v32  ;;  %9142 = vst [vmem:[#allocation136_spill] sm:$0xff] %v6471_v47  ;;  %v9151_v47 = vld [vmem:[#allocation147_spill] sm:$0xff] }
 0x2cb   : > { %1949 = vrot.lane.b32.xlu1 %v9143_v62, %s4576_s26  ;;  %1951 = vrot.lane.b32.xlu0 %v9144_v23, %s4576_s26  ;;  %v9152_v62 = vld [vmem:[#allocation148_spill] sm:$0xff] }
 0x2cd   : > { %v6477_v22 = vpop.permute.xlu1 %1677  ;;  %v6479_v35 = vpop.permute.xlu0 %1679 }
 0x2ce   : > { %9145 = vst [vmem:[#allocation139_spill] sm:$0xff] %v6477_v22  ;;  %9146 = vst [vmem:[#allocation140_spill] sm:$0xff] %v6479_v35  ;;  %v9155_v35 = vld [vmem:[#allocation151_spill] sm:$0xff] }
 0x2cf   : > { %1953 = vrot.lane.b32.xlu1 %v9147_v26, %s4576_s26  ;;  %1955 = vrot.lane.b32.xlu0 %v9148_v0, %s4576_s26  ;;  %v9156_v26 = vld [vmem:[#allocation152_spill] sm:$0xff] }
 0x2d1   : > { %v6485_v34 = vpop.permute.xlu1 %1681  ;;  %v6487_v32 = vpop.permute.xlu0 %1683 }
 0x2d2   : > { %9149 = vst [vmem:[#allocation143_spill] sm:$0xff] %v6485_v34  ;;  %9150 = vst [vmem:[#allocation144_spill] sm:$0xff] %v6487_v32  ;;  %v9159_v32 = vld [vmem:[#allocation155_spill] sm:$0xff] }
 0x2d3   : > { %1957 = vrot.lane.b32.xlu1 %v9151_v47, %s4576_s26  ;;  %1959 = vrot.lane.b32.xlu0 %v9152_v62, %s4576_s26  ;;  %v9160_v47 = vld [vmem:[#allocation156_spill] sm:$0xff] }
 0x2d5   : > { %v6493_v23 = vpop.permute.xlu1 %1685  ;;  %v6495_v22 = vpop.permute.xlu0 %1767 }
 0x2d6   : > { %9153 = vst [vmem:[#allocation147_spill] sm:$0xff] %v6493_v23  ;;  %9154 = vst [vmem:[#allocation148_spill] sm:$0xff] %v6495_v22  ;;  %v9163_v22 = vld [vmem:[#allocation159_spill] sm:$0xff] }
 0x2d7   : > { %1961 = vrot.lane.b32.xlu1 %v9155_v35, %s4576_s26  ;;  %1963 = vrot.lane.b32.xlu0 %v9156_v26, %s4576_s26  ;;  %v9164_v35 = vld [vmem:[#allocation160_spill] sm:$0xff] }
 0x2d9   : > { %v6501_v0 = vpop.permute.xlu1 %1769  ;;  %v6503_v34 = vpop.permute.xlu0 %1771 }
 0x2da   : > { %9157 = vst [vmem:[#allocation151_spill] sm:$0xff] %v6501_v0  ;;  %9158 = vst [vmem:[#allocation152_spill] sm:$0xff] %v6503_v34  ;;  %v9167_v34 = vld [vmem:[#allocation163_spill] sm:$0xff] }
 0x2db   : > { %1965 = vrot.lane.b32.xlu1 %v9159_v32, %s4576_s26  ;;  %1967 = vrot.lane.b32.xlu0 %v9160_v47, %s4576_s26  ;;  %v9168_v32 = vld [vmem:[#allocation164_spill] sm:$0xff] }
 0x2dd   : > { %v6509_v62 = vpop.permute.xlu1 %1773  ;;  %v6511_v23 = vpop.permute.xlu0 %1775 }
 0x2de   : > { %9161 = vst [vmem:[#allocation155_spill] sm:$0xff] %v6509_v62  ;;  %9162 = vst [vmem:[#allocation156_spill] sm:$0xff] %v6511_v23  ;;  %v9171_v23 = vld [vmem:[#allocation167_spill] sm:$0xff] }
 0x2df   : > { %1969 = vrot.lane.b32.xlu1 %v9163_v22, %s4576_s26  ;;  %1971 = vrot.lane.b32.xlu0 %v9164_v35, %s4576_s26  ;;  %v9172_v22 = vld [vmem:[#allocation168_spill] sm:$0xff] }
 0x2e1   : > { %v6517_v26 = vpop.permute.xlu1 %1777  ;;  %v6519_v0 = vpop.permute.xlu0 %1779 }
 0x2e2   : > { %9165 = vst [vmem:[#allocation159_spill] sm:$0xff] %v6517_v26  ;;  %9166 = vst [vmem:[#allocation160_spill] sm:$0xff] %v6519_v0  ;;  %v9175_v0 = vld [vmem:[#allocation171_spill] sm:$0xff] }
 0x2e3   : > { %1973 = vrot.lane.b32.xlu1 %v9167_v34, %s4576_s26  ;;  %1975 = vrot.lane.b32.xlu0 %v9168_v32, %s4576_s26  ;;  %v9176_v34 = vld [vmem:[#allocation172_spill] sm:$0xff] }
 0x2e5   : > { %v6525_v47 = vpop.permute.xlu1 %1781  ;;  %v6527_v62 = vpop.permute.xlu0 %1783 }
 0x2e6   : > { %9169 = vst [vmem:[#allocation163_spill] sm:$0xff] %v6525_v47  ;;  %9170 = vst [vmem:[#allocation164_spill] sm:$0xff] %v6527_v62  ;;  %v9179_v62 = vld [vmem:[#allocation175_spill] sm:$0xff] }
 0x2e7   : > { %1977 = vrot.lane.b32.xlu1 %v9171_v23, %s4576_s26  ;;  %1979 = vrot.lane.b32.xlu0 %v9172_v22, %s4576_s26  ;;  %v9180_v23 = vld [vmem:[#allocation176_spill] sm:$0xff] }
 0x2e9   : > { %v6533_v35 = vpop.permute.xlu1 %1785  ;;  %v6535_v26 = vpop.permute.xlu0 %1787 }
 0x2ea   : > { %9173 = vst [vmem:[#allocation167_spill] sm:$0xff] %v6533_v35  ;;  %9174 = vst [vmem:[#allocation168_spill] sm:$0xff] %v6535_v26  ;;  %v9183_v26 = vld [vmem:[#allocation179_spill] sm:$0xff] }
 0x2eb   : > { %1981 = vrot.lane.b32.xlu1 %v9175_v0, %s4576_s26  ;;  %1983 = vrot.lane.b32.xlu0 %v9176_v34, %s4576_s26  ;;  %v9184_v0 = vld [vmem:[#allocation180_spill] sm:$0xff] }
 0x2ed   : > { %v6541_v32 = vpop.permute.xlu1 %1789  ;;  %v6543_v47 = vpop.permute.xlu0 %1791 }
 0x2ee   : > { %9177 = vst [vmem:[#allocation171_spill] sm:$0xff] %v6541_v32  ;;  %9178 = vst [vmem:[#allocation172_spill] sm:$0xff] %v6543_v47  ;;  %v9187_v47 = vld [vmem:[#allocation183_spill] sm:$0xff] }
 0x2ef   : > { %1985 = vrot.lane.b32.xlu1 %v9179_v62, %s4576_s26  ;;  %1987 = vrot.lane.b32.xlu0 %v9180_v23, %s4576_s26  ;;  %v9188_v62 = vld [vmem:[#allocation184_spill] sm:$0xff] }
 0x2f1   : > { %v6549_v22 = vpop.permute.xlu1 %1793  ;;  %v6551_v35 = vpop.permute.xlu0 %1795 }
 0x2f2   : > { %9181 = vst [vmem:[#allocation175_spill] sm:$0xff] %v6549_v22  ;;  %9182 = vst [vmem:[#allocation176_spill] sm:$0xff] %v6551_v35  ;;  %v9191_v35 = vld [vmem:[#allocation187_spill] sm:$0xff] }
 0x2f3   : > { %1989 = vrot.lane.b32.xlu1 %v9183_v26, %s4576_s26  ;;  %1991 = vrot.lane.b32.xlu0 %v9184_v0, %s4576_s26  ;;  %v9192_v26 = vld [vmem:[#allocation188_spill] sm:$0xff] }
 0x2f5   : > { %v6557_v34 = vpop.permute.xlu1 %1797  ;;  %v6559_v32 = vpop.permute.xlu0 %1799 }
 0x2f6   : > { %9185 = vst [vmem:[#allocation179_spill] sm:$0xff] %v6557_v34  ;;  %9186 = vst [vmem:[#allocation180_spill] sm:$0xff] %v6559_v32  ;;  %v9203_v32 = vld [vmem:[#allocation61_spill] sm:$0xff] }
 0x2f7   : > { %1993 = vrot.lane.b32.xlu1 %v9187_v47, %s4576_s26  ;;  %1995 = vrot.lane.b32.xlu0 %v9188_v62, %s4576_s26  ;;  %v9195_v47 = vld [vmem:[#allocation53_spill] sm:$0xff]  ;;  %v9196_v62 = vld [vmem:[#allocation54_spill] sm:$0xff] }
 0x2f9   : > { %v6565_v23 = vpop.permute.xlu1 %1801  ;;  %v6567_v22 = vpop.permute.xlu0 %1803 }
 0x2fa   : > { %9189 = vst [vmem:[#allocation183_spill] sm:$0xff] %v6565_v23  ;;  %9190 = vst [vmem:[#allocation184_spill] sm:$0xff] %v6567_v22 }
 0x2fb   : > { %1997 = vrot.lane.b32.xlu1 %v9191_v35, %s4576_s26  ;;  %1999 = vrot.lane.b32.xlu0 %v9192_v26, %s4576_s26  ;;  %v9199_v35 = vld [vmem:[#allocation55_spill] sm:$0xff]  ;;  %v9200_v26 = vld [vmem:[#allocation56_spill] sm:$0xff] }
 0x2fd   : > { %v6573_v0 = vpop.permute.xlu1 %1805  ;;  %v6575_v34 = vpop.permute.xlu0 %1807 }
 0x2fe   : > { %9193 = vst [vmem:[#allocation187_spill] sm:$0xff] %v6573_v0  ;;  %9194 = vst [vmem:[#allocation188_spill] sm:$0xff] %v6575_v34 }
 0x2ff   : > { %2087 = vrot.lane.b32.xlu1 %v9195_v47, %s4577_s27  ;;  %2089 = vrot.lane.b32.xlu0 %v9196_v62, %s4577_s27  ;;  %v9204_v47 = vld [vmem:[#allocation62_spill] sm:$0xff] }
 0x301   : > { %v6581_v23 = vpop.permute.xlu1 %1809  ;;  %v6583_v22 = vpop.permute.xlu0 %1811 }
 0x302   : > { %9197 = vst [vmem:[#allocation53_spill] sm:$0xff] %v6581_v23  ;;  %9198 = vst [vmem:[#allocation54_spill] sm:$0xff] %v6583_v22  ;;  %v9207_v22 = vld [vmem:[#allocation63_spill] sm:$0xff] }
 0x303   : > { %2091 = vrot.lane.b32.xlu1 %v9199_v35, %s4577_s27  ;;  %2093 = vrot.lane.b32.xlu0 %v9200_v26, %s4577_s27  ;;  %v9208_v35 = vld [vmem:[#allocation64_spill] sm:$0xff] }
 0x305   : > { %v6589_v0 = vpop.permute.xlu1 %1813  ;;  %v6591_v34 = vpop.permute.xlu0 %1815 }
 0x306   : > { %9201 = vst [vmem:[#allocation55_spill] sm:$0xff] %v6589_v0  ;;  %9202 = vst [vmem:[#allocation56_spill] sm:$0xff] %v6591_v34  ;;  %v9211_v34 = vld [vmem:[#allocation57_spill] sm:$0xff] }
 0x307   : > { %2103 = vrot.lane.b32.xlu1 %v9203_v32, %s4577_s27  ;;  %2105 = vrot.lane.b32.xlu0 %v9204_v47, %s4577_s27  ;;  %v9212_v32 = vld [vmem:[#allocation58_spill] sm:$0xff] }
 0x309   : > { %v6597_v62 = vpop.permute.xlu1 %1817  ;;  %v6599_v23 = vpop.permute.xlu0 %1819 }
 0x30a   : > { %9205 = vst [vmem:[#allocation61_spill] sm:$0xff] %v6597_v62  ;;  %9206 = vst [vmem:[#allocation62_spill] sm:$0xff] %v6599_v23  ;;  %v9215_v23 = vld [vmem:[#allocation65_spill] sm:$0xff] }
 0x30b   : > { %2107 = vrot.lane.b32.xlu1 %v9207_v22, %s4577_s27  ;;  %2109 = vrot.lane.b32.xlu0 %v9208_v35, %s4577_s27  ;;  %v9216_v22 = vld [vmem:[#allocation66_spill] sm:$0xff] }
 0x30d   : > { %v6605_v26 = vpop.permute.xlu1 %1821  ;;  %v6607_v0 = vpop.permute.xlu0 %1823 }
 0x30e   : > { %9209 = vst [vmem:[#allocation63_spill] sm:$0xff] %v6605_v26  ;;  %9210 = vst [vmem:[#allocation64_spill] sm:$0xff] %v6607_v0  ;;  %v9219_v0 = vld [vmem:[#allocation59_spill] sm:$0xff] }
 0x30f   : > { %2095 = vrot.lane.b32.xlu1 %v9211_v34, %s4577_s27  ;;  %2097 = vrot.lane.b32.xlu0 %v9212_v32, %s4577_s27  ;;  %v9220_v34 = vld [vmem:[#allocation60_spill] sm:$0xff] }
 0x311   : > { %v6613_v47 = vpop.permute.xlu1 %1825  ;;  %v6615_v62 = vpop.permute.xlu0 %1827 }
 0x312   : > { %9213 = vst [vmem:[#allocation57_spill] sm:$0xff] %v6613_v47  ;;  %9214 = vst [vmem:[#allocation58_spill] sm:$0xff] %v6615_v62  ;;  %v9223_v62 = vld [vmem:[#allocation67_spill] sm:$0xff] }
 0x313   : > { %2111 = vrot.lane.b32.xlu1 %v9215_v23, %s4577_s27  ;;  %2113 = vrot.lane.b32.xlu0 %v9216_v22, %s4577_s27  ;;  %v9224_v23 = vld [vmem:[#allocation68_spill] sm:$0xff] }
 0x315   : > { %v6621_v35 = vpop.permute.xlu1 %1829  ;;  %v6623_v26 = vpop.permute.xlu0 %1831 }
 0x316   : > { %9217 = vst [vmem:[#allocation65_spill] sm:$0xff] %v6621_v35  ;;  %9218 = vst [vmem:[#allocation66_spill] sm:$0xff] %v6623_v26  ;;  %v9227_v26 = vld [vmem:[#allocation69_spill] sm:$0xff] }
 0x317   : > { %2099 = vrot.lane.b32.xlu1 %v9219_v0, %s4577_s27  ;;  %2101 = vrot.lane.b32.xlu0 %v9220_v34, %s4577_s27  ;;  %v9228_v0 = vld [vmem:[#allocation71_spill] sm:$0xff] }
 0x319   : > { %v6629_v32 = vpop.permute.xlu1 %1833  ;;  %v6631_v47 = vpop.permute.xlu0 %1835 }
 0x31a   : > { %9221 = vst [vmem:[#allocation59_spill] sm:$0xff] %v6629_v32  ;;  %9222 = vst [vmem:[#allocation60_spill] sm:$0xff] %v6631_v47  ;;  %v9231_v47 = vld [vmem:[#allocation72_spill] sm:$0xff] }
 0x31b   : > { %2115 = vrot.lane.b32.xlu1 %v9223_v62, %s4577_s27  ;;  %2117 = vrot.lane.b32.xlu0 %v9224_v23, %s4577_s27  ;;  %v9232_v62 = vld [vmem:[#allocation75_spill] sm:$0xff] }
 0x31d   : > { %v6637_v22 = vpop.permute.xlu1 %1837  ;;  %v6639_v35 = vpop.permute.xlu0 %1839 }
 0x31e   : > { %9225 = vst [vmem:[#allocation67_spill] sm:$0xff] %v6637_v22  ;;  %9226 = vst [vmem:[#allocation68_spill] sm:$0xff] %v6639_v35  ;;  %v9235_v35 = vld [vmem:[#allocation84_spill] sm:$0xff] }
 0x31f   : > { %2119 = vrot.lane.b32.xlu1 %v9227_v26, %s4577_s27  ;;  %2121 = vrot.lane.b32.xlu0 %v9228_v0, %s4577_s27  ;;  %v9236_v26 = vld [vmem:[#allocation87_spill] sm:$0xff] }
 0x321   : > { %v6645_v34 = vpop.permute.xlu1 %1841  ;;  %v6647_v32 = vpop.permute.xlu0 %1843 }
 0x322   : > { %9229 = vst [vmem:[#allocation69_spill] sm:$0xff] %v6645_v34  ;;  %9230 = vst [vmem:[#allocation71_spill] sm:$0xff] %v6647_v32  ;;  %v9239_v32 = vld [vmem:[#allocation88_spill] sm:$0xff] }
 0x323   : > { %2123 = vrot.lane.b32.xlu1 %v9231_v47, %s4577_s27  ;;  %2125 = vrot.lane.b32.xlu0 %v9232_v62, %s4577_s27  ;;  %v9240_v47 = vld [vmem:[#allocation91_spill] sm:$0xff] }
 0x325   : > { %v6653_v23 = vpop.permute.xlu1 %1845  ;;  %v6655_v22 = vpop.permute.xlu0 %1927 }
 0x326   : > { %9233 = vst [vmem:[#allocation72_spill] sm:$0xff] %v6653_v23  ;;  %9234 = vst [vmem:[#allocation75_spill] sm:$0xff] %v6655_v22  ;;  %v9251_v22 = vld [vmem:[#allocation21_spill] sm:$0xff] }
 0x327   : > { %2135 = vrot.lane.b32.xlu1 %v9235_v35, %s4577_s27  ;;  %2137 = vrot.lane.b32.xlu0 %v9236_v26, %s4577_s27  ;;  %v9243_v35 = vld [vmem:[#allocation13_spill] sm:$0xff]  ;;  %v9244_v26 = vld [vmem:[#allocation15_spill] sm:$0xff] }
 0x329   : > { %v6661_v0 = vpop.permute.xlu1 %1929  ;;  %v6663_v34 = vpop.permute.xlu0 %1931 }
 0x32a   : > { %9237 = vst [vmem:[#allocation84_spill] sm:$0xff] %v6661_v0  ;;  %9238 = vst [vmem:[#allocation87_spill] sm:$0xff] %v6663_v34 }
 0x32b   : > { %2139 = vrot.lane.b32.xlu1 %v9239_v32, %s4577_s27  ;;  %2141 = vrot.lane.b32.xlu0 %v9240_v47, %s4577_s27  ;;  %v9247_v32 = vld [vmem:[#allocation14_spill] sm:$0xff]  ;;  %v9248_v47 = vld [vmem:[#allocation16_spill] sm:$0xff] }
 0x32d   : > { %v6669_v62 = vpop.permute.xlu1 %1933  ;;  %v6671_v23 = vpop.permute.xlu0 %1935 }
 0x32e   : > { %9241 = vst [vmem:[#allocation88_spill] sm:$0xff] %v6669_v62  ;;  %9242 = vst [vmem:[#allocation91_spill] sm:$0xff] %v6671_v23 }
 0x32f   : > { %2247 = vrot.lane.b32.xlu1 %v9243_v35, %s4578_s25  ;;  %2249 = vrot.lane.b32.xlu0 %v9244_v26, %s4578_s25  ;;  %v9252_v35 = vld [vmem:[#allocation22_spill] sm:$0xff] }
 0x331   : > { %v6677_v0 = vpop.permute.xlu1 %1937  ;;  %v6679_v34 = vpop.permute.xlu0 %1939 }
 0x332   : > { %9245 = vst [vmem:[#allocation13_spill] sm:$0xff] %v6677_v0  ;;  %9246 = vst [vmem:[#allocation15_spill] sm:$0xff] %v6679_v34  ;;  %v9255_v34 = vld [vmem:[#allocation23_spill] sm:$0xff] }
 0x333   : > { %2251 = vrot.lane.b32.xlu1 %v9247_v32, %s4578_s25  ;;  %2253 = vrot.lane.b32.xlu0 %v9248_v47, %s4578_s25  ;;  %v9256_v32 = vld [vmem:[#allocation24_spill] sm:$0xff] }
 0x335   : > { %v6685_v62 = vpop.permute.xlu1 %1941  ;;  %v6687_v23 = vpop.permute.xlu0 %1943 }
 0x336   : > { %9249 = vst [vmem:[#allocation14_spill] sm:$0xff] %v6685_v62  ;;  %9250 = vst [vmem:[#allocation16_spill] sm:$0xff] %v6687_v23  ;;  %v9259_v23 = vld [vmem:[#allocation76_spill] sm:$0xff] }
 0x337   : > { %2263 = vrot.lane.b32.xlu1 %v9251_v22, %s4578_s25  ;;  %2265 = vrot.lane.b32.xlu0 %v9252_v35, %s4578_s25  ;;  %v9260_v22 = vld [vmem:[#allocation79_spill] sm:$0xff] }
 0x339   : > { %v6693_v26 = vpop.permute.xlu1 %1945  ;;  %v6695_v0 = vpop.permute.xlu0 %1947 }
 0x33a   : > { %9253 = vst [vmem:[#allocation21_spill] sm:$0xff] %v6693_v26  ;;  %9254 = vst [vmem:[#allocation22_spill] sm:$0xff] %v6695_v0  ;;  %v9263_v0 = vld [vmem:[#allocation92_spill] sm:$0xff] }
 0x33b   : > { %2267 = vrot.lane.b32.xlu1 %v9255_v34, %s4578_s25  ;;  %2269 = vrot.lane.b32.xlu0 %v9256_v32, %s4578_s25  ;;  %v9264_v34 = vld [vmem:[#allocation95_spill] sm:$0xff] }
 0x33d   : > { %v6701_v47 = vpop.permute.xlu1 %1949  ;;  %v6703_v62 = vpop.permute.xlu0 %1951 }
 0x33e   : > { %9257 = vst [vmem:[#allocation23_spill] sm:$0xff] %v6701_v47  ;;  %9258 = vst [vmem:[#allocation24_spill] sm:$0xff] %v6703_v62  ;;  %v9267_v62 = vld [vmem:[#allocation17_spill] sm:$0xff] }
 0x33f   : > { %2127 = vrot.lane.b32.xlu1 %v9259_v23, %s4577_s27  ;;  %2129 = vrot.lane.b32.xlu0 %v9260_v22, %s4577_s27  ;;  %v9268_v23 = vld [vmem:[#allocation18_spill] sm:$0xff] }
 0x341   : > { %v6709_v35 = vpop.permute.xlu1 %1953  ;;  %v6711_v26 = vpop.permute.xlu0 %1955 }
 0x342   : > { %9261 = vst [vmem:[#allocation76_spill] sm:$0xff] %v6709_v35  ;;  %9262 = vst [vmem:[#allocation79_spill] sm:$0xff] %v6711_v26  ;;  %v9271_v26 = vld [vmem:[#allocation25_spill] sm:$0xff] }
 0x343   : > { %2143 = vrot.lane.b32.xlu1 %v9263_v0, %s4577_s27  ;;  %2145 = vrot.lane.b32.xlu0 %v9264_v34, %s4577_s27  ;;  %v9272_v0 = vld [vmem:[#allocation26_spill] sm:$0xff] }
 0x345   : > { %v6717_v32 = vpop.permute.xlu1 %1957  ;;  %v6719_v47 = vpop.permute.xlu0 %1959 }
 0x346   : > { %9265 = vst [vmem:[#allocation92_spill] sm:$0xff] %v6717_v32  ;;  %9266 = vst [vmem:[#allocation95_spill] sm:$0xff] %v6719_v47  ;;  %v9275_v47 = vld [vmem:[#allocation80_spill] sm:$0xff] }
 0x347   : > { %2255 = vrot.lane.b32.xlu1 %v9267_v62, %s4578_s25  ;;  %2257 = vrot.lane.b32.xlu0 %v9268_v23, %s4578_s25  ;;  %v9276_v62 = vld [vmem:[#allocation83_spill] sm:$0xff] }
 0x349   : > { %v6725_v22 = vpop.permute.xlu1 %1961  ;;  %v6727_v35 = vpop.permute.xlu0 %1963 }
 0x34a   : > { %9269 = vst [vmem:[#allocation17_spill] sm:$0xff] %v6725_v22  ;;  %9270 = vst [vmem:[#allocation18_spill] sm:$0xff] %v6727_v35  ;;  %v9279_v35 = vld [vmem:[#allocation96_spill] sm:$0xff] }
 0x34b   : > { %2271 = vrot.lane.b32.xlu1 %v9271_v26, %s4578_s25  ;;  %2273 = vrot.lane.b32.xlu0 %v9272_v0, %s4578_s25  ;;  %v9280_v26 = vld [vmem:[#allocation99_spill] sm:$0xff] }
 0x34d   : > { %v6733_v34 = vpop.permute.xlu1 %1965  ;;  %v6735_v32 = vpop.permute.xlu0 %1967 }
 0x34e   : > { %9273 = vst [vmem:[#allocation25_spill] sm:$0xff] %v6733_v34  ;;  %9274 = vst [vmem:[#allocation26_spill] sm:$0xff] %v6735_v32  ;;  %v9283_v32 = vld [vmem:[#allocation19_spill] sm:$0xff] }
 0x34f   : > { %2131 = vrot.lane.b32.xlu1 %v9275_v47, %s4577_s27  ;;  %2133 = vrot.lane.b32.xlu0 %v9276_v62, %s4577_s27  ;;  %v9284_v47 = vld [vmem:[#allocation20_spill] sm:$0xff] }
 0x351   : > { %v6741_v23 = vpop.permute.xlu1 %1969  ;;  %v6743_v22 = vpop.permute.xlu0 %1971 }
 0x352   : > { %9277 = vst [vmem:[#allocation80_spill] sm:$0xff] %v6741_v23  ;;  %9278 = vst [vmem:[#allocation83_spill] sm:$0xff] %v6743_v22  ;;  %v9287_v22 = vld [vmem:[#allocation27_spill] sm:$0xff] }
 0x353   : > { %2147 = vrot.lane.b32.xlu1 %v9279_v35, %s4577_s27  ;;  %2149 = vrot.lane.b32.xlu0 %v9280_v26, %s4577_s27  ;;  %v9288_v35 = vld [vmem:[#allocation28_spill] sm:$0xff] }
 0x355   : > { %v6749_v0 = vpop.permute.xlu1 %1973  ;;  %v6751_v34 = vpop.permute.xlu0 %1975 }
 0x356   : > { %9281 = vst [vmem:[#allocation96_spill] sm:$0xff] %v6749_v0  ;;  %9282 = vst [vmem:[#allocation99_spill] sm:$0xff] %v6751_v34  ;;  %v9291_v34 = vld [vmem:[#allocation29_spill] sm:$0xff] }
 0x357   : > { %2259 = vrot.lane.b32.xlu1 %v9283_v32, %s4578_s25  ;;  %2261 = vrot.lane.b32.xlu0 %v9284_v47, %s4578_s25  ;;  %v9292_v32 = vld [vmem:[#allocation30_spill] sm:$0xff]  ;;  %v9293_v47 = vmov 0.0  }
 0x358   : > { %2608 = vst.msk [vmem:[#allocation3] sm:$0xff] %vm2607_vm2, %v9293_v47  ;;  %2609 = vst.msk [vmem:[#allocation3 + $0x8] sm:$0xff] %vm2607_vm2, %v9293_v47 }
 0x359   : > { %v6757_v62 = vpop.permute.xlu1 %1977  ;;  %v6759_v23 = vpop.permute.xlu0 %1979  ;;  %2610 = vst.msk [vmem:[#allocation3 + $0x10] sm:$0xff] %vm2607_vm2, %v9293_v47  ;;  %2613 = vst.msk [vmem:[#allocation3 + $0x20] sm:$0xff] %vm2607_vm2, %v9293_v47 }
 0x35a   : > { %9285 = vst [vmem:[#allocation19_spill] sm:$0xff] %v6757_v62  ;;  %9286 = vst [vmem:[#allocation20_spill] sm:$0xff] %v6759_v23  ;;  %v9300_v23 = vld [vmem:[#allocation37_spill] sm:$0xff]  ;;  %v9301_v62 = vld [vmem:[#allocation38_spill] sm:$0xff] }
 0x35b   : > { %2275 = vrot.lane.b32.xlu1 %v9287_v22, %s4578_s25  ;;  %2277 = vrot.lane.b32.xlu0 %v9288_v35, %s4578_s25  ;;  %2614 = vst.msk [vmem:[#allocation3 + $0x28] sm:$0xff] %vm2607_vm2, %v9293_v47  ;;  %2615 = vst.msk [vmem:[#allocation3 + $0x30] sm:$0xff] %vm2607_vm2, %v9293_v47  ;;  %v9296_v35 = vld [vmem:[#allocation31_spill] sm:$0xff] }
 0x35c   : > { %2617 = vst.msk [vmem:[#allocation3 + $0x40] sm:$0xff] %vm2607_vm2, %v9293_v47  ;;  %2618 = vst.msk [vmem:[#allocation3 + $0x48] sm:$0xff] %vm2607_vm2, %v9293_v47 }
 0x35d   : > { %v6765_v26 = vpop.permute.xlu1 %1981  ;;  %v6767_v0 = vpop.permute.xlu0 %1983  ;;  %2619 = vst.msk [vmem:[#allocation3 + $0x50] sm:$0xff] %vm2607_vm2, %v9293_v47  ;;  %2621 = vst.msk [vmem:[#allocation3 + $0x60] sm:$0xff] %vm2607_vm2, %v9293_v47 }
 0x35e   : > { %9289 = vst [vmem:[#allocation27_spill] sm:$0xff] %v6765_v26  ;;  %9290 = vst [vmem:[#allocation28_spill] sm:$0xff] %v6767_v0 }
 0x35f   : > { %2279 = vrot.lane.b32.xlu1 %v9291_v34, %s4578_s25  ;;  %2281 = vrot.lane.b32.xlu0 %v9292_v32, %s4578_s25  ;;  %2622 = vst.msk [vmem:[#allocation3 + $0x68] sm:$0xff] %vm2607_vm2, %v9293_v47  ;;  %2623 = vst.msk [vmem:[#allocation3 + $0x70] sm:$0xff] %vm2607_vm2, %v9293_v47  ;;  %v9297_v32 = vld [vmem:[#allocation32_spill] sm:$0xff] }
 0x360   : > { %2625 = vst.msk [vmem:[#allocation3 + $0x80] sm:$0xff] %vm2607_vm2, %v9293_v47  ;;  %2626 = vst.msk [vmem:[#allocation3 + $0x88] sm:$0xff] %vm2607_vm2, %v9293_v47 }
 0x361   : > { %2627 = vst.msk [vmem:[#allocation3 + $0x90] sm:$0xff] %vm2607_vm2, %v9293_v47  ;;  %2629 = vst.msk [vmem:[#allocation3 + $0xa0] sm:$0xff] %vm2607_vm2, %v9293_v47  ;;  %v6893_v22 = vpop.permute.xlu1 %1985  ;;  %v6895_v34 = vpop.permute.xlu0 %1987 }
 0x362   : > { %2630 = vst.msk [vmem:[#allocation3 + $0xa8] sm:$0xff] %vm2607_vm2, %v9293_v47  ;;  %2631 = vst.msk [vmem:[#allocation3 + $0xb0] sm:$0xff] %vm2607_vm2, %v9293_v47 }
 0x363   : > { %2633 = vst.msk [vmem:[#allocation3 + $0xc0] sm:$0xff] %vm2607_vm2, %v9293_v47  ;;  %2634 = vst.msk [vmem:[#allocation3 + $0xc8] sm:$0xff] %vm2607_vm2, %v9293_v47  ;;  %2283 = vrot.lane.b32.xlu1 %v9296_v35, %s4578_s25  ;;  %2285 = vrot.lane.b32.xlu0 %v9297_v32, %s4578_s25  ;;  %v9305_v35 = vld [vmem:[#allocation40_spill] sm:$0xff]  ;;  %v9306_v32 = vld [vmem:[#allocation246_spill] sm:$0xff] }
 0x364   : > { %2635 = vst.msk [vmem:[#allocation3 + $0xd0] sm:$0xff] %vm2607_vm2, %v9293_v47  ;;  %2637 = vst.msk [vmem:[#allocation3 + $0xe0] sm:$0xff] %vm2607_vm2, %v9293_v47 }
 0x365   : > { %2638 = vst.msk [vmem:[#allocation3 + $0xe8] sm:$0xff] %vm2607_vm2, %v9293_v47  ;;  %2639 = vst.msk [vmem:[#allocation3 + $0xf0] sm:$0xff] %vm2607_vm2, %v9293_v47  ;;  %v6901_v0 = vpop.permute.xlu1 %1989  ;;  %v6903_v26 = vpop.permute.xlu0 %1991 }
 0x366   : > { %2641 = vst.msk [vmem:[#allocation3 + $0x100] sm:$0xff] %vm2607_vm2, %v9293_v47  ;;  %2642 = vst.msk [vmem:[#allocation3 + $0x108] sm:$0xff] %vm2607_vm2, %v9293_v47 }
 0x367   : > { %2643 = vst.msk [vmem:[#allocation3 + $0x110] sm:$0xff] %vm2607_vm2, %v9293_v47  ;;  %2645 = vst.msk [vmem:[#allocation3 + $0x120] sm:$0xff] %vm2607_vm2, %v9293_v47  ;;  %2295 = vrot.lane.b32.xlu1 %v9300_v23, %s4578_s25  ;;  %2297 = vrot.lane.b32.xlu0 %v9301_v62, %s4578_s25  ;;  %v9310_v62 = vld [vmem:[#allocation250_spill] sm:$0xff] }
 0x368   : > { %2646 = vst.msk [vmem:[#allocation3 + $0x128] sm:$0xff] %vm2607_vm2, %v9293_v47  ;;  %2647 = vst.msk [vmem:[#allocation3 + $0x130] sm:$0xff] %vm2607_vm2, %v9293_v47 }
 0x369   : > { %2649 = vst.msk [vmem:[#allocation3 + $0x140] sm:$0xff] %vm2607_vm2, %v9293_v47  ;;  %2650 = vst.msk [vmem:[#allocation3 + $0x148] sm:$0xff] %vm2607_vm2, %v9293_v47  ;;  %v6909_v40 = vpop.permute.xlu1 %1993 }
 0x36a   : > { %2651 = vst.msk [vmem:[#allocation3 + $0x150] sm:$0xff] %vm2607_vm2, %v9293_v47  ;;  %2653 = vst.msk [vmem:[#allocation3 + $0x160] sm:$0xff] %vm2607_vm2, %v9293_v47 }
 0x36b   : > { %2654 = vst.msk [vmem:[#allocation3 + $0x168] sm:$0xff] %vm2607_vm2, %v9293_v47  ;;  %2655 = vst.msk [vmem:[#allocation3 + $0x170] sm:$0xff] %vm2607_vm2, %v9293_v47  ;;  %2301 = vrot.lane.b32.xlu0 %v9305_v35, %s4578_s25  ;;  %v9311_v35 = vld [vmem:[#allocation253_spill] sm:$0xff] }
 0x36c   : > { %2657 = vst.msk [vmem:[#allocation3 + $0x180] sm:$0xff] %vm2607_vm2, %v9293_v47  ;;  %2658 = vst.msk [vmem:[#allocation3 + $0x188] sm:$0xff] %vm2607_vm2, %v9293_v47 }
 0x36d   : > { %2659 = vst.msk [vmem:[#allocation3 + $0x190] sm:$0xff] %vm2607_vm2, %v9293_v47  ;;  %2661 = vst.msk [vmem:[#allocation3 + $0x1a0] sm:$0xff] %vm2607_vm2, %v9293_v47  ;;  %v6923_v23 = vpop.permute.xlu1 %1997 }
 0x36e   : > { %2662 = vst.msk [vmem:[#allocation3 + $0x1a8] sm:$0xff] %vm2607_vm2, %v9293_v47  ;;  %2663 = vst.msk [vmem:[#allocation3 + $0x1b0] sm:$0xff] %vm2607_vm2, %v9293_v47 }
 0x36f   : > { %2665 = vst.msk [vmem:[#allocation3 + $0x1c0] sm:$0xff] %vm2607_vm2, %v9293_v47  ;;  %2666 = vst.msk [vmem:[#allocation3 + $0x1c8] sm:$0xff] %vm2607_vm2, %v9293_v47 }
 0x370   : > { %2667 = vst.msk [vmem:[#allocation3 + $0x1d0] sm:$0xff] %vm2607_vm2, %v9293_v47  ;;  %2669 = vst.msk [vmem:[#allocation3 + $0x1e0] sm:$0xff] %vm2607_vm2, %v9293_v47 }
 0x371   : > { %2670 = vst.msk [vmem:[#allocation3 + $0x1e8] sm:$0xff] %vm2607_vm2, %v9293_v47  ;;  %2671 = vst.msk [vmem:[#allocation3 + $0x1f0] sm:$0xff] %vm2607_vm2, %v9293_v47 }
 0x372   : > { %2673 = vst.msk [vmem:[#allocation3 + $0x200] sm:$0xff] %vm2607_vm2, %v9293_v47  ;;  %2674 = vst.msk [vmem:[#allocation3 + $0x208] sm:$0xff] %vm2607_vm2, %v9293_v47 }
 0x373   : > { %2675 = vst.msk [vmem:[#allocation3 + $0x210] sm:$0xff] %vm2607_vm2, %v9293_v47  ;;  %2677 = vst.msk [vmem:[#allocation3 + $0x220] sm:$0xff] %vm2607_vm2, %v9293_v47 }
 0x374   : > { %2678 = vst.msk [vmem:[#allocation3 + $0x228] sm:$0xff] %vm2607_vm2, %v9293_v47  ;;  %2679 = vst.msk [vmem:[#allocation3 + $0x230] sm:$0xff] %vm2607_vm2, %v9293_v47 }
 0x375   : > { %2681 = vst.msk [vmem:[#allocation3 + $0x240] sm:$0xff] %vm2607_vm2, %v9293_v47  ;;  %2682 = vst.msk [vmem:[#allocation3 + $0x248] sm:$0xff] %vm2607_vm2, %v9293_v47 }
 0x376   : > { %2683 = vst.msk [vmem:[#allocation3 + $0x250] sm:$0xff] %vm2607_vm2, %v9293_v47  ;;  %2685 = vst.msk [vmem:[#allocation3 + $0x260] sm:$0xff] %vm2607_vm2, %v9293_v47 }
 0x377   : > { %2686 = vst.msk [vmem:[#allocation3 + $0x268] sm:$0xff] %vm2607_vm2, %v9293_v47  ;;  %2687 = vst.msk [vmem:[#allocation3 + $0x270] sm:$0xff] %vm2607_vm2, %v9293_v47 }
 0x378   : > { %9294 = vst [vmem:[#allocation29_spill] sm:$0xff] %v6893_v22  ;;  %9295 = vst [vmem:[#allocation30_spill] sm:$0xff] %v6895_v34  ;;  %v6911_v22 = vpop.permute.xlu0 %1995  ;;  %v9304_v34 = vld [vmem:[#allocation39_spill] sm:$0xff] }
 0x379   : > { %9298 = vst [vmem:[#allocation31_spill] sm:$0xff] %v6901_v0  ;;  %9299 = vst [vmem:[#allocation32_spill] sm:$0xff] %v6903_v26  ;;  %2299 = vrot.lane.b32.xlu1 %v9304_v34, %s4578_s25  ;;  %v6918_v0 = vmul.f32 0.0010283801, %v9306_v32  ;;  %v9307_v26 = vld [vmem:[#allocation249_spill] sm:$0xff] }
 0x37a   : > { %9302 = vst [vmem:[#allocation37_spill] sm:$0xff] %v6909_v40  ;;  %9303 = vst [vmem:[#allocation38_spill] sm:$0xff] %v6911_v22  ;;  %v6921_v27 = vmul.f32 0.0010283801, %v9307_v26  ;;  %v6932_v34 = vmul.f32 0.0010283801, %v9310_v62  ;;  %v6937_v22 = vpop.permute.xlu1 %2087 }
 0x37b   : > { %9308 = vst [vmem:[#allocation39_spill] sm:$0xff] %v6923_v23  ;;  %v6935_v32 = vmul.f32 0.0010283801, %v9311_v35  ;;  %9312 = vst [vmem:[#allocation246_spill] sm:$0xff] %v6937_v22  ;;  %v9315_v40 = vld [vmem:[#allocation265_spill] sm:$0xff] }
 0x37c   : > { %v6925_v4 = vpop.permute.xlu0 %1999  ;;  %2449 = vrot.lane.b32.xlu0 %v6921_v27, %s4579_s7  ;;  %v6949_v21 = vmul.f32 0.0010283801, %v9315_v40  ;;  %2612 = vst.msk [vmem:[#allocation3 + $0x18] sm:$0x3] %vm2611_vm3, %v9293_v47  ;;  %2628 = vst.msk [vmem:[#allocation3 + $0x98] sm:$0x3] %vm2611_vm3, %v9293_v47  ;;  %v769_v36 = vadd.f32 %v9366_v43, %v6932_v34 }
 0x37d   : > { %9309 = vst [vmem:[#allocation40_spill] sm:$0xff] %v6925_v4  ;;  %2447 = vrot.lane.b32.xlu1 %v6918_v0, %s4579_s7  ;;  %v9314_v4 = vld [vmem:[#allocation262_spill] sm:$0xff]  ;;  %2644 = vst.msk [vmem:[#allocation3 + $0x118] sm:$0x3] %vm2611_vm3, %v9293_v47 }
 0x37e   : > { %v6946_v23 = vmul.f32 0.0010283801, %v9314_v4  ;;  %v6951_v62 = vpop.permute.xlu1 %2091  ;;  %2660 = vst.msk [vmem:[#allocation3 + $0x198] sm:$0x3] %vm2611_vm3, %v9293_v47  ;;  %2676 = vst.msk [vmem:[#allocation3 + $0x218] sm:$0x3] %vm2611_vm3, %v9293_v47 }
 0x37f   : > { %9316 = vst [vmem:[#allocation250_spill] sm:$0xff] %v6951_v62  ;;  %2616 = vst.msk [vmem:[#allocation3 + $0x38] sm:$0x3] %vm2611_vm3, %v9293_v47  ;;  %v9373_v43 = vld [vmem:[#allocation86_spill] sm:$0xff] }
 0x380   : > { %v6939_v26 = vpop.permute.xlu0 %2089  ;;  %2453 = vrot.lane.b32.xlu0 %v6935_v32, %s4579_s7  ;;  %2620 = vst.msk [vmem:[#allocation3 + $0x58] sm:$0x3] %vm2611_vm3, %v9293_v47  ;;  %2624 = vst.msk [vmem:[#allocation3 + $0x78] sm:$0x3] %vm2611_vm3, %v9293_v47 }
 0x381   : > { %9313 = vst [vmem:[#allocation249_spill] sm:$0xff] %v6939_v26  ;;  %2451 = vrot.lane.b32.xlu1 %v6932_v34, %s4579_s7  ;;  %v9318_v26 = vld [vmem:[#allocation266_spill] sm:$0xff]  ;;  %2632 = vst.msk [vmem:[#allocation3 + $0xb8] sm:$0x3] %vm2611_vm3, %v9293_v47  ;;  %v775_v34 = vadd.f32 %v9373_v43, %v6946_v23 }
 0x382   : > { %v6960_v22 = vmul.f32 0.0010283801, %v9318_v26  ;;  %v6965_v4 = vpop.permute.xlu1 %2103  ;;  %v9324_v26 = vld [vmem:[#allocation33_spill] sm:$0xff]  ;;  %2636 = vst.msk [vmem:[#allocation3 + $0xd8] sm:$0x3] %vm2611_vm3, %v9293_v47 }
 0x383   : > { %9320 = vst [vmem:[#allocation262_spill] sm:$0xff] %v6965_v4  ;;  %2640 = vst.msk [vmem:[#allocation3 + $0xf8] sm:$0x3] %vm2611_vm3, %v9293_v47 }
 0x384   : > { %v6953_v35 = vpop.permute.xlu0 %2093  ;;  %2465 = vrot.lane.b32.xlu0 %v6949_v21, %s4579_s7  ;;  %2648 = vst.msk [vmem:[#allocation3 + $0x138] sm:$0x3] %vm2611_vm3, %v9293_v47  ;;  %2652 = vst.msk [vmem:[#allocation3 + $0x158] sm:$0x3] %vm2611_vm3, %v9293_v47 }
 0x385   : > { %9317 = vst [vmem:[#allocation253_spill] sm:$0xff] %v6953_v35  ;;  %2463 = vrot.lane.b32.xlu1 %v6946_v23, %s4579_s7  ;;  %2656 = vst.msk [vmem:[#allocation3 + $0x178] sm:$0x3] %vm2611_vm3, %v9293_v47  ;;  %v9380_v23 = vld [vmem:[#allocation101_spill] sm:$0xff] }
 0x386   : > { %v6973_v35 = vpop.permute.xlu1 %2107  ;;  %2664 = vst.msk [vmem:[#allocation3 + $0x1b8] sm:$0x3] %vm2611_vm3, %v9293_v47  ;;  %2668 = vst.msk [vmem:[#allocation3 + $0x1d8] sm:$0x3] %vm2611_vm3, %v9293_v47  ;;  %v782_v43 = vadd.f32 %v9380_v23, %v7078_v1  ;;  %v9389_v23 = vld [vmem:[#allocation114_spill] sm:$0xff] }
 0x387   : > { %9322 = vst [vmem:[#allocation266_spill] sm:$0xff] %v6973_v35  ;;  %v6990_v35 = vmul.f32 0.0010283801, %v9330_v9  ;;  %2672 = vst.msk [vmem:[#allocation3 + $0x1f8] sm:$0x3] %vm2611_vm3, %v9293_v47 }
 0x388   : > { %v6967_v40 = vpop.permute.xlu0 %2105  ;;  %2469 = vrot.lane.b32.xlu0 %v6963_v19, %s4579_s7  ;;  %2680 = vst.msk [vmem:[#allocation3 + $0x238] sm:$0x3] %vm2611_vm3, %v9293_v47  ;;  %2684 = vst.msk [vmem:[#allocation3 + $0x258] sm:$0x3] %vm2611_vm3, %v9293_v47 }
 0x389   : > { %9321 = vst [vmem:[#allocation265_spill] sm:$0xff] %v6967_v40  ;;  %2467 = vrot.lane.b32.xlu1 %v6960_v22, %s4579_s7  ;;  %v9328_v40 = vld [vmem:[#allocation41_spill] sm:$0xff]  ;;  %2688 = vst.msk [vmem:[#allocation3 + $0x278] sm:$0x3] %vm2611_vm3, %v9293_v47 }
 0x38a   : > { %v6981_v15 = vpop.permute.xlu1 %2095  ;;  %v4409_v47 = vld [vmem:[#allocation2 + $0x88] sm:$0xff] }
 0x38b   : > { %9326 = vst [vmem:[#allocation33_spill] sm:$0xff] %v6981_v15  ;;  %v7082_v54 = vmul.f32 0.0010283801, %v4409_v47  ;;  %v4414_v47 = vld [vmem:[#allocation2 + $0xb0] sm:$0xff] }
 0x38c   : > { %v6975_v62 = vpop.permute.xlu0 %2109  ;;  %2289 = vrot.lane.b32.xlu0 %v9325_v20, %s4578_s25  ;;  %v7096_v38 = vmul.f32 0.0010283801, %v4414_v47  ;;  %v4420_v47 = vld [vmem:[#allocation2 + $0xe0] sm:$0xff] }
 0x38d   : > { %9323 = vst [vmem:[#allocation269_spill] sm:$0xff] %v6975_v62  ;;  %2287 = vrot.lane.b32.xlu1 %v9324_v26, %s4578_s25  ;;  %v9331_v62 = vld [vmem:[#allocation257_spill] sm:$0xff]  ;;  %v7112_v53 = vmul.f32 0.0010283801, %v4420_v47 }
 0x38e   : > { %v6993_v7 = vmul.f32 0.0010283801, %v9331_v62  ;;  %v6995_v26 = vpop.permute.xlu1 %2111  ;;  %v4425_v47 = vld [vmem:[#allocation2 + $0x108] sm:$0xff] }
 0x38f   : > { %9332 = vst [vmem:[#allocation41_spill] sm:$0xff] %v6995_v26  ;;  %9352 = vst [vmem:[#allocation332_spill] sm:$0xff] %v7112_v53 }
 0x390   : > { %v6983_v4 = vpop.permute.xlu0 %2097  ;;  %2305 = vrot.lane.b32.xlu0 %v9329_v13, %s4578_s25  ;;  %v7007_v13 = vmul.f32 0.0010283801, %v6157_v10  ;;  %v9340_v10 = vld [vmem:[#allocation36_spill] sm:$0xff]  ;;  %v772_v2 = vadd.f32 %v9369_v37, %v6993_v7  ;;  %v9374_v37 = vld [vmem:[#allocation89_spill] sm:$0xff] }
 0x391   : > { %9327 = vst [vmem:[#allocation34_spill] sm:$0xff] %v6983_v4  ;;  %2303 = vrot.lane.b32.xlu1 %v9328_v40, %s4578_s25  ;;  %v9334_v40 = vld [vmem:[#allocation270_spill] sm:$0xff] }
 0x392   : > { %v7004_v20 = vmul.f32 0.0010283801, %v9334_v40  ;;  %v7009_v9 = vpop.permute.xlu1 %2099  ;;  %v9339_v40 = vld [vmem:[#allocation35_spill] sm:$0xff] }
 0x393   : > { %9335 = vst [vmem:[#allocation254_spill] sm:$0xff] %v7009_v9  ;;  %v4407_v4 = vld [vmem:[#allocation2 + $0x70] sm:$0xff] }
 0x394   : > { %v6997_v3 = vpop.permute.xlu0 %2113  ;;  %2457 = vrot.lane.b32.xlu0 %v6993_v7, %s4579_s7  ;;  %v7075_v15 = vmul.f32 0.0010283801, %v4407_v4  ;;  %v9346_v4 = vld [vmem:[#allocation44_spill] sm:$0xff]  ;;  %v776_v7 = vadd.f32 %v9374_v37, %v6949_v21 }
 0x395   : > { %9333 = vst [vmem:[#allocation42_spill] sm:$0xff] %v6997_v3  ;;  %2455 = vrot.lane.b32.xlu1 %v6990_v35, %s4579_s7 }
 0x396   : > { %v7017_v3 = vpop.permute.xlu1 %2115 }
 0x397   : > { %9337 = vst [vmem:[#allocation270_spill] sm:$0xff] %v7017_v3 }
 0x398   : > { %v7011_v62 = vpop.permute.xlu0 %2101  ;;  %2473 = vrot.lane.b32.xlu0 %v7007_v13, %s4579_s7 }
 0x399   : > { %9336 = vst [vmem:[#allocation257_spill] sm:$0xff] %v7011_v62  ;;  %2471 = vrot.lane.b32.xlu1 %v7004_v20, %s4579_s7 }
 0x39a   : > { %v7071_v62 = vpop.permute.xlu1 %2119 }
 0x39b   : > { %9343 = vst [vmem:[#allocation35_spill] sm:$0xff] %v7071_v62  ;;  %v7092_v62 = vmul.f32 0.0010283801, %v4412_v16  ;;  %v4418_v16 = vld [vmem:[#allocation2 + $0xd0] sm:$0xff] }
 0x39c   : > { %v7019_v26 = vpop.permute.xlu0 %2117  ;;  %2293 = vrot.lane.b32.xlu0 %v9340_v10, %s4578_s25  ;;  %v7108_v6 = vmul.f32 0.0010283801, %v4418_v16  ;;  %v4424_v16 = vld [vmem:[#allocation2 + $0x100] sm:$0xff] }
 0x39d   : > { %9338 = vst [vmem:[#allocation330_spill] sm:$0xff] %v7019_v26  ;;  %2291 = vrot.lane.b32.xlu1 %v9339_v40, %s4578_s25  ;;  %v9341_v40 = vld [vmem:[#allocation258_spill] sm:$0xff]  ;;  %v9342_v26 = vld [vmem:[#allocation261_spill] sm:$0xff]  ;;  %v7124_v60 = vmul.f32 0.0010283801, %v4424_v16 }
 0x39e   : > { %v7066_v10 = vmul.f32 0.0010283801, %v9341_v40  ;;  %v7069_v3 = vmul.f32 0.0010283801, %v9342_v26  ;;  %v4410_v40 = vld [vmem:[#allocation2 + $0x90] sm:$0xff]  ;;  %v4411_v26 = vld [vmem:[#allocation2 + $0x98] sm:$0xff]  ;;  %v7104_v28 = vpop.permute.xlu1 %2123 }
 0x39f   : > { %v7084_v52 = vmul.f32 0.0010283801, %v4410_v40  ;;  %v7086_v48 = vmul.f32 0.0010283801, %v4411_v26  ;;  %9347 = vst [vmem:[#allocation258_spill] sm:$0xff] %v7094_v46  ;;  %9348 = vst [vmem:[#allocation261_spill] sm:$0xff] %v7096_v38 }
 0x3a0   : > { %v7073_v9 = vpop.permute.xlu0 %2121  ;;  %2309 = vrot.lane.b32.xlu0 %v9346_v4, %s4578_s25  ;;  %v4415_v40 = vld [vmem:[#allocation2 + $0xb8] sm:$0xff]  ;;  %v4416_v26 = vld [vmem:[#allocation2 + $0xc0] sm:$0xff]  ;;  %9350 = vst [vmem:[#allocation44_spill] sm:$0xff] %v7104_v28  ;;  %9356 = vst [vmem:[#allocation336_spill] sm:$0xff] %v7124_v60 }
 0x3a1   : > { %9344 = vst [vmem:[#allocation36_spill] sm:$0xff] %v7073_v9  ;;  %v9345_v9 = vld [vmem:[#allocation43_spill] sm:$0xff]  ;;  %v7098_v41 = vmul.f32 0.0010283801, %v4415_v40  ;;  %v7100_v29 = vmul.f32 0.0010283801, %v4416_v26 }
 0x3a2   : > { %2307 = vrot.lane.b32.xlu1 %v9345_v9, %s4578_s25  ;;  %v7102_v9 = vmul.f32 0.0010283801, %v4417_v44  ;;  %v4421_v40 = vld [vmem:[#allocation2 + $0xe8] sm:$0xff]  ;;  %v4422_v26 = vld [vmem:[#allocation2 + $0xf0] sm:$0xff]  ;;  %v4423_v44 = vld [vmem:[#allocation2 + $0xf8] sm:$0xff]  ;;  %v7138_v16 = vpop.permute.xlu1 %2135 }
 0x3a3   : > { %9349 = vst [vmem:[#allocation43_spill] sm:$0xff] %v7098_v41  ;;  %v7114_v14 = vmul.f32 0.0010283801, %v4421_v40  ;;  %v7116_v59 = vmul.f32 0.0010283801, %v4422_v26  ;;  %v4426_v40 = vld [vmem:[#allocation2 + $0x110] sm:$0xff] }
 0x3a4   : > { %v7106_v4 = vpop.permute.xlu0 %2125  ;;  %v7118_v51 = vmul.f32 0.0010283801, %v4423_v44  ;;  %2461 = vrot.lane.b32.xlu0 %v7069_v3, %s4579_s7  ;;  %v7128_v28 = vmul.f32 0.0010283801, %v4426_v40  ;;  %v9359_v26 = vld [vmem:[#allocation70_spill] sm:$0xff]  ;;  %v4427_v44 = vld [vmem:[#allocation2 + $0x118] sm:$0xff] }
 0x3a5   : > { %9351 = vst [vmem:[#allocation331_spill] sm:$0xff] %v7106_v4  ;;  %9353 = vst [vmem:[#allocation333_spill] sm:$0xff] %v7114_v14  ;;  %v7126_v4 = vmul.f32 0.0010283801, %v4425_v47  ;;  %v767_v24 = vadd.f32 %v9359_v26, %v6918_v0  ;;  %v7132_v30 = vmul.f32 0.0010283801, %v4427_v44 }
 0x3a6   : > { %9354 = vst [vmem:[#allocation334_spill] sm:$0xff] %v7116_v59  ;;  %9355 = vst [vmem:[#allocation335_spill] sm:$0xff] %v7118_v51  ;;  %2459 = vrot.lane.b32.xlu1 %v7066_v10, %s4579_s7  ;;  %v9365_v47 = vld [vmem:[#allocation73_spill] sm:$0xff]  ;;  %v9368_v44 = vld [vmem:[#allocation78_spill] sm:$0xff]  ;;  %v7178_v17 = vpop.permute.xlu1 %2139 }
 0x3a7   : > { %9357 = vst [vmem:[#allocation337_spill] sm:$0xff] %v7126_v4  ;;  %9358 = vst [vmem:[#allocation338_spill] sm:$0xff] %v7128_v28  ;;  %v768_v40 = vadd.f32 %v9365_v47, %v6921_v27  ;;  %v9367_v0 = vld [vmem:[#allocation77_spill] sm:$0xff]  ;;  %v771_v42 = vadd.f32 %v9368_v44, %v6990_v35  ;;  %v7156_v27 = vmul.f32 0.0010283801, %v4430_v63  ;;  %v9377_v63 = vld [vmem:[#allocation94_spill] sm:$0xff] }
 0x3a8   : > { %9360 = vst [vmem:[#allocation70_spill] sm:$0xff] %v7132_v30  ;;  %9363 = vst [vmem:[#allocation341_spill] sm:$0xff] %v7138_v16  ;;  %v7140_v8 = vpop.permute.xlu0 %2137  ;;  %v770_v26 = vadd.f32 %v9367_v0, %v6935_v32  ;;  %v773_v16 = vadd.f32 %v9370_v18, %v7066_v10  ;;  %2477 = vrot.lane.b32.xlu0 %v7078_v1, %s4579_s7  ;;  %v9375_v18 = vld [vmem:[#allocation90_spill] sm:$0xff]  ;;  %v779_v35 = vadd.f32 %v9377_v63, %v7004_v20  ;;  %v9378_v10 = vld [vmem:[#allocation97_spill] sm:$0xff] }
 0x3a9   : > { %9364 = vst [vmem:[#allocation342_spill] sm:$0xff] %v7140_v8  ;;  %v9371_v8 = vld [vmem:[#allocation85_spill] sm:$0xff]  ;;  %9372 = vst [vmem:[#allocation73_spill] sm:$0xff] %v7156_v27  ;;  %v777_v32 = vadd.f32 %v9375_v18, %v6960_v22  ;;  %v780_v47 = vadd.f32 %v9378_v10, %v7007_v13  ;;  %v9379_v0 = vld [vmem:[#allocation98_spill] sm:$0xff] }
 0x3aa   : > { %v774_v31 = vadd.f32 %v9371_v8, %v7069_v3  ;;  %2475 = vrot.lane.b32.xlu1 %v7075_v15, %s4579_s7  ;;  %v9376_v8 = vld [vmem:[#allocation93_spill] sm:$0xff]  ;;  %v781_v44 = vadd.f32 %v9379_v0, %v7075_v15  ;;  %9381 = vst [vmem:[#allocation74_spill] sm:$0xff] %v7178_v17  ;;  %v9383_v22 = vld [vmem:[#allocation102_spill] sm:$0xff]  ;;  %v4431_v17 = vld [vmem:[#allocation2 + $0x138] sm:$0xff]  ;;  %v7218_v61 = vpop.permute.xlu1 %2247 }
 0x3ab   : > { %v778_v3 = vadd.f32 %v9376_v8, %v6963_v19  ;;  %v783_v37 = vadd.f32 %v9383_v22, %v7080_v58  ;;  %v9384_v19 = vld [vmem:[#allocation105_spill] sm:$0xff]  ;;  %v9385_v20 = vld [vmem:[#allocation106_spill] sm:$0xff]  ;;  %v7196_v22 = vmul.f32 0.0010283801, %v4431_v17  ;;  %9399 = vst [vmem:[#allocation81_spill] sm:$0xff] %v7218_v61 }
 0x3ac   : > { %v7180_v21 = vpop.permute.xlu0 %2141  ;;  %v784_v18 = vadd.f32 %v9384_v19, %v7082_v54  ;;  %v785_v8 = vadd.f32 %v9385_v20, %v7084_v52  ;;  %v9386_v13 = vld [vmem:[#allocation109_spill] sm:$0xff]  ;;  %v9387_v15 = vld [vmem:[#allocation110_spill] sm:$0xff]  ;;  %2481 = vrot.lane.b32.xlu0 %v7082_v54, %s4579_s7 }
 0x3ad   : > { %9382 = vst [vmem:[#allocation77_spill] sm:$0xff] %v7180_v21  ;;  %v786_v63 = vadd.f32 %v9386_v13, %v7086_v48  ;;  %v787_v10 = vadd.f32 %v9387_v15, %v7092_v62  ;;  %v9388_v1 = vld [vmem:[#allocation113_spill] sm:$0xff]  ;;  %v789_v21 = vadd.f32 %v9389_v23, %v7096_v38  ;;  %9390 = vst [vmem:[#allocation78_spill] sm:$0xff] %v7196_v22  ;;  %v9392_v13 = vld [vmem:[#allocation118_spill] sm:$0xff] }
 0x3ae   : > { %v788_v0 = vadd.f32 %v9388_v1, %v7094_v46  ;;  %2479 = vrot.lane.b32.xlu1 %v7080_v58, %s4579_s7  ;;  %v9391_v19 = vld [vmem:[#allocation117_spill] sm:$0xff]  ;;  %v791_v15 = vadd.f32 %v9392_v13, %v7100_v29  ;;  %v9394_v23 = vld [vmem:[#allocation122_spill] sm:$0xff] }
 0x3af   : > { %v790_v20 = vadd.f32 %v9391_v19, %v7098_v41  ;;  %v9393_v1 = vld [vmem:[#allocation121_spill] sm:$0xff]  ;;  %v793_v49 = vadd.f32 %v9394_v23, %v7108_v6  ;;  %v9396_v58 = vld [vmem:[#allocation126_spill] sm:$0xff] }
 0x3b0   : > { %v792_v45 = vadd.f32 %v9393_v1, %v7102_v9  ;;  %v9395_v17 = vld [vmem:[#allocation125_spill] sm:$0xff]  ;;  %v795_v50 = vadd.f32 %v9396_v58, %v7112_v53  ;;  %v9398_v19 = vld [vmem:[#allocation130_spill] sm:$0xff]  ;;  %v7220_v13 = vpop.permute.xlu0 %2249  ;;  %2485 = vrot.lane.b32.xlu0 %v7086_v48, %s4579_s7  ;;  %v7250_v53 = vpop.permute.xlu1 %2251 }
 0x3b1   : > { %v794_v39 = vadd.f32 %v9395_v17, %v7110_v5  ;;  %v9397_v54 = vld [vmem:[#allocation129_spill] sm:$0xff]  ;;  %v797_v55 = vadd.f32 %v9398_v19, %v7116_v59  ;;  %9400 = vst [vmem:[#allocation82_spill] sm:$0xff] %v7220_v13  ;;  %v9402_v23 = vld [vmem:[#allocation134_spill] sm:$0xff] }
 0x3b2   : > { %v796_v33 = vadd.f32 %v9397_v54, %v7114_v14  ;;  %v9401_v1 = vld [vmem:[#allocation133_spill] sm:$0xff]  ;;  %v799_v25 = vadd.f32 %v9402_v23, %v7124_v60  ;;  %v9404_v58 = vld [vmem:[#allocation138_spill] sm:$0xff]  ;;  %2483 = vrot.lane.b32.xlu1 %v7084_v52, %s4579_s7 }
 0x3b3   : > { %v798_v56 = vadd.f32 %v9401_v1, %v7118_v51  ;;  %v9403_v17 = vld [vmem:[#allocation137_spill] sm:$0xff]  ;;  %v801_v41 = vadd.f32 %v9404_v58, %v7128_v28  ;;  %v9406_v19 = vld [vmem:[#allocation142_spill] sm:$0xff] }
 0x3b4   : > { %v800_v11 = vadd.f32 %v9403_v17, %v7126_v4  ;;  %v9405_v54 = vld [vmem:[#allocation141_spill] sm:$0xff]  ;;  %v803_v61 = vadd.f32 %v9406_v19, %v7134_v12  ;;  %v9408_v1 = vld [vmem:[#allocation146_spill] sm:$0xff]  ;;  %v7252_v48 = vpop.permute.xlu0 %2253  ;;  %2497 = vrot.lane.b32.xlu0 %v7102_v9, %s4579_s7 }
 0x3b5   : > { %v802_v38 = vadd.f32 %v9405_v54, %v7132_v30  ;;  %v9407_v13 = vld [vmem:[#allocation145_spill] sm:$0xff]  ;;  %v805_v23 = vadd.f32 %v9408_v1, %v7156_v27  ;;  %v9410_v28 = vld [vmem:[#allocation150_spill] sm:$0xff] }
 0x3b6   : > { %v804_v59 = vadd.f32 %v9407_v13, %v7136_v57  ;;  %v9409_v17 = vld [vmem:[#allocation149_spill] sm:$0xff]  ;;  %v1007_v54 = vadd.f32 %v9410_v28, %v767_v24  ;;  %v9412_v19 = vld [vmem:[#allocation154_spill] sm:$0xff]  ;;  %2495 = vrot.lane.b32.xlu1 %v7100_v29, %s4579_s7  ;;  %v7273_v29 = vpop.permute.xlu1 %2263 }
 0x3b7   : > { %v806_v58 = vadd.f32 %v9409_v17, %v7196_v22  ;;  %v9411_v30 = vld [vmem:[#allocation153_spill] sm:$0xff]  ;;  %v1009_v12 = vadd.f32 %v9412_v19, %v769_v36  ;;  %v9414_v57 = vld [vmem:[#allocation158_spill] sm:$0xff] }
 0x3b8   : > { %v1008_v4 = vadd.f32 %v9411_v30, %v768_v40  ;;  %v9413_v60 = vld [vmem:[#allocation157_spill] sm:$0xff]  ;;  %v1011_v51 = vadd.f32 %v9414_v57, %v771_v42  ;;  %v9416_v1 = vld [vmem:[#allocation162_spill] sm:$0xff]  ;;  %2501 = vrot.lane.b32.xlu0 %v7110_v5, %s4579_s7 }
 0x3b9   : > { %v1010_v13 = vadd.f32 %v9413_v60, %v770_v26  ;;  %v9415_v52 = vld [vmem:[#allocation161_spill] sm:$0xff]  ;;  %v1013_v27 = vadd.f32 %v9416_v1, %v773_v16  ;;  %v9418_v22 = vld [vmem:[#allocation166_spill] sm:$0xff] }
 0x3ba   : > { %v1012_v14 = vadd.f32 %v9415_v52, %v772_v2  ;;  %v9417_v46 = vld [vmem:[#allocation165_spill] sm:$0xff]  ;;  %v1015_v24 = vadd.f32 %v9418_v22, %v775_v34  ;;  %v9420_v40 = vld [vmem:[#allocation170_spill] sm:$0xff]  ;;  %2499 = vrot.lane.b32.xlu1 %v7108_v6, %s4579_s7  ;;  %v7296_v6 = vpop.permute.xlu1 %2267 }
 0x3bb   : > { %v1014_v17 = vadd.f32 %v9417_v46, %v774_v31  ;;  %v9419_v28 = vld [vmem:[#allocation169_spill] sm:$0xff]  ;;  %v1017_v36 = vadd.f32 %v9420_v40, %v777_v32  ;;  %v9422_v26 = vld [vmem:[#allocation174_spill] sm:$0xff] }
 0x3bc   : > { %v1016_v30 = vadd.f32 %v9419_v28, %v776_v7  ;;  %v9421_v19 = vld [vmem:[#allocation173_spill] sm:$0xff]  ;;  %v1019_v57 = vadd.f32 %v9422_v26, %v779_v35  ;;  %v9424_v2 = vld [vmem:[#allocation178_spill] sm:$0xff]  ;;  %v7275_v26 = vpop.permute.xlu0 %2265 }
 0x3bd   : > { %v1018_v60 = vadd.f32 %v9421_v19, %v778_v3  ;;  %v9423_v42 = vld [vmem:[#allocation177_spill] sm:$0xff]  ;;  %v1021_v31 = vadd.f32 %v9424_v2, %v781_v44  ;;  %v9426_v22 = vld [vmem:[#allocation182_spill] sm:$0xff]  ;;  %v9433_v2 = vld [vmem:[#allocation196_spill] sm:$0xff] }
 0x3be   : > { %v1020_v16 = vadd.f32 %v9423_v42, %v780_v47  ;;  %v9425_v46 = vld [vmem:[#allocation181_spill] sm:$0xff]  ;;  %v1023_v7 = vadd.f32 %v9426_v22, %v783_v37  ;;  %v9428_v1 = vld [vmem:[#allocation186_spill] sm:$0xff]  ;;  %2487 = vrot.lane.b32.xlu1 %v7092_v62, %s4579_s7  ;;  %v7319_v62 = vpop.permute.xlu1 %2127 }
 0x3bf   : > { %v1022_v34 = vadd.f32 %v9425_v46, %v782_v43  ;;  %v9427_v52 = vld [vmem:[#allocation185_spill] sm:$0xff]  ;;  %v1025_v3 = vadd.f32 %v9428_v1, %v785_v8  ;;  %v9430_v40 = vld [vmem:[#allocation190_spill] sm:$0xff]  ;;  %v1030_v43 = vadd.f32 %v9433_v2, %v790_v20  ;;  %v9437_v1 = vld [vmem:[#allocation200_spill] sm:$0xff]  ;;  %9463 = vst [vmem:[#allocation86_spill] sm:$0xff] %v7319_v62 }
 0x3c0   : > { %v1024_v32 = vadd.f32 %v9427_v52, %v784_v18  ;;  %v9429_v28 = vld [vmem:[#allocation189_spill] sm:$0xff]  ;;  %v1027_v19 = vadd.f32 %v9430_v40, %v787_v10  ;;  %v9432_v42 = vld [vmem:[#allocation194_spill] sm:$0xff]  ;;  %v9436_v52 = vld [vmem:[#allocation199_spill] sm:$0xff] }
 0x3c1   : > { %v1026_v35 = vadd.f32 %v9429_v28, %v786_v63  ;;  %v9431_v9 = vld [vmem:[#allocation193_spill] sm:$0xff]  ;;  %v1029_v44 = vadd.f32 %v9432_v42, %v789_v21  ;;  %v9435_v22 = vld [vmem:[#allocation198_spill] sm:$0xff]  ;;  %v1033_v8 = vadd.f32 %v9436_v52, %v793_v49  ;;  %v1034_v63 = vadd.f32 %v9437_v1, %v794_v39  ;;  %v9440_v40 = vld [vmem:[#allocation203_spill] sm:$0xff]  ;;  %v7298_v1 = vpop.permute.xlu0 %2269 }
 0x3c2   : > { %v1028_v47 = vadd.f32 %v9431_v9, %v788_v0  ;;  %v9434_v46 = vld [vmem:[#allocation197_spill] sm:$0xff]  ;;  %v1032_v18 = vadd.f32 %v9435_v22, %v792_v45  ;;  %v9439_v28 = vld [vmem:[#allocation202_spill] sm:$0xff]  ;;  %v1037_v20 = vadd.f32 %v9440_v40, %v797_v55  ;;  %v9441_v9 = vld [vmem:[#allocation204_spill] sm:$0xff]  ;;  %9446 = vst [vmem:[#allocation85_spill] sm:$0xff] %v7298_v1 }
 0x3c3   : > { %v1031_v37 = vadd.f32 %v9434_v46, %v791_v15  ;;  %v9438_v10 = vld [vmem:[#allocation201_spill] sm:$0xff]  ;;  %v1036_v21 = vadd.f32 %v9439_v28, %v796_v33  ;;  %v1038_v15 = vadd.f32 %v9441_v9, %v798_v56  ;;  %v9443_v2 = vld [vmem:[#allocation206_spill] sm:$0xff]  ;;  %v9444_v46 = vld [vmem:[#allocation207_spill] sm:$0xff] }
 0x3c4   : > { %v1035_v0 = vadd.f32 %v9438_v10, %v795_v50  ;;  %v9442_v42 = vld [vmem:[#allocation205_spill] sm:$0xff]  ;;  %v1040_v49 = vadd.f32 %v9443_v2, %v800_v11  ;;  %v1041_v39 = vadd.f32 %v9444_v46, %v801_v41  ;;  %v9445_v22 = vld [vmem:[#allocation208_spill] sm:$0xff]  ;;  %v9448_v10 = vld [vmem:[#allocation210_spill] sm:$0xff] }
 0x3c5   : > { %v1039_v45 = vadd.f32 %v9442_v42, %v799_v25  ;;  %v1042_v52 = vadd.f32 %v9445_v22, %v802_v38  ;;  %v9447_v5 = vld [vmem:[#allocation209_spill] sm:$0xff]  ;;  %v1044_v33 = vadd.f32 %v9448_v10, %v804_v59  ;;  %v9449_v28 = vld [vmem:[#allocation211_spill] sm:$0xff]  ;;  %v9450_v40 = vld [vmem:[#allocation212_spill] sm:$0xff]  ;;  %v7321_v1 = vpop.permute.xlu0 %2129 }
 0x3c6   : > { %v1043_v50 = vadd.f32 %v9447_v5, %v803_v61  ;;  %v1045_v55 = vadd.f32 %v9449_v28, %v805_v23  ;;  %v1046_v56 = vadd.f32 %v9450_v40, %v806_v58  ;;  %v9451_v9 = vld [vmem:[#allocation213_spill] sm:$0xff]  ;;  %v9452_v42 = vld [vmem:[#allocation214_spill] sm:$0xff]  ;;  %v9453_v2 = vld [vmem:[#allocation215_spill] sm:$0xff]  ;;  %9464 = vst [vmem:[#allocation89_spill] sm:$0xff] %v7321_v1 }
 0x3c7   : > { %v1247_v25 = vadd.f32 %v9451_v9, %v1007_v54  ;;  %v1248_v11 = vadd.f32 %v9452_v42, %v1008_v4  ;;  %v1249_v41 = vadd.f32 %v9453_v2, %v1009_v12  ;;  %v9454_v38 = vld [vmem:[#allocation258_spill] sm:$0xff]  ;;  %v9455_v46 = vld [vmem:[#allocation216_spill] sm:$0xff]  ;;  %v9456_v22 = vld [vmem:[#allocation217_spill] sm:$0xff] }
 0x3c8   : > { %2489 = vrot.lane.b32.xlu0 %v9454_v38, %s4579_s7  ;;  %v1250_v61 = vadd.f32 %v9455_v46, %v1010_v13  ;;  %v1251_v59 = vadd.f32 %v9456_v22, %v1011_v51  ;;  %v9457_v5 = vld [vmem:[#allocation218_spill] sm:$0xff]  ;;  %v9458_v10 = vld [vmem:[#allocation219_spill] sm:$0xff]  ;;  %v9459_v28 = vld [vmem:[#allocation220_spill] sm:$0xff] }
 0x3c9   : > { %v1252_v23 = vadd.f32 %v9457_v5, %v1012_v14  ;;  %v1253_v58 = vadd.f32 %v9458_v10, %v1013_v27  ;;  %v1254_v54 = vadd.f32 %v9459_v28, %v1014_v17  ;;  %v9460_v40 = vld [vmem:[#allocation221_spill] sm:$0xff]  ;;  %v9461_v9 = vld [vmem:[#allocation222_spill] sm:$0xff]  ;;  %v9462_v42 = vld [vmem:[#allocation223_spill] sm:$0xff]  ;;  %v7344_v62 = vpop.permute.xlu0 %2145 }
 0x3ca   : > { %v1255_v4 = vadd.f32 %v9460_v40, %v1015_v24  ;;  %v1256_v12 = vadd.f32 %v9461_v9, %v1016_v30  ;;  %v1257_v2 = vadd.f32 %v9462_v42, %v1017_v36  ;;  %v9465_v38 = vld [vmem:[#allocation224_spill] sm:$0xff]  ;;  %v9466_v46 = vld [vmem:[#allocation225_spill] sm:$0xff]  ;;  %v9467_v22 = vld [vmem:[#allocation227_spill] sm:$0xff]  ;;  %9483 = vst [vmem:[#allocation93_spill] sm:$0xff] %v7344_v62 }
 0x3cb   : > { %v1258_v13 = vadd.f32 %v9465_v38, %v1018_v60  ;;  %v1259_v51 = vadd.f32 %v9466_v46, %v1019_v57  ;;  %v1260_v14 = vadd.f32 %v9467_v22, %v1020_v16  ;;  %v9468_v5 = vld [vmem:[#allocation228_spill] sm:$0xff]  ;;  %v9469_v10 = vld [vmem:[#allocation231_spill] sm:$0xff]  ;;  %v9473_v9 = vld [vmem:[#allocation333_spill] sm:$0xff] }
 0x3cc   : > { %v1261_v27 = vadd.f32 %v9468_v5, %v1021_v31  ;;  %v1262_v17 = vadd.f32 %v9469_v10, %v1022_v34  ;;  %v9470_v28 = vld [vmem:[#allocation232_spill] sm:$0xff]  ;;  %v9471_v40 = vld [vmem:[#allocation235_spill] sm:$0xff]  ;;  %2505 = vrot.lane.b32.xlu0 %v9473_v9, %s4579_s7 }
 0x3cd   : > { %v1263_v24 = vadd.f32 %v9470_v28, %v1023_v7  ;;  %v1264_v30 = vadd.f32 %v9471_v40, %v1024_v32  ;;  %v9472_v36 = vld [vmem:[#allocation332_spill] sm:$0xff]  ;;  %v9475_v38 = vld [vmem:[#allocation239_spill] sm:$0xff] }
 0x3ce   : > { %2503 = vrot.lane.b32.xlu1 %v9472_v36, %s4579_s7  ;;  %v9474_v42 = vld [vmem:[#allocation236_spill] sm:$0xff]  ;;  %v1266_v57 = vadd.f32 %v9475_v38, %v1026_v35  ;;  %v9477_v22 = vld [vmem:[#allocation243_spill] sm:$0xff]  ;;  %v7342_v36 = vpop.permute.xlu1 %2143 }
 0x3cf   : > { %v1265_v60 = vadd.f32 %v9474_v42, %v1025_v3  ;;  %v9476_v46 = vld [vmem:[#allocation240_spill] sm:$0xff]  ;;  %v1268_v31 = vadd.f32 %v9477_v22, %v1028_v47  ;;  %v9479_v10 = vld [vmem:[#allocation247_spill] sm:$0xff]  ;;  %9482 = vst [vmem:[#allocation90_spill] sm:$0xff] %v7342_v36  ;;  %v7367_v36 = vpop.permute.xlu0 %2257 }
 0x3d0   : > { %v1267_v16 = vadd.f32 %v9476_v46, %v1027_v19  ;;  %v9478_v5 = vld [vmem:[#allocation244_spill] sm:$0xff]  ;;  %v1270_v7 = vadd.f32 %v9479_v10, %v1030_v43  ;;  %v9481_v40 = vld [vmem:[#allocation251_spill] sm:$0xff]  ;;  %9502 = vst [vmem:[#allocation97_spill] sm:$0xff] %v7367_v36 }
 0x3d1   : > { %v1269_v34 = vadd.f32 %v9478_v5, %v1029_v44  ;;  %v9480_v28 = vld [vmem:[#allocation248_spill] sm:$0xff]  ;;  %v1272_v1 = vadd.f32 %v9481_v40, %v1032_v18  ;;  %v9485_v42 = vld [vmem:[#allocation255_spill] sm:$0xff]  ;;  %v9491_v18 = vld [vmem:[#allocation261_spill] sm:$0xff] }
 0x3d2   : > { %v1271_v32 = vadd.f32 %v9480_v28, %v1031_v37  ;;  %v9484_v9 = vld [vmem:[#allocation252_spill] sm:$0xff]  ;;  %v1274_v35 = vadd.f32 %v9485_v42, %v1034_v63  ;;  %v9487_v46 = vld [vmem:[#allocation259_spill] sm:$0xff]  ;;  %2491 = vrot.lane.b32.xlu1 %v9491_v18, %s4579_s7  ;;  %v7365_v18 = vpop.permute.xlu1 %2255 }
 0x3d3   : > { %v1273_v3 = vadd.f32 %v9484_v9, %v1033_v8  ;;  %v9486_v38 = vld [vmem:[#allocation256_spill] sm:$0xff]  ;;  %v1276_v47 = vadd.f32 %v9487_v46, %v1036_v21  ;;  %v9489_v5 = vld [vmem:[#allocation263_spill] sm:$0xff]  ;;  %v9497_v46 = vld [vmem:[#allocation273_spill] sm:$0xff]  ;;  %9501 = vst [vmem:[#allocation94_spill] sm:$0xff] %v7365_v18  ;;  %v7390_v18 = vpop.permute.xlu0 %2273 }
 0x3d4   : > { %v1275_v19 = vadd.f32 %v9486_v38, %v1035_v0  ;;  %v9488_v22 = vld [vmem:[#allocation260_spill] sm:$0xff]  ;;  %v1278_v43 = vadd.f32 %v9489_v5, %v1038_v15  ;;  %v9492_v28 = vld [vmem:[#allocation43_spill] sm:$0xff]  ;;  %9521 = vst [vmem:[#allocation101_spill] sm:$0xff] %v7390_v18 }
 0x3d5   : > { %v1277_v44 = vadd.f32 %v9488_v22, %v1037_v20  ;;  %v9490_v10 = vld [vmem:[#allocation264_spill] sm:$0xff]  ;;  %2493 = vrot.lane.b32.xlu0 %v9492_v28, %s4579_s7  ;;  %v9493_v40 = vld [vmem:[#allocation267_spill] sm:$0xff]  ;;  %v1284_v20 = vadd.f32 %v9497_v46, %v1044_v33  ;;  %v9498_v22 = vld [vmem:[#allocation274_spill] sm:$0xff] }
 0x3d6   : > { %v1279_v37 = vadd.f32 %v9490_v10, %v1039_v45  ;;  %v1280_v8 = vadd.f32 %v9493_v40, %v1040_v49  ;;  %v9494_v9 = vld [vmem:[#allocation268_spill] sm:$0xff]  ;;  %v9495_v42 = vld [vmem:[#allocation271_spill] sm:$0xff]  ;;  %v1285_v15 = vadd.f32 %v9498_v22, %v1045_v55  ;;  %v9503_v28 = vld [vmem:[#allocation277_spill] sm:$0xff] }
 0x3d7   : > { %v1281_v63 = vadd.f32 %v9494_v9, %v1041_v39  ;;  %v1282_v0 = vadd.f32 %v9495_v42, %v1042_v52  ;;  %v9496_v38 = vld [vmem:[#allocation272_spill] sm:$0xff]  ;;  %v9499_v5 = vld [vmem:[#allocation275_spill] sm:$0xff]  ;;  %v1488_v49 = vadd.f32 %v9503_v28, %v1248_v11  ;;  %v9504_v40 = vld [vmem:[#allocation278_spill] sm:$0xff] }
 0x3d8   : > { %v1283_v21 = vadd.f32 %v9496_v38, %v1043_v50  ;;  %v1286_v45 = vadd.f32 %v9499_v5, %v1046_v56  ;;  %v9500_v10 = vld [vmem:[#allocation276_spill] sm:$0xff]  ;;  %v1489_v39 = vadd.f32 %v9504_v40, %v1249_v41  ;;  %v9505_v9 = vld [vmem:[#allocation279_spill] sm:$0xff]  ;;  %v9507_v38 = vld [vmem:[#allocation281_spill] sm:$0xff] }
 0x3d9   : > { %v1487_v62 = vadd.f32 %v9500_v10, %v1247_v25  ;;  %v1490_v52 = vadd.f32 %v9505_v9, %v1250_v61  ;;  %v9506_v42 = vld [vmem:[#allocation280_spill] sm:$0xff]  ;;  %v1492_v33 = vadd.f32 %v9507_v38, %v1252_v23  ;;  %v9508_v46 = vld [vmem:[#allocation282_spill] sm:$0xff]  ;;  %v9509_v22 = vld [vmem:[#allocation283_spill] sm:$0xff] }
 0x3da   : > { %v1491_v50 = vadd.f32 %v9506_v42, %v1251_v59  ;;  %v1493_v55 = vadd.f32 %v9508_v46, %v1253_v58  ;;  %v1494_v56 = vadd.f32 %v9509_v22, %v1254_v54  ;;  %v9510_v25 = vld [vmem:[#allocation334_spill] sm:$0xff]  ;;  %v9511_v5 = vld [vmem:[#allocation335_spill] sm:$0xff]  ;;  %v9512_v10 = vld [vmem:[#allocation284_spill] sm:$0xff] }
 0x3db   : > { %2507 = vrot.lane.b32.xlu1 %v9510_v25, %s4579_s7  ;;  %2509 = vrot.lane.b32.xlu0 %v9511_v5, %s4579_s7  ;;  %v1495_v11 = vadd.f32 %v9512_v10, %v1255_v4  ;;  %v9513_v28 = vld [vmem:[#allocation285_spill] sm:$0xff]  ;;  %v9514_v40 = vld [vmem:[#allocation286_spill] sm:$0xff]  ;;  %v9515_v9 = vld [vmem:[#allocation287_spill] sm:$0xff]  ;;  %v7388_v25 = vpop.permute.xlu1 %2271 }
 0x3dc   : > { %v1496_v41 = vadd.f32 %v9513_v28, %v1256_v12  ;;  %v1497_v61 = vadd.f32 %v9514_v40, %v1257_v2  ;;  %v1498_v59 = vadd.f32 %v9515_v9, %v1258_v13  ;;  %v9516_v42 = vld [vmem:[#allocation288_spill] sm:$0xff]  ;;  %v9517_v38 = vld [vmem:[#allocation289_spill] sm:$0xff]  ;;  %v9518_v46 = vld [vmem:[#allocation290_spill] sm:$0xff]  ;;  %9520 = vst [vmem:[#allocation98_spill] sm:$0xff] %v7388_v25  ;;  %v7413_v25 = vpop.permute.xlu0 %2133 }
 0x3dd   : > { %v1499_v23 = vadd.f32 %v9516_v42, %v1259_v51  ;;  %v1500_v58 = vadd.f32 %v9517_v38, %v1260_v14  ;;  %v1501_v54 = vadd.f32 %v9518_v46, %v1261_v27  ;;  %v9519_v22 = vld [vmem:[#allocation291_spill] sm:$0xff]  ;;  %v9522_v5 = vld [vmem:[#allocation292_spill] sm:$0xff]  ;;  %v9523_v10 = vld [vmem:[#allocation293_spill] sm:$0xff]  ;;  %9540 = vst [vmem:[#allocation105_spill] sm:$0xff] %v7413_v25 }
 0x3de   : > { %v1502_v36 = vadd.f32 %v9519_v22, %v1262_v17  ;;  %v1503_v4 = vadd.f32 %v9522_v5, %v1263_v24  ;;  %v1504_v12 = vadd.f32 %v9523_v10, %v1264_v30  ;;  %v9524_v28 = vld [vmem:[#allocation294_spill] sm:$0xff]  ;;  %v9525_v40 = vld [vmem:[#allocation295_spill] sm:$0xff]  ;;  %v9526_v9 = vld [vmem:[#allocation296_spill] sm:$0xff] }
 0x3df   : > { %v1505_v2 = vadd.f32 %v9524_v28, %v1265_v60  ;;  %v1506_v13 = vadd.f32 %v9525_v40, %v1266_v57  ;;  %v1507_v51 = vadd.f32 %v9526_v9, %v1267_v16  ;;  %v9527_v42 = vld [vmem:[#allocation297_spill] sm:$0xff]  ;;  %v9528_v38 = vld [vmem:[#allocation298_spill] sm:$0xff]  ;;  %v9529_v17 = vld [vmem:[#allocation191_spill] sm:$0xff] }
 0x3e0   : > { %v1508_v14 = vadd.f32 %v9527_v42, %v1268_v31  ;;  %v1509_v27 = vadd.f32 %v9528_v38, %v1269_v34  ;;  %2001 = vrot.lane.b32.xlu1 %v9529_v17, %s4576_s26  ;;  %v9530_v46 = vld [vmem:[#allocation192_spill] sm:$0xff]  ;;  %v9531_v22 = vld [vmem:[#allocation299_spill] sm:$0xff]  ;;  %v9533_v10 = vld [vmem:[#allocation301_spill] sm:$0xff]  ;;  %v7411_v17 = vpop.permute.xlu1 %2131 }
 0x3e1   : > { %2003 = vrot.lane.b32.xlu0 %v9530_v46, %s4576_s26  ;;  %v1510_v24 = vadd.f32 %v9531_v22, %v1270_v7  ;;  %v9532_v5 = vld [vmem:[#allocation300_spill] sm:$0xff]  ;;  %v1512_v60 = vadd.f32 %v9533_v10, %v1272_v1  ;;  %v9534_v28 = vld [vmem:[#allocation302_spill] sm:$0xff]  ;;  %v9535_v40 = vld [vmem:[#allocation303_spill] sm:$0xff]  ;;  %9539 = vst [vmem:[#allocation102_spill] sm:$0xff] %v7411_v17  ;;  %v7436_v17 = vpop.permute.xlu0 %2149 }
 0x3e2   : > { %v1511_v30 = vadd.f32 %v9532_v5, %v1271_v32  ;;  %v1513_v57 = vadd.f32 %v9534_v28, %v1273_v3  ;;  %v1514_v16 = vadd.f32 %v9535_v40, %v1274_v35  ;;  %v9536_v9 = vld [vmem:[#allocation304_spill] sm:$0xff]  ;;  %v9537_v42 = vld [vmem:[#allocation305_spill] sm:$0xff]  ;;  %v9538_v38 = vld [vmem:[#allocation306_spill] sm:$0xff]  ;;  %9559 = vst [vmem:[#allocation109_spill] sm:$0xff] %v7436_v17 }
 0x3e3   : > { %v1515_v31 = vadd.f32 %v9536_v9, %v1275_v19  ;;  %v1516_v34 = vadd.f32 %v9537_v42, %v1276_v47  ;;  %v1517_v18 = vadd.f32 %v9538_v38, %v1277_v44  ;;  %v9541_v46 = vld [vmem:[#allocation307_spill] sm:$0xff]  ;;  %v9542_v22 = vld [vmem:[#allocation308_spill] sm:$0xff]  ;;  %v9543_v5 = vld [vmem:[#allocation309_spill] sm:$0xff] }
 0x3e4   : > { %v1518_v7 = vadd.f32 %v9541_v46, %v1278_v43  ;;  %v1519_v32 = vadd.f32 %v9542_v22, %v1279_v37  ;;  %v1520_v1 = vadd.f32 %v9543_v5, %v1280_v8  ;;  %v9544_v10 = vld [vmem:[#allocation310_spill] sm:$0xff]  ;;  %v9545_v28 = vld [vmem:[#allocation311_spill] sm:$0xff]  ;;  %v9546_v40 = vld [vmem:[#allocation312_spill] sm:$0xff] }
 0x3e5   : > { %v1521_v3 = vadd.f32 %v9544_v10, %v1281_v63  ;;  %v1522_v35 = vadd.f32 %v9545_v28, %v1282_v0  ;;  %v1523_v19 = vadd.f32 %v9546_v40, %v1283_v21  ;;  %v9547_v9 = vld [vmem:[#allocation313_spill] sm:$0xff]  ;;  %v9548_v44 = vld [vmem:[#allocation195_spill] sm:$0xff]  ;;  %v9549_v42 = vld [vmem:[#allocation100_spill] sm:$0xff] }
 0x3e6   : > { %v1524_v47 = vadd.f32 %v9547_v9, %v1284_v20  ;;  %2005 = vrot.lane.b32.xlu1 %v9548_v44, %s4576_s26  ;;  %2151 = vrot.lane.b32.xlu0 %v9549_v42, %s4577_s27  ;;  %v9550_v38 = vld [vmem:[#allocation314_spill] sm:$0xff]  ;;  %v9551_v46 = vld [vmem:[#allocation315_spill] sm:$0xff]  ;;  %v9552_v22 = vld [vmem:[#allocation316_spill] sm:$0xff]  ;;  %v7434_v44 = vpop.permute.xlu1 %2147 }
 0x3e7   : > { %v1525_v43 = vadd.f32 %v9550_v38, %v1285_v15  ;;  %v1526_v37 = vadd.f32 %v9551_v46, %v1286_v45  ;;  %v1727_v8 = vadd.f32 %v9552_v22, %v1487_v62  ;;  %v9553_v5 = vld [vmem:[#allocation317_spill] sm:$0xff]  ;;  %v9554_v10 = vld [vmem:[#allocation318_spill] sm:$0xff]  ;;  %v9555_v28 = vld [vmem:[#allocation319_spill] sm:$0xff]  ;;  %9558 = vst [vmem:[#allocation106_spill] sm:$0xff] %v7434_v44  ;;  %v7459_v44 = vpop.permute.xlu0 %2261 }
 0x3e8   : > { %v1728_v63 = vadd.f32 %v9553_v5, %v1488_v49  ;;  %v1729_v0 = vadd.f32 %v9554_v10, %v1489_v39  ;;  %v1730_v21 = vadd.f32 %v9555_v28, %v1490_v52  ;;  %v9556_v40 = vld [vmem:[#allocation320_spill] sm:$0xff]  ;;  %v9557_v9 = vld [vmem:[#allocation321_spill] sm:$0xff]  ;;  %v9560_v42 = vld [vmem:[#allocation322_spill] sm:$0xff]  ;;  %9578 = vst [vmem:[#allocation113_spill] sm:$0xff] %v7459_v44 }
 0x3e9   : > { %v1731_v20 = vadd.f32 %v9556_v40, %v1491_v50  ;;  %v1732_v25 = vadd.f32 %v9557_v9, %v1492_v33  ;;  %v1733_v15 = vadd.f32 %v9560_v42, %v1493_v55  ;;  %v9561_v38 = vld [vmem:[#allocation323_spill] sm:$0xff]  ;;  %v9562_v46 = vld [vmem:[#allocation324_spill] sm:$0xff]  ;;  %v9563_v22 = vld [vmem:[#allocation325_spill] sm:$0xff] }
 0x3ea   : > { %v1734_v45 = vadd.f32 %v9561_v38, %v1494_v56  ;;  %v1735_v62 = vadd.f32 %v9562_v46, %v1495_v11  ;;  %v1736_v49 = vadd.f32 %v9563_v22, %v1496_v41  ;;  %v9564_v5 = vld [vmem:[#allocation326_spill] sm:$0xff]  ;;  %v9565_v10 = vld [vmem:[#allocation327_spill] sm:$0xff]  ;;  %v9566_v28 = vld [vmem:[#allocation328_spill] sm:$0xff] }
 0x3eb   : > { %v1737_v39 = vadd.f32 %v9564_v5, %v1497_v61  ;;  %v1738_v52 = vadd.f32 %v9565_v10, %v1498_v59  ;;  %v1739_v50 = vadd.f32 %v9566_v28, %v1499_v23  ;;  %v9567_v33 = vld [vmem:[#allocation103_spill] sm:$0xff]  ;;  %v9568_v40 = vld [vmem:[#allocation104_spill] sm:$0xff]  ;;  %v9569_v9 = vld [vmem:[#allocation226_spill] sm:$0xff] }
 0x3ec   : > { %2153 = vrot.lane.b32.xlu1 %v9567_v33, %s4577_s27  ;;  %2155 = vrot.lane.b32.xlu0 %v9568_v40, %s4577_s27  ;;  %v1740_v55 = vadd.f32 %v9569_v9, %v1500_v58  ;;  %v9570_v42 = vld [vmem:[#allocation329_spill] sm:$0xff]  ;;  %v9572_v46 = vld [vmem:[#allocation230_spill] sm:$0xff]  ;;  %v7457_v33 = vpop.permute.xlu1 %2259 }
 0x3ed   : > { %v1741_v56 = vadd.f32 %v9570_v42, %v1501_v54  ;;  %v9571_v38 = vld [vmem:[#allocation229_spill] sm:$0xff]  ;;  %v1743_v41 = vadd.f32 %v9572_v46, %v1503_v4  ;;  %v9574_v5 = vld [vmem:[#allocation234_spill] sm:$0xff]  ;;  %9577 = vst [vmem:[#allocation110_spill] sm:$0xff] %v7457_v33  ;;  %v9583_v46 = vld [vmem:[#allocation119_spill] sm:$0xff]  ;;  %v7482_v33 = vpop.permute.xlu0 %2277 }
 0x3ee   : > { %v1742_v11 = vadd.f32 %v9571_v38, %v1502_v36  ;;  %v9573_v22 = vld [vmem:[#allocation233_spill] sm:$0xff]  ;;  %v1745_v59 = vadd.f32 %v9574_v5, %v1505_v2  ;;  %v9576_v28 = vld [vmem:[#allocation238_spill] sm:$0xff]  ;;  %v9582_v38 = vld [vmem:[#allocation116_spill] sm:$0xff]  ;;  %9597 = vst [vmem:[#allocation117_spill] sm:$0xff] %v7482_v33 }
 0x3ef   : > { %v1744_v61 = vadd.f32 %v9573_v22, %v1504_v12  ;;  %v9575_v10 = vld [vmem:[#allocation237_spill] sm:$0xff]  ;;  %v1747_v17 = vadd.f32 %v9576_v28, %v1507_v51  ;;  %v9580_v9 = vld [vmem:[#allocation242_spill] sm:$0xff]  ;;  %v1751_v4 = vadd.f32 %v9582_v38, %v1511_v30  ;;  %v1752_v12 = vadd.f32 %v9583_v46, %v1512_v60  ;;  %v9584_v22 = vld [vmem:[#allocation120_spill] sm:$0xff] }
 0x3f0   : > { %v1746_v23 = vadd.f32 %v9575_v10, %v1506_v13  ;;  %v9579_v40 = vld [vmem:[#allocation241_spill] sm:$0xff]  ;;  %v1749_v54 = vadd.f32 %v9580_v9, %v1509_v27  ;;  %v1753_v2 = vadd.f32 %v9584_v22, %v1513_v57  ;;  %v9585_v5 = vld [vmem:[#allocation123_spill] sm:$0xff]  ;;  %v9587_v10 = vld [vmem:[#allocation108_spill] sm:$0xff] }
 0x3f1   : > { %v1748_v58 = vadd.f32 %v9579_v40, %v1508_v14  ;;  %v9581_v42 = vld [vmem:[#allocation245_spill] sm:$0xff]  ;;  %v1754_v13 = vadd.f32 %v9585_v5, %v1514_v16  ;;  %v9586_v51 = vld [vmem:[#allocation107_spill] sm:$0xff]  ;;  %2159 = vrot.lane.b32.xlu0 %v9587_v10, %s4577_s27  ;;  %v9588_v28 = vld [vmem:[#allocation124_spill] sm:$0xff] }
 0x3f2   : > { %v1750_v36 = vadd.f32 %v9581_v42, %v1510_v24  ;;  %2157 = vrot.lane.b32.xlu1 %v9586_v51, %s4577_s27  ;;  %v1755_v14 = vadd.f32 %v9588_v28, %v1515_v31  ;;  %v9589_v40 = vld [vmem:[#allocation127_spill] sm:$0xff]  ;;  %v9590_v9 = vld [vmem:[#allocation128_spill] sm:$0xff]  ;;  %v7480_v51 = vpop.permute.xlu1 %2275 }
 0x3f3   : > { %v1756_v27 = vadd.f32 %v9589_v40, %v1516_v34  ;;  %v1757_v24 = vadd.f32 %v9590_v9, %v1517_v18  ;;  %v9591_v42 = vld [vmem:[#allocation131_spill] sm:$0xff]  ;;  %v9592_v38 = vld [vmem:[#allocation132_spill] sm:$0xff]  ;;  %9596 = vst [vmem:[#allocation114_spill] sm:$0xff] %v7480_v51  ;;  %v7505_v51 = vpop.permute.xlu0 %2281 }
 0x3f4   : > { %v1758_v30 = vadd.f32 %v9591_v42, %v1518_v7  ;;  %v1759_v60 = vadd.f32 %v9592_v38, %v1519_v32  ;;  %v9593_v46 = vld [vmem:[#allocation135_spill] sm:$0xff]  ;;  %v9594_v22 = vld [vmem:[#allocation136_spill] sm:$0xff]  ;;  %9616 = vst [vmem:[#allocation121_spill] sm:$0xff] %v7505_v51 }
 0x3f5   : > { %v1760_v57 = vadd.f32 %v9593_v46, %v1520_v1  ;;  %v1761_v16 = vadd.f32 %v9594_v22, %v1521_v3  ;;  %v9595_v5 = vld [vmem:[#allocation139_spill] sm:$0xff]  ;;  %v9598_v10 = vld [vmem:[#allocation140_spill] sm:$0xff] }
 0x3f6   : > { %v1762_v44 = vadd.f32 %v9595_v5, %v1522_v35  ;;  %v1763_v31 = vadd.f32 %v9598_v10, %v1523_v19  ;;  %v9599_v28 = vld [vmem:[#allocation143_spill] sm:$0xff]  ;;  %v9600_v40 = vld [vmem:[#allocation144_spill] sm:$0xff] }
 0x3f7   : > { %v1764_v34 = vadd.f32 %v9599_v28, %v1524_v47  ;;  %v1765_v18 = vadd.f32 %v9600_v40, %v1525_v43  ;;  %v9601_v9 = vld [vmem:[#allocation147_spill] sm:$0xff]  ;;  %v9602_v42 = vld [vmem:[#allocation148_spill] sm:$0xff] }
 0x3f8   : > { %v1766_v7 = vadd.f32 %v9601_v9, %v1526_v37  ;;  %v1887_v32 = vadd.f32 %v9602_v42, %v1727_v8  ;;  %v9603_v38 = vld [vmem:[#allocation151_spill] sm:$0xff]  ;;  %v9604_v46 = vld [vmem:[#allocation152_spill] sm:$0xff] }
 0x3f9   : > { %v1888_v1 = vadd.f32 %v9603_v38, %v1728_v63  ;;  %v1889_v3 = vadd.f32 %v9604_v46, %v1729_v0  ;;  %v9605_v35 = vld [vmem:[#allocation111_spill] sm:$0xff]  ;;  %v9606_v22 = vld [vmem:[#allocation112_spill] sm:$0xff] }
 0x3fa   : > { %2161 = vrot.lane.b32.xlu1 %v9605_v35, %s4577_s27  ;;  %2163 = vrot.lane.b32.xlu0 %v9606_v22, %s4577_s27  ;;  %v9607_v5 = vld [vmem:[#allocation155_spill] sm:$0xff]  ;;  %v9608_v10 = vld [vmem:[#allocation156_spill] sm:$0xff]  ;;  %v7503_v35 = vpop.permute.xlu1 %2279 }
 0x3fb   : > { %v1890_v19 = vadd.f32 %v9607_v5, %v1730_v21  ;;  %v1891_v47 = vadd.f32 %v9608_v10, %v1731_v20  ;;  %v9609_v28 = vld [vmem:[#allocation159_spill] sm:$0xff]  ;;  %v9610_v40 = vld [vmem:[#allocation160_spill] sm:$0xff]  ;;  %9615 = vst [vmem:[#allocation118_spill] sm:$0xff] %v7503_v35  ;;  %v7528_v35 = vpop.permute.xlu0 %2285 }
 0x3fc   : > { %v1892_v43 = vadd.f32 %v9609_v28, %v1732_v25  ;;  %v1893_v37 = vadd.f32 %v9610_v40, %v1733_v15  ;;  %v9611_v9 = vld [vmem:[#allocation163_spill] sm:$0xff]  ;;  %v9612_v42 = vld [vmem:[#allocation164_spill] sm:$0xff] }
 0x3fd   : > { %v1894_v8 = vadd.f32 %v9611_v9, %v1734_v45  ;;  %v1895_v63 = vadd.f32 %v9612_v42, %v1735_v62  ;;  %v9613_v38 = vld [vmem:[#allocation167_spill] sm:$0xff]  ;;  %v9614_v46 = vld [vmem:[#allocation168_spill] sm:$0xff] }
 0x3fe   : > { %v1896_v0 = vadd.f32 %v9613_v38, %v1736_v49  ;;  %v1897_v33 = vadd.f32 %v9614_v46, %v1737_v39  ;;  %v9617_v22 = vld [vmem:[#allocation171_spill] sm:$0xff]  ;;  %v9618_v5 = vld [vmem:[#allocation172_spill] sm:$0xff]  ;;  %v9625_v38 = vld [vmem:[#allocation45_spill] sm:$0xff] }
 0x3ff   : > { %v1898_v21 = vadd.f32 %v9617_v22, %v1738_v52  ;;  %v1899_v20 = vadd.f32 %v9618_v5, %v1739_v50  ;;  %v9619_v10 = vld [vmem:[#allocation175_spill] sm:$0xff]  ;;  %v9620_v28 = vld [vmem:[#allocation176_spill] sm:$0xff]  ;;  %2311 = vrot.lane.b32.xlu0 %v9625_v38, %s4578_s25  ;;  %v9634_v38 = vld [vmem:[#allocation62_spill] sm:$0xff] }
 0x400   : > { %v1900_v25 = vadd.f32 %v9619_v10, %v1740_v55  ;;  %v1901_v15 = vadd.f32 %v9620_v28, %v1741_v56  ;;  %v9621_v40 = vld [vmem:[#allocation179_spill] sm:$0xff]  ;;  %v9622_v9 = vld [vmem:[#allocation180_spill] sm:$0xff]  ;;  %v9629_v10 = vld [vmem:[#allocation53_spill] sm:$0xff] }
 0x401   : > { %v1902_v45 = vadd.f32 %v9621_v40, %v1742_v11  ;;  %v1903_v62 = vadd.f32 %v9622_v9, %v1743_v41  ;;  %v9623_v42 = vld [vmem:[#allocation183_spill] sm:$0xff]  ;;  %v9626_v46 = vld [vmem:[#allocation184_spill] sm:$0xff]  ;;  %v1908_v56 = vadd.f32 %v9629_v10, %v1748_v58  ;;  %v9630_v28 = vld [vmem:[#allocation54_spill] sm:$0xff] }
 0x402   : > { %v1904_v49 = vadd.f32 %v9623_v42, %v1744_v61  ;;  %v9624_v39 = vld [vmem:[#allocation115_spill] sm:$0xff]  ;;  %v1905_v52 = vadd.f32 %v9626_v46, %v1745_v59  ;;  %v9628_v5 = vld [vmem:[#allocation188_spill] sm:$0xff]  ;;  %v1909_v11 = vadd.f32 %v9630_v28, %v1749_v54  ;;  %v9633_v42 = vld [vmem:[#allocation61_spill] sm:$0xff]  ;;  %v1913_v59 = vadd.f32 %v9634_v38, %v1753_v2 }
 0x403   : > { %2165 = vrot.lane.b32.xlu1 %v9624_v39, %s4577_s27  ;;  %v9627_v22 = vld [vmem:[#allocation187_spill] sm:$0xff]  ;;  %v1907_v55 = vadd.f32 %v9628_v5, %v1747_v17  ;;  %v9632_v9 = vld [vmem:[#allocation56_spill] sm:$0xff]  ;;  %v1912_v51 = vadd.f32 %v9633_v42, %v1752_v12  ;;  %v7526_v39 = vpop.permute.xlu1 %2283  ;;  %v9637_v5 = vld [vmem:[#allocation57_spill] sm:$0xff] }
 0x404   : > { %v1906_v50 = vadd.f32 %v9627_v22, %v1746_v23  ;;  %v9631_v40 = vld [vmem:[#allocation55_spill] sm:$0xff]  ;;  %v1911_v61 = vadd.f32 %v9632_v9, %v1751_v4  ;;  %v9636_v22 = vld [vmem:[#allocation64_spill] sm:$0xff]  ;;  %v1916_v58 = vadd.f32 %v9637_v5, %v1756_v27  ;;  %v9638_v10 = vld [vmem:[#allocation58_spill] sm:$0xff] }
 0x405   : > { %v1910_v41 = vadd.f32 %v9631_v40, %v1750_v36  ;;  %v9635_v46 = vld [vmem:[#allocation63_spill] sm:$0xff]  ;;  %v1915_v17 = vadd.f32 %v9636_v22, %v1755_v14  ;;  %v1917_v54 = vadd.f32 %v9638_v10, %v1757_v24  ;;  %v9639_v28 = vld [vmem:[#allocation65_spill] sm:$0xff]  ;;  %v9640_v40 = vld [vmem:[#allocation66_spill] sm:$0xff] }
 0x406   : > { %v1914_v23 = vadd.f32 %v9635_v46, %v1754_v13  ;;  %v1918_v36 = vadd.f32 %v9639_v28, %v1758_v30  ;;  %v7537_v4 = vadd.f32 %v9640_v40, %v1759_v60  ;;  %v9641_v12 = vld [vmem:[#allocation46_spill] sm:$0xff]  ;;  %v9642_v9 = vld [vmem:[#allocation47_spill] sm:$0xff]  ;;  %v9644_v13 = vld [vmem:[#allocation60_spill] sm:$0xff] }
 0x407   : > { %2313 = vrot.lane.b32.xlu1 %v9641_v12, %s4578_s25  ;;  %2315 = vrot.lane.b32.xlu0 %v9642_v9, %s4578_s25  ;;  %v9643_v2 = vld [vmem:[#allocation59_spill] sm:$0xff]  ;;  %v7547_v14 = vadd.f32 %v9644_v13, %v1761_v16  ;;  %v9646_v24 = vld [vmem:[#allocation68_spill] sm:$0xff]  ;;  %v9647_v60 = vld [vmem:[#allocation69_spill] sm:$0xff]  ;;  %v7565_v12 = vpop.permute.xlu1 %2295  ;;  %v7567_v16 = vpop.permute.xlu0 %2297 }
 0x408   : > { %v7544_v42 = vadd.f32 %v9643_v2, %v1760_v57  ;;  %v9645_v27 = vld [vmem:[#allocation67_spill] sm:$0xff]  ;;  %v7553_v30 = vadd.f32 %v9646_v24, %v1763_v31  ;;  %v7556_v46 = vadd.f32 %v9647_v60, %v1764_v34  ;;  %v9651_v10 = vld [vmem:[#allocation72_spill] sm:$0xff] }
 0x409   : > { %v7550_v38 = vadd.f32 %v9645_v27, %v1762_v44  ;;  %v9649_v22 = vld [vmem:[#allocation71_spill] sm:$0xff]  ;;  %v7562_v28 = vadd.f32 %v9651_v10, %v1766_v7  ;;  %v9654_v44 = vld [vmem:[#allocation84_spill] sm:$0xff] }
 0x40a   : > { %9648 = vst [vmem:[#allocation122_spill] sm:$0xff] %v7556_v46  ;;  %v7559_v5 = vadd.f32 %v9649_v22, %v1765_v18  ;;  %v9653_v57 = vld [vmem:[#allocation75_spill] sm:$0xff]  ;;  %v2048_v9 = vadd.f32 %v9654_v44, %v1888_v1  ;;  %v9656_v13 = vld [vmem:[#allocation88_spill] sm:$0xff]  ;;  %v9658_v18 = vld [vmem:[#allocation13_spill] sm:$0xff] }
 0x40b   : > { %9652 = vst [vmem:[#allocation126_spill] sm:$0xff] %v7562_v28  ;;  %v2047_v40 = vadd.f32 %v9653_v57, %v1887_v32  ;;  %v9655_v2 = vld [vmem:[#allocation87_spill] sm:$0xff]  ;;  %v2050_v27 = vadd.f32 %v9656_v13, %v1890_v19  ;;  %v7576_v60 = vadd.f32 %v9658_v18, %v1892_v43  ;;  %v9660_v32 = vld [vmem:[#allocation14_spill] sm:$0xff]  ;;  %v9661_v57 = vld [vmem:[#allocation48_spill] sm:$0xff]  ;;  %v7600_v46 = vpop.permute.xlu1 %2299 }
 0x40c   : > { %9650 = vst [vmem:[#allocation125_spill] sm:$0xff] %v7559_v5  ;;  %v2049_v31 = vadd.f32 %v9655_v2, %v1889_v3  ;;  %v9657_v34 = vld [vmem:[#allocation91_spill] sm:$0xff]  ;;  %v7582_v10 = vadd.f32 %v9660_v32, %v1894_v8  ;;  %2317 = vrot.lane.b32.xlu1 %v9661_v57, %s4578_s25  ;;  %v9662_v1 = vld [vmem:[#allocation49_spill] sm:$0xff]  ;;  %v9663_v3 = vld [vmem:[#allocation16_spill] sm:$0xff] }
 0x40d   : > { %v7573_v24 = vadd.f32 %v9657_v34, %v1891_v47  ;;  %v9659_v7 = vld [vmem:[#allocation15_spill] sm:$0xff]  ;;  %2319 = vrot.lane.b32.xlu0 %v9662_v1, %s4578_s25  ;;  %v2055_v19 = vadd.f32 %v9663_v3, %v1895_v63  ;;  %v9664_v44 = vld [vmem:[#allocation21_spill] sm:$0xff]  ;;  %v9665_v2 = vld [vmem:[#allocation22_spill] sm:$0xff]  ;;  %v7602_v1 = vpop.permute.xlu0 %2301 }
 0x40e   : > { %v7579_v22 = vadd.f32 %v9659_v7, %v1893_v37  ;;  %v2056_v47 = vadd.f32 %v9664_v44, %v1896_v0  ;;  %v2057_v13 = vadd.f32 %v9665_v2, %v1897_v33  ;;  %v9666_v43 = vld [vmem:[#allocation23_spill] sm:$0xff]  ;;  %v9667_v18 = vld [vmem:[#allocation24_spill] sm:$0xff]  ;;  %9671 = vst [vmem:[#allocation129_spill] sm:$0xff] %v7602_v1  ;;  %v9673_v33 = vld [vmem:[#allocation17_spill] sm:$0xff] }
 0x40f   : > { %v2058_v34 = vadd.f32 %v9666_v43, %v1898_v21  ;;  %v2059_v37 = vadd.f32 %v9667_v18, %v1899_v20  ;;  %v9668_v7 = vld [vmem:[#allocation76_spill] sm:$0xff]  ;;  %v9669_v8 = vld [vmem:[#allocation79_spill] sm:$0xff]  ;;  %v7608_v3 = vadd.f32 %v9673_v33, %v1904_v49  ;;  %v9674_v21 = vld [vmem:[#allocation246_spill] sm:$0xff] }
 0x410   : > { %v2060_v28 = vadd.f32 %v9668_v7, %v1900_v25  ;;  %v7595_v32 = vadd.f32 %v9669_v8, %v1901_v15  ;;  %v9670_v5 = vld [vmem:[#allocation92_spill] sm:$0xff]  ;;  %v9672_v63 = vld [vmem:[#allocation95_spill] sm:$0xff]  ;;  %v2207_v20 = vadd.f32 %v9674_v21, %v2047_v40  ;;  %v9675_v44 = vld [vmem:[#allocation249_spill] sm:$0xff] }
 0x411   : > { %v7598_v57 = vadd.f32 %v9670_v5, %v1902_v45  ;;  %v7605_v0 = vadd.f32 %v9672_v63, %v1903_v62  ;;  %v2208_v25 = vadd.f32 %v9675_v44, %v2048_v9  ;;  %v9676_v2 = vld [vmem:[#allocation18_spill] sm:$0xff]  ;;  %v9677_v43 = vld [vmem:[#allocation25_spill] sm:$0xff]  ;;  %v9680_v62 = vld [vmem:[#allocation51_spill] sm:$0xff] }
 0x412   : > { %v7613_v15 = vadd.f32 %v9676_v2, %v1905_v52  ;;  %v7616_v45 = vadd.f32 %v9677_v43, %v1906_v50  ;;  %v9678_v5 = vld [vmem:[#allocation26_spill] sm:$0xff]  ;;  %2323 = vrot.lane.b32.xlu0 %v9680_v62, %s4578_s25  ;;  %v9681_v49 = vld [vmem:[#allocation80_spill] sm:$0xff]  ;;  %v9682_v40 = vld [vmem:[#allocation83_spill] sm:$0xff] }
 0x413   : > { %v7619_v18 = vadd.f32 %v9678_v5, %v1907_v55  ;;  %v9679_v7 = vld [vmem:[#allocation50_spill] sm:$0xff]  ;;  %v7626_v8 = vadd.f32 %v9681_v49, %v1908_v56  ;;  %v7629_v9 = vadd.f32 %v9682_v40, %v1909_v11  ;;  %v9683_v52 = vld [vmem:[#allocation81_spill] sm:$0xff]  ;;  %v9685_v21 = vld [vmem:[#allocation96_spill] sm:$0xff]  ;;  %v2448_v56 = vpop.permute.xlu1 %2447  ;;  %v2450_v49 = vpop.permute.xlu0 %2449 }
 0x414   : > { %2321 = vrot.lane.b32.xlu1 %v9679_v7, %s4578_s25  ;;  %v2367_v63 = vadd.f32 %v9683_v52, %v2207_v20  ;;  %v9684_v33 = vld [vmem:[#allocation82_spill] sm:$0xff]  ;;  %v7634_v44 = vadd.f32 %v9685_v21, %v1910_v41  ;;  %v9686_v55 = vld [vmem:[#allocation99_spill] sm:$0xff]  ;;  %v9688_v7 = vld [vmem:[#allocation20_spill] sm:$0xff] }
 0x415   : > { %v2368_v50 = vadd.f32 %v9684_v33, %v2208_v25  ;;  %v7637_v2 = vadd.f32 %v9686_v55, %v1911_v61  ;;  %v9687_v43 = vld [vmem:[#allocation19_spill] sm:$0xff]  ;;  %v7643_v62 = vadd.f32 %v9688_v7, %v1913_v59  ;;  %v9689_v11 = vld [vmem:[#allocation250_spill] sm:$0xff]  ;;  %v9690_v1 = vld [vmem:[#allocation253_spill] sm:$0xff] }
 0x416   : > { %v7640_v5 = vadd.f32 %v9687_v43, %v1912_v51  ;;  %v2209_v40 = vadd.f32 %v9689_v11, %v2049_v31  ;;  %v2210_v20 = vadd.f32 %v9690_v1, %v2050_v27  ;;  %v2567_v52 = vadd.f32 %v2448_v56, %v2367_v63  ;;  %v9691_v33 = vld [vmem:[#allocation27_spill] sm:$0xff]  ;;  %v9692_v21 = vld [vmem:[#allocation28_spill] sm:$0xff]  ;;  %v9693_v55 = vld [vmem:[#allocation29_spill] sm:$0xff] }
 0x417   : > { %v2568_v25 = vadd.f32 %v2450_v49, %v2368_v50  ;;  %v7648_v41 = vadd.f32 %v9691_v33, %v1914_v23  ;;  %v7651_v61 = vadd.f32 %v9692_v21, %v1915_v17  ;;  %v7654_v51 = vadd.f32 %v9693_v55, %v1916_v58  ;;  %v9694_v59 = vld [vmem:[#allocation52_spill] sm:$0xff]  ;;  %v9696_v31 = vld [vmem:[#allocation30_spill] sm:$0xff]  ;;  %v9697_v27 = vld [vmem:[#allocation31_spill] sm:$0xff]  ;;  %v2454_v11 = vpop.permute.xlu0 %2453 }
 0x418   : > { %2325 = vrot.lane.b32.xlu1 %v9694_v59, %s4578_s25  ;;  %v9695_v43 = vld [vmem:[#allocation336_spill] sm:$0xff]  ;;  %v7661_v7 = vadd.f32 %v9696_v31, %v1917_v54  ;;  %v7664_v1 = vadd.f32 %v9697_v27, %v1918_v36  ;;  %v2369_v23 = vadd.f32 %v7250_v53, %v2209_v40  ;;  %v2370_v17 = vadd.f32 %v7252_v48, %v2210_v20  ;;  %v9700_v50 = vld [vmem:[#allocation37_spill] sm:$0xff]  ;;  %v9702_v54 = vld [vmem:[#allocation38_spill] sm:$0xff]  ;;  %v2452_v48 = vpop.permute.xlu1 %2451 }
 0x419   : > { %2511 = vrot.lane.b32.xlu0 %v9695_v43, %s4579_s7  ;;  %2689 = vst.msk [vmem:[#allocation3 + $0x5] sm:$0xff] %vm2607_vm2, %v2567_v52  ;;  %2690 = vst.msk [vmem:[#allocation3 + $0xd] sm:$0xff] %vm2607_vm2, %v2568_v25  ;;  %v9698_v58 = vld [vmem:[#allocation32_spill] sm:$0xff]  ;;  %v7676_v56 = vadd.f32 %v9700_v50, %v7544_v42  ;;  %v7680_v36 = vadd.f32 %v9702_v54, %v7547_v14  ;;  %v9704_v53 = vld [vmem:[#allocation39_spill] sm:$0xff] }
 0x41a   : > { %v7672_v63 = vadd.f32 %v9698_v58, %v7537_v4  ;;  %v7684_v49 = vadd.f32 %v9704_v53, %v7550_v38  ;;  %v9706_v40 = vld [vmem:[#allocation262_spill] sm:$0xff]  ;;  %v9707_v52 = vld [vmem:[#allocation265_spill] sm:$0xff]  ;;  %v2569_v4 = vadd.f32 %v2452_v48, %v2369_v23  ;;  %v2570_v33 = vadd.f32 %v2454_v11, %v2370_v17  ;;  %v9708_v21 = vld [vmem:[#allocation40_spill] sm:$0xff] }
 0x41b   : > { %9701 = vst [vmem:[#allocation133_spill] sm:$0xff] %v7676_v56  ;;  %9703 = vst [vmem:[#allocation134_spill] sm:$0xff] %v7680_v36  ;;  %v2215_v20 = vadd.f32 %v9706_v40, %v2055_v19  ;;  %v2216_v25 = vadd.f32 %v9707_v52, %v2056_v47  ;;  %v7690_v42 = vadd.f32 %v9708_v21, %v7553_v30  ;;  %v9710_v55 = vld [vmem:[#allocation266_spill] sm:$0xff]  ;;  %v9711_v14 = vld [vmem:[#allocation269_spill] sm:$0xff] }
 0x41c   : > { %9699 = vst [vmem:[#allocation130_spill] sm:$0xff] %v7672_v63  ;;  %9705 = vst [vmem:[#allocation137_spill] sm:$0xff] %v7684_v49  ;;  %v2217_v59 = vadd.f32 %v9710_v55, %v2057_v13  ;;  %v2218_v43 = vadd.f32 %v9711_v14, %v2058_v34  ;;  %v9712_v31 = vld [vmem:[#allocation337_spill] sm:$0xff]  ;;  %v9713_v38 = vld [vmem:[#allocation338_spill] sm:$0xff] }
 0x41d   : > { %9709 = vst [vmem:[#allocation138_spill] sm:$0xff] %v7690_v42  ;;  %2513 = vrot.lane.b32.xlu1 %v9712_v31, %s4579_s7  ;;  %2515 = vrot.lane.b32.xlu0 %v9713_v38, %s4579_s7  ;;  %v9714_v19 = vld [vmem:[#allocation33_spill] sm:$0xff]  ;;  %v9715_v47 = vld [vmem:[#allocation34_spill] sm:$0xff]  ;;  %v2375_v30 = vadd.f32 %v7273_v29, %v2215_v20  ;;  %v2376_v13 = vadd.f32 %v7275_v26, %v2216_v25  ;;  %2691 = vst.msk [vmem:[#allocation3 + $0x25] sm:$0xff] %vm2607_vm2, %v2569_v4  ;;  %v2464_v29 = vpop.permute.xlu1 %2463  ;;  %v2466_v26 = vpop.permute.xlu0 %2465 }
 0x41e   : > { %v7700_v27 = vadd.f32 %v9714_v19, %v7573_v24  ;;  %v7704_v23 = vadd.f32 %v9715_v47, %v7576_v60  ;;  %2692 = vst.msk [vmem:[#allocation3 + $0x2d] sm:$0xff] %vm2607_vm2, %v2570_v33  ;;  %v9716_v34 = vld [vmem:[#allocation41_spill] sm:$0xff]  ;;  %v9717_v58 = vld [vmem:[#allocation42_spill] sm:$0xff]  ;;  %v9722_v52 = vld [vmem:[#allocation35_spill] sm:$0xff] }
 0x41f   : > { %v7711_v17 = vadd.f32 %v9716_v34, %v2059_v37  ;;  %v7714_v50 = vadd.f32 %v9717_v58, %v2060_v28  ;;  %v9718_v24 = vld [vmem:[#allocation254_spill] sm:$0xff]  ;;  %v9719_v60 = vld [vmem:[#allocation257_spill] sm:$0xff]  ;;  %v2575_v28 = vadd.f32 %v2464_v29, %v2375_v30  ;;  %v2576_v20 = vadd.f32 %v2466_v26, %v2376_v13  ;;  %v9723_v25 = vld [vmem:[#allocation36_spill] sm:$0xff] }
 0x420   : > { %v7718_v54 = vadd.f32 %v9718_v24, %v7579_v22  ;;  %v7722_v53 = vadd.f32 %v9719_v60, %v7582_v10  ;;  %v9720_v48 = vld [vmem:[#allocation270_spill] sm:$0xff]  ;;  %v7734_v22 = vadd.f32 %v9722_v52, %v7605_v0  ;;  %v7738_v10 = vadd.f32 %v9723_v25, %v7608_v3  ;;  %v9724_v4 = vld [vmem:[#allocation44_spill] sm:$0xff]  ;;  %v9727_v31 = vld [vmem:[#allocation85_spill] sm:$0xff] }
 0x421   : > { %v7726_v11 = vadd.f32 %v9720_v48, %v7595_v32  ;;  %v9721_v37 = vld [vmem:[#allocation330_spill] sm:$0xff]  ;;  %v7742_v33 = vadd.f32 %v9724_v4, %v7613_v15  ;;  %v2729_v21 = vld [vmem:[#allocation3] sm:$0xff]  ;;  %v2377_v0 = vadd.f32 %v7296_v6, %v2217_v59  ;;  %v2378_v38 = vadd.f32 %v9727_v31, %v2218_v43  ;;  %2697 = vst.msk [vmem:[#allocation3 + $0x85] sm:$0xff] %vm2607_vm2, %v2575_v28  ;;  %v9728_v30 = vld [vmem:[#allocation331_spill] sm:$0xff]  ;;  %v2468_v6 = vpop.permute.xlu1 %2467  ;;  %v2470_v59 = vpop.permute.xlu0 %2469 }
 0x422   : > { %v7730_v40 = vadd.f32 %v9721_v37, %v7598_v57  ;;  %v9725_v32 = vld [vmem:[#allocation70_spill] sm:$0xff]  ;;  %v9726_v57 = vld [vmem:[#allocation339_spill] sm:$0xff]  ;;  %v2809_v14 = vld [vmem:[#allocation3 + $0x1] sm:$0xff]  ;;  %2698 = vst.msk [vmem:[#allocation3 + $0x8d] sm:$0xff] %vm2607_vm2, %v2576_v20  ;;  %v2769_v3 = vmul.f32 0.0010283801, %v2729_v21  ;;  %v7757_v13 = vadd.f32 %v9728_v30, %v7616_v45 }
 0x423   : > { %2517 = vrot.lane.b32.xlu1 %v9725_v32, %s4579_s7  ;;  %2519 = vrot.lane.b32.xlu0 %v9726_v57, %s4579_s7  ;;  %v7748_v55 = vld [vmem:[#allocation3 + $0x8] sm:$0xff]  ;;  %v2849_v43 = vmul.f32 0.007598758, %v2809_v14  ;;  %v2577_v45 = vadd.f32 %v2468_v6, %v2377_v0  ;;  %v2578_v28 = vadd.f32 %v2470_v59, %v2378_v38 }
 0x424   : > { %v2770_v15 = vmul.f32 0.0010283801, %v7748_v55  ;;  %v2810_v19 = vld [vmem:[#allocation3 + $0x9] sm:$0xff]  ;;  %v7849_v49 = vmul.f32 0.036000773, %v7748_v55 }
 0x425   : > { %v2929_v47 = vld [vmem:[#allocation3 + $0x2] sm:$0xff]  ;;  %v7763_v24 = vmul.f32 0.007598758, %v2810_v19  ;;  %v7765_v60 = vld [vmem:[#allocation3 + $0xa] sm:$0xff]  ;;  %v2889_v25 = vadd.f32 %v2849_v43, %v2769_v3  ;;  %2699 = vst.msk [vmem:[#allocation3 + $0xa5] sm:$0xff] %vm2607_vm2, %v2577_v45  ;;  %2700 = vst.msk [vmem:[#allocation3 + $0xad] sm:$0xff] %vm2607_vm2, %v2578_v28 }
 0x426   : > { %v9729_v34 = vld [vmem:[#allocation341_spill] sm:$0xff]  ;;  %v9730_v29 = vld [vmem:[#allocation342_spill] sm:$0xff]  ;;  %v2969_v32 = vmul.f32 0.036000773, %v2929_v47 }
 0x427   : > { %v7761_v58 = vadd.f32 %v9729_v34, %v7637_v2  ;;  %v7769_v26 = vadd.f32 %v9730_v29, %v7640_v5  ;;  %v9731_v48 = vld [vmem:[#allocation74_spill] sm:$0xff]  ;;  %v9732_v2 = vld [vmem:[#allocation340_spill] sm:$0xff]  ;;  %v9733_v52 = vld [vmem:[#allocation73_spill] sm:$0xff]  ;;  %v2890_v4 = vadd.f32 %v7763_v24, %v2770_v15  ;;  %v2970_v5 = vmul.f32 0.036000773, %v7765_v60  ;;  %v7803_v34 = vpop.permute.xlu1 %2287 }
 0x428   : > { %v7773_v37 = vadd.f32 %v9731_v48, %v7643_v62  ;;  %v3049_v20 = vld [vmem:[#allocation3 + $0x3] sm:$0xff]  ;;  %2521 = vrot.lane.b32.xlu1 %v9732_v2, %s4579_s7  ;;  %2523 = vrot.lane.b32.xlu0 %v9733_v52, %s4579_s7  ;;  %v3050_v57 = vld [vmem:[#allocation3 + $0xb] sm:$0xff]  ;;  %v3009_v6 = vadd.f32 %v2969_v32, %v2889_v25 }
 0x429   : > { %v3169_v21 = vld [vmem:[#allocation3 + $0x4] sm:$0xff]  ;;  %v3170_v47 = vld [vmem:[#allocation3 + $0xc] sm:$0xff]  ;;  %v3089_v59 = vmul.f32 0.10936069, %v3049_v20  ;;  %v3090_v45 = vmul.f32 0.10936069, %v3050_v57 }
 0x42a   : > { %v9734_v62 = vld [vmem:[#allocation77_spill] sm:$0xff]  ;;  %v9735_v0 = vld [vmem:[#allocation86_spill] sm:$0xff]  ;;  %v3209_v28 = vmul.f32 0.21300554, %v3169_v21 }
 0x42b   : > { %v7783_v14 = vadd.f32 %v9734_v62, %v7648_v41  ;;  %v7787_v31 = vadd.f32 %v9735_v0, %v7619_v18  ;;  %v9736_v38 = vld [vmem:[#allocation89_spill] sm:$0xff]  ;;  %v9738_v3 = vld [vmem:[#allocation90_spill] sm:$0xff]  ;;  %v7805_v18 = vpop.permute.xlu0 %2289  ;;  %v3129_v32 = vadd.f32 %v3089_v59, %v3009_v6 }
 0x42c   : > { %v7791_v19 = vadd.f32 %v9736_v38, %v7626_v8  ;;  %v7795_v15 = vadd.f32 %v9738_v3, %v7651_v61  ;;  %v9740_v41 = vld [vmem:[#allocation93_spill] sm:$0xff]  ;;  %9742 = vst [vmem:[#allocation146_spill] sm:$0xff] %v7805_v18  ;;  %v3010_v8 = vadd.f32 %v2970_v5, %v2890_v4  ;;  %v9743_v43 = vld [vmem:[#allocation94_spill] sm:$0xff] }
 0x42d   : > { %v7801_v30 = vadd.f32 %v9740_v41, %v7654_v51  ;;  %v2371_v61 = vadd.f32 %v9743_v43, %v7700_v27  ;;  %v9744_v29 = vld [vmem:[#allocation97_spill] sm:$0xff]  ;;  %v9745_v52 = vld [vmem:[#allocation98_spill] sm:$0xff] }
 0x42e   : > { %9737 = vst [vmem:[#allocation141_spill] sm:$0xff] %v7791_v19  ;;  %9739 = vst [vmem:[#allocation142_spill] sm:$0xff] %v7795_v15  ;;  %v2372_v48 = vadd.f32 %v9744_v29, %v7704_v23  ;;  %v3289_v2 = vld [vmem:[#allocation3 + $0x5] sm:$0xff]  ;;  %v7813_v51 = vadd.f32 %v9745_v52, %v7711_v17  ;;  %v3210_v23 = vmul.f32 0.21300554, %v3170_v47  ;;  %v3130_v41 = vadd.f32 %v3090_v45, %v3010_v8  ;;  %v7832_v52 = vpop.permute.xlu1 %2303 }
 0x42f   : > { %9741 = vst [vmem:[#allocation145_spill] sm:$0xff] %v7801_v30  ;;  %v9746_v62 = vld [vmem:[#allocation101_spill] sm:$0xff]  ;;  %v9747_v25 = vld [vmem:[#allocation78_spill] sm:$0xff]  ;;  %9752 = vst [vmem:[#allocation153_spill] sm:$0xff] %v7832_v52  ;;  %v3329_v42 = vmul.f32 0.26601171, %v3289_v2 }
 0x430   : > { %v7817_v0 = vadd.f32 %v9746_v62, %v7714_v50  ;;  %2525 = vrot.lane.b32.xlu1 %v9747_v25, %s4579_s7  ;;  %v2737_v20 = vld [vmem:[#allocation3 + $0x80] sm:$0xff]  ;;  %v7821_v4 = vld [vmem:[#allocation3 + $0x88] sm:$0xff]  ;;  %v7834_v62 = vpop.permute.xlu0 %2305 }
 0x431   : > { %v2817_v27 = vld [vmem:[#allocation3 + $0x81] sm:$0xff]  ;;  %v9748_v57 = vld [vmem:[#allocation102_spill] sm:$0xff]  ;;  %v2777_v17 = vmul.f32 0.0010283801, %v2737_v20  ;;  %v2778_v38 = vmul.f32 0.0010283801, %v7821_v4 }
 0x432   : > { %v3409_v5 = vld [vmem:[#allocation3 + $0x6] sm:$0xff]  ;;  %v7825_v21 = vadd.f32 %v9748_v57, %v7629_v9  ;;  %9753 = vst [vmem:[#allocation154_spill] sm:$0xff] %v7834_v62  ;;  %v2857_v47 = vmul.f32 0.007598758, %v2817_v27  ;;  %v3249_v9 = vadd.f32 %v3209_v28, %v3129_v32 }
 0x433   : > { %v2818_v3 = vld [vmem:[#allocation3 + $0x89] sm:$0xff] }
 0x434   : > { %9749 = vst [vmem:[#allocation149_spill] sm:$0xff] %v7825_v21  ;;  %v2937_v50 = vld [vmem:[#allocation3 + $0x82] sm:$0xff]  ;;  %v7836_v6 = vmul.f32 0.007598758, %v2818_v3  ;;  %v7838_v59 = vld [vmem:[#allocation3 + $0x8a] sm:$0xff]  ;;  %v2897_v27 = vadd.f32 %v2857_v47, %v2777_v17  ;;  %v3369_v63 = vadd.f32 %v3329_v42, %v3249_v9 }
 0x435   : > { %v9750_v43 = vld [vmem:[#allocation105_spill] sm:$0xff]  ;;  %v9754_v20 = vld [vmem:[#allocation106_spill] sm:$0xff]  ;;  %v2977_v36 = vmul.f32 0.036000773, %v2937_v50  ;;  %v2978_v28 = vmul.f32 0.036000773, %v7838_v59 }
 0x436   : > { %v7830_v29 = vadd.f32 %v9750_v43, %v7634_v44  ;;  %v3529_v25 = vld [vmem:[#allocation3 + $0x7] sm:$0xff]  ;;  %v7842_v57 = vadd.f32 %v9754_v20, %v7661_v7  ;;  %v2898_v3 = vadd.f32 %v7836_v6, %v2778_v38  ;;  %v3250_v20 = vadd.f32 %v3210_v23, %v3130_v41  ;;  %v3530_v42 = vld [vmem:[#allocation3 + $0xf] sm:$0xff] }
 0x437   : > { %v9756_v8 = vld [vmem:[#allocation109_spill] sm:$0xff]  ;;  %v3058_v43 = vld [vmem:[#allocation3 + $0x8b] sm:$0xff] }
 0x438   : > { %9751 = vst [vmem:[#allocation150_spill] sm:$0xff] %v7830_v29  ;;  %9755 = vst [vmem:[#allocation157_spill] sm:$0xff] %v7842_v57  ;;  %v7846_v45 = vadd.f32 %v9756_v8, %v7664_v1  ;;  %v3057_v44 = vld [vmem:[#allocation3 + $0x83] sm:$0xff]  ;;  %v3290_v32 = vld [vmem:[#allocation3 + $0xd] sm:$0xff]  ;;  %v3449_v57 = vmul.f32 0.21300554, %v3409_v5  ;;  %v2456_v8 = vpop.permute.xlu1 %2455  ;;  %v3017_v29 = vadd.f32 %v2977_v36, %v2897_v27  ;;  %v3018_v2 = vadd.f32 %v2978_v28, %v2898_v3 }
 0x439   : > { %v3177_v56 = vld [vmem:[#allocation3 + $0x84] sm:$0xff]  ;;  %v3178_v7 = vld [vmem:[#allocation3 + $0x8c] sm:$0xff]  ;;  %v3569_v1 = vmul.f32 0.10936069, %v3529_v25  ;;  %v3097_v21 = vmul.f32 0.10936069, %v3057_v44  ;;  %v2571_v47 = vadd.f32 %v2456_v8, %v2371_v61 }
 0x43a   : > { %9757 = vst [vmem:[#allocation158_spill] sm:$0xff] %v7846_v45  ;;  %v2458_v45 = vpop.permute.xlu0 %2457  ;;  %v3098_v55 = vmul.f32 0.10936069, %v3058_v43  ;;  %v3297_v62 = vld [vmem:[#allocation3 + $0x85] sm:$0xff]  ;;  %v3410_v17 = vld [vmem:[#allocation3 + $0xe] sm:$0xff]  ;;  %v3489_v50 = vadd.f32 %v3449_v57, %v3369_v63 }
 0x43b   : > { %v2572_v38 = vadd.f32 %v2458_v45, %v2372_v48  ;;  %v3298_v30 = vld [vmem:[#allocation3 + $0x8d] sm:$0xff]  ;;  %v3330_v52 = vmul.f32 0.26601171, %v3290_v32  ;;  %v3137_v15 = vadd.f32 %v3097_v21, %v3017_v29  ;;  %v3217_v19 = vmul.f32 0.21300554, %v3177_v56  ;;  %2693 = vst.msk [vmem:[#allocation3 + $0x45] sm:$0xff] %vm2607_vm2, %v2571_v47 }
 0x43c   : > { %v3138_v18 = vadd.f32 %v3098_v55, %v3018_v2  ;;  %v3218_v23 = vmul.f32 0.21300554, %v3178_v7  ;;  %v9758_v5 = vld [vmem:[#allocation110_spill] sm:$0xff]  ;;  %v3337_v36 = vmul.f32 0.26601171, %v3297_v62  ;;  %v2472_v25 = vpop.permute.xlu1 %2471  ;;  %v3609_v45 = vadd.f32 %v3569_v1, %v3489_v50  ;;  %v9759_v8 = vld [vmem:[#allocation113_spill] sm:$0xff] }
 0x43d   : > { %v7855_v41 = vadd.f32 %v9758_v5, %v7718_v54  ;;  %2694 = vst.msk [vmem:[#allocation3 + $0x4d] sm:$0xff] %vm2607_vm2, %v2572_v38  ;;  %v3417_v9 = vld [vmem:[#allocation3 + $0x86] sm:$0xff]  ;;  %v3370_v61 = vadd.f32 %v3330_v52, %v3250_v20  ;;  %v3418_v48 = vld [vmem:[#allocation3 + $0x8e] sm:$0xff]  ;;  %v3450_v63 = vmul.f32 0.21300554, %v3410_v17  ;;  %v3257_v21 = vadd.f32 %v3217_v19, %v3137_v15 }
 0x43e   : > { %v2474_v57 = vpop.permute.xlu0 %2473  ;;  %v3258_v29 = vadd.f32 %v3218_v23, %v3138_v18  ;;  %v3537_v56 = vld [vmem:[#allocation3 + $0x87] sm:$0xff]  ;;  %v3338_v44 = vmul.f32 0.26601171, %v3298_v30  ;;  %v3649_v43 = vld [vmem:[#allocation3 + $0x10] sm:$0xff]  ;;  %v2579_v54 = vadd.f32 %v2472_v25, %v7813_v51  ;;  %v3570_v32 = vmul.f32 0.10936069, %v3530_v42 }
 0x43f   : > { %v2580_v27 = vadd.f32 %v2474_v57, %v7817_v0  ;;  %v3490_v3 = vadd.f32 %v3450_v63, %v3370_v61  ;;  %v3538_v28 = vld [vmem:[#allocation3 + $0x8f] sm:$0xff]  ;;  %v3377_v62 = vadd.f32 %v3337_v36, %v3257_v21  ;;  %v3457_v7 = vmul.f32 0.21300554, %v3417_v9  ;;  %v9761_v23 = vld [vmem:[#allocation117_spill] sm:$0xff] }
 0x440   : > { %v3378_v52 = vadd.f32 %v3338_v44, %v3258_v29  ;;  %v3458_v20 = vmul.f32 0.21300554, %v3418_v48  ;;  %v2374_v2 = vadd.f32 %v9759_v8, %v7722_v53  ;;  %2701 = vst.msk [vmem:[#allocation3 + $0xc5] sm:$0xff] %vm2607_vm2, %v2579_v54  ;;  %v3577_v19 = vmul.f32 0.10936069, %v3537_v56  ;;  %v3653_v30 = vld [vmem:[#allocation3 + $0x90] sm:$0xff]  ;;  %v7865_v51 = vpop.permute.xlu1 %2291 }
 0x441   : > { %2702 = vst.msk [vmem:[#allocation3 + $0xcd] sm:$0xff] %vm2607_vm2, %v2580_v27  ;;  %v3610_v15 = vadd.f32 %v3570_v32, %v3490_v3  ;;  %v3670_v18 = vmul.f32 0.036000773, %v3649_v43  ;;  %v3497_v1 = vadd.f32 %v3457_v7, %v3377_v62  ;;  %v3709_v55 = vadd.f32 %v7849_v49, %v3609_v45  ;;  %v3749_v38 = vld [vmem:[#allocation3 + $0x11] sm:$0xff]  ;;  %v9763_v57 = vld [vmem:[#allocation121_spill] sm:$0xff] }
 0x442   : > { %v7867_v0 = vpop.permute.xlu0 %2293  ;;  %v3498_v17 = vadd.f32 %v3458_v20, %v3378_v52  ;;  %v3578_v47 = vmul.f32 0.10936069, %v3538_v28  ;;  %v9760_v53 = vld [vmem:[#allocation114_spill] sm:$0xff]  ;;  %v7876_v42 = vadd.f32 %v9761_v23, %v7730_v40  ;;  %v3677_v49 = vmul.f32 0.036000773, %v7821_v4  ;;  %v3833_v29 = vld [vmem:[#allocation3 + $0x92] sm:$0xff] }
 0x443   : > { %v7872_v50 = vadd.f32 %v9760_v53, %v7726_v11  ;;  %v9762_v5 = vld [vmem:[#allocation118_spill] sm:$0xff]  ;;  %v3710_v9 = vadd.f32 %v3670_v18, %v3610_v15  ;;  %v3617_v48 = vadd.f32 %v3577_v19, %v3497_v1  ;;  %v3678_v25 = vmul.f32 0.036000773, %v3653_v30  ;;  %v3829_v54 = vld [vmem:[#allocation3 + $0x12] sm:$0xff]  ;;  %v2731_v32 = vld [vmem:[#allocation3 + $0x20] sm:$0xff] }
 0x444   : > { %v7880_v36 = vadd.f32 %v9762_v5, %v7734_v22  ;;  %v3753_v61 = vld [vmem:[#allocation3 + $0x91] sm:$0xff]  ;;  %v3618_v63 = vadd.f32 %v3578_v47, %v3498_v17  ;;  %v7885_v21 = vadd.f32 %v9763_v57, %v7738_v10  ;;  %v7889_v11 = vadd.f32 %v7526_v39, %v7742_v33  ;;  %v7895_v56 = vpop.permute.xlu1 %2307  ;;  %v9765_v7 = vld [vmem:[#allocation141_spill] sm:$0xff] }
 0x445   : > { %v7893_v40 = vadd.f32 %v7528_v35, %v7757_v13  ;;  %v3769_v22 = vmul.f32 0.007598758, %v3749_v38  ;;  %v3717_v4 = vadd.f32 %v3677_v49, %v3617_v48  ;;  %v3789_v44 = vadd.f32 %v3709_v55, %v7763_v24  ;;  %v9766_v52 = vld [vmem:[#allocation146_spill] sm:$0xff]  ;;  %v9770_v48 = vld [vmem:[#allocation153_spill] sm:$0xff] }
 0x446   : > { %v7897_v45 = vpop.permute.xlu0 %2309  ;;  %v3718_v43 = vadd.f32 %v3678_v25, %v3618_v63  ;;  %v3773_v10 = vmul.f32 0.007598758, %v3753_v61  ;;  %v7902_v39 = vadd.f32 %v7565_v12, %v7761_v58  ;;  %v7906_v35 = vadd.f32 %v7567_v16, %v7769_v26  ;;  %v9764_v12 = vld [vmem:[#allocation129_spill] sm:$0xff]  ;;  %v9769_v61 = vld [vmem:[#allocation142_spill] sm:$0xff] }
 0x447   : > { %v3849_v33 = vmul.f32 0.0010283801, %v7765_v60  ;;  %v3790_v13 = vadd.f32 %v3769_v22, %v3710_v9  ;;  %v3797_v27 = vadd.f32 %v3717_v4, %v7836_v6  ;;  %v3857_v3 = vmul.f32 0.0010283801, %v7838_v59  ;;  %v7923_v26 = vld [vmem:[#allocation3 + $0x28] sm:$0xff]  ;;  %v2739_v6 = vld [vmem:[#allocation3 + $0xa0] sm:$0xff] }
 0x448   : > { %v3798_v28 = vadd.f32 %v3773_v10, %v3718_v43  ;;  %v3858_v24 = vmul.f32 0.0010283801, %v3833_v29  ;;  %v7913_v62 = vadd.f32 %v7600_v46, %v7773_v37  ;;  %v7917_v58 = vadd.f32 %v9764_v12, %v7783_v14  ;;  %v2811_v59 = vld [vmem:[#allocation3 + $0x21] sm:$0xff]  ;;  %v2460_v8 = vpop.permute.xlu1 %2459  ;;  %v2812_v55 = vld [vmem:[#allocation3 + $0x29] sm:$0xff] }
 0x449   : > { %v7921_v16 = vadd.f32 %v7803_v34, %v7787_v31  ;;  %v3850_v60 = vmul.f32 0.0010283801, %v3829_v54  ;;  %v7927_v20 = vadd.f32 %v9766_v52, %v9765_v7  ;;  %v3889_v37 = vadd.f32 %v3849_v33, %v3789_v44  ;;  %v2819_v14 = vld [vmem:[#allocation3 + $0xa1] sm:$0xff]  ;;  %v2820_v17 = vld [vmem:[#allocation3 + $0xa9] sm:$0xff] }
 0x44a   : > { %v2462_v46 = vpop.permute.xlu0 %2461  ;;  %v3897_v19 = vadd.f32 %v3857_v3, %v3797_v27  ;;  %v3898_v15 = vadd.f32 %v3858_v24, %v3798_v28  ;;  %v2573_v30 = vadd.f32 %v2460_v8, %v7855_v41  ;;  %v7930_v34 = vld [vmem:[#allocation3 + $0xa8] sm:$0xff]  ;;  %v2771_v1 = vmul.f32 0.0010283801, %v2731_v32 }
 0x44b   : > { %v2574_v18 = vadd.f32 %v2462_v46, %v2374_v2  ;;  %v3890_v31 = vadd.f32 %v3850_v60, %v3790_v13  ;;  %v2772_v38 = vmul.f32 0.0010283801, %v7923_v26  ;;  %v2779_v53 = vmul.f32 0.0010283801, %v2739_v6  ;;  %v2931_v54 = vld [vmem:[#allocation3 + $0x22] sm:$0xff]  ;;  %v7958_v33 = vld [vmem:[#allocation3 + $0x2a] sm:$0xff] }
 0x44c   : > { %v7932_v47 = vmul.f32 %v3897_v19, %v3889_v37  ;;  %v2851_v23 = vmul.f32 0.007598758, %v2811_v59  ;;  %2695 = vst.msk [vmem:[#allocation3 + $0x65] sm:$0xff] %vm2607_vm2, %v2573_v30  ;;  %v7937_v5 = vmul.f32 %v3897_v19, %v3897_v19  ;;  %v7939_v41 = vmul.f32 %v3898_v15, %v3898_v15  ;;  %v2476_v63 = vpop.permute.xlu1 %2475  ;;  %v2939_v13 = vld [vmem:[#allocation3 + $0xa2] sm:$0xff]  ;;  %v9772_v3 = vld [vmem:[#allocation154_spill] sm:$0xff] }
 0x44d   : > { %2696 = vst.msk [vmem:[#allocation3 + $0x6d] sm:$0xff] %vm2607_vm2, %v2574_v18  ;;  %v7941_v2 = vmul.f32 %v3898_v15, %v3890_v31  ;;  %v2859_v9 = vmul.f32 0.007598758, %v2819_v14  ;;  %v7945_v49 = vadd.f32 %v9770_v48, %v9769_v61  ;;  %v2780_v57 = vmul.f32 0.0010283801, %v7930_v34  ;;  %v9771_v27 = vld [vmem:[#allocation145_spill] sm:$0xff] }
 0x44e   : > { %9767 = vst [vmem:[#allocation161_spill] sm:$0xff] %v7932_v47  ;;  %v2478_v25 = vpop.permute.xlu0 %2477  ;;  %v7948_v22 = vmul.f32 0.007598758, %v2812_v55  ;;  %v7950_v29 = vmul.f32 0.007598758, %v2820_v17  ;;  %v2581_v4 = vadd.f32 %v2476_v63, %v7872_v50  ;;  %v7954_v43 = vmul.f32 %v3889_v37, %v3889_v37  ;;  %v9773_v24 = vld [vmem:[#allocation149_spill] sm:$0xff] }
 0x44f   : > { %9768 = vst [vmem:[#allocation162_spill] sm:$0xff] %v7941_v2  ;;  %v2582_v44 = vadd.f32 %v2478_v25, %v7876_v42  ;;  %v7956_v10 = vmul.f32 %v3890_v31, %v3890_v31  ;;  %v7962_v28 = vadd.f32 %v9772_v3, %v9771_v27  ;;  %v7966_v32 = vadd.f32 %v7865_v51, %v9773_v24  ;;  %v7969_v42 = vld [vmem:[#allocation3 + $0xaa] sm:$0xff] }
 0x450   : > { %v3977_v50 = vmul.f32 2.0, %v7932_v47  ;;  %v2891_v12 = vadd.f32 %v2851_v23, %v2771_v1  ;;  %v3051_v60 = vld [vmem:[#allocation3 + $0x23] sm:$0xff]  ;;  %v3052_v6 = vld [vmem:[#allocation3 + $0x2b] sm:$0xff]  ;;  %2703 = vst.msk [vmem:[#allocation3 + $0xe5] sm:$0xff] %vm2607_vm2, %v2581_v4  ;;  %v4017_v59 = vadd.f32 %v7937_v5, %v7954_v43  ;;  %v3978_v7 = vmul.f32 2.0, %v7941_v2  ;;  %v2480_v19 = vpop.permute.xlu1 %2479 }
 0x451   : > { %2704 = vst.msk [vmem:[#allocation3 + $0xed] sm:$0xff] %vm2607_vm2, %v2582_v44  ;;  %v4018_v51 = vadd.f32 %v7939_v41, %v7956_v10  ;;  %v2899_v52 = vadd.f32 %v2859_v9, %v2779_v53  ;;  %v3059_v8 = vld [vmem:[#allocation3 + $0xa3] sm:$0xff]  ;;  %v3060_v46 = vld [vmem:[#allocation3 + $0xab] sm:$0xff]  ;;  %v2892_v14 = vadd.f32 %v7948_v22, %v2772_v38  ;;  %v2900_v30 = vadd.f32 %v7950_v29, %v2780_v57 }
 0x452   : > { %v3171_v37 = vld [vmem:[#allocation3 + $0x24] sm:$0xff]  ;;  %v2482_v15 = vpop.permute.xlu0 %2481  ;;  %v2971_v18 = vmul.f32 0.036000773, %v2931_v54  ;;  %v2972_v31 = vmul.f32 0.036000773, %v7958_v33  ;;  %v3172_v1 = vld [vmem:[#allocation3 + $0x2c] sm:$0xff]  ;;  %v2583_v17 = vadd.f32 %v2480_v19, %v7880_v36 }
 0x453   : > { %v3179_v55 = vld [vmem:[#allocation3 + $0xa4] sm:$0xff]  ;;  %v2584_v23 = vadd.f32 %v2482_v15, %v7885_v21  ;;  %v2979_v61 = vmul.f32 0.036000773, %v2939_v13  ;;  %v2980_v53 = vmul.f32 0.036000773, %v7969_v42  ;;  %v3180_v9 = vld [vmem:[#allocation3 + $0xac] sm:$0xff] }
 0x454   : > { %v3291_v48 = vld [vmem:[#allocation3 + $0x25] sm:$0xff]  ;;  %v7984_v25 = vadd.f32 0.0001, %v3977_v50  ;;  %v3011_v38 = vadd.f32 %v2971_v18, %v2891_v12  ;;  %v3091_v4 = vmul.f32 0.10936069, %v3051_v60  ;;  %2705 = vst.msk [vmem:[#allocation3 + $0x105] sm:$0xff] %vm2607_vm2, %v2583_v17  ;;  %v2484_v24 = vpop.permute.xlu1 %2483  ;;  %v3012_v12 = vadd.f32 %v2972_v31, %v2892_v14 }
 0x455   : > { %v3299_v63 = vld [vmem:[#allocation3 + $0xa5] sm:$0xff]  ;;  %v7986_v57 = vmul.f32 0.10936069, %v3052_v6  ;;  %2706 = vst.msk [vmem:[#allocation3 + $0x10d] sm:$0xff] %vm2607_vm2, %v2584_v23  ;;  %v7990_v36 = vadd.f32 0.0001, %v4017_v59  ;;  %v3019_v3 = vadd.f32 %v2979_v61, %v2899_v52  ;;  %v2585_v15 = vadd.f32 %v2484_v24, %v7889_v11 }
 0x456   : > { %9774 = vst [vmem:[#allocation165_spill] sm:$0xff] %v7984_v25  ;;  %v3411_v44 = vld [vmem:[#allocation3 + $0x26] sm:$0xff]  ;;  %v7992_v21 = vadd.f32 0.0001, %v3978_v7  ;;  %v7994_v13 = vadd.f32 0.0001, %v4018_v51  ;;  %v2486_v50 = vpop.permute.xlu0 %2485  ;;  %v3131_v7 = vadd.f32 %v3091_v4, %v3011_v38  ;;  %v3020_v31 = vadd.f32 %v2980_v53, %v2900_v30 }
 0x457   : > { %v3419_v54 = vld [vmem:[#allocation3 + $0xa6] sm:$0xff]  ;;  %9775 = vst [vmem:[#allocation166_spill] sm:$0xff] %v7990_v36  ;;  %v3099_v60 = vmul.f32 0.10936069, %v3059_v8  ;;  %v3100_v6 = vmul.f32 0.10936069, %v3060_v46  ;;  %v2586_v18 = vadd.f32 %v2486_v50, %v7893_v40 }
 0x458   : > { %v3531_v27 = vld [vmem:[#allocation3 + $0x27] sm:$0xff]  ;;  %9776 = vst [vmem:[#allocation169_spill] sm:$0xff] %v7992_v21  ;;  %9777 = vst [vmem:[#allocation170_spill] sm:$0xff] %v7994_v13  ;;  %v3211_v19 = vmul.f32 0.21300554, %v3171_v37  ;;  %v2496_v37 = vpop.permute.xlu1 %2495 }
 0x459   : > { %v7998_v17 = vmul.f32 0.21300554, %v3172_v1  ;;  %v3219_v23 = vmul.f32 0.21300554, %v3179_v55  ;;  %v3539_v59 = vld [vmem:[#allocation3 + $0xa7] sm:$0xff]  ;;  %2707 = vst.msk [vmem:[#allocation3 + $0x125] sm:$0xff] %vm2607_vm2, %v2585_v15  ;;  %v3139_v8 = vadd.f32 %v3099_v60, %v3019_v3 }
 0x45a   : > { %v3292_v25 = vld [vmem:[#allocation3 + $0x2d] sm:$0xff]  ;;  %v8000_v21 = vmul.f32 0.21300554, %v3180_v9  ;;  %v3331_v51 = vmul.f32 0.26601171, %v3291_v48  ;;  %2708 = vst.msk [vmem:[#allocation3 + $0x12d] sm:$0xff] %vm2607_vm2, %v2586_v18  ;;  %v2498_v14 = vpop.permute.xlu0 %2497  ;;  %v2591_v9 = vadd.f32 %v2496_v37, %v7902_v39  ;;  %v3251_v60 = vadd.f32 %v3211_v19, %v3131_v7 }
 0x45b   : > { %v3339_v52 = vmul.f32 0.26601171, %v3299_v63  ;;  %v8004_v46 = vmul.f32 0.21300554, %v3411_v44  ;;  %v8006_v11 = vmul.f32 0.21300554, %v3419_v54  ;;  %v2592_v48 = vadd.f32 %v2498_v14, %v7906_v35 }
 0x45c   : > { %v8008_v40 = vmul.f32 0.10936069, %v3531_v27  ;;  %v8010_v1 = vmul.f32 0.10936069, %v3539_v59  ;;  %v8013_v55 = vmul.f32 0.036000773, %v7923_v26  ;;  %v3259_v15 = vadd.f32 %v3219_v23, %v3139_v8 }
 0x45d   : > { %v8016_v61 = vmul.f32 0.036000773, %v7930_v34  ;;  %v8021_v63 = vmul.f32 0.0010283801, %v7958_v33  ;;  %v8024_v38 = vmul.f32 0.0010283801, %v7969_v42 }
 0x45e   : > { %v3300_v4 = vld [vmem:[#allocation3 + $0xad] sm:$0xff]  ;;  %v9779_v26 = vld [vmem:[#allocation157_spill] sm:$0xff]  ;;  %v8040_v42 = vmul.f32 0.26601171, %v3292_v25  ;;  %2713 = vst.msk [vmem:[#allocation3 + $0x185] sm:$0xff] %vm2607_vm2, %v2591_v9  ;;  %2714 = vst.msk [vmem:[#allocation3 + $0x18d] sm:$0xff] %vm2607_vm2, %v2592_v48  ;;  %v2502_v18 = vpop.permute.xlu0 %2501  ;;  %v3132_v25 = vadd.f32 %v7986_v57, %v3012_v12  ;;  %v3379_v12 = vadd.f32 %v3339_v52, %v3259_v15 }
 0x45f   : > { %v3412_v30 = vld [vmem:[#allocation3 + $0x2e] sm:$0xff]  ;;  %v8032_v34 = vadd.f32 %v7895_v56, %v9779_v26  ;;  %v2745_v35 = vld [vmem:[#allocation3 + $0x100] sm:$0xff]  ;;  %v2594_v26 = vadd.f32 %v2502_v18, %v7917_v58  ;;  %v3371_v58 = vadd.f32 %v3331_v51, %v3251_v60 }
 0x460   : > { %v9778_v53 = vld [vmem:[#allocation150_spill] sm:$0xff]  ;;  %v2825_v27 = vld [vmem:[#allocation3 + $0x101] sm:$0xff]  ;;  %v8054_v19 = vmul.f32 0.21300554, %v3412_v30 }
 0x461   : > { %v8028_v44 = vadd.f32 %v7867_v0, %v9778_v53  ;;  %v9780_v54 = vld [vmem:[#allocation158_spill] sm:$0xff]  ;;  %v2785_v0 = vmul.f32 0.0010283801, %v2745_v35  ;;  %v2945_v50 = vld [vmem:[#allocation3 + $0x102] sm:$0xff]  ;;  %v2865_v59 = vmul.f32 0.007598758, %v2825_v27  ;;  %v3140_v53 = vadd.f32 %v3100_v6, %v3020_v31 }
 0x462   : > { %v8036_v39 = vadd.f32 %v7897_v45, %v9780_v54  ;;  %v8038_v33 = vld [vmem:[#allocation3 + $0x108] sm:$0xff]  ;;  %v2500_v45 = vpop.permute.xlu1 %2499  ;;  %v8052_v35 = vmul.f32 0.26601171, %v3300_v4  ;;  %v2985_v27 = vmul.f32 0.036000773, %v2945_v50  ;;  %v3650_v57 = vld [vmem:[#allocation3 + $0x30] sm:$0xff]  ;;  %v2490_v30 = vpop.permute.xlu0 %2489 }
 0x463   : > { %v3420_v3 = vld [vmem:[#allocation3 + $0xae] sm:$0xff]  ;;  %v2786_v24 = vmul.f32 0.0010283801, %v8038_v33  ;;  %v2593_v48 = vadd.f32 %v2500_v45, %v7913_v62  ;;  %v3065_v54 = vld [vmem:[#allocation3 + $0x103] sm:$0xff]  ;;  %v2905_v7 = vadd.f32 %v2865_v59, %v2785_v0  ;;  %2716 = vst.msk [vmem:[#allocation3 + $0x1ad] sm:$0xff] %vm2607_vm2, %v2594_v26  ;;  %v2588_v59 = vadd.f32 %v2490_v30, %v7927_v20 }
 0x464   : > { %v2826_v56 = vld [vmem:[#allocation3 + $0x109] sm:$0xff]  ;;  %v8060_v6 = vmul.f32 0.21300554, %v3420_v3  ;;  %v3105_v50 = vmul.f32 0.10936069, %v3065_v54  ;;  %v8073_v54 = vadd.f32 %v7998_v17, %v3132_v25  ;;  %v8089_v30 = vadd.f32 %v8006_v11, %v3379_v12 }
 0x465   : > { %v8045_v37 = vmul.f32 0.007598758, %v2826_v56  ;;  %v8047_v14 = vld [vmem:[#allocation3 + $0x10a] sm:$0xff]  ;;  %2715 = vst.msk [vmem:[#allocation3 + $0x1a5] sm:$0xff] %vm2607_vm2, %v2593_v48  ;;  %v3025_v0 = vadd.f32 %v2985_v27, %v2905_v7  ;;  %v8068_v51 = vmul.f32 0.036000773, %v3650_v57 }
 0x466   : > { %v3532_v9 = vld [vmem:[#allocation3 + $0x2f] sm:$0xff]  ;;  %v2986_v56 = vmul.f32 0.036000773, %v8047_v14  ;;  %v3185_v62 = vld [vmem:[#allocation3 + $0x104] sm:$0xff]  ;;  %v2488_v4 = vpop.permute.xlu1 %2487  ;;  %2710 = vst.msk [vmem:[#allocation3 + $0x14d] sm:$0xff] %vm2607_vm2, %v2588_v59 }
 0x467   : > { %v3540_v23 = vld [vmem:[#allocation3 + $0xaf] sm:$0xff]  ;;  %v2906_v8 = vadd.f32 %v8045_v37, %v2786_v24  ;;  %v8062_v31 = vmul.f32 0.10936069, %v3532_v9  ;;  %v2587_v18 = vadd.f32 %v2488_v4, %v7921_v16  ;;  %v3305_v47 = vld [vmem:[#allocation3 + $0x105] sm:$0xff]  ;;  %9782 = vst [vmem:[#allocation174_spill] sm:$0xff] %v8068_v51  ;;  %v3145_v15 = vadd.f32 %v3105_v50, %v3025_v0 }
 0x468   : > { %v3066_v2 = vld [vmem:[#allocation3 + $0x10b] sm:$0xff]  ;;  %v8064_v45 = vmul.f32 0.10936069, %v3540_v23  ;;  %v2753_v52 = vld [vmem:[#allocation3 + $0x180] sm:$0xff]  ;;  %v3225_v9 = vmul.f32 0.21300554, %v3185_v62  ;;  %v8076_v23 = vadd.f32 %v8000_v21, %v3140_v53  ;;  %v2506_v62 = vpop.permute.xlu0 %2505 }
 0x469   : > { %v3026_v24 = vadd.f32 %v2986_v56, %v2906_v8  ;;  %v3106_v48 = vmul.f32 0.10936069, %v3066_v2  ;;  %v3186_v26 = vld [vmem:[#allocation3 + $0x10c] sm:$0xff]  ;;  %v2833_v60 = vld [vmem:[#allocation3 + $0x181] sm:$0xff]  ;;  %2709 = vst.msk [vmem:[#allocation3 + $0x145] sm:$0xff] %vm2607_vm2, %v2587_v18  ;;  %v8082_v56 = vadd.f32 %v8004_v46, %v3371_v58  ;;  %v2596_v50 = vadd.f32 %v2506_v62, %v7962_v28 }
 0x46a   : > { %9781 = vst [vmem:[#allocation173_spill] sm:$0xff] %v8064_v45  ;;  %v8070_v3 = vld [vmem:[#allocation3 + $0x188] sm:$0xff]  ;;  %v2793_v16 = vmul.f32 0.0010283801, %v2753_v52  ;;  %v2504_v57 = vpop.permute.xlu1 %2503  ;;  %v2873_v17 = vmul.f32 0.007598758, %v2833_v60  ;;  %v3265_v53 = vadd.f32 %v3225_v9, %v3145_v15 }
 0x46b   : > { %v3425_v7 = vld [vmem:[#allocation3 + $0x106] sm:$0xff]  ;;  %v2794_v20 = vmul.f32 0.0010283801, %v8070_v3  ;;  %v3146_v27 = vadd.f32 %v3106_v48, %v3026_v24  ;;  %v2595_v0 = vadd.f32 %v2504_v57, %v7945_v49  ;;  %v3226_v46 = vmul.f32 0.21300554, %v3186_v26  ;;  %2718 = vst.msk [vmem:[#allocation3 + $0x1cd] sm:$0xff] %vm2607_vm2, %v2596_v50 }
 0x46c   : > { %v2834_v2 = vld [vmem:[#allocation3 + $0x189] sm:$0xff]  ;;  %v3345_v58 = vmul.f32 0.26601171, %v3305_v47  ;;  %v2913_v59 = vadd.f32 %v2873_v17, %v2793_v16  ;;  %v3465_v28 = vmul.f32 0.21300554, %v3425_v7  ;;  %v2494_v26 = vpop.permute.xlu0 %2493 }
 0x46d   : > { %v2953_v8 = vld [vmem:[#allocation3 + $0x182] sm:$0xff]  ;;  %v8084_v25 = vmul.f32 0.007598758, %v2834_v2  ;;  %v8086_v21 = vld [vmem:[#allocation3 + $0x18a] sm:$0xff]  ;;  %2717 = vst.msk [vmem:[#allocation3 + $0x1c5] sm:$0xff] %vm2607_vm2, %v2595_v0  ;;  %v3266_v49 = vadd.f32 %v3226_v46, %v3146_v27  ;;  %v2590_v51 = vadd.f32 %v2494_v26, %v8028_v44 }
 0x46e   : > { %v3545_v4 = vld [vmem:[#allocation3 + $0x107] sm:$0xff]  ;;  %v2993_v52 = vmul.f32 0.036000773, %v2953_v8  ;;  %v2994_v60 = vmul.f32 0.036000773, %v8086_v21  ;;  %v3385_v15 = vadd.f32 %v3345_v58, %v3265_v53  ;;  %v2492_v57 = vpop.permute.xlu1 %2491  ;;  %v3546_v44 = vld [vmem:[#allocation3 + $0x10f] sm:$0xff] }
 0x46f   : > { %v3073_v24 = vld [vmem:[#allocation3 + $0x183] sm:$0xff]  ;;  %v3074_v18 = vld [vmem:[#allocation3 + $0x18b] sm:$0xff]  ;;  %v2914_v48 = vadd.f32 %v8084_v25, %v2794_v20  ;;  %v3585_v9 = vmul.f32 0.10936069, %v3545_v4  ;;  %v2589_v17 = vadd.f32 %v2492_v57, %v7966_v32  ;;  %2712 = vst.msk [vmem:[#allocation3 + $0x16d] sm:$0xff] %vm2607_vm2, %v2590_v51 }
 0x470   : > { %v3306_v2 = vld [vmem:[#allocation3 + $0x10d] sm:$0xff]  ;;  %v3193_v11 = vld [vmem:[#allocation3 + $0x184] sm:$0xff]  ;;  %v3033_v47 = vadd.f32 %v2993_v52, %v2913_v59  ;;  %v3113_v62 = vmul.f32 0.10936069, %v3073_v24  ;;  %v3114_v20 = vmul.f32 0.10936069, %v3074_v18  ;;  %v3505_v45 = vadd.f32 %v3465_v28, %v3385_v15 }
 0x471   : > { %v3194_v12 = vld [vmem:[#allocation3 + $0x18c] sm:$0xff]  ;;  %v3034_v16 = vadd.f32 %v2994_v60, %v2914_v48  ;;  %v3346_v13 = vmul.f32 0.26601171, %v3306_v2  ;;  %v3233_v53 = vmul.f32 0.21300554, %v3193_v11  ;;  %2711 = vst.msk [vmem:[#allocation3 + $0x165] sm:$0xff] %vm2607_vm2, %v2589_v17  ;;  %v2510_v48 = vpop.permute.xlu0 %2509 }
 0x472   : > { %v3426_v8 = vld [vmem:[#allocation3 + $0x10e] sm:$0xff]  ;;  %v3313_v0 = vld [vmem:[#allocation3 + $0x185] sm:$0xff]  ;;  %v3153_v36 = vadd.f32 %v3113_v62, %v3033_v47  ;;  %v3234_v7 = vmul.f32 0.21300554, %v3194_v12  ;;  %v3625_v24 = vadd.f32 %v3585_v9, %v3505_v45  ;;  %v3685_v18 = vmul.f32 0.036000773, %v8038_v33  ;;  %v2508_v59 = vpop.permute.xlu1 %2507 }
 0x473   : > { %v3314_v50 = vld [vmem:[#allocation3 + $0x18d] sm:$0xff]  ;;  %v3154_v27 = vadd.f32 %v3114_v20, %v3034_v16  ;;  %v3386_v46 = vadd.f32 %v3346_v13, %v3266_v49  ;;  %v3466_v58 = vmul.f32 0.21300554, %v3426_v8  ;;  %v3353_v2 = vmul.f32 0.26601171, %v3313_v0 }
 0x474   : > { %v3433_v4 = vld [vmem:[#allocation3 + $0x186] sm:$0xff]  ;;  %v3434_v32 = vld [vmem:[#allocation3 + $0x18e] sm:$0xff]  ;;  %v3273_v52 = vadd.f32 %v3233_v53, %v3153_v36  ;;  %v3354_v11 = vmul.f32 0.26601171, %v3314_v50  ;;  %v2597_v12 = vadd.f32 %v2508_v59, %v8032_v34  ;;  %v2598_v28 = vadd.f32 %v2510_v48, %v8036_v39 }
 0x475   : > { %v3274_v60 = vadd.f32 %v3234_v7, %v3154_v27  ;;  %v3553_v15 = vld [vmem:[#allocation3 + $0x187] sm:$0xff]  ;;  %v3473_v57 = vmul.f32 0.21300554, %v3433_v4  ;;  %v3506_v51 = vadd.f32 %v3466_v58, %v3386_v46  ;;  %v3554_v45 = vld [vmem:[#allocation3 + $0x18f] sm:$0xff]  ;;  %v3474_v13 = vmul.f32 0.21300554, %v3434_v32  ;;  %v8111_v8 = vpop.permute.xlu0 %2003 }
 0x476   : > { %v3393_v9 = vadd.f32 %v3353_v2, %v3273_v52  ;;  %v3586_v49 = vmul.f32 0.10936069, %v3546_v44  ;;  %v3657_v26 = vld [vmem:[#allocation3 + $0x110] sm:$0xff]  ;;  %2719 = vst.msk [vmem:[#allocation3 + $0x1e5] sm:$0xff] %vm2607_vm2, %v2597_v12  ;;  %2720 = vst.msk [vmem:[#allocation3 + $0x1ed] sm:$0xff] %vm2607_vm2, %v2598_v28  ;;  %v3725_v47 = vadd.f32 %v3685_v18, %v3625_v24  ;;  %v2747_v34 = vld [vmem:[#allocation3 + $0x120] sm:$0xff]  ;;  %v3611_v39 = vadd.f32 %v8008_v40, %v8082_v56  ;;  %v8109_v20 = vpop.permute.xlu1 %2001 }
 0x477   : > { %v3394_v33 = vadd.f32 %v3354_v11, %v3274_v60  ;;  %v3593_v36 = vmul.f32 0.10936069, %v3553_v15  ;;  %v3865_v16 = vmul.f32 0.0010283801, %v8047_v14  ;;  %v3661_v62 = vld [vmem:[#allocation3 + $0x190] sm:$0xff]  ;;  %v2755_v7 = vld [vmem:[#allocation3 + $0x1a0] sm:$0xff]  ;;  %v3619_v14 = vadd.f32 %v8010_v1, %v8089_v30 }
 0x478   : > { %v3513_v17 = vadd.f32 %v3473_v57, %v3393_v9  ;;  %v3594_v50 = vmul.f32 0.10936069, %v3554_v45  ;;  %v3626_v27 = vadd.f32 %v3586_v49, %v3506_v51  ;;  %v3761_v53 = vld [vmem:[#allocation3 + $0x191] sm:$0xff]  ;;  %v3693_v4 = vmul.f32 0.036000773, %v8070_v3  ;;  %v2827_v18 = vld [vmem:[#allocation3 + $0x121] sm:$0xff] }
 0x479   : > { %v3514_v0 = vadd.f32 %v3474_v13, %v3394_v33  ;;  %v3686_v24 = vmul.f32 0.036000773, %v3657_v26  ;;  %v3372_v40 = vadd.f32 %v8040_v42, %v8073_v54  ;;  %v3694_v32 = vmul.f32 0.036000773, %v3661_v62  ;;  %v2835_v44 = vld [vmem:[#allocation3 + $0x1a1] sm:$0xff]  ;;  %v3757_v48 = vld [vmem:[#allocation3 + $0x111] sm:$0xff]  ;;  %v8122_v15 = vpop.permute.xlu0 %2151 }
 0x47a   : > { %v3633_v56 = vadd.f32 %v3593_v36, %v3513_v17  ;;  %v2787_v58 = vmul.f32 0.0010283801, %v2747_v34  ;;  %v3805_v59 = vadd.f32 %v3725_v47, %v8045_v37  ;;  %v3781_v52 = vmul.f32 0.007598758, %v3761_v53  ;;  %v8120_v2 = vpop.permute.xlu1 %2005  ;;  %v3841_v42 = vld [vmem:[#allocation3 + $0x192] sm:$0xff]  ;;  %v8125_v28 = vld [vmem:[#allocation3 + $0x1a8] sm:$0xff] }
 0x47b   : > { %v3634_v46 = vadd.f32 %v3594_v50, %v3514_v0  ;;  %v2795_v60 = vmul.f32 0.0010283801, %v2755_v7  ;;  %v3711_v3 = vadd.f32 %v8013_v55, %v3611_v39  ;;  %v3726_v30 = vadd.f32 %v3686_v24, %v3626_v27  ;;  %v2947_v37 = vld [vmem:[#allocation3 + $0x122] sm:$0xff]  ;;  %v3837_v47 = vld [vmem:[#allocation3 + $0x112] sm:$0xff] }
 0x47c   : > { %v3733_v1 = vadd.f32 %v3693_v4, %v3633_v56  ;;  %v2867_v54 = vmul.f32 0.007598758, %v2827_v18  ;;  %v3873_v12 = vmul.f32 0.0010283801, %v8086_v21  ;;  %v2875_v57 = vmul.f32 0.007598758, %v2835_v44 }
 0x47d   : > { %v3734_v11 = vadd.f32 %v3694_v32, %v3634_v46  ;;  %v3719_v51 = vadd.f32 %v8016_v61, %v3619_v14  ;;  %v3380_v55 = vadd.f32 %v8052_v35, %v8076_v23  ;;  %v3777_v9 = vmul.f32 0.007598758, %v3757_v48  ;;  %v2836_v13 = vld [vmem:[#allocation3 + $0x1a9] sm:$0xff]  ;;  %v8136_v61 = vpop.permute.xlu0 %2155 }
 0x47e   : > { %v3813_v45 = vadd.f32 %v3733_v1, %v8084_v25  ;;  %v2907_v49 = vadd.f32 %v2867_v54, %v2787_v58  ;;  %v2955_v26 = vld [vmem:[#allocation3 + $0x1a2] sm:$0xff]  ;;  %v3905_v36 = vadd.f32 %v3865_v16, %v3805_v59  ;;  %v3874_v62 = vmul.f32 0.0010283801, %v3841_v42  ;;  %v8134_v17 = vpop.permute.xlu1 %2153 }
 0x47f   : > { %v3814_v33 = vadd.f32 %v3781_v52, %v3734_v11  ;;  %v8131_v21 = vld [vmem:[#allocation3 + $0x128] sm:$0xff]  ;;  %v2915_v34 = vadd.f32 %v2875_v57, %v2795_v60  ;;  %v3492_v39 = vadd.f32 %v8054_v19, %v3372_v40  ;;  %v3806_v23 = vadd.f32 %v3777_v9, %v3726_v30 }
 0x480   : > { %v3913_v35 = vadd.f32 %v3873_v12, %v3813_v45  ;;  %v2796_v25 = vmul.f32 0.0010283801, %v8125_v28  ;;  %v2828_v0 = vld [vmem:[#allocation3 + $0x129] sm:$0xff]  ;;  %v2987_v50 = vmul.f32 0.036000773, %v2947_v37  ;;  %v3791_v4 = vadd.f32 %v3711_v3, %v7948_v22 }
 0x481   : > { %v3067_v27 = vld [vmem:[#allocation3 + $0x123] sm:$0xff]  ;;  %v8139_v53 = vmul.f32 0.007598758, %v2836_v13  ;;  %v2995_v16 = vmul.f32 0.036000773, %v2955_v26  ;;  %v3799_v24 = vadd.f32 %v3719_v51, %v7950_v29  ;;  %v3914_v14 = vadd.f32 %v3874_v62, %v3814_v33  ;;  %v8149_v59 = vpop.permute.xlu0 %2159 }
 0x482   : > { %v3075_v7 = vld [vmem:[#allocation3 + $0x1a3] sm:$0xff]  ;;  %v3961_v19 = vsub.f32 %v3913_v35, %v7937_v5  ;;  %v3866_v18 = vmul.f32 0.0010283801, %v3837_v47  ;;  %v3027_v40 = vadd.f32 %v2987_v50, %v2907_v49  ;;  %v2788_v56 = vmul.f32 0.0010283801, %v8131_v21  ;;  %v8147_v44 = vpop.permute.xlu1 %2157  ;;  %v3068_v50 = vld [vmem:[#allocation3 + $0x12b] sm:$0xff] }
 0x483   : > { %v8145_v46 = vmul.f32 0.007598758, %v2828_v0  ;;  %v3035_v32 = vadd.f32 %v2995_v16, %v2915_v34  ;;  %v3107_v58 = vmul.f32 0.10936069, %v3067_v27  ;;  %v3953_v48 = vsub.f32 %v3905_v36, %v7954_v43  ;;  %v8152_v52 = vld [vmem:[#allocation3 + $0x1aa] sm:$0xff]  ;;  %v9784_v33 = vld [vmem:[#allocation125_spill] sm:$0xff] }
 0x484   : > { %v3906_v22 = vadd.f32 %v3866_v18, %v3806_v23  ;;  %v3115_v29 = vmul.f32 0.10936069, %v3075_v7  ;;  %v3187_v5 = vld [vmem:[#allocation3 + $0x124] sm:$0xff]  ;;  %v8155_v60 = vadd.f32 %v8060_v6, %v3380_v55  ;;  %v2916_v3 = vadd.f32 %v8139_v53, %v2796_v25 }
 0x485   : > { %v3147_v1 = vadd.f32 %v3107_v58, %v3027_v40  ;;  %v3195_v30 = vld [vmem:[#allocation3 + $0x1a4] sm:$0xff]  ;;  %v8159_v11 = vadd.f32 %v8021_v63, %v3791_v4  ;;  %v8162_v42 = vadd.f32 %v8024_v38, %v3799_v24  ;;  %v4033_v54 = vadd.f32 %v3961_v19, %v3953_v48  ;;  %v8186_v26 = vpop.permute.xlu0 %2163  ;;  %v3196_v48 = vld [vmem:[#allocation3 + $0x1ac] sm:$0xff] }
 0x486   : > { %v3962_v43 = vsub.f32 %v3914_v14, %v7939_v41  ;;  %v8165_v12 = vld [vmem:[#allocation3 + $0x12a] sm:$0xff]  ;;  %v3155_v57 = vadd.f32 %v3115_v29, %v3035_v32  ;;  %v8168_v6 = vadd.f32 %v8062_v31, %v3492_v39  ;;  %v2908_v63 = vadd.f32 %v8145_v46, %v2788_v56  ;;  %v8184_v31 = vpop.permute.xlu1 %2161  ;;  %v9787_v40 = vld [vmem:[#allocation133_spill] sm:$0xff] }
 0x487   : > { %v3307_v37 = vld [vmem:[#allocation3 + $0x125] sm:$0xff]  ;;  %v2996_v45 = vmul.f32 0.036000773, %v8152_v52  ;;  %v3227_v38 = vmul.f32 0.21300554, %v3187_v5  ;;  %v8178_v41 = vadd.f32 %v8111_v8, %v9784_v33  ;;  %v8196_v56 = vadd.f32 %v8134_v17, %v9787_v40  ;;  %v3436_v40 = vld [vmem:[#allocation3 + $0x1ae] sm:$0xff] }
 0x488   : > { %v9783_v51 = vld [vmem:[#allocation122_spill] sm:$0xff]  ;;  %v3235_v47 = vmul.f32 0.21300554, %v3195_v30  ;;  %v2988_v34 = vmul.f32 0.036000773, %v8165_v12 }
 0x489   : > { %v8172_v55 = vadd.f32 %v8109_v20, %v9783_v51  ;;  %v3315_v9 = vld [vmem:[#allocation3 + $0x1a5] sm:$0xff]  ;;  %v3954_v20 = vsub.f32 %v3906_v22, %v7956_v10  ;;  %v3036_v39 = vadd.f32 %v2996_v45, %v2916_v3  ;;  %v3267_v35 = vadd.f32 %v3227_v38, %v3147_v1  ;;  %v8198_v58 = vpop.permute.xlu0 %2311 }
 0x48a   : > { %v9785_v13 = vld [vmem:[#allocation126_spill] sm:$0xff]  ;;  %v3347_v23 = vmul.f32 0.26601171, %v3307_v37  ;;  %v4041_v25 = vadd.f32 0.0009, %v4033_v54  ;;  %v3028_v7 = vadd.f32 %v2988_v34, %v2908_v63  ;;  %v2166_v32 = vpop.permute.xlu1 %2165 }
 0x48b   : > { %v8182_v49 = vadd.f32 %v8120_v2, %v9785_v13  ;;  %v3076_v36 = vld [vmem:[#allocation3 + $0x1ab] sm:$0xff]  ;;  %v4034_v0 = vadd.f32 %v3962_v43, %v3954_v20  ;;  %v3275_v2 = vadd.f32 %v3235_v47, %v3155_v57  ;;  %v3355_v27 = vmul.f32 0.26601171, %v3315_v9  ;;  %v9790_v13 = vld [vmem:[#allocation137_spill] sm:$0xff] }
 0x48c   : > { %v3427_v62 = vld [vmem:[#allocation3 + $0x126] sm:$0xff]  ;;  %v3116_v4 = vmul.f32 0.10936069, %v3076_v36  ;;  %v3387_v24 = vadd.f32 %v3347_v23, %v3267_v35  ;;  %v3108_v5 = vmul.f32 0.10936069, %v3068_v50  ;;  %v8210_v20 = vadd.f32 %v8147_v44, %v9790_v13 }
 0x48d   : > { %v3435_v8 = vld [vmem:[#allocation3 + $0x1a6] sm:$0xff]  ;;  %v3467_v19 = vmul.f32 0.21300554, %v3427_v62  ;;  %v3395_v22 = vadd.f32 %v3355_v27, %v3275_v2  ;;  %v4042_v57 = vadd.f32 0.0009, %v4034_v0  ;;  %v8212_v47 = vpop.permute.xlu0 %2315  ;;  %v3939_v50 = vmul.f32 %v8162_v42, %v8162_v42 }
 0x48e   : > { %v3547_v16 = vld [vmem:[#allocation3 + $0x127] sm:$0xff]  ;;  %v3475_v29 = vmul.f32 0.21300554, %v3435_v8  ;;  %v3156_v3 = vadd.f32 %v3116_v4, %v3036_v39  ;;  %v3148_v63 = vadd.f32 %v3108_v5, %v3028_v7  ;;  %v3236_v17 = vmul.f32 0.21300554, %v3196_v48  ;;  %v2314_v36 = vpop.permute.xlu1 %2313  ;;  %v3654_v48 = vld [vmem:[#allocation3 + $0xb0] sm:$0xff] }
 0x48f   : > { %v3555_v10 = vld [vmem:[#allocation3 + $0x1a7] sm:$0xff]  ;;  %v3507_v1 = vadd.f32 %v3467_v19, %v3387_v24  ;;  %v3587_v30 = vmul.f32 0.10936069, %v3547_v16  ;;  %v3687_v38 = vmul.f32 0.036000773, %v8131_v21 }
 0x490   : > { %v9786_v18 = vld [vmem:[#allocation130_spill] sm:$0xff]  ;;  %v3515_v37 = vadd.f32 %v3475_v29, %v3395_v22  ;;  %v3595_v51 = vmul.f32 0.10936069, %v3555_v10  ;;  %v3695_v34 = vmul.f32 0.036000773, %v8125_v28  ;;  %v3276_v8 = vadd.f32 %v3236_v17, %v3156_v3 }
 0x491   : > { %v8192_v14 = vadd.f32 %v8122_v15, %v9786_v18  ;;  %v9788_v54 = vld [vmem:[#allocation166_spill] sm:$0xff]  ;;  %v3627_v45 = vadd.f32 %v3587_v30, %v3507_v1  ;;  %v3867_v16 = vmul.f32 0.0010283801, %v8165_v12  ;;  %v2320_v4 = vpop.permute.xlu0 %2319  ;;  %v3875_v19 = vmul.f32 0.0010283801, %v8152_v52  ;;  %v9793_v12 = vld [vmem:[#allocation173_spill] sm:$0xff] }
 0x492   : > { %v8201_v43 = vmul.f32 %v4041_v25, %v9788_v54  ;;  %v3188_v15 = vld [vmem:[#allocation3 + $0x12c] sm:$0xff]  ;;  %v3635_v62 = vadd.f32 %v3595_v51, %v3515_v37  ;;  %v2318_v7 = vpop.permute.xlu1 %2317  ;;  %v3931_v10 = vmul.f32 %v8159_v11, %v8159_v11  ;;  %v8233_v18 = vmul.f32 %v8162_v42, %v8159_v11 }
 0x493   : > { %v9789_v9 = vld [vmem:[#allocation134_spill] sm:$0xff]  ;;  %v3228_v21 = vmul.f32 0.21300554, %v3188_v15  ;;  %v3727_v25 = vadd.f32 %v3687_v38, %v3627_v45  ;;  %v3620_v5 = vadd.f32 %v9793_v12, %v8155_v60  ;;  %v8241_v52 = vadd.f32 %v8186_v26, %v8178_v41 }
 0x494   : > { %v8206_v33 = vadd.f32 %v8136_v61, %v9789_v9  ;;  %v3316_v39 = vld [vmem:[#allocation3 + $0x1ad] sm:$0xff]  ;;  %4376 = vrcp.f32 %v8201_v43  ;;  %v3735_v44 = vadd.f32 %v3695_v34, %v3635_v62  ;;  %v4019_v1 = vadd.f32 %v3939_v50, %v3931_v10 }
 0x495   : > { %v9791_v35 = vld [vmem:[#allocation138_spill] sm:$0xff]  ;;  %v3268_v27 = vadd.f32 %v3228_v21, %v3148_v63  ;;  %v3807_v28 = vadd.f32 %v3727_v25, %v8145_v46  ;;  %v3476_v42 = vmul.f32 0.21300554, %v3436_v40  ;;  %v3680_v54 = vmul.f32 0.036000773, %v3654_v48  ;;  %v8247_v60 = vpop.permute.xlu0 %2323  ;;  %v3834_v21 = vld [vmem:[#allocation3 + $0xb2] sm:$0xff] }
 0x496   : > { %v8217_v23 = vadd.f32 %v8149_v59, %v9791_v35  ;;  %v9792_v61 = vld [vmem:[#allocation170_spill] sm:$0xff]  ;;  %v3356_v59 = vmul.f32 0.26601171, %v3316_v39  ;;  %v3815_v24 = vadd.f32 %v3735_v44, %v8139_v53  ;;  %v2244_v53 = vadd.f32 %v8184_v31, %v8172_v55  ;;  %v2322_v15 = vpop.permute.xlu1 %2321  ;;  %v3830_v35 = vld [vmem:[#allocation3 + $0x32] sm:$0xff] }
 0x497   : > { %v8221_v0 = vmul.f32 %v4042_v57, %v9792_v61  ;;  %v3308_v2 = vld [vmem:[#allocation3 + $0x12d] sm:$0xff]  ;;  %v3907_v22 = vadd.f32 %v3867_v16, %v3807_v28  ;;  %v8245_v57 = vadd.f32 %v2166_v32, %v8182_v49  ;;  %v3979_v31 = vmul.f32 2.0, %v8233_v18 }
 0x498   : > { %v3348_v46 = vmul.f32 0.26601171, %v3308_v2  ;;  %v3396_v29 = vadd.f32 %v3356_v59, %v3276_v8  ;;  %v3915_v3 = vadd.f32 %v3875_v19, %v3815_v24  ;;  %v3428_v30 = vld [vmem:[#allocation3 + $0x12e] sm:$0xff]  ;;  %v3720_v13 = vadd.f32 %v3680_v54, %v3620_v5 }
 0x499   : > { %4378 = vrcp.f32 %v8221_v0  ;;  %v3955_v37 = vsub.f32 %v3907_v22, %v3931_v10  ;;  %v3556_v41 = vld [vmem:[#allocation3 + $0x1af] sm:$0xff]  ;;  %v3468_v63 = vmul.f32 0.21300554, %v3428_v30  ;;  %v2399_v49 = vadd.f32 %v8198_v58, %v8192_v14 }
 0x49a   : > { %v3388_v11 = vadd.f32 %v3348_v46, %v3268_v27  ;;  %v3963_v55 = vsub.f32 %v3915_v3, %v3939_v50  ;;  %v3750_v26 = vld [vmem:[#allocation3 + $0x31] sm:$0xff]  ;;  %v3516_v17 = vadd.f32 %v3476_v42, %v3396_v29  ;;  %v2400_v32 = vadd.f32 %v2314_v36, %v8196_v56  ;;  %v8259_v2 = vpop.permute.xlu1 %2325  ;;  %v2512_v27 = vpop.permute.xlu0 %2511  ;;  %v8272_v42 = vld [vmem:[#allocation3 + $0x48] sm:$0xff] }
 0x49b   : > { %v3754_v51 = vld [vmem:[#allocation3 + $0xb1] sm:$0xff]  ;;  %v4027_v62 = vadd.f32 0.0001, %v4019_v1  ;;  %v3596_v25 = vmul.f32 0.10936069, %v3556_v41  ;;  %v2599_v36 = vadd.f32 %v2512_v27, %v2399_v49  ;;  %v2402_v19 = vadd.f32 %v2318_v7, %v8210_v20  ;;  %v2741_v41 = vld [vmem:[#allocation3 + $0xc0] sm:$0xff] }
 0x49c   : > { %v3548_v45 = vld [vmem:[#allocation3 + $0x12f] sm:$0xff]  ;;  %v4035_v34 = vadd.f32 %v3963_v55, %v3955_v37  ;;  %v3508_v8 = vadd.f32 %v3468_v63, %v3388_v11  ;;  %v3770_v61 = vmul.f32 0.007598758, %v3750_v26  ;;  %v3774_v44 = vmul.f32 0.007598758, %v3754_v51  ;;  %v2733_v11 = vld [vmem:[#allocation3 + $0x40] sm:$0xff] }
 0x49d   : > { %v9794_v38 = vld [vmem:[#allocation174_spill] sm:$0xff]  ;;  %v8261_v14 = vadd.f32 0.0001, %v3979_v31  ;;  %v3588_v58 = vmul.f32 0.10936069, %v3548_v45  ;;  %v3636_v28 = vadd.f32 %v3596_v25, %v3516_v17  ;;  %v2403_v10 = vadd.f32 %v2320_v4, %v8217_v23  ;;  %2721 = vst.msk [vmem:[#allocation3 + $0x205] sm:$0xff] %vm2607_vm2, %v2599_v36 }
 0x49e   : > { %v3712_v9 = vadd.f32 %v9794_v38, %v8168_v6  ;;  %v3662_v39 = vld [vmem:[#allocation3 + $0x1b0] sm:$0xff]  ;;  %v8255_v50 = vpop.eup %4376  ;;  %v2401_v6 = vadd.f32 %v8212_v47, %v8206_v33  ;;  %v4043_v56 = vadd.f32 0.0009, %v4035_v34  ;;  %v3800_v24 = vadd.f32 %v3774_v44, %v3720_v13  ;;  %v2514_v1 = vpop.permute.xlu1 %2513  ;;  %v8276_v26 = vld [vmem:[#allocation3 + $0xc8] sm:$0xff]  ;;  %v2749_v51 = vld [vmem:[#allocation3 + $0x140] sm:$0xff] }
 0x49f   : > { %v3658_v16 = vld [vmem:[#allocation3 + $0x130] sm:$0xff]  ;;  %v3852_v48 = vmul.f32 0.0010283801, %v3830_v35  ;;  %v3860_v22 = vmul.f32 0.0010283801, %v3834_v21  ;;  %v8268_v33 = vmul.f32 %v8255_v50, %v8201_v43  ;;  %v3628_v46 = vadd.f32 %v3588_v58, %v3508_v8  ;;  %v2516_v20 = vpop.permute.xlu0 %2515  ;;  %v8284_v45 = vld [vmem:[#allocation3 + $0x148] sm:$0xff] }
 0x4a0   : > { %v3792_v59 = vadd.f32 %v3770_v61, %v3712_v9  ;;  %v3758_v40 = vld [vmem:[#allocation3 + $0x131] sm:$0xff]  ;;  %v8270_v47 = vmul.f32 %v4043_v56, %v4027_v62  ;;  %v3696_v29 = vmul.f32 0.036000773, %v3662_v39  ;;  %v2404_v3 = vadd.f32 %v2322_v15, %v2244_v53  ;;  %v2757_v38 = vld [vmem:[#allocation3 + $0x1c0] sm:$0xff]  ;;  %v8297_v35 = vld [vmem:[#allocation3 + $0x1c8] sm:$0xff] }
 0x4a1   : > { %v3762_v12 = vld [vmem:[#allocation3 + $0x1b1] sm:$0xff]  ;;  %v3688_v7 = vmul.f32 0.036000773, %v3658_v16  ;;  %v3900_v30 = vadd.f32 %v3860_v22, %v3800_v24  ;;  %v2600_v43 = vadd.f32 %v2514_v1, %v2400_v32  ;;  %v2601_v37 = vadd.f32 %v2516_v20, %v2401_v6  ;;  %v2813_v27 = vld [vmem:[#allocation3 + $0x41] sm:$0xff] }
 0x4a2   : > { %v3838_v5 = vld [vmem:[#allocation3 + $0x132] sm:$0xff]  ;;  %v3892_v4 = vadd.f32 %v3852_v48, %v3792_v59  ;;  %v3736_v55 = vadd.f32 %v3696_v29, %v3636_v28  ;;  %v3778_v31 = vmul.f32 0.007598758, %v3758_v40  ;;  %v3782_v53 = vmul.f32 0.007598758, %v3762_v12  ;;  %v2518_v32 = vpop.permute.xlu1 %2517 }
 0x4a3   : > { %v3842_v23 = vld [vmem:[#allocation3 + $0x1b2] sm:$0xff]  ;;  %v8274_v54 = vpop.eup %4378  ;;  %v8278_v15 = vmul.f32 0.0010283801, %v3838_v5  ;;  %v8280_v63 = vmul.f32 %v3900_v30, %v3900_v30  ;;  %2722 = vst.msk [vmem:[#allocation3 + $0x20d] sm:$0xff] %vm2607_vm2, %v2600_v43  ;;  %2723 = vst.msk [vmem:[#allocation3 + $0x225] sm:$0xff] %vm2607_vm2, %v2601_v37  ;;  %4380 = vrcp.f32 %v8270_v47  ;;  %v2520_v62 = vpop.permute.xlu0 %2519  ;;  %v2602_v25 = vadd.f32 %v2518_v32, %v2402_v19 }
 0x4a4   : > { %v8282_v17 = vmul.f32 %v3900_v30, %v3892_v4  ;;  %v3876_v9 = vmul.f32 0.0010283801, %v3842_v23  ;;  %v8289_v13 = vmul.f32 0.0010283801, %v2733_v11  ;;  %v8292_v49 = vmul.f32 0.0010283801, %v8272_v42 }
 0x4a5   : > { %v8294_v34 = vmul.f32 %v3892_v4, %v3892_v4  ;;  %v8299_v21 = vmul.f32 0.0010283801, %v2741_v41  ;;  %v8302_v8 = vmul.f32 0.0010283801, %v8276_v26  ;;  %v2603_v61 = vadd.f32 %v2520_v62, %v2403_v10  ;;  %v2761_v56 = vld [vmem:[#allocation3 + $0x200] sm:$0xff]  ;;  %2724 = vst.msk [vmem:[#allocation3 + $0x22d] sm:$0xff] %vm2607_vm2, %v2602_v25 }
 0x4a6   : > { %v3980_v39 = vmul.f32 2.0, %v8282_v17  ;;  %v8304_v44 = vmul.f32 0.0010283801, %v2749_v51  ;;  %v8307_v6 = vmul.f32 0.0010283801, %v8284_v45  ;;  %v2841_v58 = vld [vmem:[#allocation3 + $0x201] sm:$0xff]  ;;  %v3728_v28 = vadd.f32 %v3688_v7, %v3628_v46  ;;  %v2522_v22 = vpop.permute.xlu1 %2521 }
 0x4a7   : > { %v2961_v36 = vld [vmem:[#allocation3 + $0x202] sm:$0xff]  ;;  %v3816_v16 = vadd.f32 %v3782_v53, %v3736_v55  ;;  %v4020_v59 = vadd.f32 %v8280_v63, %v8294_v34  ;;  %v8311_v24 = vmul.f32 0.0010283801, %v2757_v38  ;;  %v2405_v19 = vadd.f32 %v8247_v60, %v8241_v52  ;;  %2725 = vst.msk [vmem:[#allocation3 + $0x245] sm:$0xff] %vm2607_vm2, %v2603_v61  ;;  %v2524_v46 = vpop.permute.xlu0 %2523 }
 0x4a8   : > { %v2801_v10 = vmul.f32 0.0010283801, %v2761_v56  ;;  %v2881_v40 = vmul.f32 0.007598758, %v2841_v58  ;;  %v8318_v48 = vmul.f32 0.0010283801, %v8297_v35  ;;  %v4066_v5 = vmul.f32 %v8274_v54, %v8221_v0 }
 0x4a9   : > { %v3081_v29 = vld [vmem:[#allocation3 + $0x203] sm:$0xff]  ;;  %v4073_v12 = vsub.f32 2.0, %v8268_v33  ;;  %v8323_v1 = vadd.f32 0.0001, %v3980_v39  ;;  %v8325_v52 = vmul.f32 0.007598758, %v2813_v27  ;;  %v2604_v60 = vadd.f32 %v2522_v22, %v2404_v3 }
 0x4aa   : > { %v2605_v20 = vadd.f32 %v2524_v46, %v2405_v19  ;;  %v2921_v7 = vadd.f32 %v2881_v40, %v2801_v10  ;;  %v3001_v23 = vmul.f32 0.036000773, %v2961_v36  ;;  %v3201_v4 = vld [vmem:[#allocation3 + $0x204] sm:$0xff]  ;;  %v2406_v11 = vadd.f32 %v8259_v2, %v8245_v57  ;;  %v2526_v32 = vpop.permute.xlu1 %2525  ;;  %v3202_v39 = vld [vmem:[#allocation3 + $0x20c] sm:$0xff] }
 0x4ab   : > { %v3321_v30 = vld [vmem:[#allocation3 + $0x205] sm:$0xff]  ;;  %v3808_v33 = vadd.f32 %v3778_v31, %v3728_v28  ;;  %v3916_v41 = vadd.f32 %v3876_v9, %v3816_v16  ;;  %v8329_v51 = vadd.f32 0.0001, %v4020_v59  ;;  %2726 = vst.msk [vmem:[#allocation3 + $0x24d] sm:$0xff] %vm2607_vm2, %v2604_v60  ;;  %v3121_v38 = vmul.f32 0.10936069, %v3081_v29 }
 0x4ac   : > { %v2762_v43 = vld [vmem:[#allocation3 + $0x208] sm:$0xff]  ;;  %2727 = vst.msk [vmem:[#allocation3 + $0x265] sm:$0xff] %vm2607_vm2, %v2605_v20  ;;  %v3041_v53 = vadd.f32 %v3001_v23, %v2921_v7  ;;  %v3241_v57 = vmul.f32 0.21300554, %v3201_v4  ;;  %v4074_v25 = vsub.f32 2.0, %v4066_v5  ;;  %v2606_v31 = vadd.f32 %v2526_v32, %v2406_v11 }
 0x4ad   : > { %v2842_v37 = vld [vmem:[#allocation3 + $0x209] sm:$0xff]  ;;  %v2802_v0 = vmul.f32 0.0010283801, %v2762_v43  ;;  %v8335_v61 = vpop.eup %4380  ;;  %v3361_v28 = vmul.f32 0.26601171, %v3321_v30  ;;  %v3908_v19 = vadd.f32 %v8278_v15, %v3808_v33  ;;  %v3964_v10 = vsub.f32 %v3916_v41, %v8280_v63  ;;  %v2763_v33 = vld [vmem:[#allocation3 + $0x220] sm:$0xff] }
 0x4ae   : > { %v2962_v55 = vld [vmem:[#allocation3 + $0x20a] sm:$0xff]  ;;  %v8333_v3 = vmul.f32 0.007598758, %v2842_v37  ;;  %v3161_v56 = vadd.f32 %v3121_v38, %v3041_v53  ;;  %2728 = vst.msk [vmem:[#allocation3 + $0x26d] sm:$0xff] %vm2607_vm2, %v2606_v31  ;;  %v3242_v22 = vmul.f32 0.21300554, %v3202_v39  ;;  %v4067_v23 = vmul.f32 %v8335_v61, %v8270_v47 }
 0x4af   : > { %v3082_v62 = vld [vmem:[#allocation3 + $0x20b] sm:$0xff]  ;;  %v3002_v27 = vmul.f32 0.036000773, %v2962_v55  ;;  %v3701_v20 = vmul.f32 0.036000773, %v2762_v43  ;;  %v8344_v63 = vmul.f32 %v8255_v50, %v4073_v12  ;;  %v8347_v53 = vmul.f32 %v8274_v54, %v4074_v25  ;;  %v2843_v43 = vld [vmem:[#allocation3 + $0x221] sm:$0xff] }
 0x4b0   : > { %v3441_v2 = vld [vmem:[#allocation3 + $0x206] sm:$0xff]  ;;  %v2922_v9 = vadd.f32 %v8333_v3, %v2802_v0  ;;  %v3122_v36 = vmul.f32 0.10936069, %v3082_v62  ;;  %v3442_v59 = vld [vmem:[#allocation3 + $0x20e] sm:$0xff]  ;;  %v3281_v46 = vadd.f32 %v3241_v57, %v3161_v56  ;;  %v3881_v7 = vmul.f32 0.0010283801, %v2962_v55 }
 0x4b1   : > { %v3561_v58 = vld [vmem:[#allocation3 + $0x207] sm:$0xff]  ;;  %v3481_v29 = vmul.f32 0.21300554, %v3441_v2  ;;  %v3562_v5 = vld [vmem:[#allocation3 + $0x20f] sm:$0xff]  ;;  %v3482_v37 = vmul.f32 0.21300554, %v3442_v59  ;;  %v3956_v55 = vsub.f32 %v3908_v19, %v8294_v34  ;;  %v8354_v54 = vadd.f32 %v8325_v52, %v8289_v13 }
 0x4b2   : > { %v3322_v16 = vld [vmem:[#allocation3 + $0x20d] sm:$0xff]  ;;  %v3042_v40 = vadd.f32 %v3002_v27, %v2922_v9  ;;  %v3601_v60 = vmul.f32 0.10936069, %v3561_v58  ;;  %v3401_v30 = vadd.f32 %v3361_v28, %v3281_v46  ;;  %v3602_v41 = vmul.f32 0.10936069, %v3562_v5  ;;  %v2963_v2 = vld [vmem:[#allocation3 + $0x222] sm:$0xff] }
 0x4b3   : > { %v3362_v11 = vmul.f32 0.26601171, %v3322_v16  ;;  %v3665_v15 = vld [vmem:[#allocation3 + $0x210] sm:$0xff]  ;;  %v2764_v38 = vld [vmem:[#allocation3 + $0x228] sm:$0xff]  ;;  %v2803_v62 = vmul.f32 0.0010283801, %v2763_v33  ;;  %v4036_v12 = vadd.f32 %v3964_v10, %v3956_v55 }
 0x4b4   : > { %v3162_v4 = vadd.f32 %v3122_v36, %v3042_v40  ;;  %v3765_v0 = vld [vmem:[#allocation3 + $0x211] sm:$0xff]  ;;  %v3521_v47 = vadd.f32 %v3481_v29, %v3401_v30  ;;  %v2804_v39 = vmul.f32 0.0010283801, %v2764_v38  ;;  %v2844_v57 = vld [vmem:[#allocation3 + $0x229] sm:$0xff]  ;;  %v2883_v9 = vmul.f32 0.007598758, %v2843_v43 }
 0x4b5   : > { %v3845_v31 = vld [vmem:[#allocation3 + $0x212] sm:$0xff]  ;;  %v8350_v27 = vmul.f32 0.007598758, %v2844_v57  ;;  %v2964_v50 = vld [vmem:[#allocation3 + $0x22a] sm:$0xff]  ;;  %v3702_v58 = vmul.f32 0.036000773, %v3665_v15 }
 0x4b6   : > { %v3282_v32 = vadd.f32 %v3242_v22, %v3162_v4  ;;  %v3641_v25 = vadd.f32 %v3601_v60, %v3521_v47  ;;  %v3083_v34 = vld [vmem:[#allocation3 + $0x223] sm:$0xff]  ;;  %v3084_v36 = vld [vmem:[#allocation3 + $0x22b] sm:$0xff]  ;;  %v4075_v28 = vsub.f32 2.0, %v4067_v23  ;;  %v2923_v16 = vadd.f32 %v2883_v9, %v2803_v62 }
 0x4b7   : > { %v2924_v59 = vadd.f32 %v8350_v27, %v2804_v39  ;;  %v3003_v19 = vmul.f32 0.036000773, %v2963_v2  ;;  %v3004_v40 = vmul.f32 0.036000773, %v2964_v50  ;;  %v3203_v22 = vld [vmem:[#allocation3 + $0x224] sm:$0xff]  ;;  %v3204_v4 = vld [vmem:[#allocation3 + $0x22c] sm:$0xff] }
 0x4b8   : > { %v3402_v56 = vadd.f32 %v3362_v11, %v3282_v32  ;;  %v3741_v46 = vadd.f32 %v3701_v20, %v3641_v25  ;;  %v3785_v5 = vmul.f32 0.007598758, %v3765_v0  ;;  %v3882_v10 = vmul.f32 0.0010283801, %v3845_v31  ;;  %v3323_v30 = vld [vmem:[#allocation3 + $0x225] sm:$0xff]  ;;  %v3324_v47 = vld [vmem:[#allocation3 + $0x22d] sm:$0xff] }
 0x4b9   : > { %v3043_v13 = vadd.f32 %v3003_v19, %v2923_v16  ;;  %v3044_v52 = vadd.f32 %v3004_v40, %v2924_v59  ;;  %v3123_v60 = vmul.f32 0.10936069, %v3083_v34  ;;  %v3124_v11 = vmul.f32 0.10936069, %v3084_v36  ;;  %v3443_v15 = vld [vmem:[#allocation3 + $0x226] sm:$0xff]  ;;  %v3444_v9 = vld [vmem:[#allocation3 + $0x22e] sm:$0xff] }
 0x4ba   : > { %v3522_v29 = vadd.f32 %v3482_v37, %v3402_v56  ;;  %v3563_v33 = vld [vmem:[#allocation3 + $0x227] sm:$0xff]  ;;  %v3821_v23 = vadd.f32 %v3741_v46, %v8333_v3  ;;  %v3243_v55 = vmul.f32 0.21300554, %v3203_v22  ;;  %v8359_v32 = vmul.f32 %v8335_v61, %v4075_v28  ;;  %v3564_v25 = vld [vmem:[#allocation3 + $0x22f] sm:$0xff] }
 0x4bb   : > { %v3163_v20 = vadd.f32 %v3123_v60, %v3043_v13  ;;  %v3164_v37 = vadd.f32 %v3124_v11, %v3044_v52  ;;  %v3244_v0 = vmul.f32 0.21300554, %v3204_v4  ;;  %v3363_v62 = vmul.f32 0.26601171, %v3323_v30  ;;  %v9795_v16 = vld [vmem:[#allocation161_spill] sm:$0xff]  ;;  %v3766_v19 = vld [vmem:[#allocation3 + $0x231] sm:$0xff] }
 0x4bc   : > { %v3642_v43 = vadd.f32 %v3602_v41, %v3522_v29  ;;  %v3921_v39 = vadd.f32 %v3881_v7, %v3821_v23  ;;  %v3483_v2 = vmul.f32 0.21300554, %v3443_v15  ;;  %v3603_v31 = vmul.f32 0.10936069, %v3563_v33  ;;  %v3666_v41 = vld [vmem:[#allocation3 + $0x230] sm:$0xff]  ;;  %v2765_v4 = vld [vmem:[#allocation3 + $0x240] sm:$0xff] }
 0x4bd   : > { %v3283_v56 = vadd.f32 %v3243_v55, %v3163_v20  ;;  %v3284_v34 = vadd.f32 %v3244_v0, %v3164_v37  ;;  %v3703_v36 = vmul.f32 0.036000773, %v2764_v38  ;;  %v3364_v3 = vmul.f32 0.26601171, %v3324_v47  ;;  %v3846_v40 = vld [vmem:[#allocation3 + $0x232] sm:$0xff]  ;;  %v8365_v38 = vld [vmem:[#allocation3 + $0x248] sm:$0xff] }
 0x4be   : > { %v3742_v57 = vadd.f32 %v3702_v58, %v3642_v43  ;;  %v3969_v59 = vsub.f32 %v3921_v39, %v9795_v16  ;;  %v3883_v28 = vmul.f32 0.0010283801, %v2964_v50  ;;  %v4044_v22 = vadd.f32 0.0009, %v4036_v12  ;;  %v2814_v11 = vld [vmem:[#allocation3 + $0x49] sm:$0xff]  ;;  %v2821_v15 = vld [vmem:[#allocation3 + $0xc1] sm:$0xff] }
 0x4bf   : > { %v3403_v46 = vadd.f32 %v3363_v62, %v3283_v56  ;;  %v3404_v29 = vadd.f32 %v3364_v3, %v3284_v34  ;;  %v3484_v7 = vmul.f32 0.21300554, %v3444_v9  ;;  %v3604_v58 = vmul.f32 0.10936069, %v3564_v25  ;;  %v2822_v12 = vld [vmem:[#allocation3 + $0xc9] sm:$0xff]  ;;  %v2829_v43 = vld [vmem:[#allocation3 + $0x141] sm:$0xff] }
 0x4c0   : > { %v3822_v61 = vadd.f32 %v3785_v5, %v3742_v57  ;;  %v3993_v30 = vmul.f32 2.0, %v3969_v59  ;;  %v3704_v52 = vmul.f32 0.036000773, %v3666_v41  ;;  %v8363_v60 = vmul.f32 %v4044_v22, %v8329_v51  ;;  %v9796_v47 = vld [vmem:[#allocation162_spill] sm:$0xff]  ;;  %v2837_v0 = vld [vmem:[#allocation3 + $0x1c1] sm:$0xff] }
 0x4c1   : > { %v3523_v5 = vadd.f32 %v3483_v2, %v3403_v46  ;;  %v3524_v50 = vadd.f32 %v3484_v7, %v3404_v29  ;;  %v3786_v33 = vmul.f32 0.007598758, %v3766_v19  ;;  %v3884_v23 = vmul.f32 0.0010283801, %v3846_v40  ;;  %v2830_v37 = vld [vmem:[#allocation3 + $0x149] sm:$0xff]  ;;  %v2845_v9 = vld [vmem:[#allocation3 + $0x241] sm:$0xff] }
 0x4c2   : > { %v3922_v13 = vadd.f32 %v3882_v10, %v3822_v61  ;;  %v4001_v55 = vadd.f32 0.0009, %v3993_v30  ;;  %4382 = vrcp.f32 %v8363_v60  ;;  %v2805_v10 = vmul.f32 0.0010283801, %v2765_v4  ;;  %v2838_v57 = vld [vmem:[#allocation3 + $0x1c9] sm:$0xff] }
 0x4c3   : > { %v3643_v51 = vadd.f32 %v3603_v31, %v3523_v5  ;;  %v3644_v62 = vadd.f32 %v3604_v58, %v3524_v50  ;;  %v2806_v39 = vmul.f32 0.0010283801, %v8365_v38  ;;  %v8370_v2 = vmul.f32 0.007598758, %v2814_v11  ;;  %v9797_v25 = vld [vmem:[#allocation165_spill] sm:$0xff]  ;;  %v8388_v5 = vld [vmem:[#allocation3 + $0x4a] sm:$0xff] }
 0x4c4   : > { %v3970_v20 = vsub.f32 %v3922_v13, %v9796_v47  ;;  %v4009_v56 = vmul.f32 %v4001_v55, %v9797_v25  ;;  %v2846_v3 = vld [vmem:[#allocation3 + $0x249] sm:$0xff]  ;;  %v2861_v41 = vmul.f32 0.007598758, %v2821_v15  ;;  %v8373_v16 = vmul.f32 0.007598758, %v2822_v12 }
 0x4c5   : > { %v3743_v59 = vadd.f32 %v3703_v36, %v3643_v51  ;;  %v3744_v61 = vadd.f32 %v3704_v52, %v3644_v62  ;;  %v2869_v19 = vmul.f32 0.007598758, %v2829_v43  ;;  %v8375_v40 = vmul.f32 0.007598758, %v2830_v37  ;;  %v9798_v11 = vld [vmem:[#allocation169_spill] sm:$0xff]  ;;  %v8393_v55 = vld [vmem:[#allocation3 + $0xca] sm:$0xff] }
 0x4c6   : > { %v3994_v34 = vmul.f32 2.0, %v3970_v20  ;;  %v4089_v31 = vmul.f32 %v8344_v63, %v4009_v56  ;;  %v2877_v46 = vmul.f32 0.007598758, %v2837_v0  ;;  %v8378_v29 = vmul.f32 0.007598758, %v2838_v57  ;;  %v2933_v63 = vld [vmem:[#allocation3 + $0x42] sm:$0xff] }
 0x4c7   : > { %v3823_v7 = vadd.f32 %v3743_v59, %v8350_v27  ;;  %v3824_v58 = vadd.f32 %v3786_v33, %v3744_v61  ;;  %v2885_v4 = vmul.f32 0.007598758, %v2845_v9  ;;  %v8381_v30 = vmul.f32 0.007598758, %v2846_v3  ;;  %v2941_v43 = vld [vmem:[#allocation3 + $0xc2] sm:$0xff]  ;;  %v8405_v0 = vld [vmem:[#allocation3 + $0x1ca] sm:$0xff] }
 0x4c8   : > { %v4002_v22 = vadd.f32 0.0009, %v3994_v34  ;;  %v4097_v13 = vsel %vm2607_vm2, %v4089_v31, 0.0  ;;  %v2894_v52 = vadd.f32 %v8370_v2, %v8292_v49  ;;  %v2901_v15 = vadd.f32 %v2861_v41, %v8299_v21  ;;  %v2957_v37 = vld [vmem:[#allocation3 + $0x1c2] sm:$0xff] }
 0x4c9   : > { %4098 = vadd.xlane.f32.xlu0 %v4097_v13  ;;  %v3923_v50 = vadd.f32 %v3883_v28, %v3823_v7  ;;  %v3924_v12 = vadd.f32 %v3884_v23, %v3824_v58  ;;  %v2902_v27 = vadd.f32 %v8373_v16, %v8302_v8  ;;  %v2909_v33 = vadd.f32 %v2869_v19, %v8304_v44  ;;  %v2949_v28 = vld [vmem:[#allocation3 + $0x142] sm:$0xff]  ;;  %v8401_v23 = vld [vmem:[#allocation3 + $0x14a] sm:$0xff] }
 0x4ca   : > { %v4010_v36 = vmul.f32 %v4002_v22, %v9798_v11  ;;  %v2910_v49 = vadd.f32 %v8375_v40, %v8307_v6  ;;  %v2917_v21 = vadd.f32 %v2877_v46, %v8311_v24  ;;  %v2918_v20 = vadd.f32 %v8378_v29, %v8318_v48  ;;  %v2965_v56 = vld [vmem:[#allocation3 + $0x242] sm:$0xff]  ;;  %v3054_v13 = vld [vmem:[#allocation3 + $0x4b] sm:$0xff] }
 0x4cb   : > { %v3971_v8 = vsub.f32 %v3923_v50, %v8233_v18  ;;  %v3972_v44 = vsub.f32 %v3924_v12, %v8282_v17  ;;  %v2973_v51 = vmul.f32 0.036000773, %v2933_v63  ;;  %v2925_v24 = vadd.f32 %v2885_v4, %v2805_v10  ;;  %v8411_v17 = vld [vmem:[#allocation3 + $0x24a] sm:$0xff] }
 0x4cc   : > { %v4090_v47 = vmul.f32 %v8347_v53, %v4010_v36  ;;  %v2974_v53 = vmul.f32 0.036000773, %v8388_v5  ;;  %v4383_v62 = vpop.eup %4382  ;;  %v2981_v57 = vmul.f32 0.036000773, %v2941_v43  ;;  %v2982_v48 = vmul.f32 0.036000773, %v8393_v55 }
 0x4cd   : > { %v3995_v9 = vmul.f32 2.0, %v3971_v8  ;;  %v3996_v25 = vmul.f32 2.0, %v3972_v44  ;;  %v4068_v18 = vmul.f32 %v4383_v62, %v8363_v60  ;;  %v2989_v34 = vmul.f32 0.036000773, %v2949_v28  ;;  %v3053_v4 = vld [vmem:[#allocation3 + $0x43] sm:$0xff]  ;;  %v3062_v12 = vld [vmem:[#allocation3 + $0xcb] sm:$0xff] }
 0x4ce   : > { %v4100_v6 = vsel %vm2607_vm2, %v4090_v47, 0.0  ;;  %v2926_v3 = vadd.f32 %v8381_v30, %v2806_v39  ;;  %v2990_v41 = vmul.f32 0.036000773, %v8401_v23  ;;  %v2997_v59 = vmul.f32 0.036000773, %v2957_v37  ;;  %v3061_v50 = vld [vmem:[#allocation3 + $0xc3] sm:$0xff] }
 0x4cf   : > { %4101 = vadd.xlane.f32.xlu1 %v4100_v6  ;;  %v2998_v61 = vmul.f32 0.036000773, %v8405_v0  ;;  %v4003_v10 = vadd.f32 0.0009, %v3995_v9  ;;  %v4004_v19 = vadd.f32 0.0009, %v3996_v25  ;;  %v3013_v22 = vadd.f32 %v2973_v51, %v8354_v54 }
 0x4d0   : > { %v4076_v31 = vsub.f32 2.0, %v4068_v18  ;;  %v3005_v46 = vmul.f32 0.036000773, %v2965_v56  ;;  %v3006_v7 = vmul.f32 0.036000773, %v8411_v17  ;;  %v3014_v60 = vadd.f32 %v2974_v53, %v2894_v52  ;;  %v3069_v43 = vld [vmem:[#allocation3 + $0x143] sm:$0xff] }
 0x4d1   : > { %v3021_v58 = vadd.f32 %v2981_v57, %v2901_v15  ;;  %v4011_v11 = vmul.f32 %v4003_v10, %v8261_v14  ;;  %v4012_v39 = vmul.f32 %v4004_v19, %v8323_v1  ;;  %v3022_v63 = vadd.f32 %v2982_v48, %v2902_v27  ;;  %v3070_v44 = vld [vmem:[#allocation3 + $0x14b] sm:$0xff]  ;;  %v3077_v37 = vld [vmem:[#allocation3 + $0x1c3] sm:$0xff] }
 0x4d2   : > { %v4084_v36 = vmul.f32 %v4383_v62, %v4076_v31  ;;  %v3029_v47 = vadd.f32 %v2989_v34, %v2909_v33  ;;  %v3030_v28 = vadd.f32 %v2990_v41, %v2910_v49  ;;  %v3037_v8 = vadd.f32 %v2997_v59, %v2917_v21  ;;  %v3078_v51 = vld [vmem:[#allocation3 + $0x1cb] sm:$0xff]  ;;  %v3085_v53 = vld [vmem:[#allocation3 + $0x243] sm:$0xff] }
 0x4d3   : > { %v3038_v54 = vadd.f32 %v2998_v61, %v2918_v20  ;;  %v4091_v52 = vmul.f32 %v8359_v32, %v4011_v11  ;;  %v3086_v6 = vld [vmem:[#allocation3 + $0x24b] sm:$0xff]  ;;  %v3093_v14 = vmul.f32 0.10936069, %v3053_v4  ;;  %v3094_v57 = vmul.f32 0.10936069, %v3054_v13 }
 0x4d4   : > { %v4092_v15 = vmul.f32 %v4084_v36, %v4012_v39  ;;  %v3045_v1 = vadd.f32 %v3005_v46, %v2925_v24  ;;  %v3101_v62 = vmul.f32 0.10936069, %v3061_v50  ;;  %v3102_v27 = vmul.f32 0.10936069, %v3062_v12  ;;  %v3173_v9 = vld [vmem:[#allocation3 + $0x44] sm:$0xff]  ;;  %v3174_v25 = vld [vmem:[#allocation3 + $0x4c] sm:$0xff] }
 0x4d5   : > { %v3109_v48 = vmul.f32 0.10936069, %v3069_v43  ;;  %v3181_v33 = vld [vmem:[#allocation3 + $0xc4] sm:$0xff]  ;;  %v4103_v49 = vsel %vm2607_vm2, %v4091_v52, 0.0  ;;  %v3046_v21 = vadd.f32 %v3006_v7, %v2926_v3  ;;  %v3110_v20 = vmul.f32 0.10936069, %v3070_v44 }
 0x4d6   : > { %v3117_v18 = vmul.f32 0.10936069, %v3077_v37  ;;  %v3182_v56 = vld [vmem:[#allocation3 + $0xcc] sm:$0xff]  ;;  %4104 = vadd.xlane.f32.xlu0 %v4103_v49  ;;  %v4106_v32 = vsel %vm2607_vm2, %v4092_v15, 0.0  ;;  %v3118_v34 = vmul.f32 0.10936069, %v3078_v51  ;;  %v3133_v59 = vadd.f32 %v3093_v14, %v3013_v22 }
 0x4d7   : > { %v3125_v41 = vmul.f32 0.10936069, %v3085_v53  ;;  %v3189_v61 = vld [vmem:[#allocation3 + $0x144] sm:$0xff]  ;;  %v3126_v24 = vmul.f32 0.10936069, %v3086_v6  ;;  %v3134_v10 = vadd.f32 %v3094_v57, %v3014_v60  ;;  %v3141_v19 = vadd.f32 %v3101_v62, %v3021_v58  ;;  %v3190_v46 = vld [vmem:[#allocation3 + $0x14c] sm:$0xff] }
 0x4d8   : > { %v3142_v31 = vadd.f32 %v3102_v27, %v3022_v63  ;;  %v3197_v4 = vld [vmem:[#allocation3 + $0x1c4] sm:$0xff]  ;;  %v3198_v13 = vld [vmem:[#allocation3 + $0x1cc] sm:$0xff]  ;;  %v3149_v11 = vadd.f32 %v3109_v48, %v3029_v47  ;;  %v8423_v39 = vadd.f32 %v3110_v20, %v3030_v28  ;;  %v3157_v3 = vadd.f32 %v3117_v18, %v3037_v8 }
 0x4d9   : > { %v8425_v7 = vadd.f32 %v3118_v34, %v3038_v54  ;;  %v3205_v36 = vld [vmem:[#allocation3 + $0x244] sm:$0xff]  ;;  %v3206_v50 = vld [vmem:[#allocation3 + $0x24c] sm:$0xff]  ;;  %v3165_v44 = vadd.f32 %v3125_v41, %v3045_v1  ;;  %v3213_v22 = vmul.f32 0.21300554, %v3173_v9  ;;  %v3214_v37 = vmul.f32 0.21300554, %v3174_v25 }
 0x4da   : > { %v3293_v12 = vld [vmem:[#allocation3 + $0x45] sm:$0xff]  ;;  %v3221_v51 = vmul.f32 0.21300554, %v3181_v33  ;;  %4107 = vadd.xlane.f32.xlu0 %v4106_v32  ;;  %v8427_v63 = vadd.f32 %v3126_v24, %v3046_v21  ;;  %v3222_v52 = vmul.f32 0.21300554, %v3182_v56 }
 0x4db   : > { %v3301_v43 = vld [vmem:[#allocation3 + $0xc5] sm:$0xff]  ;;  %v3229_v47 = vmul.f32 0.21300554, %v3189_v61  ;;  %v3237_v28 = vmul.f32 0.21300554, %v3197_v4  ;;  %v3253_v53 = vadd.f32 %v3213_v22, %v3133_v59  ;;  %v8431_v33 = vadd.f32 %v3214_v37, %v3134_v10 }
 0x4dc   : > { %v3309_v60 = vld [vmem:[#allocation3 + $0x145] sm:$0xff]  ;;  %v3230_v8 = vmul.f32 0.21300554, %v3190_v46  ;;  %v3245_v54 = vmul.f32 0.21300554, %v3205_v36  ;;  %v3261_v6 = vadd.f32 %v3221_v51, %v3141_v19  ;;  %v8433_v32 = vadd.f32 %v3222_v52, %v3142_v31 }
 0x4dd   : > { %v3317_v58 = vld [vmem:[#allocation3 + $0x1c5] sm:$0xff]  ;;  %v3238_v62 = vmul.f32 0.21300554, %v3198_v13  ;;  %v8429_v1 = vmul.f32 0.21300554, %v3206_v50  ;;  %v3269_v27 = vadd.f32 %v3229_v47, %v3149_v11  ;;  %v3277_v48 = vadd.f32 %v3237_v28, %v3157_v3 }
 0x4de   : > { %v3413_v15 = vld [vmem:[#allocation3 + $0x46] sm:$0xff]  ;;  %v3285_v49 = vadd.f32 %v3245_v54, %v3165_v44  ;;  %v3333_v21 = vmul.f32 0.26601171, %v3293_v12  ;;  %v3341_v20 = vmul.f32 0.26601171, %v3301_v43 }
 0x4df   : > { %v3325_v14 = vld [vmem:[#allocation3 + $0x245] sm:$0xff]  ;;  %v3349_v34 = vmul.f32 0.26601171, %v3309_v60  ;;  %v3357_v41 = vmul.f32 0.26601171, %v3317_v58 }
 0x4e0   : > { %v3421_v57 = vld [vmem:[#allocation3 + $0xc6] sm:$0xff]  ;;  %v3365_v59 = vmul.f32 0.26601171, %v3325_v14  ;;  %v3373_v61 = vadd.f32 %v3333_v21, %v3253_v53  ;;  %v3381_v24 = vadd.f32 %v3341_v20, %v3261_v6  ;;  %v3453_v19 = vmul.f32 0.21300554, %v3413_v15 }
 0x4e1   : > { %v3429_v9 = vld [vmem:[#allocation3 + $0x146] sm:$0xff]  ;;  %v3461_v46 = vmul.f32 0.21300554, %v3421_v57  ;;  %v3389_v11 = vadd.f32 %v3349_v34, %v3269_v27  ;;  %v3397_v3 = vadd.f32 %v3357_v41, %v3277_v48  ;;  %v3673_v14 = vmul.f32 0.036000773, %v8272_v42 }
 0x4e2   : > { %v3437_v25 = vld [vmem:[#allocation3 + $0x1c6] sm:$0xff]  ;;  %v3405_v10 = vadd.f32 %v3365_v59, %v3285_v49  ;;  %v3469_v36 = vmul.f32 0.21300554, %v3429_v9  ;;  %v3493_v22 = vadd.f32 %v3453_v19, %v3373_v61  ;;  %v3681_v48 = vmul.f32 0.036000773, %v8276_v26 }
 0x4e3   : > { %v3445_v18 = vld [vmem:[#allocation3 + $0x246] sm:$0xff]  ;;  %v3477_v43 = vmul.f32 0.21300554, %v3437_v25  ;;  %v3501_v31 = vadd.f32 %v3461_v46, %v3381_v24  ;;  %v3689_v9 = vmul.f32 0.036000773, %v8284_v45  ;;  %v3270_v25 = vadd.f32 %v3230_v8, %v8423_v39 }
 0x4e4   : > { %v3533_v56 = vld [vmem:[#allocation3 + $0x47] sm:$0xff]  ;;  %v3485_v44 = vmul.f32 0.21300554, %v3445_v18  ;;  %v3509_v37 = vadd.f32 %v3469_v36, %v3389_v11  ;;  %v3697_v49 = vmul.f32 0.036000773, %v8297_v35  ;;  %v3278_v18 = vadd.f32 %v3238_v62, %v8425_v7 }
 0x4e5   : > { %v3541_v4 = vld [vmem:[#allocation3 + $0xc7] sm:$0xff]  ;;  %v3573_v51 = vmul.f32 0.10936069, %v3533_v56  ;;  %v3517_v52 = vadd.f32 %v3477_v43, %v3397_v3  ;;  %v3705_v21 = vmul.f32 0.036000773, %v8365_v38 }
 0x4e6   : > { %v3549_v13 = vld [vmem:[#allocation3 + $0x147] sm:$0xff]  ;;  %v3581_v60 = vmul.f32 0.10936069, %v3541_v4  ;;  %v3525_v47 = vadd.f32 %v3485_v44, %v3405_v10  ;;  %v3853_v41 = vmul.f32 0.0010283801, %v8388_v5 }
 0x4e7   : > { %v3557_v50 = vld [vmem:[#allocation3 + $0x1c7] sm:$0xff]  ;;  %v3589_v58 = vmul.f32 0.10936069, %v3549_v13  ;;  %v3613_v54 = vadd.f32 %v3573_v51, %v3493_v22  ;;  %v3861_v26 = vmul.f32 0.0010283801, %v8393_v55  ;;  %v3286_v55 = vadd.f32 %v8429_v1, %v8427_v63 }
 0x4e8   : > { %v3565_v12 = vld [vmem:[#allocation3 + $0x247] sm:$0xff]  ;;  %v3597_v28 = vmul.f32 0.10936069, %v3557_v50  ;;  %v3621_v53 = vadd.f32 %v3581_v60, %v3501_v31  ;;  %v3869_v38 = vmul.f32 0.0010283801, %v8401_v23 }
 0x4e9   : > { %v3605_v15 = vmul.f32 0.10936069, %v3565_v12  ;;  %v3629_v6 = vadd.f32 %v3589_v58, %v3509_v37  ;;  %v3713_v20 = vadd.f32 %v3673_v14, %v3613_v54  ;;  %v3294_v45 = vld [vmem:[#allocation3 + $0x4d] sm:$0xff]  ;;  %v3877_v8 = vmul.f32 0.0010283801, %v8405_v0 }
 0x4ea   : > { %v3637_v57 = vadd.f32 %v3597_v28, %v3517_v52  ;;  %v3721_v56 = vadd.f32 %v3681_v48, %v3621_v53  ;;  %v3302_v7 = vld [vmem:[#allocation3 + $0xcd] sm:$0xff]  ;;  %v3885_v24 = vmul.f32 0.0010283801, %v8411_v17  ;;  %v3334_v13 = vmul.f32 0.26601171, %v3294_v45 }
 0x4eb   : > { %v3645_v27 = vadd.f32 %v3605_v15, %v3525_v47  ;;  %v3729_v34 = vadd.f32 %v3689_v9, %v3629_v6  ;;  %v3793_v61 = vadd.f32 %v3713_v20, %v8370_v2  ;;  %v3310_v2 = vld [vmem:[#allocation3 + $0x14d] sm:$0xff]  ;;  %v3342_v3 = vmul.f32 0.26601171, %v3302_v7 }
 0x4ec   : > { %v3737_v42 = vadd.f32 %v3697_v49, %v3637_v57  ;;  %v3801_v39 = vadd.f32 %v3721_v56, %v8373_v16  ;;  %v3318_v46 = vld [vmem:[#allocation3 + $0x1cd] sm:$0xff]  ;;  %v3350_v36 = vmul.f32 0.26601171, %v3310_v2  ;;  %v3374_v44 = vadd.f32 %v3334_v13, %v8431_v33 }
 0x4ed   : > { %v3745_v59 = vadd.f32 %v3705_v21, %v3645_v27  ;;  %v3809_v35 = vadd.f32 %v3729_v34, %v8375_v40  ;;  %v3893_v19 = vadd.f32 %v3853_v41, %v3793_v61  ;;  %v3326_v40 = vld [vmem:[#allocation3 + $0x24d] sm:$0xff]  ;;  %v3382_v63 = vadd.f32 %v3342_v3, %v8433_v32 }
 0x4ee   : > { %v3817_v62 = vadd.f32 %v3737_v42, %v8378_v29  ;;  %v3901_v16 = vadd.f32 %v3861_v26, %v3801_v39  ;;  %v3414_v50 = vld [vmem:[#allocation3 + $0x4e] sm:$0xff]  ;;  %v3366_v43 = vmul.f32 0.26601171, %v3326_v40  ;;  %v3390_v51 = vadd.f32 %v3350_v36, %v3270_v25 }
 0x4ef   : > { %v3825_v5 = vadd.f32 %v3745_v59, %v8381_v30  ;;  %v3909_v4 = vadd.f32 %v3869_v38, %v3809_v35  ;;  %v3933_v0 = vmul.f32 %v3893_v19, %v3893_v19  ;;  %v3358_v30 = vmul.f32 0.26601171, %v3318_v46  ;;  %v3422_v17 = vld [vmem:[#allocation3 + $0xce] sm:$0xff] }
 0x4f0   : > { %v3917_v23 = vadd.f32 %v3877_v8, %v3817_v62  ;;  %v3941_v10 = vmul.f32 %v3901_v16, %v3901_v16  ;;  %v3949_v29 = vmul.f32 %v3901_v16, %v3893_v19  ;;  %v3430_v1 = vld [vmem:[#allocation3 + $0x14e] sm:$0xff]  ;;  %v3406_v28 = vadd.f32 %v3366_v43, %v3286_v55 }
 0x4f1   : > { %v3925_v11 = vadd.f32 %v3885_v24, %v3825_v5  ;;  %v3957_v12 = vsub.f32 %v3909_v4, %v3933_v0  ;;  %v3438_v60 = vld [vmem:[#allocation3 + $0x1ce] sm:$0xff]  ;;  %v3398_v47 = vadd.f32 %v3358_v30, %v3278_v18  ;;  %v3454_v15 = vmul.f32 0.21300554, %v3414_v50 }
 0x4f2   : > { %v3965_v22 = vsub.f32 %v3917_v23, %v3941_v10  ;;  %v4021_v37 = vadd.f32 %v3941_v10, %v3933_v0  ;;  %v3446_v58 = vld [vmem:[#allocation3 + $0x24e] sm:$0xff]  ;;  %v3462_v54 = vmul.f32 0.21300554, %v3422_v17  ;;  %v8456_v14 = vmul.f32 2.0, %v3949_v29 }
 0x4f3   : > { %v3973_v31 = vsub.f32 %v3925_v11, %v3949_v29  ;;  %v3534_v52 = vld [vmem:[#allocation3 + $0x4f] sm:$0xff]  ;;  %v3470_v27 = vmul.f32 0.21300554, %v3430_v1  ;;  %v3478_v9 = vmul.f32 0.21300554, %v3438_v60  ;;  %v3494_v21 = vadd.f32 %v3454_v15, %v3374_v44 }
 0x4f4   : > { %v3542_v53 = vld [vmem:[#allocation3 + $0xcf] sm:$0xff]  ;;  %v4037_v33 = vadd.f32 %v3965_v22, %v3957_v12  ;;  %v3486_v49 = vmul.f32 0.21300554, %v3446_v58  ;;  %v3502_v25 = vadd.f32 %v3462_v54, %v3382_v63  ;;  %v4029_v34 = vadd.f32 0.0001, %v4021_v37 }
 0x4f5   : > { %v3550_v6 = vld [vmem:[#allocation3 + $0x14f] sm:$0xff]  ;;  %v3997_v57 = vmul.f32 2.0, %v3973_v31  ;;  %v3510_v41 = vadd.f32 %v3470_v27, %v3390_v51  ;;  %v3574_v42 = vmul.f32 0.10936069, %v3534_v52  ;;  %v3518_v26 = vadd.f32 %v3478_v9, %v3398_v47 }
 0x4f6   : > { %v3558_v32 = vld [vmem:[#allocation3 + $0x1cf] sm:$0xff]  ;;  %v4045_v18 = vadd.f32 0.0009, %v4037_v33  ;;  %v3526_v45 = vadd.f32 %v3486_v49, %v3406_v28  ;;  %v3582_v39 = vmul.f32 0.10936069, %v3542_v53  ;;  %v2735_v49 = vld [vmem:[#allocation3 + $0x60] sm:$0xff] }
 0x4f7   : > { %v3651_v48 = vld [vmem:[#allocation3 + $0x50] sm:$0xff]  ;;  %v3590_v35 = vmul.f32 0.10936069, %v3550_v6  ;;  %v4005_v62 = vadd.f32 0.0009, %v3997_v57  ;;  %v3614_v2 = vadd.f32 %v3574_v42, %v3494_v21  ;;  %v2743_v42 = vld [vmem:[#allocation3 + $0xe0] sm:$0xff] }
 0x4f8   : > { %v3566_v20 = vld [vmem:[#allocation3 + $0x24f] sm:$0xff]  ;;  %v4053_v5 = vmul.f32 %v4045_v18, %v4029_v34  ;;  %v3598_v24 = vmul.f32 0.10936069, %v3558_v32  ;;  %v3622_v46 = vadd.f32 %v3582_v39, %v3502_v25  ;;  %v3674_v16 = vmul.f32 0.036000773, %v3651_v48 }
 0x4f9   : > { %v3655_v56 = vld [vmem:[#allocation3 + $0xd0] sm:$0xff]  ;;  %v3606_v19 = vmul.f32 0.10936069, %v3566_v20  ;;  %v3630_v55 = vadd.f32 %v3590_v35, %v3510_v41  ;;  %v3989_v21 = vadd.f32 0.0001, %v8456_v14  ;;  %v8459_v41 = vld [vmem:[#allocation3 + $0x68] sm:$0xff] }
 0x4fa   : > { %v3659_v59 = vld [vmem:[#allocation3 + $0x150] sm:$0xff]  ;;  %4384 = vrcp.f32 %v4053_v5  ;;  %v3638_v23 = vadd.f32 %v3598_v24, %v3518_v26  ;;  %v3682_v0 = vmul.f32 0.036000773, %v3655_v56  ;;  %v3714_v17 = vadd.f32 %v3674_v16, %v3614_v2  ;;  %v8463_v39 = vld [vmem:[#allocation3 + $0x168] sm:$0xff]  ;;  %v2759_v35 = vld [vmem:[#allocation3 + $0x1e0] sm:$0xff] }
 0x4fb   : > { %v3663_v61 = vld [vmem:[#allocation3 + $0x1d0] sm:$0xff]  ;;  %v3646_v11 = vadd.f32 %v3606_v19, %v3526_v45  ;;  %v3690_v36 = vmul.f32 0.036000773, %v3659_v59  ;;  %v8461_v59 = vld [vmem:[#allocation3 + $0xe8] sm:$0xff]  ;;  %v4013_v26 = vmul.f32 %v4005_v62, %v3989_v21  ;;  %v2751_v45 = vld [vmem:[#allocation3 + $0x160] sm:$0xff] }
 0x4fc   : > { %v3667_v38 = vld [vmem:[#allocation3 + $0x250] sm:$0xff]  ;;  %v3698_v30 = vmul.f32 0.036000773, %v3663_v61  ;;  %v3722_v12 = vadd.f32 %v3682_v0, %v3622_v46  ;;  %v8465_v19 = vld [vmem:[#allocation3 + $0x1e8] sm:$0xff]  ;;  %v2784_v0 = vmul.f32 0.0010283801, %v8461_v59 }
 0x4fd   : > { %v3751_v8 = vld [vmem:[#allocation3 + $0x51] sm:$0xff]  ;;  %v3706_v50 = vmul.f32 0.036000773, %v3667_v38  ;;  %v3730_v1 = vadd.f32 %v3690_v36, %v3630_v55  ;;  %v2775_v38 = vmul.f32 0.0010283801, %v2735_v49  ;;  %v2815_v2 = vld [vmem:[#allocation3 + $0x61] sm:$0xff] }
 0x4fe   : > { %v3755_v7 = vld [vmem:[#allocation3 + $0xd1] sm:$0xff]  ;;  %v3771_v43 = vmul.f32 0.007598758, %v3751_v8  ;;  %v3738_v22 = vadd.f32 %v3698_v30, %v3638_v23  ;;  %v2816_v46 = vld [vmem:[#allocation3 + $0x69] sm:$0xff]  ;;  %v2792_v36 = vmul.f32 0.0010283801, %v8463_v39 }
 0x4ff   : > { %v3759_v4 = vld [vmem:[#allocation3 + $0x151] sm:$0xff]  ;;  %v3775_v44 = vmul.f32 0.007598758, %v3755_v7  ;;  %v3746_v31 = vadd.f32 %v3706_v50, %v3646_v11  ;;  %v2799_v30 = vmul.f32 0.0010283801, %v2759_v35  ;;  %v2839_v50 = vld [vmem:[#allocation3 + $0x1e1] sm:$0xff] }
 0x500   : > { %v3763_v40 = vld [vmem:[#allocation3 + $0x1d1] sm:$0xff]  ;;  %v3779_v63 = vmul.f32 0.007598758, %v3759_v4  ;;  %v3794_v52 = vadd.f32 %v3771_v43, %v3714_v17  ;;  %v2776_v4 = vmul.f32 0.0010283801, %v8459_v41  ;;  %v2840_v17 = vld [vmem:[#allocation3 + $0x1e9] sm:$0xff] }
 0x501   : > { %v3831_v13 = vld [vmem:[#allocation3 + $0x52] sm:$0xff]  ;;  %v3783_v37 = vmul.f32 0.007598758, %v3763_v40  ;;  %v3802_v47 = vadd.f32 %v3775_v44, %v3722_v12  ;;  %v2783_v40 = vmul.f32 0.0010283801, %v2743_v42  ;;  %v8493_v42 = vld [vmem:[#allocation3 + $0xea] sm:$0xff] }
 0x502   : > { %v3767_v3 = vld [vmem:[#allocation3 + $0x251] sm:$0xff]  ;;  %v3854_v28 = vmul.f32 0.0010283801, %v3831_v13  ;;  %v3810_v15 = vadd.f32 %v3779_v63, %v3730_v1  ;;  %v2823_v13 = vld [vmem:[#allocation3 + $0xe1] sm:$0xff] }
 0x503   : > { %v3835_v10 = vld [vmem:[#allocation3 + $0xd2] sm:$0xff]  ;;  %v3787_v58 = vmul.f32 0.007598758, %v3767_v3  ;;  %v3818_v54 = vadd.f32 %v3783_v37, %v3738_v22  ;;  %v2824_v3 = vld [vmem:[#allocation3 + $0xe9] sm:$0xff]  ;;  %v2767_v63 = vld [vmem:[#allocation3 + $0x260] sm:$0xff] }
 0x504   : > { %v3839_v29 = vld [vmem:[#allocation3 + $0x152] sm:$0xff]  ;;  %v3862_v53 = vmul.f32 0.0010283801, %v3835_v10  ;;  %v3894_v32 = vadd.f32 %v3854_v28, %v3794_v52  ;;  %v4385_v61 = vpop.eup %4384  ;;  %v2832_v10 = vld [vmem:[#allocation3 + $0x169] sm:$0xff]  ;;  %v2800_v22 = vmul.f32 0.0010283801, %v8465_v19 }
 0x505   : > { %v3843_v51 = vld [vmem:[#allocation3 + $0x1d2] sm:$0xff]  ;;  %v3870_v6 = vmul.f32 0.0010283801, %v3839_v29  ;;  %v3826_v57 = vadd.f32 %v3787_v58, %v3746_v31  ;;  %v4069_v8 = vmul.f32 %v4385_v61, %v4053_v5  ;;  %v2831_v5 = vld [vmem:[#allocation3 + $0x161] sm:$0xff]  ;;  %v2791_v29 = vmul.f32 0.0010283801, %v2751_v45 }
 0x506   : > { %v3847_v60 = vld [vmem:[#allocation3 + $0x252] sm:$0xff]  ;;  %v3878_v33 = vmul.f32 0.0010283801, %v3843_v51  ;;  %v3902_v48 = vadd.f32 %v3862_v53, %v3802_v47  ;;  %v3934_v56 = vmul.f32 %v3894_v32, %v3894_v32  ;;  %v8470_v1 = vld [vmem:[#allocation3 + $0x268] sm:$0xff]  ;;  %v2855_v37 = vmul.f32 0.007598758, %v2815_v2 }
 0x507   : > { %v3886_v27 = vmul.f32 0.0010283801, %v3847_v60  ;;  %v3910_v9 = vadd.f32 %v3870_v6, %v3810_v15  ;;  %v4077_v62 = vsub.f32 2.0, %v4069_v8  ;;  %v8473_v51 = vmul.f32 0.007598758, %v2816_v46  ;;  %v2847_v47 = vld [vmem:[#allocation3 + $0x261] sm:$0xff] }
 0x508   : > { %v3918_v25 = vadd.f32 %v3878_v33, %v3818_v54  ;;  %v3942_v34 = vmul.f32 %v3902_v48, %v3902_v48  ;;  %v3950_v18 = vmul.f32 %v3902_v48, %v3894_v32  ;;  %v2848_v28 = vld [vmem:[#allocation3 + $0x269] sm:$0xff]  ;;  %v2863_v15 = vmul.f32 0.007598758, %v2823_v13 }
 0x509   : > { %v3926_v20 = vadd.f32 %v3886_v27, %v3826_v57  ;;  %v3958_v7 = vsub.f32 %v3910_v9, %v3934_v56  ;;  %v4085_v12 = vmul.f32 %v4385_v61, %v4077_v62  ;;  %v8477_v54 = vmul.f32 0.007598758, %v2824_v3  ;;  %v2935_v57 = vld [vmem:[#allocation3 + $0x62] sm:$0xff]  ;;  %v8481_v33 = vld [vmem:[#allocation3 + $0x6a] sm:$0xff] }
 0x50a   : > { %v3966_v14 = vsub.f32 %v3918_v25, %v3942_v34  ;;  %v3982_v55 = vmul.f32 2.0, %v3950_v18  ;;  %v4022_v16 = vadd.f32 %v3942_v34, %v3934_v56  ;;  %v2871_v53 = vmul.f32 0.007598758, %v2831_v5  ;;  %v2943_v9 = vld [vmem:[#allocation3 + $0xe2] sm:$0xff] }
 0x50b   : > { %v3974_v24 = vsub.f32 %v3926_v20, %v3950_v18  ;;  %v4093_v60 = vmul.f32 %v4085_v12, %v4013_v26  ;;  %v8479_v6 = vmul.f32 0.007598758, %v2832_v10  ;;  %v2879_v32 = vmul.f32 0.007598758, %v2839_v50  ;;  %v2951_v61 = vld [vmem:[#allocation3 + $0x162] sm:$0xff]  ;;  %v8495_v26 = vld [vmem:[#allocation3 + $0x16a] sm:$0xff] }
 0x50c   : > { %v4038_v11 = vadd.f32 %v3966_v14, %v3958_v7  ;;  %v4030_v43 = vadd.f32 0.0001, %v4022_v16  ;;  %v3990_v31 = vadd.f32 0.0001, %v3982_v55  ;;  %v8485_v48 = vmul.f32 0.007598758, %v2840_v17 }
 0x50d   : > { %v3998_v23 = vmul.f32 2.0, %v3974_v24  ;;  %v4109_v27 = vsel %vm2607_vm2, %v4093_v60, 0.0  ;;  %v2807_v49 = vmul.f32 0.0010283801, %v2767_v63  ;;  %v2808_v21 = vmul.f32 0.0010283801, %v8470_v1 }
 0x50e   : > { %v4046_v44 = vadd.f32 0.0009, %v4038_v11  ;;  %4110 = vadd.xlane.f32.xlu1 %v4109_v27  ;;  %v2887_v25 = vmul.f32 0.007598758, %v2847_v47  ;;  %v8490_v56 = vmul.f32 0.007598758, %v2848_v28  ;;  %v2895_v34 = vadd.f32 %v2855_v37, %v2775_v38 }
 0x50f   : > { %v4006_v58 = vadd.f32 0.0009, %v3998_v23  ;;  %v2896_v18 = vadd.f32 %v8473_v51, %v2776_v4  ;;  %v2903_v45 = vadd.f32 %v2863_v15, %v2783_v40  ;;  %v2904_v35 = vadd.f32 %v8477_v54, %v2784_v0  ;;  %v2959_v14 = vld [vmem:[#allocation3 + $0x1e2] sm:$0xff]  ;;  %v8499_v24 = vld [vmem:[#allocation3 + $0x1ea] sm:$0xff] }
 0x510   : > { %v8475_v52 = vmul.f32 %v4046_v44, %v4030_v43  ;;  %v2911_v8 = vadd.f32 %v2871_v53, %v2791_v29  ;;  %v2912_v7 = vadd.f32 %v8479_v6, %v2792_v36  ;;  %v2967_v2 = vld [vmem:[#allocation3 + $0x262] sm:$0xff]  ;;  %v2919_v46 = vadd.f32 %v2879_v32, %v2799_v30  ;;  %v8502_v55 = vld [vmem:[#allocation3 + $0x26a] sm:$0xff] }
 0x511   : > { %v8488_v20 = vmul.f32 %v4006_v58, %v3990_v31  ;;  %v2920_v38 = vadd.f32 %v8485_v48, %v2800_v22  ;;  %v2975_v16 = vmul.f32 0.036000773, %v2935_v57  ;;  %v2976_v4 = vmul.f32 0.036000773, %v8481_v33  ;;  %v3055_v13 = vld [vmem:[#allocation3 + $0x63] sm:$0xff]  ;;  %v3056_v0 = vld [vmem:[#allocation3 + $0x6b] sm:$0xff] }
 0x512   : > { %4386 = vrcp.f32 %v8475_v52  ;;  %v2927_v62 = vadd.f32 %v2887_v25, %v2807_v49  ;;  %v2983_v40 = vmul.f32 0.036000773, %v2943_v9  ;;  %v2984_v23 = vmul.f32 0.036000773, %v8493_v42  ;;  %v3063_v3 = vld [vmem:[#allocation3 + $0xe3] sm:$0xff]  ;;  %v3064_v43 = vld [vmem:[#allocation3 + $0xeb] sm:$0xff] }
 0x513   : > { %v2991_v11 = vmul.f32 0.036000773, %v2951_v61  ;;  %v2928_v5 = vadd.f32 %v8490_v56, %v2808_v21  ;;  %v2992_v10 = vmul.f32 0.036000773, %v8495_v26  ;;  %v2999_v29 = vmul.f32 0.036000773, %v2959_v14 }
 0x514   : > { %v3000_v36 = vmul.f32 0.036000773, %v8499_v24  ;;  %v3007_v30 = vmul.f32 0.036000773, %v2967_v2  ;;  %v3008_v50 = vmul.f32 0.036000773, %v8502_v55  ;;  %v3015_v17 = vadd.f32 %v2975_v16, %v2895_v34 }
 0x515   : > { %v3016_v12 = vadd.f32 %v2976_v4, %v2896_v18  ;;  %v3071_v44 = vld [vmem:[#allocation3 + $0x163] sm:$0xff]  ;;  %v3023_v63 = vadd.f32 %v2983_v40, %v2903_v45  ;;  %v3024_v22 = vadd.f32 %v2984_v23, %v2904_v35  ;;  %v3031_v31 = vadd.f32 %v2991_v11, %v2911_v8  ;;  %v3072_v60 = vld [vmem:[#allocation3 + $0x16b] sm:$0xff] }
 0x516   : > { %v3032_v37 = vadd.f32 %v2992_v10, %v2912_v7  ;;  %v3079_v58 = vld [vmem:[#allocation3 + $0x1e3] sm:$0xff]  ;;  %v3080_v47 = vld [vmem:[#allocation3 + $0x1eb] sm:$0xff]  ;;  %v3039_v28 = vadd.f32 %v2999_v29, %v2919_v46  ;;  %v3040_v15 = vadd.f32 %v3000_v36, %v2920_v38  ;;  %v3047_v53 = vadd.f32 %v3007_v30, %v2927_v62 }
 0x517   : > { %v3087_v57 = vld [vmem:[#allocation3 + $0x263] sm:$0xff]  ;;  %v3088_v27 = vld [vmem:[#allocation3 + $0x26b] sm:$0xff]  ;;  %v3095_v32 = vmul.f32 0.10936069, %v3055_v13  ;;  %v3048_v21 = vadd.f32 %v3008_v50, %v2928_v5  ;;  %v3096_v25 = vmul.f32 0.10936069, %v3056_v0 }
 0x518   : > { %v3175_v9 = vld [vmem:[#allocation3 + $0x64] sm:$0xff]  ;;  %v3103_v34 = vmul.f32 0.10936069, %v3063_v3  ;;  %v3104_v18 = vmul.f32 0.10936069, %v3064_v43  ;;  %v3176_v61 = vld [vmem:[#allocation3 + $0x6c] sm:$0xff] }
 0x519   : > { %v3183_v45 = vld [vmem:[#allocation3 + $0xe4] sm:$0xff]  ;;  %v3184_v35 = vld [vmem:[#allocation3 + $0xec] sm:$0xff]  ;;  %v3111_v7 = vmul.f32 0.10936069, %v3071_v44  ;;  %v3112_v14 = vmul.f32 0.10936069, %v3072_v60  ;;  %v3135_v62 = vadd.f32 %v3095_v32, %v3015_v17  ;;  %v8511_v40 = vadd.f32 %v3096_v25, %v3016_v12 }
 0x51a   : > { %v3119_v2 = vmul.f32 0.10936069, %v3079_v58  ;;  %v3191_v46 = vld [vmem:[#allocation3 + $0x164] sm:$0xff]  ;;  %v3120_v38 = vmul.f32 0.10936069, %v3080_v47  ;;  %v3143_v23 = vadd.f32 %v3103_v34, %v3023_v63  ;;  %v8513_v11 = vadd.f32 %v3104_v18, %v3024_v22  ;;  %v3192_v0 = vld [vmem:[#allocation3 + $0x16c] sm:$0xff] }
 0x51b   : > { %v3127_v16 = vmul.f32 0.10936069, %v3087_v57  ;;  %v3128_v4 = vmul.f32 0.10936069, %v3088_v27  ;;  %v3199_v3 = vld [vmem:[#allocation3 + $0x1e4] sm:$0xff]  ;;  %v3151_v10 = vadd.f32 %v3111_v7, %v3031_v31  ;;  %v3200_v36 = vld [vmem:[#allocation3 + $0x1ec] sm:$0xff]  ;;  %v8519_v22 = vadd.f32 %v3112_v14, %v3032_v37 }
 0x51c   : > { %v4387_v49 = vpop.eup %4386  ;;  %v3207_v5 = vld [vmem:[#allocation3 + $0x264] sm:$0xff]  ;;  %v3159_v29 = vadd.f32 %v3119_v2, %v3039_v28  ;;  %v3215_v30 = vmul.f32 0.21300554, %v3175_v9  ;;  %v8515_v60 = vmul.f32 0.21300554, %v3176_v61  ;;  %v8527_v14 = vadd.f32 %v3120_v38, %v3040_v15 }
 0x51d   : > { %v4070_v8 = vmul.f32 %v4387_v49, %v8475_v52  ;;  %v3167_v52 = vadd.f32 %v3127_v16, %v3047_v53  ;;  %v3295_v50 = vld [vmem:[#allocation3 + $0x65] sm:$0xff]  ;;  %v3223_v17 = vmul.f32 0.21300554, %v3183_v45  ;;  %v8517_v58 = vmul.f32 0.21300554, %v3184_v35 }
 0x51e   : > { %v3303_v43 = vld [vmem:[#allocation3 + $0xe5] sm:$0xff]  ;;  %v3231_v47 = vmul.f32 0.21300554, %v3191_v46  ;;  %v3239_v57 = vmul.f32 0.21300554, %v3199_v3  ;;  %v3255_v53 = vadd.f32 %v3215_v30, %v3135_v62  ;;  %v8529_v16 = vadd.f32 %v3128_v4, %v3048_v21 }
 0x51f   : > { %v4078_v13 = vsub.f32 2.0, %v4070_v8  ;;  %v3311_v12 = vld [vmem:[#allocation3 + $0x165] sm:$0xff]  ;;  %v3247_v27 = vmul.f32 0.21300554, %v3207_v5  ;;  %v8522_v28 = vmul.f32 0.21300554, %v3192_v0  ;;  %v3263_v32 = vadd.f32 %v3223_v17, %v3143_v23 }
 0x520   : > { %v3319_v63 = vld [vmem:[#allocation3 + $0x1e5] sm:$0xff]  ;;  %v8524_v34 = vmul.f32 0.21300554, %v3200_v36  ;;  %v3271_v18 = vadd.f32 %v3231_v47, %v3151_v10  ;;  %v3279_v61 = vadd.f32 %v3239_v57, %v3159_v29  ;;  %v3343_v2 = vmul.f32 0.26601171, %v3303_v43 }
 0x521   : > { %v4086_v44 = vmul.f32 %v4387_v49, %v4078_v13  ;;  %v3327_v9 = vld [vmem:[#allocation3 + $0x265] sm:$0xff]  ;;  %v3287_v45 = vadd.f32 %v3247_v27, %v3167_v52  ;;  %v3351_v62 = vmul.f32 0.26601171, %v3311_v12  ;;  %v3359_v13 = vmul.f32 0.26601171, %v3319_v63 }
 0x522   : > { %v3415_v49 = vld [vmem:[#allocation3 + $0x66] sm:$0xff]  ;;  %v3367_v23 = vmul.f32 0.26601171, %v3327_v9  ;;  %v3383_v3 = vadd.f32 %v3343_v2, %v3263_v32  ;;  %v3707_v2 = vmul.f32 0.036000773, %v8470_v1 }
 0x523   : > { %v4094_v31 = vmul.f32 %v4086_v44, %v8488_v20  ;;  %v3423_v25 = vld [vmem:[#allocation3 + $0xe6] sm:$0xff]  ;;  %v3335_v20 = vmul.f32 0.26601171, %v3295_v50  ;;  %v3455_v5 = vmul.f32 0.21300554, %v3415_v49  ;;  %v3391_v36 = vadd.f32 %v3351_v62, %v3271_v18 }
 0x524   : > { %v3431_v35 = vld [vmem:[#allocation3 + $0x166] sm:$0xff]  ;;  %v3463_v10 = vmul.f32 0.21300554, %v3423_v25  ;;  %v3399_v30 = vadd.f32 %v3359_v13, %v3279_v61  ;;  %v3407_v44 = vadd.f32 %v3367_v23, %v3287_v45  ;;  %v3675_v61 = vmul.f32 0.036000773, %v8459_v41 }
 0x525   : > { %v3439_v37 = vld [vmem:[#allocation3 + $0x1e6] sm:$0xff]  ;;  %v4112_v7 = vsel %vm2607_vm2, %v4094_v31, 0.0  ;;  %v3375_v0 = vadd.f32 %v3335_v20, %v3255_v53  ;;  %v3471_v15 = vmul.f32 0.21300554, %v3431_v35  ;;  %v3699_v20 = vmul.f32 0.036000773, %v8465_v19 }
 0x526   : > { %v3447_v8 = vld [vmem:[#allocation3 + $0x266] sm:$0xff]  ;;  %4113 = vadd.xlane.f32.xlu0 %v4112_v7  ;;  %v3479_v43 = vmul.f32 0.21300554, %v3439_v37  ;;  %v3503_v21 = vadd.f32 %v3463_v10, %v3383_v3  ;;  %v3683_v37 = vmul.f32 0.036000773, %v8461_v59  ;;  %v3256_v62 = vadd.f32 %v8515_v60, %v8511_v40 }
 0x527   : > { %v3535_v46 = vld [vmem:[#allocation3 + $0x67] sm:$0xff]  ;;  %v3487_v17 = vmul.f32 0.21300554, %v3447_v8  ;;  %v3495_v47 = vadd.f32 %v3455_v5, %v3375_v0  ;;  %v3511_v4 = vadd.f32 %v3471_v15, %v3391_v36  ;;  %v3691_v8 = vmul.f32 0.036000773, %v8463_v39 }
 0x528   : > { %v3543_v29 = vld [vmem:[#allocation3 + $0xe7] sm:$0xff]  ;;  %v3575_v12 = vmul.f32 0.10936069, %v3535_v46  ;;  %v3519_v31 = vadd.f32 %v3479_v43, %v3399_v30  ;;  %v3264_v13 = vadd.f32 %v8517_v58, %v8513_v11  ;;  %v3855_v39 = vmul.f32 0.0010283801, %v8481_v33 }
 0x529   : > { %v3551_v52 = vld [vmem:[#allocation3 + $0x167] sm:$0xff]  ;;  %v3583_v63 = vmul.f32 0.10936069, %v3543_v29  ;;  %v3527_v53 = vadd.f32 %v3487_v17, %v3407_v44  ;;  %v3863_v1 = vmul.f32 0.0010283801, %v8493_v42  ;;  %v3272_v33 = vadd.f32 %v8522_v28, %v8519_v22 }
 0x52a   : > { %v3559_v38 = vld [vmem:[#allocation3 + $0x1e7] sm:$0xff]  ;;  %v3591_v57 = vmul.f32 0.10936069, %v3551_v52  ;;  %v3615_v49 = vadd.f32 %v3575_v12, %v3495_v47  ;;  %v3871_v10 = vmul.f32 0.0010283801, %v8495_v26 }
 0x52b   : > { %v3567_v50 = vld [vmem:[#allocation3 + $0x267] sm:$0xff]  ;;  %v3599_v32 = vmul.f32 0.10936069, %v3559_v38  ;;  %v3623_v25 = vadd.f32 %v3583_v63, %v3503_v21  ;;  %v3879_v29 = vmul.f32 0.0010283801, %v8499_v24 }
 0x52c   : > { %v3208_v27 = vld [vmem:[#allocation3 + $0x26c] sm:$0xff]  ;;  %v3607_v9 = vmul.f32 0.10936069, %v3567_v50  ;;  %v3631_v18 = vadd.f32 %v3591_v57, %v3511_v4  ;;  %v3715_v46 = vadd.f32 %v3675_v61, %v3615_v49  ;;  %v3887_v26 = vmul.f32 0.0010283801, %v8502_v55 }
 0x52d   : > { %v3639_v45 = vadd.f32 %v3599_v32, %v3519_v31  ;;  %v3248_v7 = vmul.f32 0.21300554, %v3208_v27  ;;  %v3723_v23 = vadd.f32 %v3683_v37, %v3623_v25  ;;  %v3296_v40 = vld [vmem:[#allocation3 + $0x6d] sm:$0xff] }
 0x52e   : > { %v3647_v35 = vadd.f32 %v3607_v9, %v3527_v53  ;;  %v3731_v41 = vadd.f32 %v3691_v8, %v3631_v18  ;;  %v3795_v59 = vadd.f32 %v3715_v46, %v8473_v51  ;;  %v3304_v60 = vld [vmem:[#allocation3 + $0xed] sm:$0xff]  ;;  %v3336_v44 = vmul.f32 0.26601171, %v3296_v40 }
 0x52f   : > { %v3739_v0 = vadd.f32 %v3699_v20, %v3639_v45  ;;  %v3803_v5 = vadd.f32 %v3723_v23, %v8477_v54  ;;  %v3312_v51 = vld [vmem:[#allocation3 + $0x16d] sm:$0xff]  ;;  %v3280_v54 = vadd.f32 %v8524_v34, %v8527_v14 }
 0x530   : > { %v3747_v3 = vadd.f32 %v3707_v2, %v3647_v35  ;;  %v3811_v19 = vadd.f32 %v3731_v41, %v8479_v6  ;;  %v3895_v52 = vadd.f32 %v3855_v39, %v3795_v59  ;;  %v3320_v36 = vld [vmem:[#allocation3 + $0x1ed] sm:$0xff]  ;;  %v3352_v50 = vmul.f32 0.26601171, %v3312_v51 }
 0x531   : > { %v3819_v11 = vadd.f32 %v3739_v0, %v8485_v48  ;;  %v3903_v6 = vadd.f32 %v3863_v1, %v3803_v5  ;;  %v3344_v48 = vmul.f32 0.26601171, %v3304_v60  ;;  %v3328_v38 = vld [vmem:[#allocation3 + $0x26d] sm:$0xff]  ;;  %v3360_v28 = vmul.f32 0.26601171, %v3320_v36 }
 0x532   : > { %v3827_v58 = vadd.f32 %v3747_v3, %v8490_v56  ;;  %v3911_v42 = vadd.f32 %v3871_v10, %v3811_v19  ;;  %v3288_v56 = vadd.f32 %v3248_v7, %v8529_v16  ;;  %v3935_v15 = vmul.f32 %v3895_v52, %v3895_v52  ;;  %v3416_v43 = vld [vmem:[#allocation3 + $0x6e] sm:$0xff] }
 0x533   : > { %v3919_v30 = vadd.f32 %v3879_v29, %v3819_v11  ;;  %v3943_v24 = vmul.f32 %v3903_v6, %v3903_v6  ;;  %v3424_v17 = vld [vmem:[#allocation3 + $0xee] sm:$0xff]  ;;  %v3376_v47 = vadd.f32 %v3336_v44, %v3256_v62  ;;  %v3384_v34 = vadd.f32 %v3344_v48, %v3264_v13 }
 0x534   : > { %v3927_v22 = vadd.f32 %v3887_v26, %v3827_v58  ;;  %v3432_v14 = vld [vmem:[#allocation3 + $0x16e] sm:$0xff]  ;;  %v3959_v21 = vsub.f32 %v3911_v42, %v3935_v15  ;;  %v3392_v55 = vadd.f32 %v3352_v50, %v3272_v33  ;;  %v3368_v57 = vmul.f32 0.26601171, %v3328_v38 }
 0x535   : > { %v3967_v4 = vsub.f32 %v3919_v30, %v3943_v24  ;;  %v4023_v12 = vadd.f32 %v3943_v24, %v3935_v15  ;;  %v3440_v63 = vld [vmem:[#allocation3 + $0x1ee] sm:$0xff]  ;;  %v3400_v27 = vadd.f32 %v3360_v28, %v3280_v54  ;;  %v3456_v31 = vmul.f32 0.21300554, %v3416_v43 }
 0x536   : > { %v3464_v16 = vmul.f32 0.21300554, %v3424_v17  ;;  %v8555_v53 = vmul.f32 %v3903_v6, %v3895_v52  ;;  %v3472_v9 = vmul.f32 0.21300554, %v3432_v14  ;;  %v3536_v49 = vld [vmem:[#allocation3 + $0x6f] sm:$0xff]  ;;  %v3408_v61 = vadd.f32 %v3368_v57, %v3288_v56 }
 0x537   : > { %v4039_v32 = vadd.f32 %v3967_v4, %v3959_v21  ;;  %v3544_v25 = vld [vmem:[#allocation3 + $0xef] sm:$0xff]  ;;  %v3480_v35 = vmul.f32 0.21300554, %v3440_v63  ;;  %v3496_v37 = vadd.f32 %v3456_v31, %v3376_v47  ;;  %v4031_v2 = vadd.f32 0.0001, %v4023_v12 }
 0x538   : > { %v3552_v18 = vld [vmem:[#allocation3 + $0x16f] sm:$0xff]  ;;  %v3504_v8 = vadd.f32 %v3464_v16, %v3384_v34  ;;  %v3975_v20 = vsub.f32 %v3927_v22, %v8555_v53  ;;  %v3512_v62 = vadd.f32 %v3472_v9, %v3392_v55  ;;  %v3576_v3 = vmul.f32 0.10936069, %v3536_v49 }
 0x539   : > { %v3448_v45 = vld [vmem:[#allocation3 + $0x26e] sm:$0xff]  ;;  %v4047_v46 = vadd.f32 0.0009, %v4039_v32  ;;  %v3520_v41 = vadd.f32 %v3480_v35, %v3400_v27  ;;  %v3584_v59 = vmul.f32 0.10936069, %v3544_v25  ;;  %v3983_v25 = vmul.f32 2.0, %v8555_v53 }
 0x53a   : > { %v3560_v7 = vld [vmem:[#allocation3 + $0x1ef] sm:$0xff]  ;;  %v3592_v39 = vmul.f32 0.10936069, %v3552_v18  ;;  %v3488_v19 = vmul.f32 0.21300554, %v3448_v45  ;;  %v3616_v60 = vadd.f32 %v3576_v3, %v3496_v37  ;;  %v3999_v44 = vmul.f32 2.0, %v3975_v20 }
 0x53b   : > { %v3652_v13 = vld [vmem:[#allocation3 + $0x70] sm:$0xff]  ;;  %v4055_v5 = vmul.f32 %v4047_v46, %v4031_v2  ;;  %v3600_v1 = vmul.f32 0.10936069, %v3560_v7  ;;  %v3624_v11 = vadd.f32 %v3584_v59, %v3504_v8 }
 0x53c   : > { %v3656_v23 = vld [vmem:[#allocation3 + $0xf0] sm:$0xff]  ;;  %v3632_v58 = vadd.f32 %v3592_v39, %v3512_v62  ;;  %v3676_v29 = vmul.f32 0.036000773, %v3652_v13  ;;  %v3528_v54 = vadd.f32 %v3488_v19, %v3408_v61  ;;  %v4007_v8 = vadd.f32 0.0009, %v3999_v44 }
 0x53d   : > { %v3568_v0 = vld [vmem:[#allocation3 + $0x26f] sm:$0xff]  ;;  %4388 = vrcp.f32 %v4055_v5  ;;  %v3640_v6 = vadd.f32 %v3600_v1, %v3520_v41  ;;  %v3684_v42 = vmul.f32 0.036000773, %v3656_v23  ;;  %v3991_v62 = vadd.f32 0.0001, %v3983_v25 }
 0x53e   : > { %v3660_v10 = vld [vmem:[#allocation3 + $0x170] sm:$0xff]  ;;  %v3716_v15 = vadd.f32 %v3676_v29, %v3616_v60  ;;  %v3608_v38 = vmul.f32 0.10936069, %v3568_v0 }
 0x53f   : > { %v3664_v40 = vld [vmem:[#allocation3 + $0x1f0] sm:$0xff]  ;;  %v3692_v48 = vmul.f32 0.036000773, %v3660_v10  ;;  %v3724_v50 = vadd.f32 %v3684_v42, %v3624_v11  ;;  %v4015_v39 = vmul.f32 %v4007_v8, %v3991_v62 }
 0x540   : > { %v3752_v52 = vld [vmem:[#allocation3 + $0x71] sm:$0xff]  ;;  %v3700_v56 = vmul.f32 0.036000773, %v3664_v40  ;;  %v3648_v4 = vadd.f32 %v3608_v38, %v3528_v54 }
 0x541   : > { %v3756_v51 = vld [vmem:[#allocation3 + $0xf1] sm:$0xff]  ;;  %v3772_v43 = vmul.f32 0.007598758, %v3752_v52  ;;  %v3732_v28 = vadd.f32 %v3692_v48, %v3632_v58 }
 0x542   : > { %v3760_v33 = vld [vmem:[#allocation3 + $0x171] sm:$0xff]  ;;  %v3776_v17 = vmul.f32 0.007598758, %v3756_v51  ;;  %v3740_v47 = vadd.f32 %v3700_v56, %v3640_v6 }
 0x543   : > { %v3764_v36 = vld [vmem:[#allocation3 + $0x1f1] sm:$0xff]  ;;  %v3780_v34 = vmul.f32 0.007598758, %v3760_v33  ;;  %v3796_v12 = vadd.f32 %v3772_v43, %v3716_v15 }
 0x544   : > { %v3832_v26 = vld [vmem:[#allocation3 + $0x72] sm:$0xff]  ;;  %v3784_v14 = vmul.f32 0.007598758, %v3764_v36  ;;  %v3804_v55 = vadd.f32 %v3776_v17, %v3724_v50  ;;  %v4129_v50 = vlaneseq }
 0x545   : > { %v3836_v30 = vld [vmem:[#allocation3 + $0xf2] sm:$0xff]  ;;  %v3856_v63 = vmul.f32 0.0010283801, %v3832_v26  ;;  %v3812_v57 = vadd.f32 %v3780_v34, %v3732_v28 }
 0x546   : > { %v3840_v24 = vld [vmem:[#allocation3 + $0x172] sm:$0xff]  ;;  %v3820_v27 = vadd.f32 %v3784_v14, %v3740_v47  ;;  %v3864_v31 = vmul.f32 0.0010283801, %v3836_v30  ;;  %v4130_v17 = vand.u32 127, %v4129_v50  ;;  %v4132_v47 = vshrl.u32 %v4129_v50, 7 }
 0x547   : > { %v3668_v22 = vld [vmem:[#allocation3 + $0x270] sm:$0xff]  ;;  %v3872_v16 = vmul.f32 0.0010283801, %v3840_v24  ;;  %v3896_v49 = vadd.f32 %v3856_v63, %v3796_v12  ;;  %v4389_v2 = vpop.eup %4388 }
 0x548   : > { %v3844_v21 = vld [vmem:[#allocation3 + $0x1f2] sm:$0xff]  ;;  %v3708_v32 = vmul.f32 0.036000773, %v3668_v22  ;;  %v3904_v61 = vadd.f32 %v3864_v31, %v3804_v55  ;;  %v4071_v13 = vmul.f32 %v4389_v2, %v4055_v5  ;;  %v4135_v28 = vadd.s32 4294967288, %v4130_v17 }
 0x549   : > { %v3880_v9 = vmul.f32 0.0010283801, %v3844_v21  ;;  %v3768_v18 = vld [vmem:[#allocation3 + $0x271] sm:$0xff]  ;;  %v3912_v45 = vadd.f32 %v3872_v16, %v3812_v57  ;;  %v3936_v7 = vmul.f32 %v3896_v49, %v3896_v49 }
 0x54a   : > { %v3748_v35 = vadd.f32 %v3708_v32, %v3648_v4  ;;  %v3944_v20 = vmul.f32 %v3904_v61, %v3904_v61  ;;  %v3788_v46 = vmul.f32 0.007598758, %v3768_v18  ;;  %v3848_v23 = vld [vmem:[#allocation3 + $0x272] sm:$0xff]  ;;  %v4079_v19 = vsub.f32 2.0, %v4071_v13 }
 0x54b   : > { %v3920_v37 = vadd.f32 %v3880_v9, %v3820_v27  ;;  %v3960_v41 = vsub.f32 %v3912_v45, %v3936_v7  ;;  %v3888_v1 = vmul.f32 0.0010283801, %v3848_v23  ;;  %v3952_v52 = vmul.f32 %v3904_v61, %v3896_v49 }
 0x54c   : > { %v3828_v3 = vadd.f32 %v3788_v46, %v3748_v35  ;;  %v4024_v59 = vadd.f32 %v3944_v20, %v3936_v7  ;;  %v4087_v10 = vmul.f32 %v4389_v2, %v4079_v19  ;;  %v4138_v14 = vsub.s32 %v4135_v28, %v4132_v47 }
 0x54d   : > { %v3968_v0 = vsub.f32 %v3920_v37, %v3944_v20  ;;  %v3984_v54 = vmul.f32 2.0, %v3952_v52  ;;  %v4133_v4 = vsub.s32 %v4130_v17, %v4132_v47 }
 0x54e   : > { %v4032_v40 = vadd.f32 0.0001, %v4024_v59  ;;  %v3928_v11 = vadd.f32 %v3888_v1, %v3828_v3  ;;  %v4095_v58 = vmul.f32 %v4087_v10, %v4015_v39 }
 0x54f   : > { %v4040_v53 = vadd.f32 %v3968_v0, %v3960_v41  ;;  %v3992_v36 = vadd.f32 0.0001, %v3984_v54 }
 0x550   : > { %v4115_v51 = vsel %vm2607_vm2, %v4095_v58, 0.0  ;;  %v3976_v5 = vsub.f32 %v3928_v11, %v3952_v52 }
 0x551   : > { %v4048_v60 = vadd.f32 0.0009, %v4040_v53  ;;  %4116 = vadd.xlane.f32.xlu1 %v4115_v51 }
 0x552   : > { %v4000_v33 = vmul.f32 2.0, %v3976_v5 }
 0x553   : > { %v4056_v29 = vmul.f32 %v4048_v60, %v4032_v40 }
 0x554   : > { %v4008_v6 = vadd.f32 0.0009, %v4000_v33 }
 0x555   : > { %4390 = vrcp.f32 %v4056_v29 }
 0x556   : > { %v4016_v30 = vmul.f32 %v4008_v6, %v3992_v36  ;;  %v4099_v24 = vpop.xlane.xlu0 %4098 }
 0x557   : > { %v4134_v16 = vrot.slane %v4099_v24, %v4133_v4 }
 0x55c   : > { %v4102_v43 = vpop.xlane.xlu1 %4101 }
 0x55d   : > { %v4139_v63 = vrot.slane %v4102_v43, %v4138_v14 }
 0x55f   : > { %v4391_v42 = vpop.eup %4390  ;;  %v4141_v25 = vsel %vm4140_vm4, %v4139_v63, %v4134_v16 }
 0x560   : > { %v4072_v26 = vmul.f32 %v4391_v42, %v4056_v29 }
 0x562   : > { %v4080_v44 = vsub.f32 2.0, %v4072_v26 }
 0x563   : > { %v4105_v38 = vpop.xlane.xlu0 %4104 }
 0x564   : > { %v4088_v48 = vmul.f32 %v4391_v42, %v4080_v44  ;;  %v4145_v57 = vrot.slane %v4105_v38, %v4133_v4 }
 0x566   : > { %v4096_v56 = vmul.f32 %v4088_v48, %v4016_v30 }
 0x567   : > { %v4108_v22 = vpop.xlane.xlu0 %4107 }
 0x568   : > { %v4118_v15 = vsel %vm2607_vm2, %v4096_v56, 0.0  ;;  %v4149_v12 = vrot.slane %v4108_v22, %v4138_v14 }
 0x569   : > { %4119 = vadd.xlane.f32.xlu0 %v4118_v15 }
 0x56a   : > { %v4150_v32 = vsel %vm4140_vm4, %v4149_v12, %v4145_v57 }
 0x56b   : > { %v4170_v45 = vsel %vm4169_vm5, %v4150_v32, %v4141_v25 }
 0x59b   : > { %v4111_v34 = vpop.xlane.xlu1 %4110 }
 0x59c   : > { %v4154_v27 = vrot.slane %v4111_v34, %v4133_v4 }
 0x5b3   : > { %v4114_v21 = vpop.xlane.xlu0 %4113 }
 0x5b4   : > { %v4158_v55 = vrot.slane %v4114_v21, %v4138_v14 }
 0x5b6   : > { %v4159_v9 = vsel %vm4140_vm4, %v4158_v55, %v4154_v27 }
 0x5b7   : > { %v4172_v37 = vsel %vm4171_vm6, %v4159_v9, %v4170_v45 }
 0x5de   : > { %v4117_v31 = vpop.xlane.xlu1 %4116 }
 0x5df   : > { %v4163_v18 = vrot.slane %v4117_v31, %v4133_v4 }
 0x5f6   : > { %v4120_v49 = vpop.xlane.xlu0 %4119 }
 0x5f7   : > { %v4167_v61 = vrot.slane %v4120_v49, %v4138_v14 }
 0x5f9   : > { %v4168_v35 = vsel %vm4140_vm4, %v4167_v61, %v4163_v18 }
 0x5fa   : > { %v4174_v8 = vsel %vm4173_vm7, %v4168_v35, %v4172_v37 }
 0x5fb   : > { %v4177_v7 = vsel %vm4176_vm8, %v4174_v8, 0.0 }
 0x5fc   : > { %4178 = vadd.xlane.f32.xlu1 %v4177_v7 }
 0x689   : > { %v4179_v20 = vpop.xlane.xlu1 %4178 }
 0x68a   : > { %v4184_v2 = vrot.slane %v4179_v20, %v4133_v4 }
 0x68c   : > { %4187 = vst.msk [vmem:[%s202_s16] sm:$0x1] %vm4186_vm9, %v4184_v2 }
 0x68d   : > { %4505 = shalt.err (!%p4502_p11)
}
 0x68e   : > { %s4506_s30 = scalar_lea.hbm %s8566_s23, 16  ;;  %s4510_s28 = scalar_lea.hbm %s8612_s2, 32 }
 0x68f   : > { %p4507_p3 = scmp.ne.s32.totalorder %s8566_s23, %s4506_s30  ;;  %p4511_p2 = scmp.lt.u32.totalorder %s8566_s23, %s8612_s2 }
 0x690   : > { %p4512_p4 = scmp.lt.u32.totalorder %s4510_s28, %s4506_s30  ;;  %p4514_p13 = scmp.lt.u32.totalorder %s4506_s30, %s8566_s23 }
 0x691   : > { %p4508_p8 = pnand %p4507_p3, %p9799_p1 }
 0x692   : > { %p4513_p6 = por %p4512_p4, %p4511_p2 }
 0x693   : > { %p4509_p0 = pneg %p4508_p8 }
 0x694   : > { %p4515_p12 = por %p4514_p13, %p4513_p6 }
 0x696   : > { %p4516_p10 = pnand %p4515_p12, %p4509_p0 }
 0x698   : > { %4519 = shalt.err (!%p4516_p10)
}
 0x699   : > { %4315 = dma.vmem_to_hbm [thread:$0]  (%p9799_p1), %s8568_s4, 16, %s8566_s23, %s4189_s29  }
 0x69a PF: > { %s4213_s27 = sand.u32 1, %s4550_s9   ;;  %p9800_p5 = scmp.ne.s32.totalorder %s8780_s22, 0 }
 0x69b   : > { %p9801_p7 = scmp.ge.s32.totalorder %s4562_s12, 2  ;;  %s4214_s25 = scalar_lea.sflag [#allocation6], %s4213_s27 }
 0x69d   : > { %p4325_p9 = pnand %p9801_p7, %p9800_p5 }
 0x69f   : > { %4545 = dma.done.wait (!%p4325_p9), %s4214_s25, 16  }
 0x6a0   : > { %4547 = vsyncadd (!%p4325_p9), %s4214_s25, 4294967280  ;;  %p18_p11 = scmp.ge.s32.totalorder %s4621_s15, 4   ;;  %s9802_s9 = smov %s4554_s10 }
 0x6a1   : > { %s9803_s10 = smov %s4558_s11  ;;  %s9804_s11 = smov %s4633_s18 }
 0x6a2   : > { %s9805_s12 = smov %s4621_s15  ;;  %20 = sbr.rel (!%p18_p11) target bundleno = 7 (0x7), region = 86 }
 0x6a9   :  { %4218 = vsyncpa [#allocation5], 1 }
 0x6aa   :  { %4220 = vsyncpa [#allocation5 + $0x1], 1 }
 0x6ab   :  { %4221 = vsyncpa [#allocation8], 1 }
 0x6ac   :  { %4223 = vsyncpa [#allocation8 + $0x1], 1 }
 0x6ad   :  { %4224 = vsyncpa [#allocation6], 1 }
 0x6ae   :  { %4226 = vsyncpa [#allocation6 + $0x1], 1 }

</bundles_post_ra>
